<compile_context>
chip_gen: v7x
topology: tpu7x:2x2x1
jax: 0.10.0
libtpu: 0.0.40
codegen_flags: <defaults>
</compile_context>

<pallas_src>
import functools

import jax
import jax.numpy as jnp
from jax import lax
from jax.experimental import pallas as pl
from jax.experimental.pallas import tpu as pltpu


# ----------------------------------------------------------------------------- kernel
def _regional_attn_kernel(q_ref, kc_ref, vc_ref, sel_ref, o_ref, *,
                          scale, base_ratio, prompt_len, num_segments):
    """Fused regional + base attention for one (batch, head, q-tile) grid cell.

    q_ref   : (1, 1, TQ, D)   bf16 queries
    kc_ref  : (1, 1, Lk, D)   bf16 combined keys   = cat([k] + regional_k) (seq axis)
    vc_ref  : (1, 1, Lk, D)   bf16 combined values = cat([v] + regional_v)
    sel_ref : (1, TQ, R+1)    f32 segment selector {0,1}; col 0 == global prompt
    o_ref   : (1, 1, TQ, D)   bf16 output
    """
    q = q_ref[0, 0]          # (TQ, D)   bf16
    kc = kc_ref[0, 0]        # (Lk, D)   bf16
    vc = vc_ref[0, 0]        # (Lk, D)   bf16

    # One QK^T for both branches; contract on dim_head directly (no transpose).
    s_full = lax.dot_general(q, kc, (((1,), (1,)), ((), ())),
                             preferred_element_type=jnp.float32) * scale   # (TQ, Lk) f32

    # Single row-max + single exp shared by the base and regional branches.
    m = jnp.max(s_full, axis=-1, keepdims=True)
    p_full = jnp.exp(s_full - m)                                           # (TQ, Lk) f32
    p16 = p_full.astype(vc.dtype)                                          # bf16 once

    tiny = jnp.float32(1e-30)

    if num_segments == 1:
        # No regions: regional and base branches are identical -> plain attention.
        l = jnp.sum(p_full, axis=-1, keepdims=True)
        o = lax.dot_general(p16, vc, (((1,), (0,)), ((), ())),
                            preferred_element_type=jnp.float32)
        o_ref[0, 0] = (o * pl.reciprocal(jnp.maximum(l, tiny), approx=True)
                       ).astype(o_ref.dtype)
        return

    sel = sel_ref[0]                                                       # (TQ, R+1)
    P = prompt_len
    tq, d = q.shape

    # Per-segment sums and PV contributions (column blocks are lane-aligned when P is a
    # multiple of 128).  Segment 0's unmasked contribution doubles as the base branch,
    # so no separate base matmul / exp / max is needed.
    l_r = jnp.zeros((tq, 1), jnp.float32)
    o_r = jnp.zeros((tq, d), jnp.float32)
    l_b = None
    o_b = None
    for r in range(num_segments):
        s_r = jnp.sum(p_full[:, r * P:(r + 1) * P], axis=-1, keepdims=True)   # (TQ, 1)
        o_seg = lax.dot_general(p16[:, r * P:(r + 1) * P], vc[r * P:(r + 1) * P],
                                (((1,), (0,)), ((), ())),
                                preferred_element_type=jnp.float32)           # (TQ, D)
        w = sel[:, r:r + 1]                                                   # (TQ, 1)
        l_r = l_r + w * s_r
        o_r = o_r + w * o_seg
        if r == 0:
            l_b, o_b = s_r, o_seg

    # Blend: out = regional * (1 - base_ratio) + base * base_ratio, with the
    # normalization (EUP reciprocal) absorbing the blend ratios.  The tiny floor guards
    # the shared-exp base branch against underflow (constant factor otherwise cancels).
    inv_r = pl.reciprocal(jnp.maximum(l_r, tiny), approx=True) * (1.0 - base_ratio)
    inv_b = pl.reciprocal(jnp.maximum(l_b, tiny), approx=True) * base_ratio
    o_ref[0, 0] = (o_r * inv_r + o_b * inv_b).astype(o_ref.dtype)


def _regional_attention_pallas(qb, kcb, vcb, sel, *, scale, base_ratio, prompt_len, tq):
    """qb/kcb/vcb: (B, H, *, D) bf16; sel: (B, S, R+1) f32. Returns (B, H, S, D) bf16."""
    B, H, S, D = qb.shape
    Lk = kcb.shape[2]
    nseg = sel.shape[-1]
    assert S % tq == 0

    kernel = functools.partial(_regional_attn_kernel, scale=scale,
                               base_ratio=base_ratio, prompt_len=prompt_len,
                               num_segments=nseg)
    return pl.pallas_call(
        kernel,
        out_shape=jax.ShapeDtypeStruct((B, H, S, D), jnp.bfloat16),
        grid_spec=pltpu.PrefetchScalarGridSpec(
            num_scalar_prefetch=0,
            grid=(B, H, S // tq),
            in_specs=[
                pl.BlockSpec((1, 1, tq, D), lambda b, h, i: (b, h, i, 0)),
                # combined K/V indexed only by (b, h): resident across the S tiles
                # TODO(synk): consider pipeline_mode=pl.Buffered(1) here on 64 MiB v7x.
                pl.BlockSpec((1, 1, Lk, D), lambda b, h, i: (b, h, 0, 0)),
                pl.BlockSpec((1, 1, Lk, D), lambda b, h, i: (b, h, 0, 0)),
                # compact selector, shared over heads
                pl.BlockSpec((1, tq, nseg), lambda b, h, i: (b, i, 0)),
            ],
            out_specs=pl.BlockSpec((1, 1, tq, D), lambda b, h, i: (b, h, i, 0)),
        ),
        compiler_params=pltpu.CompilerParams(
            dimension_semantics=("parallel", "parallel", "parallel"),
            vmem_limit_bytes=64 * 1024 * 1024),
    )(qb, kcb, vcb, sel)


# ----------------------------------------------------------------------------- glue
def _build_selector(region_masks, B, S):
    """Compact (B, S, R+1) {0,1} selector: col 0 = global prompt (no region hit),
    col r+1 = region r. Factored form of the torch (B, S, (R+1)*P) attention mask."""
    if not region_masks:
        return jnp.ones((B, S, 1), jnp.float32)
    masks = jnp.stack([m > 0.5 for m in region_masks], axis=-1)        # (B, S, R) bool
    global_m = jnp.sum(masks.astype(jnp.int32), axis=-1) == 0          # (B, S)
    return jnp.concatenate([global_m[..., None], masks], axis=-1).astype(jnp.float32)


def _to_bhsd(x):   # (S, B, H, D) -> (B, H, S, D)
    return jnp.transpose(x, (1, 2, 0, 3))


def _pick_tq(S, Lk):
    """Largest q-tile dividing S whose (TQ, Lk) f32 temporaries stay well under the
    scoped VMEM budget on every generation (v7x has only 64 MiB physical)."""
    budget = 6 * 1024 * 1024        # bytes allowed for ~2 live (TQ, Lk) f32 temporaries
    for cand in (512, 256, 128, 64, 32, 16, 8):
        if S % cand == 0 and 2 * cand * Lk * 4 <= budget:
            return cand
    return S


class RegionalAttentionOpPallas:
    """JAX/Pallas re-implementation of RegionalAttentionOp.forward (qkv_format='sbhd')."""

    def __init__(self, heads, dim_head, base_ratio=0.5):
        self.heads = heads
        self.dim_head = dim_head
        self.scale = dim_head ** (-0.5)
        self.base_ratio = base_ratio

    def __call__(self, q, k, v, regional_k=None, regional_v=None, region_masks=None):
        S, B, H, D = q.shape
        P = k.shape[0]

        if regional_k is None or regional_v is None or region_masks is None:
            # Plain attention path (specialized in-kernel: no blend, no second branch).
            kc, vc = k, v
            sel = jnp.ones((B, S, 1), dtype=jnp.float32)
        else:
            # TODO(synk): the trilinear-interpolation mask preprocessing
            # (F.interpolate to the hardcoded 16x44x80 video grid) is dataset-specific
            # host/JAX glue; here masks must already be flattened to (batch, seq_len).
            for m in region_masks:
                assert m.shape == (B, S), "region masks must be pre-flattened to (B, S)"
            kc = jnp.concatenate([k] + list(regional_k), axis=0)   # seq-axis concat
            vc = jnp.concatenate([v] + list(regional_v), axis=0)
            sel = _build_selector(region_masks, B, S)

        # bf16 operands for the MXU; cast BEFORE the layout transposes so they move
        # half the bytes.  Softmax / accumulation stay f32 in-kernel.
        qb = _to_bhsd(q.astype(jnp.bfloat16))
        kcb = _to_bhsd(kc.astype(jnp.bfloat16))
        vcb = _to_bhsd(vc.astype(jnp.bfloat16))

        out_bhsd = _regional_attention_pallas(
            qb, kcb, vcb, sel, scale=self.scale, base_ratio=self.base_ratio,
            prompt_len=P, tq=_pick_tq(S, kcb.shape[2]))

        # TE sbhd output convention: (S, B, H * D); stay in bf16 to halve writeback.
        return jnp.transpose(out_bhsd, (2, 0, 1, 3)).reshape(S, B, H * D)


# ----------------------------------------------------------------------------- reference
def _reference(q, k, v, regional_k, regional_v, region_masks, scale, base_ratio):
    # Reference uses the same bf16-rounded operands so the tolerance can stay tight.
    rt = lambda x: x.astype(jnp.bfloat16).astype(jnp.float32)
    S, B, H, D = q.shape
    P = k.shape[0]
    kc = jnp.concatenate([k] + list(regional_k), axis=0)
    vc = jnp.concatenate([v] + list(regional_v), axis=0)

    masks = jnp.stack([m > 0.5 for m in region_masks], axis=-1)        # (B, S, R)
    global_m = jnp.sum(masks.astype(jnp.int32), axis=-1) == 0          # (B, S)
    cols = [jnp.broadcast_to(global_m[..., None], (B, S, P))]
    for i in range(masks.shape[-1]):
        cols.append(jnp.broadcast_to(masks[..., i:i + 1], (B, S, P)))
    mask = jnp.concatenate(cols, axis=-1)                              # (B, S, Lk)

    qb, kcb, vcb = rt(_to_bhsd(q)), rt(_to_bhsd(kc)), rt(_to_bhsd(vc))
    kbb, vbb = rt(_to_bhsd(k)), rt(_to_bhsd(v))

    s = jnp.einsum("bhsd,bhld->bhsl", qb, kcb) * scale
    s = jnp.where(mask[:, None, :, :], s, -jnp.inf)
    o_reg = jnp.einsum("bhsl,bhld->bhsd", jax.nn.softmax(s, axis=-1), vcb)

    s2 = jnp.einsum("bhsd,bhpd->bhsp", qb, kbb) * scale
    o_b = jnp.einsum("bhsp,bhpd->bhsd", jax.nn.softmax(s2, axis=-1), vbb)

    out = o_reg * (1.0 - base_ratio) + o_b * base_ratio
    return jnp.transpose(out, (2, 0, 1, 3)).reshape(S, B, H * D)


# ----------------------------------------------------------------------------- main
if __name__ == "__main__":
    B, S, H, D = 2, 512, 2, 128        # batch, query seq, heads, head_dim
    P, R = 128, 2                      # prompt (kv) length, number of regions

    key = jax.random.PRNGKey(0)
    ks = jax.random.split(key, 10)
    q = jax.random.normal(ks[0], (S, B, H, D), jnp.float32)
    k = jax.random.normal(ks[1], (P, B, H, D), jnp.float32)
    v = jax.random.normal(ks[2], (P, B, H, D), jnp.float32)
    regional_k = [jax.random.normal(ks[3 + i], (P, B, H, D), jnp.float32) for i in range(R)]
    regional_v = [jax.random.normal(ks[5 + i], (P, B, H, D), jnp.float32) for i in range(R)]
    region_masks = [
        jax.random.bernoulli(ks[7 + i], 0.35, (B, S)).astype(jnp.float32) for i in range(R)
    ]

    op = RegionalAttentionOpPallas(heads=H, dim_head=D)
    out = op(q, k, v, regional_k, regional_v, region_masks)
    out = jax.block_until_ready(out)

    ref = _reference(q, k, v, regional_k, regional_v, region_masks,
                     scale=D ** (-0.5), base_ratio=0.5)

    out_f32 = out.astype(jnp.float32)
    assert out.shape == (S, B, H * D), out.shape
    assert out.dtype == jnp.bfloat16, out.dtype
    assert bool(jnp.all(jnp.isfinite(out_f32)))
    # bf16 output + bf16 probabilities + approx reciprocal vs f32 reference math.
    assert bool(jnp.allclose(out_f32, ref, atol=3e-2, rtol=3e-2)), float(
        jnp.max(jnp.abs(out_f32 - ref)))
    print("KERNEL_OK")
</pallas_src>

<mosaic_0001>
module attributes {stable_mosaic.version = 11 : i64} {
  func.func @_regional_attn_kernel(%arg0: i32, %arg1: i32, %arg2: i32, %arg3: memref<1x1x512x128xbf16, #tpu.memory_space<vmem>>, %arg4: memref<1x1x384x128xbf16, #tpu.memory_space<vmem>>, %arg5: memref<1x1x384x128xbf16, #tpu.memory_space<vmem>>, %arg6: memref<1x512x3xf32, #tpu.memory_space<vmem>>, %arg7: memref<1x1x512x128xbf16, #tpu.memory_space<vmem>>) attributes {dimension_semantics = [#tpu.dimension_semantics<parallel>, #tpu.dimension_semantics<parallel>, #tpu.dimension_semantics<parallel>], iteration_bounds = array<i64: 2, 2, 1>, scalar_prefetch = 0 : i64, scratch_operands = 0 : i64, tpu.core_type = #tpu.core_type<tc>, window_params = [{transform_indices = @transform_0, window_bounds = array<i64: 1, 1, 512, 128>}, {transform_indices = @transform_1, window_bounds = array<i64: 1, 1, 384, 128>}, {transform_indices = @transform_2, window_bounds = array<i64: 1, 1, 384, 128>}, {transform_indices = @transform_3, window_bounds = array<i64: 1, 512, 3>}, {transform_indices = @transform_4, window_bounds = array<i64: 1, 1, 512, 128>}]} {
    %c0 = arith.constant 0 : index
    %c0_0 = arith.constant 0 : index
    %c0_1 = arith.constant 0 : index
    %c0_2 = arith.constant 0 : index
    %0 = vector.load %arg3[%c0, %c0_0, %c0_1, %c0_2] : memref<1x1x512x128xbf16, #tpu.memory_space<vmem>>, vector<1x1x512x128xbf16>
    %1 = vector.shape_cast %0 : vector<1x1x512x128xbf16> to vector<512x128xbf16>
    %c0_3 = arith.constant 0 : index
    %c0_4 = arith.constant 0 : index
    %c0_5 = arith.constant 0 : index
    %c0_6 = arith.constant 0 : index
    %2 = vector.load %arg4[%c0_3, %c0_4, %c0_5, %c0_6] : memref<1x1x384x128xbf16, #tpu.memory_space<vmem>>, vector<1x1x384x128xbf16>
    %3 = vector.shape_cast %2 : vector<1x1x384x128xbf16> to vector<384x128xbf16>
    %c0_7 = arith.constant 0 : index
    %c0_8 = arith.constant 0 : index
    %c0_9 = arith.constant 0 : index
    %c0_10 = arith.constant 0 : index
    %4 = vector.load %arg5[%c0_7, %c0_8, %c0_9, %c0_10] : memref<1x1x384x128xbf16, #tpu.memory_space<vmem>>, vector<1x1x384x128xbf16>
    %5 = vector.shape_cast %4 : vector<1x1x384x128xbf16> to vector<384x128xbf16>
    %cst = arith.constant dense<0.000000e+00> : vector<512x384xf32>
    %6 = tpu.matmul %1, %3, %cst {dimension_numbers = #tpu.dot_dimension_numbers<[1], [1], [0], [0], [0, 0, 1, 0], [], []>} : vector<512x128xbf16>, vector<384x128xbf16>, vector<512x384xf32> -> vector<512x384xf32>
    %cst_11 = arith.constant 0.0883883461 : f32
    %7 = vector.broadcast %cst_11 : f32 to vector<512x384xf32>
    %8 = arith.mulf %6, %7 : vector<512x384xf32>
    %cst_12 = arith.constant dense<0xFF800000> : vector<512xf32>
    %9 = vector.multi_reduction <maximumf>, %8, %cst_12 [1] : vector<512x384xf32> to vector<512xf32>
    %10 = vector.shape_cast %9 : vector<512xf32> to vector<512x1xf32>
    %11 = vector.broadcast %10 : vector<512x1xf32> to vector<512x384xf32>
    %12 = arith.subf %8, %11 : vector<512x384xf32>
    %13 = math.exp %12 : vector<512x384xf32>
    %14 = arith.truncf %13 : vector<512x384xf32> to vector<512x384xbf16>
    %c0_13 = arith.constant 0 : index
    %c0_14 = arith.constant 0 : index
    %c0_15 = arith.constant 0 : index
    %15 = vector.load %arg6[%c0_13, %c0_14, %c0_15] : memref<1x512x3xf32, #tpu.memory_space<vmem>>, vector<1x512x3xf32>
    %16 = vector.shape_cast %15 : vector<1x512x3xf32> to vector<512x3xf32>
    %cst_16 = arith.constant 0.000000e+00 : f32
    %17 = vector.broadcast %cst_16 : f32 to vector<512x1xf32>
    %cst_17 = arith.constant 0.000000e+00 : f32
    %18 = vector.broadcast %cst_17 : f32 to vector<512x128xf32>
    %19 = vector.extract_strided_slice %13 {offsets = [0, 0], sizes = [512, 128], strides = [1, 1]} : vector<512x384xf32> to vector<512x128xf32>
    %cst_18 = arith.constant dense<0.000000e+00> : vector<512xf32>
    %20 = vector.multi_reduction <add>, %19, %cst_18 [1] : vector<512x128xf32> to vector<512xf32>
    %21 = vector.shape_cast %20 : vector<512xf32> to vector<512x1xf32>
    %22 = vector.extract_strided_slice %14 {offsets = [0, 0], sizes = [512, 128], strides = [1, 1]} : vector<512x384xbf16> to vector<512x128xbf16>
    %23 = vector.extract_strided_slice %5 {offsets = [0, 0], sizes = [128, 128], strides = [1, 1]} : vector<384x128xbf16> to vector<128x128xbf16>
    %cst_19 = arith.constant dense<0.000000e+00> : vector<512x128xf32>
    %24 = tpu.matmul %22, %23, %cst_19 {dimension_numbers = #tpu.dot_dimension_numbers<[1], [0], [0], [1], [0, 0, 1, 1], [], []>} : vector<512x128xbf16>, vector<128x128xbf16>, vector<512x128xf32> -> vector<512x128xf32>
    %25 = vector.extract_strided_slice %16 {offsets = [0, 0], sizes = [512, 1], strides = [1, 1]} : vector<512x3xf32> to vector<512x1xf32>
    %26 = arith.mulf %25, %21 : vector<512x1xf32>
    %27 = arith.addf %17, %26 : vector<512x1xf32>
    %28 = vector.broadcast %25 : vector<512x1xf32> to vector<512x128xf32>
    %29 = arith.mulf %28, %24 : vector<512x128xf32>
    %30 = arith.addf %18, %29 : vector<512x128xf32>
    %31 = vector.extract_strided_slice %13 {offsets = [0, 128], sizes = [512, 128], strides = [1, 1]} : vector<512x384xf32> to vector<512x128xf32>
    %cst_20 = arith.constant dense<0.000000e+00> : vector<512xf32>
    %32 = vector.multi_reduction <add>, %31, %cst_20 [1] : vector<512x128xf32> to vector<512xf32>
    %33 = vector.shape_cast %32 : vector<512xf32> to vector<512x1xf32>
    %34 = vector.extract_strided_slice %14 {offsets = [0, 128], sizes = [512, 128], strides = [1, 1]} : vector<512x384xbf16> to vector<512x128xbf16>
    %35 = vector.extract_strided_slice %5 {offsets = [128, 0], sizes = [128, 128], strides = [1, 1]} : vector<384x128xbf16> to vector<128x128xbf16>
    %cst_21 = arith.constant dense<0.000000e+00> : vector<512x128xf32>
    %36 = tpu.matmul %34, %35, %cst_21 {dimension_numbers = #tpu.dot_dimension_numbers<[1], [0], [0], [1], [0, 0, 1, 1], [], []>} : vector<512x128xbf16>, vector<128x128xbf16>, vector<512x128xf32> -> vector<512x128xf32>
    %37 = vector.extract_strided_slice %16 {offsets = [0, 1], sizes = [512, 1], strides = [1, 1]} : vector<512x3xf32> to vector<512x1xf32>
    %38 = arith.mulf %37, %33 : vector<512x1xf32>
    %39 = arith.addf %27, %38 : vector<512x1xf32>
    %40 = vector.broadcast %37 : vector<512x1xf32> to vector<512x128xf32>
    %41 = arith.mulf %40, %36 : vector<512x128xf32>
    %42 = arith.addf %30, %41 : vector<512x128xf32>
    %43 = vector.extract_strided_slice %13 {offsets = [0, 256], sizes = [512, 128], strides = [1, 1]} : vector<512x384xf32> to vector<512x128xf32>
    %cst_22 = arith.constant dense<0.000000e+00> : vector<512xf32>
    %44 = vector.multi_reduction <add>, %43, %cst_22 [1] : vector<512x128xf32> to vector<512xf32>
    %45 = vector.shape_cast %44 : vector<512xf32> to vector<512x1xf32>
    %46 = vector.extract_strided_slice %14 {offsets = [0, 256], sizes = [512, 128], strides = [1, 1]} : vector<512x384xbf16> to vector<512x128xbf16>
    %47 = vector.extract_strided_slice %5 {offsets = [256, 0], sizes = [128, 128], strides = [1, 1]} : vector<384x128xbf16> to vector<128x128xbf16>
    %cst_23 = arith.constant dense<0.000000e+00> : vector<512x128xf32>
    %48 = tpu.matmul %46, %47, %cst_23 {dimension_numbers = #tpu.dot_dimension_numbers<[1], [0], [0], [1], [0, 0, 1, 1], [], []>} : vector<512x128xbf16>, vector<128x128xbf16>, vector<512x128xf32> -> vector<512x128xf32>
    %49 = vector.extract_strided_slice %16 {offsets = [0, 2], sizes = [512, 1], strides = [1, 1]} : vector<512x3xf32> to vector<512x1xf32>
    %50 = arith.mulf %49, %45 : vector<512x1xf32>
    %51 = arith.addf %39, %50 : vector<512x1xf32>
    %52 = vector.broadcast %49 : vector<512x1xf32> to vector<512x128xf32>
    %53 = arith.mulf %52, %48 : vector<512x128xf32>
    %54 = arith.addf %42, %53 : vector<512x128xf32>
    %cst_24 = arith.constant 1.000000e-30 : f32
    %55 = vector.broadcast %cst_24 : f32 to vector<512x1xf32>
    %56 = arith.maximumf %51, %55 : vector<512x1xf32>
    %57 = tpu.reciprocal %56 {approx = true} : vector<512x1xf32> -> vector<512x1xf32>
    %cst_25 = arith.constant 5.000000e-01 : f32
    %58 = vector.broadcast %cst_25 : f32 to vector<512x1xf32>
    %59 = arith.mulf %57, %58 : vector<512x1xf32>
    %cst_26 = arith.constant 1.000000e-30 : f32
    %60 = vector.broadcast %cst_26 : f32 to vector<512x1xf32>
    %61 = arith.maximumf %21, %60 : vector<512x1xf32>
    %62 = tpu.reciprocal %61 {approx = true} : vector<512x1xf32> -> vector<512x1xf32>
    %cst_27 = arith.constant 5.000000e-01 : f32
    %63 = vector.broadcast %cst_27 : f32 to vector<512x1xf32>
    %64 = arith.mulf %62, %63 : vector<512x1xf32>
    %65 = vector.broadcast %59 : vector<512x1xf32> to vector<512x128xf32>
    %66 = arith.mulf %54, %65 : vector<512x128xf32>
    %67 = vector.broadcast %64 : vector<512x1xf32> to vector<512x128xf32>
    %68 = arith.mulf %24, %67 : vector<512x128xf32>
    %69 = arith.addf %66, %68 : vector<512x128xf32>
    %70 = arith.truncf %69 : vector<512x128xf32> to vector<512x128xbf16>
    %c0_28 = arith.constant 0 : index
    %c0_29 = arith.constant 0 : index
    %c0_30 = arith.constant 0 : index
    %c0_31 = arith.constant 0 : index
    %71 = vector.load %arg7[%c0_28, %c0_29, %c0_30, %c0_31] : memref<1x1x512x128xbf16, #tpu.memory_space<vmem>>, vector<1x1x512x128xbf16>
    %72 = vector.shape_cast %71 : vector<1x1x512x128xbf16> to vector<512x128xbf16>
    %73 = vector.shape_cast %70 : vector<512x128xbf16> to vector<1x1x512x128xbf16>
    tpu.vector_store %arg7[%c0_28, %c0_29, %c0_30, %c0_31], %73 {strides = array<i32>} : memref<1x1x512x128xbf16, #tpu.memory_space<vmem>>, vector<1x1x512x128xbf16>,
    return
  }
  func.func @transform_0(%arg0: i32, %arg1: i32, %arg2: i32) -> (i32, i32, i32, i32) {
    %c0_i32 = arith.constant 0 : i32
    %c0_i32_0 = arith.constant 0 : i32
    return %arg0, %arg1, %arg2, %c0_i32 : i32, i32, i32, i32
  }
  func.func @transform_1(%arg0: i32, %arg1: i32, %arg2: i32) -> (i32, i32, i32, i32) {
    %c0_i32 = arith.constant 0 : i32
    %c0_i32_0 = arith.constant 0 : i32
    %c0_i32_1 = arith.constant 0 : i32
    return %arg0, %arg1, %c0_i32, %c0_i32_0 : i32, i32, i32, i32
  }
  func.func @transform_2(%arg0: i32, %arg1: i32, %arg2: i32) -> (i32, i32, i32, i32) {
    %c0_i32 = arith.constant 0 : i32
    %c0_i32_0 = arith.constant 0 : i32
    %c0_i32_1 = arith.constant 0 : i32
    return %arg0, %arg1, %c0_i32, %c0_i32_0 : i32, i32, i32, i32
  }
  func.func @transform_3(%arg0: i32, %arg1: i32, %arg2: i32) -> (i32, i32, i32) {
    %c0_i32 = arith.constant 0 : i32
    %c0_i32_0 = arith.constant 0 : i32
    return %arg0, %arg2, %c0_i32 : i32, i32, i32
  }
  func.func @transform_4(%arg0: i32, %arg1: i32, %arg2: i32) -> (i32, i32, i32, i32) {
    %c0_i32 = arith.constant 0 : i32
    %c0_i32_0 = arith.constant 0 : i32
    return %arg0, %arg1, %arg2, %c0_i32 : i32, i32, i32, i32
  }
}

</mosaic_0001>

<bundles_post_ra>
// kernel: tpu_custom_call.1
= control target key start
LH: loop header
LB: loop body
LE: loop exit
PB: predicated region body
PF: predicated region fallthrough
CT: control target
= control target key end

     0   :  { %s15516_s0 = inlined_call_operand.hbm [shape: bf16[2,2,512,128], index: 0, kind: input, shape index: {}]   ;;  %s15517_s1 = inlined_call_operand.hbm [shape: bf16[2,2,384,128], index: 1, kind: input, shape index: {}]   ;;  %s15518_s2 = inlined_call_operand.hbm [shape: bf16[2,2,384,128], index: 2, kind: input, shape index: {}]   ;;  %s15519_s3 = inlined_call_operand.hbm [shape: f32[2,512,3], index: 3, kind: input, shape index: {}]   ;;  %s15520_s4 = inlined_call_operand.hbm [shape: bf16[2,2,512,128], index: 4, kind: output, shape index: {}]  }
   0x1   :  { %15976 = sst [smem:[#allocation428_spill]] %s15517_s1 }
   0x2   :  { %15977 = sst [smem:[#allocation429_spill]] %s15519_s3 }
   0x3   :  { %15978 = sst [smem:[#allocation430_spill]] %s15520_s4 }
   0x4   :  { %9 = vsyncpa [#allocation3], 0 }
   0x5   :  { %11 = vsyncpa [#allocation3 + $0x1], 0 }
   0x6   :  { %12 = vsyncpa [#allocation6], 0 }
   0x7   :  { %14 = vsyncpa [#allocation6 + $0x1], 0 }
   0x8   :  { %15 = vsyncpa [#allocation9], 0 }
   0x9   :  { %17 = vsyncpa [#allocation9 + $0x1], 0 }
   0xa   :  { %18 = vsyncpa [#allocation4], 0 }
   0xb   :  { %20 = vsyncpa [#allocation4 + $0x1], 0  ;;  %s9895_s15 = smov 0   ;;  %s9897_s16 = smov 0  }
   0xc   :  { %s9899_s17 = smov 0   ;;  %s9901_s18 = smov 0  }
   0xd   :  { %s9903_s19 = smov 0   ;;  %s9905_s20 = smov 0  }
   0xe   :  { %s9907_s21 = smov 0   ;;  %s9909_s22 = smov 0  }
   0xf   :  { %s9911_s23 = smov 0   ;;  %s9913_s24 = smov 0  }
  0x10   :  { %s9915_s25 = smov 0  }
  0x11 LB: > { %15979 = sst [smem:[#allocation15_spill]] %s9812_s15  ;;  %s9951_s26 = sadd.s32 4294967295, %s9852_s25   ;;  %s9852_s25 = sphi %s9915_s25, %s26_s25   ;;  %s9848_s24 = sphi %s9913_s24, %s17722_s24   ;;  %s9844_s23 = sphi %s9911_s23, %s17721_s23   ;;  %s9840_s22 = sphi %s9909_s22, %s17720_s22   ;;  %s9836_s21 = sphi %s9907_s21, %s17719_s21   ;;  %s9832_s20 = sphi %s9905_s20, %s17711_s20   ;;  %s9828_s19 = sphi %s9903_s19, %s17718_s19   ;;  %s9824_s18 = sphi %s9901_s18, %s17717_s18   ;;  %s9820_s17 = sphi %s9899_s17, %s17716_s17   ;;  %s9816_s16 = sphi %s9897_s16, %s17715_s16   ;;  %s9812_s15 = sphi %s9895_s15, %s17714_s15  }
  0x12   : > { %15980 = sst [smem:[#allocation16_spill]] %s9832_s20  ;;  %s7616_s27 = sadd.s32 4294967294, %s9852_s25  }
  0x13   : > { %15981 = sst [smem:[#allocation17_spill]] %s9836_s21  ;;  %s41_s28 = sadd.s32 1, %s9844_s23 }
  0x14   : > { %15982 = sst [smem:[#allocation18_spill]] %s9840_s22  ;;  %s45_s29 = sadd.s32 1, %s9848_s24 }
  0x15   : > { %p43_p0 = scmp.ge.s32.totalorder %s41_s28, 2  ;;  %s56_s30 = sadd.s32 1, %s9832_s20 }
  0x16   : > { %p63_p1 = scmp.ne.s32.totalorder %s9832_s20, %s9828_s19  ;;  %p15529_p2 = scmp.eq.s32.totalorder %s9852_s25, 0 }
  0x17   : > { %s17724_s28 = smov (%p43_p0, %s41_s28), 0  ;;  %s17726_s29 = smov (!%p43_p0, %s45_s29), %s9848_s24 }
  0x18   : > { %15983 = sst [smem:[#allocation19_spill]] %s17724_s28  ;;  %s50_s5 = ssub.s32 %s9844_s23, %s17724_s28 }
  0x19   : > { %p9967_p3 = por %p15529_p2, %p63_p1  ;;  %p47_p4 = scmp.ge.s32.totalorder %s17726_s29, 2 }
  0x1a   : > { %p15530_p5 = scmp.ne.s32.totalorder %s9828_s19, %s9824_s18  ;;  %p181_p6 = scmp.eq.s32.totalorder %s9951_s26, 3 }
  0x1b   : > { %p187_p7 = scmp.eq.s32.totalorder %s7616_s27, 3  ;;  %s17728_s29 = smov (%p47_p4, %s17726_s29), 0 }
  0x1c   : > { %15985 = sst [smem:[#allocation20_spill]] %s17728_s29  ;;  %p9976_p8 = por %p181_p6, %p63_p1 }
  0x1d   : > { %p9983_p9 = por %p187_p7, %p15530_p5  ;;  %s9989_s9 = ssub.s32 %s9848_s24, %s17728_s29 }
  0x1e   : > { %s15986_s7 = scalar_select %p9976_p8, 1, 0 }
  0x1f   : > { %s15988_s8 = scalar_select %p9983_p9, 1, 0 }
  0x20   : > { %15987 = sst [smem:[#allocation21_spill]] %s15986_s7  ;;  %s51_s10 = sor.u32 %s50_s5, %s9989_s9 }
  0x21   : > { %15989 = sst [smem:[#allocation22_spill]] %s15988_s8  ;;  %p15528_p10 = scmp.lt.s32.totalorder %s9852_s25, 4 }
  0x22   : > { %p54_p11 = scmp.eq.s32.totalorder %s51_s10, 0  ;;  %s9994_s11 = sand.u32 1, %s9832_s20  }
  0x23   : > { %p10000_p12 = pnand %p15528_p10, %p9967_p3  ;;  %s232_s14 = sand.u32 1, %s9852_s25  }
  0x24   : > { %s10005_s13 = scalar_select %p54_p11, %s9832_s20, %s56_s30  }
  0x25   : > { %s15527_s27 = smul.u32 192, %s9994_s11  ;;  %s15992_s1 = sld [smem:[#allocation428_spill]] }
  0x26   : > { %15991 = sst [smem:[#allocation23_spill]] %s10005_s13  ;;  %s8599_s29 = smul.u32 48, %s9844_s23 }
  0x27   : > { %s8600_s5 = smul.u32 96, %s9848_s24  ;;  %s236_s28 = scalar_lea.vmem [#allocation5], %s15527_s27 }
  0x28   : > { %s245_s10 = sshll.u32 %s236_s28, 4  ;;  %s10027_s28 = scalar_lea.sflag [#allocation6], %s232_s14  ;;  %s10014_s10 = int_to_ptr.vmem [resolvable:$true] %s245_s10 }
  0x29   : > { %s242_s8 = sadd.s32 %s8600_s5, %s8599_s29  ;;  %p10033_p3 = pneg %p10000_p12 }
  0x2a   : > { %s7623_s6 = sshll.u32 %s242_s8, 6 }
  0x2b   : > { %s10020_s22 = scalar_lea.hbm %s15992_s1, %s7623_s6  ;;  %s10025_s27 = scalar_lea.hbm %s15518_s2, %s7623_s6 }
  0x2c   : > { %s9602_s29 = scalar_lea.hbm %s10020_s22, 3072  ;;  %s9607_s13 = scalar_lea.hbm %s15992_s1, 12288 }
  0x2d   : > { %p9603_p1 = scmp.ne.s32.totalorder %s10020_s22, %s9602_s29  ;;  %p9608_p7 = scmp.lt.u32.totalorder %s10020_s22, %s15992_s1 }
  0x2e   : > { %p9609_p11 = scmp.lt.u32.totalorder %s9607_s13, %s9602_s29  ;;  %p9611_p2 = scmp.lt.u32.totalorder %s9602_s29, %s10020_s22 }
  0x2f   : > { %p9605_p4 = pnand %p10033_p3, %p9603_p1 }
  0x30   : > { %p9610_p10 = por %p9609_p11, %p9608_p7 }
  0x31   : > { %p9606_p6 = pneg %p9605_p4 }
  0x32   : > { %p9612_p5 = por %p9611_p2, %p9610_p10 }
  0x34   : > { %p9613_p13 = pnand %p9612_p5, %p9606_p6 }
  0x36   : > { %9616 = shalt.err (!%p9613_p13)
}
  0x37   : > { %s9617_s14 = scalar_lea.vmem %s10014_s10, 3072  ;;  %s9854_s30 = smov [#allocation5]  }
  0x38   : > { %p9618_p1 = scmp.ne.s32.totalorder %s10014_s10, %s9617_s14  ;;  %s9622_s4 = sshll.u32 %s9854_s30, 4  ;;  %s9623_s4 = int_to_ptr.vmem [resolvable:$false] %s9622_s4 }
  0x39   : > { %s9624_s7 = scalar_lea.vmem %s9623_s4, 6144  ;;  %p9625_p9 = scmp.lt.s32.totalorder %s10014_s10, %s9623_s4 }
  0x3a   : > { %p9620_p4 = pnand %p9618_p1, %p10033_p3  ;;  %p9626_p8 = scmp.lt.s32.totalorder %s9624_s7, %s9617_s14 }
  0x3c   : > { %p9621_p0 = pneg %p9620_p4  ;;  %p9627_p7 = por %p9626_p8, %p9625_p9 }
  0x3e   : > { %p9628_p11 = pnand %p9627_p7, %p9621_p0 }
  0x40   : > { %9631 = shalt.err (!%p9628_p11)
}
  0x41   : > { %s9855_s29 = smov 64   ;;  %s9856_s13 = smov 4  }
  0x42   : > { %8621 = dma.hbm_to_vmem [thread:$0]  (!%p10000_p12), %s10020_s22, 3072, %s10014_s10, %s10027_s28, %s9855_s29, %s9855_s29, %s9856_s13  }
  0x43   : > { %p15994_p2 = scmp.lt.s32.totalorder %s9852_s25, 5  ;;  %p15995_p5 = scmp.ge.s32.totalorder %s9852_s25, 1 }
  0x44   : > { %s7619_s6 = sshll.u32 %s9994_s11, 8  ;;  %s7620_s14 = sshll.u32 %s9844_s23, 6 }
  0x45   : > { %p10064_p8 = pnand %p15995_p5, %p15994_p2  ;;  %s7621_s30 = sshll.u32 %s9848_s24, 7 }
  0x46   : > { %s219_s4 = sadd.s32 %s7621_s30, %s7620_s14  ;;  %s211_s7 = scalar_lea.vmem [#allocation2], %s7619_s6 }
  0x47   : > { %s15996_s5 = scalar_select %p10064_p8, 1, 0 }
  0x48   : > { %s222_s1 = sshll.u32 %s211_s7, 4  ;;  %s7622_s20 = sshll.u32 %s219_s4, 6  ;;  %s10071_s1 = int_to_ptr.vmem [resolvable:$true] %s222_s1 }
  0x49   : > { %s10076_s15 = scalar_lea.hbm %s15516_s0, %s7622_s20  ;;  %s208_s22 = scalar_lea.sflag [#allocation3], %s9994_s11 }
  0x4a   : > { %s9632_s10 = scalar_lea.hbm %s10076_s15, 4096  ;;  %s9637_s30 = scalar_lea.hbm %s15516_s0, 16384 }
  0x4b   : > { %p9633_p9 = scmp.ne.s32.totalorder %s10076_s15, %s9632_s10  ;;  %p9638_p0 = scmp.lt.u32.totalorder %s10076_s15, %s15516_s0 }
  0x4c   : > { %p9639_p6 = scmp.lt.u32.totalorder %s9637_s30, %s9632_s10  ;;  %p9641_p4 = scmp.lt.u32.totalorder %s9632_s10, %s10076_s15 }
  0x4d   : > { %p9635_p10 = pnand %p9633_p9, %p10033_p3 }
  0x4e   : > { %p9640_p1 = por %p9639_p6, %p9638_p0 }
  0x4f   : > { %p9636_p13 = pneg %p9635_p10 }
  0x50   : > { %p9642_p7 = por %p9641_p4, %p9640_p1 }
  0x52   : > { %p9643_p11 = pnand %p9642_p7, %p9636_p13 }
  0x54   : > { %9646 = shalt.err (!%p9643_p11)
}
  0x55   : > { %s9647_s3 = scalar_lea.vmem %s10071_s1, 4096  ;;  %s9857_s20 = smov [#allocation2]  }
  0x56   : > { %p9648_p2 = scmp.ne.s32.totalorder %s10071_s1, %s9647_s3  ;;  %s9652_s21 = sshll.u32 %s9857_s20, 4  ;;  %s9653_s21 = int_to_ptr.vmem [resolvable:$false] %s9652_s21 }
  0x57   : > { %s9654_s6 = scalar_lea.vmem %s9653_s21, 8192  ;;  %p9655_p10 = scmp.lt.s32.totalorder %s10071_s1, %s9653_s21 }
  0x58   : > { %p9650_p5 = pnand %p9648_p2, %p10033_p3  ;;  %p9656_p8 = scmp.lt.s32.totalorder %s9654_s6, %s9647_s3 }
  0x5a   : > { %p9651_p9 = pneg %p9650_p5  ;;  %p9657_p0 = por %p9656_p8, %p9655_p10 }
  0x5c   : > { %p9658_p6 = pnand %p9657_p0, %p9651_p9 }
  0x5e   : > { %9661 = shalt.err (!%p9658_p6)
}
  0x5f   : > { %8618 = dma.hbm_to_vmem [thread:$0]  (!%p10000_p12), %s10076_s15, 4096, %s10071_s1, %s208_s22, %s9855_s29, %s9855_s29, %s9856_s13  }
  0x60   : > { %s15997_s10 = smul.u32 192, %s9994_s11  ;;  %s9662_s4 = scalar_lea.hbm %s10025_s27, 3072 }
  0x61   : > { %p9663_p8 = scmp.ne.s32.totalorder %s10025_s27, %s9662_s4  ;;  %s9667_s20 = scalar_lea.hbm %s15518_s2, 12288 }
  0x62   : > { %s259_s14 = scalar_lea.vmem [#allocation7], %s15997_s10  ;;  %p9668_p4 = scmp.lt.u32.totalorder %s10025_s27, %s15518_s2 }
  0x63   : > { %s268_s30 = sshll.u32 %s259_s14, 4  ;;  %p9665_p13 = pnand %p9663_p8, %p10033_p3  ;;  %s10107_s30 = int_to_ptr.vmem [resolvable:$true] %s268_s30 }
  0x64   : > { %p9669_p7 = scmp.lt.u32.totalorder %s9667_s20, %s9662_s4  ;;  %p9671_p2 = scmp.lt.u32.totalorder %s9662_s4, %s10025_s27 }
  0x65   : > { %p9666_p1 = pneg %p9665_p13 }
  0x66   : > { %p9670_p11 = por %p9669_p7, %p9668_p4 }
  0x68   : > { %p9672_p5 = por %p9671_p2, %p9670_p11 }
  0x6a   : > { %p9673_p9 = pnand %p9672_p5, %p9666_p1 }
  0x6c   : > { %9676 = shalt.err (!%p9673_p9)
}
  0x6d   : > { %s9677_s1 = scalar_lea.vmem %s10107_s30, 3072  ;;  %s9858_s15 = smov [#allocation7]  }
  0x6e   : > { %p9678_p10 = scmp.ne.s32.totalorder %s10107_s30, %s9677_s1  ;;  %s9682_s11 = sshll.u32 %s9858_s15, 4  ;;  %s9683_s11 = int_to_ptr.vmem [resolvable:$false] %s9682_s11 }
  0x6f   : > { %s9684_s22 = scalar_lea.vmem %s9683_s11, 6144  ;;  %p9685_p8 = scmp.lt.s32.totalorder %s10107_s30, %s9683_s11 }
  0x70   : > { %p9680_p0 = pnand %p9678_p10, %p10033_p3  ;;  %p9686_p13 = scmp.lt.s32.totalorder %s9684_s22, %s9677_s1 }
  0x72   : > { %p9681_p6 = pneg %p9680_p0  ;;  %p9687_p4 = por %p9686_p13, %p9685_p8 }
  0x74   : > { %p9688_p7 = pnand %p9687_p4, %p9681_p6 }
  0x76   : > { %9691 = shalt.err (!%p9688_p7)
}
  0x77   : > { %s15998_s8 = sld [smem:[#allocation15_spill]]  ;;  %p70_p3 = scmp.eq.s32.totalorder %s9951_s26, 0 }
  0x78   : > { %8624 = dma.hbm_to_vmem [thread:$0]  (!%p10000_p12), %s10025_s27, 3072, %s10107_s30, %s10027_s28, %s9855_s29, %s9855_s29, %s9856_s13  }
  0x79   : > { %p138_p1 = scmp.eq.s32.totalorder %s9989_s9, 0  ;;  %s140_s12 = sadd.s32 1, %s9820_s17 }
  0x7a   : > { %p147_p11 = scmp.ne.s32.totalorder %s9820_s17, %s9816_s16  ;;  %p15999_p2 = scmp.ne.s32.totalorder %s9828_s19, %s9824_s18 }
  0x7b   : > { %s10149_s14 = scalar_select %p138_p1, %s9820_s17, %s140_s12  }
  0x7c   : > { %p10142_p5 = por %p70_p3, %p15999_p2  ;;  %p16001_p10 = scmp.eq.s32.totalorder %s9852_s25, 0 }
  0x7d   : > { %p153_p9 = scmp.ne.s32.totalorder %s9816_s16, %s15998_s8  ;;  %s278_s27 = sand.u32 1, %s9820_s17  }
  0x7e   : > { %p149_p0 = por %p147_p11, %p16001_p10  ;;  %s7782_s28 = sshll.u32 %s9848_s24, 13 }
  0x7f   : > { %p10153_p6 = por %p153_p9, %p70_p3  ;;  %s7625_s29 = sshll.u32 %s278_s27, 9 }
  0x80   : > { %s16003_s30 = sld [smem:[#allocation429_spill]]  ;;  %s282_s3 = scalar_lea.vmem [#allocation8], %s7625_s29 }
  0x81   : > { %s16002_s4 = scalar_select %p10153_p6, 1, 0 }
  0x82   : > { %s291_s20 = sshll.u32 %s282_s3, 4  ;;  %p16004_p12 = scmp.lt.s32.totalorder %s9852_s25, 4  ;;  %s10170_s20 = int_to_ptr.vmem [resolvable:$true] %s291_s20 }
  0x83   : > { %s10172_s6 = scalar_lea.sflag [#allocation9], %s278_s27 }
  0x84   : > { %p10166_p8 = pnand %p16004_p12, %p149_p0 }
  0x86   : > { %s10162_s7 = scalar_lea.hbm %s16003_s30, %s7782_s28  ;;  %p9694_p4 = pneg %p10166_p8 }
  0x87   : > { %s9692_s1 = scalar_lea.hbm %s10162_s7, 8192  ;;  %s9697_s22 = scalar_lea.hbm %s16003_s30, 16384 }
  0x88   : > { %p9693_p13 = scmp.ne.s32.totalorder %s10162_s7, %s9692_s1  ;;  %p9698_p1 = scmp.lt.u32.totalorder %s10162_s7, %s16003_s30 }
  0x89   : > { %p9699_p11 = scmp.lt.u32.totalorder %s9697_s22, %s9692_s1  ;;  %p9701_p9 = scmp.lt.u32.totalorder %s9692_s1, %s10162_s7 }
  0x8a   : > { %p9695_p7 = pnand %p9694_p4, %p9693_p13 }
  0x8b   : > { %p9700_p2 = por %p9699_p11, %p9698_p1 }
  0x8c   : > { %p9696_p3 = pneg %p9695_p7 }
  0x8d   : > { %p9702_p10 = por %p9701_p9, %p9700_p2 }
  0x8f   : > { %p9703_p0 = pnand %p9702_p10, %p9696_p3 }
  0x91   : > { %9706 = shalt.err (!%p9703_p0)
}
  0x92   : > { %s9707_s27 = scalar_lea.vmem %s10170_s20, 8192  ;;  %s9859_s28 = smov [#allocation8]  }
  0x93   : > { %p9708_p12 = scmp.ne.s32.totalorder %s10170_s20, %s9707_s27  ;;  %s9712_s29 = sshll.u32 %s9859_s28, 4  ;;  %s9713_s29 = int_to_ptr.vmem [resolvable:$false] %s9712_s29 }
  0x94   : > { %s9714_s9 = scalar_lea.vmem %s9713_s29, 16384  ;;  %p9715_p6 = scmp.lt.s32.totalorder %s10170_s20, %s9713_s29 }
  0x95   : > { %p9710_p13 = pnand %p9708_p12, %p9694_p4  ;;  %p9716_p1 = scmp.lt.s32.totalorder %s9714_s9, %s9707_s27 }
  0x97   : > { %p9711_p7 = pneg %p9710_p13  ;;  %p9717_p11 = por %p9716_p1, %p9715_p6 }
  0x99   : > { %p9718_p2 = pnand %p9717_p11, %p9711_p7 }
  0x9b   : > { %9721 = shalt.err (!%p9718_p2)
}
  0x9c   : > { %s9860_s13 = smov 128   ;;  %s9861_s3 = smov 8  }
  0x9d   : > { %8627 = dma.hbm_to_vmem [thread:$0]  (!%p10166_p8), %s10162_s7, 8192, %s10170_s20, %s10172_s6, %s9860_s13, %s9860_s13, %s9861_s3  }
  0x9e   : > { %p16006_p4 = scmp.ne.s32.totalorder %s15996_s5, 0 }
  0xa0   : > { %303 = sbr.rel (%p16006_p4) target bundleno = 2582 (0xa16), region = 36 }
  0xa7   : > { %s10203_s1 = sand.u32 1, %s9828_s19  }
  0xa8   : > { %s7629_s15 = sshll.u32 %s10203_s1, 8  ;;  %s306_s11 = scalar_lea.sflag [#allocation3], %s10203_s1 }
  0xa9   : > { %s10209_s22 = scalar_lea.vmem [#allocation2], %s7629_s15 }
  0xaa   : > { %9795 = dma.done.wait (%p10142_p5), %s306_s11, 4096  }
  0xab   : > { %9797 = vsyncadd (%p10142_p5), %s306_s11, 4294963200  ;;  %s314_s5 = sand.u32 1, %s9951_s26   ;;  %s8604_s7 = smul.u32 192, %s10203_s1 }
  0xac   : > { %s315_s20 = scalar_lea.sflag [#allocation6], %s314_s5 }
  0xad   : > { %s10217_s21 = scalar_lea.vmem [#allocation5], %s8604_s7 }
  0xae   : > { %9799 = dma.done.wait (%p10142_p5), %s315_s20, 6144  }
  0xaf   : > { %9801 = vsyncadd (%p10142_p5), %s315_s20, 4294961152  ;;  %s332_s6 = sand.u32 1, %s9816_s16   ;;  %s10224_s12 = scalar_lea.vmem [#allocation7], %s8604_s7 }
  0xb0   : > { %s7630_s8 = sshll.u32 %s332_s6, 9  ;;  %s333_s27 = scalar_lea.sflag [#allocation9], %s332_s6 }
  0xb1   : > { %s10226_s28 = scalar_lea.vmem [#allocation8], %s7630_s8  ;;  %p16007_p6 = scmp.ne.s32.totalorder %s16002_s4, 0 }
  0xb3   : > { %9803 = dma.done.wait (%p16007_p6), %s333_s27, 8192  }
  0xb4   : > { %9805 = vsyncadd (%p16007_p6), %s333_s27, 4294959104  ;;  %v15535_v0 = vmov 0   ;;  %v2639_v1 = vld [vmem:[%s10226_s28 + $0x8] sm:$0xff]  ;;  %v8740_v2 = vld [vmem:[%s10217_s21 + $0x40] sm:$0xff]   ;;  %v9863_v14 = vmov 1   ;;  %s9864_s26 = smov 127  }
  0xb5   : > { %8733 = vset.pattern.permute.xlu1 %v15535_v0  ;;  %v8741_v3 = vld [vmem:[%s10217_s21 + $0x80] sm:$0xff]   ;;  %8038 = vmatprep.subr.bf16.mxu0 %v8740_v2  ;;  %v10238_v5 = vld [vmem:[%s10226_s28 + $0x10] sm:$0xff]  ;;  %v8743_v6 = vld [vmem:[%s10217_s21 + $0x48] sm:$0xff]   ;;  %s9865_s10 = smov 126   ;;  %s14936_s4 = scalar_lea.vmem [#allocation10], %s7629_s15 }
  0xb6   : > { %3302 = vperm.xlu1 %8733, %v2639_v1   ;;  %v8742_v4 = vld [vmem:[%s10217_s21] sm:$0xff]   ;;  %8278 = vmatprep.subr.bf16.mxu1 %v8741_v3  ;;  %v8744_v7 = vld [vmem:[%s10217_s21 + $0x88] sm:$0xff]   ;;  %v10244_v8 = vld [vmem:[%s10226_s28 + $0x18] sm:$0xff]  ;;  %s17695_s29 = sld [smem:[#allocation17_spill]]  ;;  %s17697_s9 = sld [smem:[#allocation18_spill]] }
  0xb7   : > { %8039 = vmatpush3.bf16.xpose.msra.mxu0 %v8742_v4  ;;  %8279 = vmatpush3.bf16.xpose.msra.mxu1 %v8741_v3  ;;  %v8745_v9 = vld [vmem:[%s10217_s21 + $0x8] sm:$0xff]   ;;  %v2642_v10 = vld [vmem:[%s10226_s28 + $0x20] sm:$0xff]  ;;  %v8746_v11 = vld [vmem:[%s10217_s21 + $0x50] sm:$0xff]   ;;  %s17702_s11 = sld [smem:[#allocation21_spill]] }
  0xb8   : > { %8040 = vmatprep.subr.bf16.mxu0 %v8743_v6  ;;  %8280 = vmatprep.subr.bf16.mxu1 %v8744_v7  ;;  %v8747_v12 = vld [vmem:[%s10217_s21 + $0x90] sm:$0xff]   ;;  %v10252_v13 = vld [vmem:[%s10226_s28 + $0x28] sm:$0xff]  ;;  %v8749_v17 = vld [vmem:[%s10217_s21 + $0x58] sm:$0xff]  }
  0xb9   : > { %8735 = vset.pattern.permute.xlu0 %v9863_v14  ;;  %v8748_v15 = vld [vmem:[%s10217_s21 + $0x10] sm:$0xff]   ;;  %v8750_v18 = vld [vmem:[%s10217_s21 + $0x98] sm:$0xff]   ;;  %v2646_v21 = vld [vmem:[%s10226_s28 + $0x40] sm:$0xff] }
  0xba   : > { %3307 = vperm.xlu1 %8733, %v10238_v5   ;;  %4597 = vperm.xlu0 %8735, %v2639_v1   ;;  %v2644_v16 = vld [vmem:[%s10226_s28 + $0x30] sm:$0xff]  ;;  %v10261_v19 = vld [vmem:[%s10226_s28 + $0x38] sm:$0xff]  ;;  %v8752_v22 = vld [vmem:[%s10217_s21 + $0x60] sm:$0xff]  }
  0xbb   : > { %v8751_v20 = vld [vmem:[%s10217_s21 + $0x18] sm:$0xff]   ;;  %v8753_v23 = vld [vmem:[%s10217_s21 + $0xa0] sm:$0xff]   ;;  %v2648_v25 = vld [vmem:[%s10226_s28 + $0x50] sm:$0xff] }
  0xbc   : > { %v8764_v24 = vld [vmem:[%s10209_s22] sm:$0xff]   ;;  %v8755_v27 = vld [vmem:[%s10217_s21 + $0x68] sm:$0xff]   ;;  %v2652_v30 = vld [vmem:[%s10226_s28 + $0x70] sm:$0xff]  ;;  %s7777_s13 = sshll.u32 %s17695_s29, 6  ;;  %s7778_s3 = sshll.u32 %s17697_s9, 7 }
  0xbd   : > { %8054 = vmatprep.mubr.bf16.mxu0 %v8764_v24  ;;  %8294 = vmatprep.mubr.bf16.mxu1 %v8764_v24  ;;  %v8754_v26 = vld [vmem:[%s10217_s21 + $0x20] sm:$0xff]   ;;  %v8756_v29 = vld [vmem:[%s10217_s21 + $0xa8] sm:$0xff]   ;;  %v8758_v33 = vld [vmem:[%s10217_s21 + $0x70] sm:$0xff]   ;;  %s7440_s15 = sadd.s32 %s7778_s3, %s7777_s13  ;;  %p17707_p8 = scmp.ne.s32.totalorder %s17702_s11, 0 }
  0xbe   : > { %3312 = vperm.xlu1 %8733, %v10244_v8   ;;  %4609 = vperm.xlu0 %8735, %v2642_v10   ;;  %v2650_v28 = vld [vmem:[%s10226_s28 + $0x60] sm:$0xff]  ;;  %v8757_v31 = vld [vmem:[%s10217_s21 + $0x28] sm:$0xff]   ;;  %v8759_v34 = vld [vmem:[%s10217_s21 + $0xb0] sm:$0xff]   ;;  %s7779_s5 = sshll.u32 %s7440_s15, 6 }
  0xbf   : > { %8041 = vmatpush3.bf16.xpose.msra.mxu0 %v8745_v9  ;;  %8281 = vmatpush3.bf16.xpose.msra.mxu1 %v8744_v7  ;;  %v2654_v32 = vld [vmem:[%s10226_s28 + $0x80] sm:$0xff]  ;;  %v2656_v35 = vld [vmem:[%s10226_s28 + $0x90] sm:$0xff]  ;;  %v8761_v37 = vld [vmem:[%s10217_s21 + $0x78] sm:$0xff]  }
  0xc0   : > { %8042 = vmatprep.subr.bf16.mxu0 %v8746_v11  ;;  %8282 = vmatprep.subr.bf16.mxu1 %v8747_v12  ;;  %v8760_v36 = vld [vmem:[%s10217_s21 + $0x30] sm:$0xff]   ;;  %v2658_v38 = vld [vmem:[%s10226_s28 + $0xa0] sm:$0xff]  ;;  %v8762_v39 = vld [vmem:[%s10217_s21 + $0xb8] sm:$0xff]  }
  0xc1   : > { %v2660_v40 = vld [vmem:[%s10226_s28 + $0xb0] sm:$0xff]  ;;  %v8763_v41 = vld [vmem:[%s10217_s21 + $0x38] sm:$0xff]   ;;  %v2662_v42 = vld [vmem:[%s10226_s28 + $0xc0] sm:$0xff]  ;;  %s17705_s21 = sld [smem:[#allocation430_spill]] }
  0xc2   : > { %3317 = vperm.xlu1 %8733, %v2642_v10   ;;  %4617 = vperm.xlu0 %8735, %v2644_v16   ;;  %v2664_v43 = vld [vmem:[%s10226_s28 + $0xd0] sm:$0xff]  ;;  %v8765_v44 = vld [vmem:[%s10209_s22 + $0x8] sm:$0xff]   ;;  %v2666_v45 = vld [vmem:[%s10226_s28 + $0xe0] sm:$0xff] }
  0xc3   : > { %v8766_v46 = vld [vmem:[%s10209_s22 + $0x10] sm:$0xff]   ;;  %v8767_v48 = vld [vmem:[%s10209_s22 + $0x18] sm:$0xff]   ;;  %v2670_v49 = vld [vmem:[%s10226_s28 + $0x100] sm:$0xff] }
  0xc4   : > { %v2668_v47 = vld [vmem:[%s10226_s28 + $0xf0] sm:$0xff]  ;;  %v8768_v50 = vld [vmem:[%s10209_s22 + $0x20] sm:$0xff]   ;;  %v8769_v52 = vld [vmem:[%s10209_s22 + $0x28] sm:$0xff]  }
  0xc5   : > { %v2672_v51 = vld [vmem:[%s10226_s28 + $0x110] sm:$0xff]  ;;  %v2674_v53 = vld [vmem:[%s10226_s28 + $0x120] sm:$0xff]  ;;  %v8771_v56 = vld [vmem:[%s10209_s22 + $0x38] sm:$0xff]  }
  0xc6   : > { %3322 = vperm.xlu1 %8733, %v10252_v13   ;;  %4625 = vperm.xlu0 %8735, %v2646_v21   ;;  %v8770_v54 = vld [vmem:[%s10209_s22 + $0x30] sm:$0xff]   ;;  %v2678_v57 = vld [vmem:[%s10226_s28 + $0x140] sm:$0xff]  ;;  %v8773_v60 = vld [vmem:[%s10209_s22 + $0x48] sm:$0xff]  }
  0xc7   : > { %8043 = vmatpush3.bf16.xpose.msra.mxu0 %v8748_v15  ;;  %8283 = vmatpush3.bf16.xpose.msra.mxu1 %v8747_v12  ;;  %v2676_v55 = vld [vmem:[%s10226_s28 + $0x130] sm:$0xff]  ;;  %v8772_v58 = vld [vmem:[%s10209_s22 + $0x40] sm:$0xff]   ;;  %v10312_v1 = vld [vmem:[%s10209_s22 + $0x58] sm:$0xff]   ;;  %s17706_s6 = smov %s17705_s21  ;;  %s15452_s8 = scalar_lea.hbm %s17705_s21, %s7779_s5 }
  0xc8   : > { %8044 = vmatprep.subr.bf16.mxu0 %v8749_v17  ;;  %8284 = vmatprep.subr.bf16.mxu1 %v8750_v18  ;;  %v2680_v59 = vld [vmem:[%s10226_s28 + $0x150] sm:$0xff]  ;;  %v2682_v61 = vld [vmem:[%s10226_s28 + $0x160] sm:$0xff]  ;;  %v10322_v6 = vld [vmem:[%s10209_s22 + $0x68] sm:$0xff]  }
  0xc9   : > { %v10307_v62 = vld [vmem:[%s10209_s22 + $0x50] sm:$0xff]   ;;  %v2686_v2 = vld [vmem:[%s10226_s28 + $0x180] sm:$0xff]  ;;  %v10332_v11 = vld [vmem:[%s10209_s22 + $0x78] sm:$0xff]  }
  0xca   : > { %3327 = vperm.xlu1 %8733, %v2644_v16   ;;  %4633 = vperm.xlu0 %8735, %v2648_v25   ;;  %v2684_v63 = vld [vmem:[%s10226_s28 + $0x170] sm:$0xff]  ;;  %v10316_v3 = vld [vmem:[%s10209_s22 + $0x60] sm:$0xff]  }
  0xcb   : > { %v2688_v4 = vld [vmem:[%s10226_s28 + $0x190] sm:$0xff]  ;;  %v2690_v7 = vld [vmem:[%s10226_s28 + $0x1a0] sm:$0xff] }
  0xcc   : > { %v10326_v9 = vld [vmem:[%s10209_s22 + $0x70] sm:$0xff]   ;;  %v2694_v12 = vld [vmem:[%s10226_s28 + $0x1c0] sm:$0xff] }
  0xcd   : > { %v2692_v10 = vld [vmem:[%s10226_s28 + $0x1b0] sm:$0xff]  ;;  %v10336_v15 = vld [vmem:[%s10209_s22 + $0x80] sm:$0xff]  }
  0xce   : > { %3332 = vperm.xlu1 %8733, %v10261_v19   ;;  %4641 = vperm.xlu0 %8735, %v2650_v28   ;;  %v2696_v16 = vld [vmem:[%s10226_s28 + $0x1d0] sm:$0xff] }
  0xcf   : > { %8045 = vmatpush3.bf16.xpose.msra.mxu0 %v8751_v20  ;;  %8285 = vmatpush3.bf16.xpose.msra.mxu1 %v8750_v18  ;;  %v10344_v18 = vld [vmem:[%s10209_s22 + $0x88] sm:$0xff]   ;;  %v2698_v20 = vld [vmem:[%s10226_s28 + $0x1e0] sm:$0xff] }
  0xd0   : > { %8046 = vmatprep.subr.bf16.mxu0 %v8752_v22  ;;  %8286 = vmatprep.subr.bf16.mxu1 %v8753_v23 }
  0xd2   : > { %3337 = vperm.xlu1 %8733, %v2646_v21   ;;  %4649 = vperm.xlu0 %8735, %v2652_v30   ;;  %v10348_v21 = vld [vmem:[%s10209_s22 + $0x90] sm:$0xff]  }
  0xd6   : > { %3347 = vperm.xlu1 %8733, %v2648_v25   ;;  %4657 = vperm.xlu0 %8735, %v2654_v32  }
  0xd7   : > { %8047 = vmatpush3.bf16.xpose.msra.mxu0 %v8754_v26  ;;  %8287 = vmatpush3.bf16.xpose.msra.mxu1 %v8753_v23  ;;  %v2700_v23 = vld [vmem:[%s10226_s28 + $0x1f0] sm:$0xff]  ;;  %v10361_v26 = vld [vmem:[%s10209_s22 + $0xa0] sm:$0xff]  }
  0xd8   : > { %8048 = vmatprep.subr.bf16.mxu0 %v8755_v27  ;;  %8288 = vmatprep.subr.bf16.mxu1 %v8756_v29  ;;  %v2638_v27 = vld [vmem:[%s10226_s28] sm:$0xff] }
  0xda   : > { %3357 = vperm.xlu1 %8733, %v2650_v28   ;;  %4665 = vperm.xlu0 %8735, %v2656_v35  }
  0xde   : > { %3367 = vperm.xlu1 %8733, %v2652_v30   ;;  %4673 = vperm.xlu0 %8735, %v2658_v38  }
  0xdf   : > { %8049 = vmatpush3.bf16.xpose.msra.mxu0 %v8757_v31  ;;  %8289 = vmatpush3.bf16.xpose.msra.mxu1 %v8756_v29  ;;  %v10371_v29 = vld [vmem:[%s10209_s22 + $0xa8] sm:$0xff]   ;;  %v10377_v31 = vld [vmem:[%s10209_s22 + $0xb0] sm:$0xff]  }
  0xe0   : > { %8050 = vmatprep.subr.bf16.mxu0 %v8758_v33  ;;  %8290 = vmatprep.subr.bf16.mxu1 %v8759_v34  ;;  %v10393_v33 = vld [vmem:[%s10209_s22 + $0xc0] sm:$0xff]  }
  0xe2   : > { %3377 = vperm.xlu1 %8733, %v2654_v32   ;;  %4681 = vperm.xlu0 %8735, %v2660_v40  }
  0xe6   : > { %3387 = vperm.xlu1 %8733, %v2656_v35   ;;  %4689 = vperm.xlu0 %8735, %v2662_v42  }
  0xe7   : > { %8051 = vmatpush3.bf16.xpose.msra.mxu0 %v8760_v36  ;;  %8291 = vmatpush3.bf16.xpose.msra.mxu1 %v8759_v34  ;;  %v2649_v36 = vld [vmem:[%s10226_s28 + $0x58] sm:$0xff] }
  0xe8   : > { %8052 = vmatprep.subr.bf16.mxu0 %v8761_v37  ;;  %8292 = vmatprep.subr.bf16.mxu1 %v8762_v39  ;;  %v10412_v37 = vld [vmem:[%s10209_s22 + $0xd0] sm:$0xff]  }
  0xea   : > { %3397 = vperm.xlu1 %8733, %v2658_v38   ;;  %4697 = vperm.xlu0 %8735, %v2664_v43  }
  0xee   : > { %3407 = vperm.xlu1 %8733, %v2660_v40   ;;  %4705 = vperm.xlu0 %8735, %v2666_v45   ;;  %v2653_v40 = vld [vmem:[%s10226_s28 + $0x78] sm:$0xff] }
  0xef   : > { %8053 = vmatpush3.bf16.xpose.msra.mxu0 %v8763_v41  ;;  %8293 = vmatpush3.bf16.xpose.msra.mxu1 %v8762_v39  ;;  %v10424_v41 = vld [vmem:[%s10209_s22 + $0xd8] sm:$0xff]  }
  0xf2   : > { %3417 = vperm.xlu1 %8733, %v2662_v42   ;;  %4713 = vperm.xlu0 %8735, %v2668_v47  }
  0xf6   : > { %3427 = vperm.xlu1 %8733, %v2664_v43   ;;  %8055 = vmatmul.mubr.bf16.vlgmr.msra.gmra.mrb[0].mxu0 %v8764_v24  ;;  %v10356_v24 = vld [vmem:[%s10209_s22 + $0x98] sm:$0xff]   ;;  %v2655_v43 = vld [vmem:[%s10226_s28 + $0x88] sm:$0xff] }
  0xf7   : > { %8295 = vmatmul.mubr.bf16.vlgmr.msra.gmra.mrb[0].mxu1 %v8765_v44  ;;  %8056 = vmatprep.mubr.bf16.mxu0 %v8765_v44 }
  0xf8   : > { %8298 = vmatprep.mubr.bf16.mxu1 %v8766_v46 }
  0xfa   : > { %3437 = vperm.xlu1 %8733, %v2666_v45   ;;  %v2657_v45 = vld [vmem:[%s10226_s28 + $0x98] sm:$0xff] }
  0xfe   : > { %3447 = vperm.xlu1 %8733, %v2668_v47   ;;  %8057 = vmatmul.mubr.bf16.gmra.mrb[4].mxu0 %v8765_v44  ;;  %v2659_v47 = vld [vmem:[%s10226_s28 + $0xa8] sm:$0xff] }
  0xff   : > { %8299 = vmatmul.mubr.bf16.gmra.mrb[4].mxu1 %v8767_v48  ;;  %8058 = vmatprep.mubr.bf16.mxu0 %v8766_v46 }
 0x100   : > { %8302 = vmatprep.mubr.bf16.mxu1 %v8768_v50 }
 0x102   : > { %3457 = vperm.xlu1 %8733, %v2670_v49   ;;  %v2661_v49 = vld [vmem:[%s10226_s28 + $0xb8] sm:$0xff] }
 0x106   : > { %3467 = vperm.xlu1 %8733, %v2672_v51   ;;  %8059 = vmatmul.mubr.bf16.gmra.mrb[8].mxu0 %v8766_v46  ;;  %v2663_v51 = vld [vmem:[%s10226_s28 + $0xc8] sm:$0xff] }
 0x107   : > { %8303 = vmatmul.mubr.bf16.gmra.mrb[8].mxu1 %v8769_v52  ;;  %8060 = vmatprep.mubr.bf16.mxu0 %v8767_v48 }
 0x108   : > { %8306 = vmatprep.mubr.bf16.mxu1 %v8770_v54 }
 0x10a   : > { %3477 = vperm.xlu1 %8733, %v2674_v53   ;;  %v2665_v53 = vld [vmem:[%s10226_s28 + $0xd8] sm:$0xff] }
 0x10e   : > { %3487 = vperm.xlu1 %8733, %v2676_v55   ;;  %8061 = vmatmul.mubr.bf16.gmra.mrb[12].mxu0 %v8767_v48 }
 0x10f   : > { %8307 = vmatmul.mubr.bf16.gmra.mrb[12].mxu1 %v8771_v56  ;;  %8062 = vmatprep.mubr.bf16.mxu0 %v8768_v50 }
 0x110   : > { %8310 = vmatprep.mubr.bf16.mxu1 %v8772_v58 }
 0x112   : > { %3497 = vperm.xlu1 %8733, %v2678_v57  }
 0x116   : > { %3507 = vperm.xlu1 %8733, %v2680_v59   ;;  %8063 = vmatmul.mubr.bf16.gmra.mrb[16].mxu0 %v8768_v50  ;;  %v10444_v50 = vld [vmem:[%s10209_s22 + $0xe0] sm:$0xff]   ;;  %v10469_v59 = vld [vmem:[%s10209_s22 + $0xf0] sm:$0xff]  }
 0x117   : > { %8311 = vmatmul.mubr.bf16.gmra.mrb[16].mxu1 %v8773_v60  ;;  %8064 = vmatprep.mubr.bf16.mxu0 %v8769_v52 }
 0x118   : > { %8314 = vmatprep.mubr.bf16.mxu1 %v10307_v62 }
 0x11a   : > { %3517 = vperm.xlu1 %8733, %v2682_v61   ;;  %v10477_v61 = vld [vmem:[%s10209_s22 + $0xf8] sm:$0xff]  }
 0x11e   : > { %3527 = vperm.xlu1 %8733, %v2684_v63   ;;  %8065 = vmatmul.mubr.bf16.gmra.mrb[20].mxu0 %v8769_v52 }
 0x11f   : > { %8315 = vmatmul.mubr.bf16.gmra.mrb[20].mxu1 %v10312_v1  ;;  %8066 = vmatprep.mubr.bf16.mxu0 %v8770_v54 }
 0x120   : > { %8318 = vmatprep.mubr.bf16.mxu1 %v10316_v3 }
 0x122   : > { %3537 = vperm.xlu1 %8733, %v2686_v2  }
 0x126   : > { %3547 = vperm.xlu1 %8733, %v2688_v4   ;;  %8067 = vmatmul.mubr.bf16.gmra.mrb[24].mxu0 %v8770_v54  ;;  %v10454_v54 = vld [vmem:[%s10209_s22 + $0xe8] sm:$0xff]  }
 0x127   : > { %8319 = vmatmul.mubr.bf16.gmra.mrb[24].mxu1 %v10322_v6  ;;  %8068 = vmatprep.mubr.bf16.mxu0 %v8771_v56 }
 0x128   : > { %8322 = vmatprep.mubr.bf16.mxu1 %v10326_v9 }
 0x12a   : > { %3557 = vperm.xlu1 %8733, %v2690_v7  }
 0x12e   : > { %3567 = vperm.xlu1 %8733, %v2692_v10   ;;  %8069 = vmatmul.mubr.bf16.gmra.mrb[28].mxu0 %v8771_v56  ;;  %v2667_v56 = vld [vmem:[%s10226_s28 + $0xe8] sm:$0xff] }
 0x12f   : > { %8323 = vmatmul.mubr.bf16.gmra.mrb[28].mxu1 %v10332_v11  ;;  %8070 = vmatprep.mubr.bf16.mxu0 %v8772_v58 }
 0x130   : > { %8326 = vmatprep.mubr.bf16.mxu1 %v10336_v15 }
 0x132   : > { %3577 = vperm.xlu1 %8733, %v2694_v12  }
 0x135   : > { %v10341_v17 = vpop.permute.xlu1 %3302 }
 0x136   : > { %16008 = vst [vmem:[#allocation24_spill] sm:$0xff] %v10341_v17  ;;  %3587 = vperm.xlu1 %8733, %v2696_v16   ;;  %8071 = vmatmul.mubr.bf16.gmra.mrb[32].mxu0 %v8772_v58 }
 0x137   : > { %8327 = vmatmul.mubr.bf16.gmra.mrb[32].mxu1 %v10344_v18  ;;  %8072 = vmatprep.mubr.bf16.mxu0 %v8773_v60 }
 0x138   : > { %8330 = vmatprep.mubr.bf16.mxu1 %v10348_v21 }
 0x139   : > { %v10351_v22 = vpop.permute.xlu1 %3307 }
 0x13a   : > { %16009 = vst [vmem:[#allocation25_spill] sm:$0xff] %v10351_v22  ;;  %3597 = vperm.xlu1 %8733, %v2698_v20  }
 0x13d   : > { %v10358_v25 = vpop.permute.xlu1 %3312 }
 0x13e   : > { %16010 = vst [vmem:[#allocation26_spill] sm:$0xff] %v10358_v25  ;;  %3607 = vperm.xlu1 %8733, %v2700_v23   ;;  %8073 = vmatmul.mubr.bf16.gmra.mrb[36].mxu0 %v8773_v60 }
 0x13f   : > { %8331 = vmatmul.mubr.bf16.gmra.mrb[36].mxu1 %v10356_v24  ;;  %8074 = vmatprep.mubr.bf16.mxu0 %v10307_v62 }
 0x140   : > { %8334 = vmatprep.mubr.bf16.mxu1 %v10361_v26 }
 0x141   : > { %v10365_v28 = vpop.permute.xlu1 %3317 }
 0x142   : > { %16011 = vst [vmem:[#allocation27_spill] sm:$0xff] %v10365_v28  ;;  %8734 = vset.pattern.permute.xlu1 %v9863_v14 }
 0x143   : > { %4593 = vperm.xlu1 %8734, %v2638_v27  }
 0x145   : > { %v10373_v30 = vpop.permute.xlu1 %3322 }
 0x146   : > { %16012 = vst [vmem:[#allocation28_spill] sm:$0xff] %v10373_v30  ;;  %8075 = vmatmul.mubr.bf16.gmra.mrb[40].mxu0 %v10307_v62 }
 0x147   : > { %4601 = vperm.xlu1 %8734, %v10238_v5   ;;  %8335 = vmatmul.mubr.bf16.gmra.mrb[40].mxu1 %v10371_v29  ;;  %v10389_v5 = vld [vmem:[%s10209_s22 + $0xb8] sm:$0xff]  }
 0x148   : > { %8076 = vmatprep.mubr.bf16.mxu0 %v10312_v1  ;;  %8338 = vmatprep.mubr.bf16.mxu1 %v10377_v31 }
 0x149   : > { %v10381_v32 = vpop.permute.xlu1 %3327 }
 0x14a   : > { %16013 = vst [vmem:[#allocation29_spill] sm:$0xff] %v10381_v32 }
 0x14b   : > { %4605 = vperm.xlu1 %8734, %v10244_v8   ;;  %v2647_v8 = vld [vmem:[%s10226_s28 + $0x48] sm:$0xff] }
 0x14d   : > { %v10386_v14 = vpop.permute.xlu1 %3332 }
 0x14e   : > { %16014 = vst [vmem:[#allocation30_spill] sm:$0xff] %v10386_v14  ;;  %8077 = vmatmul.mubr.bf16.gmra.mrb[44].mxu0 %v10312_v1 }
 0x14f   : > { %4613 = vperm.xlu1 %8734, %v10252_v13   ;;  %8339 = vmatmul.mubr.bf16.gmra.mrb[44].mxu1 %v10389_v5  ;;  %v10406_v13 = vld [vmem:[%s10209_s22 + $0xc8] sm:$0xff]   ;;  %s7443_s22 = sshll.u32 %s14936_s4, 4  ;;  %s15446_s22 = int_to_ptr.vmem [resolvable:$true] %s7443_s22 }
 0x150   : > { %8078 = vmatprep.mubr.bf16.mxu0 %v10316_v3  ;;  %8342 = vmatprep.mubr.bf16.mxu1 %v10393_v33  ;;  %s9722_s27 = scalar_lea.vmem %s15446_s22, 4096 }
 0x151   : > { %v10397_v34 = vpop.permute.xlu1 %3337  ;;  %p9723_p5 = scmp.ne.s32.totalorder %s15446_s22, %s9722_s27 }
 0x152   : > { %16015 = vst [vmem:[#allocation31_spill] sm:$0xff] %v10397_v34 }
 0x153   : > { %4621 = vperm.xlu1 %8734, %v10261_v19   ;;  %v2651_v19 = vld [vmem:[%s10226_s28 + $0x68] sm:$0xff]  ;;  %p9724_p3 = pnand %p9723_p5, %p17707_p8 }
 0x155   : > { %v10403_v35 = vpop.permute.xlu1 %3347  ;;  %p9725_p9 = pneg %p9724_p3 }
 0x156   : > { %16016 = vst [vmem:[#allocation32_spill] sm:$0xff] %v10403_v35  ;;  %8079 = vmatmul.mubr.bf16.gmra.mrb[48].mxu0 %v10316_v3 }
 0x157   : > { %4629 = vperm.xlu1 %8734, %v2647_v8   ;;  %8343 = vmatmul.mubr.bf16.gmra.mrb[48].mxu1 %v10406_v13 }
 0x158   : > { %8080 = vmatprep.mubr.bf16.mxu0 %v10322_v6  ;;  %8346 = vmatprep.mubr.bf16.mxu1 %v10412_v37 }
 0x159   : > { %v10414_v38 = vpop.permute.xlu1 %3357 }
 0x15a   : > { %16017 = vst [vmem:[#allocation33_spill] sm:$0xff] %v10414_v38 }
 0x15b   : > { %4637 = vperm.xlu1 %8734, %v2649_v36  }
 0x15d   : > { %v10419_v39 = vpop.permute.xlu1 %3367 }
 0x15e   : > { %16018 = vst [vmem:[#allocation34_spill] sm:$0xff] %v10419_v39  ;;  %8081 = vmatmul.mubr.bf16.gmra.mrb[52].mxu0 %v10322_v6 }
 0x15f   : > { %4645 = vperm.xlu1 %8734, %v2651_v19   ;;  %8082 = vmatprep.mubr.bf16.mxu0 %v10326_v9 }
 0x160   : > { %8347 = vmatmul.mubr.bf16.gmra.mrb[52].mxu1 %v10424_v41 }
 0x161   : > { %v10426_v42 = vpop.permute.xlu1 %3377  ;;  %8350 = vmatprep.mubr.bf16.mxu1 %v10444_v50 }
 0x162   : > { %16019 = vst [vmem:[#allocation35_spill] sm:$0xff] %v10426_v42  ;;  %v10696_v42 = vpop.permute.xlu0 %4597 }
 0x163   : > { %4653 = vperm.xlu1 %8734, %v2653_v40   ;;  %16056 = vst [vmem:[#allocation72_spill] sm:$0xff] %v10696_v42 }
 0x165   : > { %v10431_v44 = vpop.permute.xlu1 %3387 }
 0x166   : > { %16020 = vst [vmem:[#allocation36_spill] sm:$0xff] %v10431_v44  ;;  %8083 = vmatmul.mubr.bf16.gmra.mrb[56].mxu0 %v10326_v9  ;;  %v8810_v44 = vld [vmem:[%s10224_s12 + $0x38] sm:$0xff]   ;;  %v10730_v38 = vpop.permute.xlu0 %4609 }
 0x167   : > { %4661 = vperm.xlu1 %8734, %v2655_v43   ;;  %8084 = vmatprep.mubr.bf16.mxu0 %v10332_v11  ;;  %16062 = vst [vmem:[#allocation78_spill] sm:$0xff] %v10730_v38 }
 0x168   : > { %8351 = vmatmul.mubr.bf16.gmra.mrb[56].mxu1 %v10454_v54 }
 0x169   : > { %v10436_v46 = vpop.permute.xlu1 %3397  ;;  %8354 = vmatprep.mubr.bf16.mxu1 %v10469_v59 }
 0x16a   : > { %16021 = vst [vmem:[#allocation37_spill] sm:$0xff] %v10436_v46 }
 0x16b   : > { %4669 = vperm.xlu1 %8734, %v2657_v45  }
 0x16d   : > { %v10439_v48 = vpop.permute.xlu1 %3407 }
 0x16e   : > { %16022 = vst [vmem:[#allocation38_spill] sm:$0xff] %v10439_v48  ;;  %8085 = vmatmul.mubr.bf16.gmra.mrb[60].mxu0 %v10332_v11  ;;  %v8806_v48 = vld [vmem:[%s10224_s12 + $0x28] sm:$0xff]  }
 0x16f   : > { %4677 = vperm.xlu1 %8734, %v2659_v47   ;;  %8086 = vmatprep.mubr.bf16.mxu0 %v10336_v15 }
 0x170   : > { %8355 = vmatmul.mubr.bf16.gmra.mrb[60].mxu1 %v10477_v61 }
 0x171   : > { %v10449_v52 = vpop.permute.xlu1 %3417 }
 0x172   : > { %16023 = vst [vmem:[#allocation39_spill] sm:$0xff] %v10449_v52 }
 0x173   : > { %4685 = vperm.xlu1 %8734, %v2661_v49  }
 0x175   : > { %v10458_v55 = vpop.permute.xlu1 %3427 }
 0x176   : > { %8087 = vmatmul.mubr.bf16.gmra.mrb[64].mxu0 %v10336_v15  ;;  %16024 = vst [vmem:[#allocation40_spill] sm:$0xff] %v10458_v55  ;;  %v8805_v55 = vld [vmem:[%s10224_s12 + $0x60] sm:$0xff]  }
 0x177   : > { %4693 = vperm.xlu1 %8734, %v2663_v51   ;;  %8088 = vmatprep.mubr.bf16.mxu0 %v10344_v18 }
 0x179   : > { %v10463_v57 = vpop.permute.xlu1 %3437 }
 0x17a   : > { %16025 = vst [vmem:[#allocation41_spill] sm:$0xff] %v10463_v57 }
 0x17b   : > { %4701 = vperm.xlu1 %8734, %v2665_v53  }
 0x17d   : > { %v10465_v58 = vpop.permute.xlu1 %3447 }
 0x17e   : > { %8089 = vmatmul.mubr.bf16.gmra.mrb[68].mxu0 %v10344_v18  ;;  %16026 = vst [vmem:[#allocation42_spill] sm:$0xff] %v10465_v58 }
 0x17f   : > { %4709 = vperm.xlu1 %8734, %v2667_v56   ;;  %8090 = vmatprep.mubr.bf16.mxu0 %v10348_v21 }
 0x181   : > { %v10473_v60 = vpop.permute.xlu1 %3457 }
 0x182   : > { %16027 = vst [vmem:[#allocation43_spill] sm:$0xff] %v10473_v60 }
 0x185   : > { %v10481_v62 = vpop.permute.xlu1 %3467 }
 0x186   : > { %8091 = vmatmul.mubr.bf16.gmra.mrb[72].mxu0 %v10348_v21  ;;  %16028 = vst [vmem:[#allocation44_spill] sm:$0xff] %v10481_v62 }
 0x187   : > { %8092 = vmatprep.mubr.bf16.mxu0 %v10356_v24 }
 0x189   : > { %v10485_v63 = vpop.permute.xlu1 %3477 }
 0x18a   : > { %16029 = vst [vmem:[#allocation45_spill] sm:$0xff] %v10485_v63  ;;  %v8803_v63 = vld [vmem:[%s10224_s12 + $0x58] sm:$0xff]  }
 0x18d   : > { %v10487_v1 = vpop.permute.xlu1 %3487 }
 0x18e   : > { %8093 = vmatmul.mubr.bf16.gmra.mrb[76].mxu0 %v10356_v24  ;;  %16030 = vst [vmem:[#allocation46_spill] sm:$0xff] %v10487_v1 }
 0x18f   : > { %8094 = vmatprep.mubr.bf16.mxu0 %v10361_v26 }
 0x191   : > { %v10491_v2 = vpop.permute.xlu1 %3497 }
 0x192   : > { %16031 = vst [vmem:[#allocation47_spill] sm:$0xff] %v10491_v2 }
 0x195   : > { %v10495_v3 = vpop.permute.xlu1 %3507 }
 0x196   : > { %8095 = vmatmul.mubr.bf16.gmra.mrb[80].mxu0 %v10361_v26  ;;  %16032 = vst [vmem:[#allocation48_spill] sm:$0xff] %v10495_v3 }
 0x197   : > { %8096 = vmatprep.mubr.bf16.mxu0 %v10371_v29 }
 0x199   : > { %v10499_v4 = vpop.permute.xlu1 %3517 }
 0x19a   : > { %16033 = vst [vmem:[#allocation49_spill] sm:$0xff] %v10499_v4 }
 0x19d   : > { %v10501_v6 = vpop.permute.xlu1 %3527 }
 0x19e   : > { %8097 = vmatmul.mubr.bf16.gmra.mrb[84].mxu0 %v10371_v29  ;;  %16034 = vst [vmem:[#allocation50_spill] sm:$0xff] %v10501_v6 }
 0x19f   : > { %8098 = vmatprep.mubr.bf16.mxu0 %v10377_v31 }
 0x1a1   : > { %v10505_v7 = vpop.permute.xlu1 %3537 }
 0x1a2   : > { %16035 = vst [vmem:[#allocation51_spill] sm:$0xff] %v10505_v7 }
 0x1a5   : > { %v10509_v9 = vpop.permute.xlu1 %3547 }
 0x1a6   : > { %8099 = vmatmul.mubr.bf16.gmra.mrb[88].mxu0 %v10377_v31  ;;  %16036 = vst [vmem:[#allocation52_spill] sm:$0xff] %v10509_v9 }
 0x1a7   : > { %8100 = vmatprep.mubr.bf16.mxu0 %v10389_v5 }
 0x1a9   : > { %v10513_v10 = vpop.permute.xlu1 %3557 }
 0x1aa   : > { %16037 = vst [vmem:[#allocation53_spill] sm:$0xff] %v10513_v10  ;;  %v8797_v10 = vld [vmem:[%s10224_s12 + $0x40] sm:$0xff]  }
 0x1ab   : > { %8438 = vmatprep.subr.bf16.mxu0 %v8797_v10 }
 0x1ac   : > { %8439 = vmatpush3.bf16.msra.mxu0 %v8797_v10 }
 0x1ae   : > { %8101 = vmatmul.mubr.bf16.gmra.mrb[92].mxu0 %v10389_v5 }
 0x1af   : > { %8102 = vmatprep.mubr.bf16.mxu0 %v10393_v33 }
 0x1b6   : > { %8103 = vmatmul.mubr.bf16.gmra.mrb[96].mxu0 %v10393_v33 }
 0x1b7   : > { %8104 = vmatprep.mubr.bf16.mxu0 %v10406_v13 }
 0x1be   : > { %8105 = vmatmul.mubr.bf16.gmra.mrb[100].mxu0 %v10406_v13  ;;  %v10532_v13 = vpop.permute.xlu1 %3567 }
 0x1bf   : > { %8106 = vmatprep.mubr.bf16.mxu0 %v10412_v37  ;;  %16039 = vst [vmem:[#allocation55_spill] sm:$0xff] %v10532_v13 }
 0x1c6   : > { %8107 = vmatmul.mubr.bf16.gmra.mrb[104].mxu0 %v10412_v37 }
 0x1c7   : > { %8108 = vmatprep.mubr.bf16.mxu0 %v10424_v41 }
 0x1c9   : > { %v910_v11 = vpop.f32.mrb[0].mxu0 }
 0x1ca   : > { %v8296_v12 = vpop.f32.mrb[0].mxu1  ;;  %v10515_v15 = vmul.f32 0.088388346, %v910_v11  ;;  %v912_v16 = vpop.f32.mrb[1].mxu0 }
 0x1cb   : > { %v1263_v18 = vpop.f32.mrb[1].mxu1  ;;  %v10517_v20 = vmul.f32 0.088388346, %v912_v16  ;;  %v914_v23 = vpop.f32.mrb[2].mxu0  ;;  %v10545_v11 = vmul.f32 0.088388346, %v8296_v12 }
 0x1cc   : > { %v10519_v21 = vmul.f32 0.088388346, %v1263_v18  ;;  %v8297_v24 = vpop.f32.mrb[2].mxu1  ;;  %v10521_v26 = vmul.f32 0.088388346, %v914_v23  ;;  %v916_v27 = vpop.f32.mrb[3].mxu0 }
 0x1cd   : > { %v1710_v29 = vmax.f32 %v10515_v15, %v10517_v20  ;;  %v10525_v31 = vmul.f32 0.088388346, %v916_v27  ;;  %v1266_v5 = vpop.f32.mrb[3].mxu1  ;;  %16041 = vst [vmem:[#allocation57_spill] sm:$0xff] %v10545_v11  ;;  %v10558_v12 = vmul.f32 0.088388346, %v8297_v24 }
 0x1ce   : > { %16038 = vst [vmem:[#allocation54_spill] sm:$0xff] %v10519_v21  ;;  %8109 = vmatmul.mubr.bf16.gmra.mrb[108].mxu0 %v10424_v41  ;;  %v10534_v36 = vmul.f32 0.088388346, %v1266_v5  ;;  %v10556_v5 = vpop.permute.xlu1 %3577 }
 0x1cf   : > { %v1714_v33 = vmax.f32 %v10521_v26, %v10525_v31  ;;  %v1711_v8 = vmax.f32 %v1710_v29, %v10519_v21  ;;  %8110 = vmatprep.mubr.bf16.mxu0 %v10444_v50  ;;  %16042 = vst [vmem:[#allocation58_spill] sm:$0xff] %v10556_v5  ;;  %16043 = vst [vmem:[#allocation59_spill] sm:$0xff] %v10558_v12  ;;  %v8796_v5 = vld [vmem:[%s10224_s12] sm:$0xff]  }
 0x1d0   : > { %16040 = vst [vmem:[#allocation56_spill] sm:$0xff] %v10534_v36  ;;  %8358 = vmatprep.subr.bf16.mxu1 %v8796_v5 }
 0x1d1   : > { %1712 = vmax.xlane.f32.xlu0 %v1711_v8  ;;  %v920_v37 = vpop.f32.mrb[4].mxu0  ;;  %v1715_v49 = vmax.f32 %v1714_v33, %v10534_v36  ;;  %8359 = vmatpush3.bf16.msra.mxu1 %v8796_v5 }
 0x1d2   : > { %v8300_v19 = vpop.f32.mrb[4].mxu1  ;;  %v10536_v40 = vmul.f32 0.088388346, %v920_v37  ;;  %v922_v43 = vpop.f32.mrb[5].mxu0 }
 0x1d3   : > { %v1279_v45 = vpop.f32.mrb[5].mxu1  ;;  %v10538_v47 = vmul.f32 0.088388346, %v922_v43  ;;  %v924_v41 = vpop.f32.mrb[6].mxu0 }
 0x1d4   : > { %v10541_v51 = vpop.f32.mrb[6].mxu1  ;;  %v10543_v53 = vmul.f32 0.088388346, %v924_v41  ;;  %v926_v56 = vpop.f32.mrb[7].mxu0 }
 0x1d5   : > { %v1718_v16 = vmax.f32 %v10536_v40, %v10538_v47  ;;  %v10549_v18 = vmul.f32 0.088388346, %v926_v56  ;;  %1716 = vmax.xlane.f32.xlu0 %v1715_v49  ;;  %v1282_v23 = vpop.f32.mrb[7].mxu1  ;;  %v10568_v56 = vmul.f32 0.088388346, %v1279_v45  ;;  %v10590_v9 = vpop.permute.xlu1 %3587 }
 0x1d6   : > { %8111 = vmatmul.mubr.bf16.gmra.mrb[112].mxu0 %v10444_v50  ;;  %16046 = vst [vmem:[#allocation62_spill] sm:$0xff] %v10590_v9  ;;  %v10601_v9 = vmul.f32 0.088388346, %v8300_v19 }
 0x1d7   : > { %v1722_v27 = vmax.f32 %v10543_v53, %v10549_v18  ;;  %v1719_v29 = vmax.f32 %v1718_v16, %v10545_v11  ;;  %8112 = vmatprep.mubr.bf16.mxu0 %v10454_v54  ;;  %16044 = vst [vmem:[#allocation60_spill] sm:$0xff] %v10568_v56 }
 0x1d8   : > { %16047 = vst [vmem:[#allocation63_spill] sm:$0xff] %v10601_v9 }
 0x1d9   : > { %1720 = vmax.xlane.f32.xlu1 %v1719_v29  ;;  %v930_v33 = vpop.f32.mrb[8].mxu0  ;;  %v1723_v16 = vmax.f32 %v1722_v27, %v10558_v12 }
 0x1da   : > { %v10560_v8 = vpop.f32.mrb[8].mxu1  ;;  %v10562_v37 = vmul.f32 0.088388346, %v930_v33  ;;  %v932_v50 = vpop.f32.mrb[9].mxu0 }
 0x1db   : > { %v10564_v43 = vpop.f32.mrb[9].mxu1  ;;  %v10566_v41 = vmul.f32 0.088388346, %v932_v50  ;;  %v934_v49 = vpop.f32.mrb[10].mxu0  ;;  %v10580_v50 = vmul.f32 0.088388346, %v1282_v23 }
 0x1dc   : > { %v10571_v0 = vpop.f32.mrb[10].mxu1  ;;  %v10573_v24 = vmul.f32 0.088388346, %v934_v49  ;;  %v936_v29 = vpop.f32.mrb[11].mxu0  ;;  %v8798_v23 = vld [vmem:[%s10224_s12 + $0x8] sm:$0xff]  }
 0x1dd   : > { %v1726_v33 = vmax.f32 %v10562_v37, %v10566_v41  ;;  %v10578_v13 = vmul.f32 0.088388346, %v936_v29  ;;  %1724 = vmax.xlane.f32.xlu1 %v1723_v16  ;;  %16045 = vst [vmem:[#allocation61_spill] sm:$0xff] %v10580_v50  ;;  %v10582_v45 = vpop.f32.mrb[11].mxu1  ;;  %v8799_v16 = vld [vmem:[%s10224_s12 + $0x48] sm:$0xff]   ;;  %8360 = vmatprep.subr.bf16.mxu1 %v8798_v23 }
 0x1de   : > { %8113 = vmatmul.mubr.bf16.gmra.mrb[116].mxu0 %v10454_v54  ;;  %8440 = vmatprep.subr.bf16.mxu0 %v8799_v16 }
 0x1df   : > { %v1730_v27 = vmax.f32 %v10573_v24, %v10578_v13  ;;  %v1727_v49 = vmax.f32 %v1726_v33, %v10568_v56  ;;  %8114 = vmatprep.mubr.bf16.mxu0 %v10469_v59  ;;  %8361 = vmatpush3.bf16.msra.mxu1 %v8798_v23 }
 0x1e0   : > { %8441 = vmatpush3.bf16.msra.mxu0 %v8799_v16 }
 0x1e1   : > { %v1731_v29 = vmax.f32 %v1730_v27, %v10580_v50  ;;  %1728 = vmax.xlane.f32.xlu0 %v1727_v49  ;;  %v940_v7 = vpop.f32.mrb[12].mxu0  ;;  %v8811_v50 = vld [vmem:[%s10224_s12 + $0x78] sm:$0xff]  }
 0x1e2   : > { %v10595_v54 = vpop.f32.mrb[12].mxu1  ;;  %v10597_v6 = vmul.f32 0.088388346, %v940_v7  ;;  %v942_v4 = vpop.f32.mrb[13].mxu0  ;;  %v8800_v7 = vld [vmem:[%s10224_s12 + $0x10] sm:$0xff]  }
 0x1e3   : > { %v10599_v33 = vpop.f32.mrb[13].mxu1  ;;  %v10603_v10 = vmul.f32 0.088388346, %v942_v4  ;;  %1732 = vmax.xlane.f32.xlu1 %v1731_v29  ;;  %v944_v5 = vpop.f32.mrb[14].mxu0  ;;  %v8801_v4 = vld [vmem:[%s10224_s12 + $0x50] sm:$0xff]   ;;  %8362 = vmatprep.subr.bf16.mxu1 %v8800_v7 }
 0x1e4   : > { %v10605_v27 = vpop.f32.mrb[14].mxu1  ;;  %v10607_v49 = vmul.f32 0.088388346, %v944_v5  ;;  %v946_v3 = vpop.f32.mrb[15].mxu0  ;;  %v10619_v29 = vmul.f32 0.088388346, %v10541_v51  ;;  %8442 = vmatprep.subr.bf16.mxu0 %v8801_v4  ;;  %8363 = vmatpush3.bf16.msra.mxu1 %v8800_v7 }
 0x1e5   : > { %v1734_v2 = vmax.f32 %v10597_v6, %v10603_v10  ;;  %v10612_v1 = vmul.f32 0.088388346, %v946_v3  ;;  %v10614_v19 = vpop.f32.mrb[15].mxu1  ;;  %v10625_v5 = vpop.permute.xlu1 %3597  ;;  %8443 = vmatpush3.bf16.msra.mxu0 %v8801_v4  ;;  %v8802_v3 = vld [vmem:[%s10224_s12 + $0x18] sm:$0xff]   ;;  %v10639_v4 = vmul.f32 0.088388346, %v10564_v43 }
 0x1e6   : > { %8115 = vmatmul.mubr.bf16.gmra.mrb[120].mxu0 %v10469_v59  ;;  %16048 = vst [vmem:[#allocation64_spill] sm:$0xff] %v10619_v29  ;;  %16049 = vst [vmem:[#allocation65_spill] sm:$0xff] %v10625_v5  ;;  %8364 = vmatprep.subr.bf16.mxu1 %v8802_v3  ;;  %v10646_v5 = vmul.f32 0.088388346, %v10582_v45  ;;  %v8804_v43 = vld [vmem:[%s10224_s12 + $0x20] sm:$0xff]  }
 0x1e7   : > { %v1738_v23 = vmax.f32 %v10607_v49, %v10612_v1  ;;  %v1735_v16 = vmax.f32 %v1734_v2, %v10601_v9  ;;  %8116 = vmatprep.mubr.bf16.mxu0 %v10477_v61  ;;  %8444 = vmatprep.subr.bf16.mxu0 %v8803_v63  ;;  %16050 = vst [vmem:[#allocation66_spill] sm:$0xff] %v10639_v4  ;;  %v8807_v9 = vld [vmem:[%s10224_s12 + $0x68] sm:$0xff]  }
 0x1e8   : > { %16051 = vst [vmem:[#allocation67_spill] sm:$0xff] %v10646_v5  ;;  %8365 = vmatpush3.bf16.msra.mxu1 %v8802_v3 }
 0x1e9   : > { %1736 = vmax.xlane.f32.xlu0 %v1735_v16  ;;  %v950_v59 = vpop.f32.mrb[16].mxu0  ;;  %v1739_v62 = vmax.f32 %v1738_v23, %v10619_v29  ;;  %8445 = vmatpush3.bf16.msra.mxu0 %v8803_v63  ;;  %v10660_v63 = vpop.permute.xlu1 %3607 }
 0x1ea   : > { %v10630_v51 = vpop.f32.mrb[16].mxu1  ;;  %v10632_v60 = vmul.f32 0.088388346, %v950_v59  ;;  %v952_v57 = vpop.f32.mrb[17].mxu0  ;;  %8366 = vmatprep.subr.bf16.mxu1 %v8804_v43  ;;  %8446 = vmatprep.subr.bf16.mxu0 %v8805_v55  ;;  %16052 = vst [vmem:[#allocation68_spill] sm:$0xff] %v10660_v63 }
 0x1eb   : > { %v10634_v58 = vpop.f32.mrb[17].mxu1  ;;  %v10636_v2 = vmul.f32 0.088388346, %v952_v57  ;;  %1740 = vmax.xlane.f32.xlu1 %v1739_v62  ;;  %v954_v7 = vpop.f32.mrb[18].mxu0 }
 0x1ec   : > { %v10641_v16 = vpop.f32.mrb[18].mxu1  ;;  %v10643_v23 = vmul.f32 0.088388346, %v954_v7  ;;  %v956_v59 = vpop.f32.mrb[19].mxu0  ;;  %8367 = vmatpush3.bf16.msra.mxu1 %v8804_v43 }
 0x1ed   : > { %v1742_v52 = vmax.f32 %v10632_v60, %v10636_v2  ;;  %v10650_v57 = vmul.f32 0.088388346, %v956_v59  ;;  %v10652_v62 = vpop.f32.mrb[19].mxu1  ;;  %8447 = vmatpush3.bf16.msra.mxu0 %v8805_v55  ;;  %8368 = vmatprep.subr.bf16.mxu1 %v8806_v48 }
 0x1ee   : > { %8117 = vmatmul.mubr.bf16.gmra.mrb[124].mxu0 %v10477_v61  ;;  %8448 = vmatprep.subr.bf16.mxu0 %v8807_v9 }
 0x1ef   : > { %v1746_v7 = vmax.f32 %v10643_v23, %v10650_v57  ;;  %v1743_v45 = vmax.f32 %v1742_v52, %v10639_v4  ;;  %v10672_v52 = vmul.f32 0.088388346, %v10560_v8 }
 0x1f0   : > { %8369 = vmatpush3.bf16.msra.mxu1 %v8806_v48  ;;  %v10694_v48 = vpop.permute.xlu1 %4593 }
 0x1f1   : > { %v1747_v3 = vmax.f32 %v1746_v7, %v10646_v5  ;;  %1744 = vmax.xlane.f32.xlu0 %v1743_v45  ;;  %v960_v59 = vpop.f32.mrb[20].mxu0  ;;  %16053 = vst [vmem:[#allocation69_spill] sm:$0xff] %v10672_v52  ;;  %v10679_v45 = vmul.f32 0.088388346, %v10571_v0  ;;  %8449 = vmatpush3.bf16.msra.mxu0 %v8807_v9  ;;  %v8809_v5 = vld [vmem:[%s10224_s12 + $0x70] sm:$0xff]   ;;  %16055 = vst [vmem:[#allocation71_spill] sm:$0xff] %v10694_v48 }
 0x1f2   : > { %v10663_v46 = vpop.f32.mrb[20].mxu1  ;;  %v10667_v61 = vmul.f32 0.088388346, %v960_v59  ;;  %v962_v29 = vpop.f32.mrb[21].mxu0  ;;  %8450 = vmatprep.subr.bf16.mxu0 %v8809_v5 }
 0x1f3   : > { %v10669_v56 = vpop.f32.mrb[21].mxu1  ;;  %v10674_v43 = vmul.f32 0.088388346, %v962_v29  ;;  %1748 = vmax.xlane.f32.xlu1 %v1747_v3  ;;  %v964_v55 = vpop.f32.mrb[22].mxu0  ;;  %16054 = vst [vmem:[#allocation70_spill] sm:$0xff] %v10679_v45  ;;  %v8808_v3 = vld [vmem:[%s10224_s12 + $0x30] sm:$0xff]  }
 0x1f4   : > { %v10676_v7 = vpop.f32.mrb[22].mxu1  ;;  %v10681_v59 = vmul.f32 0.088388346, %v964_v55  ;;  %v966_v63 = vpop.f32.mrb[23].mxu0  ;;  %8370 = vmatprep.subr.bf16.mxu1 %v8808_v3 }
 0x1f5   : > { %v1750_v8 = vmax.f32 %v10667_v61, %v10674_v43  ;;  %v10685_v4 = vmul.f32 0.088388346, %v966_v63  ;;  %v10687_v29 = vpop.f32.mrb[23].mxu1  ;;  %8371 = vmatpush3.bf16.msra.mxu1 %v8808_v3  ;;  %8451 = vmatpush3.bf16.msra.mxu0 %v8809_v5  ;;  %v10710_v3 = vmul.f32 0.088388346, %v10599_v33  ;;  %v10728_v21 = vpop.permute.xlu1 %4601 }
 0x1f6   : > { %8372 = vmatprep.subr.bf16.mxu1 %v8810_v44  ;;  %8452 = vmatprep.subr.bf16.mxu0 %v8811_v50  ;;  %16061 = vst [vmem:[#allocation77_spill] sm:$0xff] %v10728_v21 }
 0x1f7   : > { %v1754_v0 = vmax.f32 %v10681_v59, %v10685_v4  ;;  %v1751_v55 = vmax.f32 %v1750_v8, %v10672_v52  ;;  %16057 = vst [vmem:[#allocation73_spill] sm:$0xff] %v10710_v3 }
 0x1f9   : > { %1752 = vmax.xlane.f32.xlu0 %v1751_v55  ;;  %v970_v63 = vpop.f32.mrb[24].mxu0  ;;  %v1755_v11 = vmax.f32 %v1754_v0, %v10679_v45  ;;  %8373 = vmatpush3.bf16.msra.mxu1 %v8810_v44 }
 0x1fa   : > { %v10699_v9 = vpop.f32.mrb[24].mxu1  ;;  %v10703_v12 = vmul.f32 0.088388346, %v970_v63  ;;  %v972_v36 = vpop.f32.mrb[25].mxu0  ;;  %8453 = vmatpush3.bf16.msra.mxu0 %v8811_v50  ;;  %v10740_v50 = vmul.f32 0.088388346, %v10595_v54 }
 0x1fb   : > { %v10705_v8 = vpop.f32.mrb[25].mxu1  ;;  %v10707_v52 = vmul.f32 0.088388346, %v972_v36  ;;  %1756 = vmax.xlane.f32.xlu1 %v1755_v11  ;;  %v974_v48 = vpop.f32.mrb[26].mxu0  ;;  %v10721_v36 = vmul.f32 0.088388346, %v10614_v19 }
 0x1fc   : > { %v10712_v55 = vpop.f32.mrb[26].mxu1  ;;  %v10714_v0 = vmul.f32 0.088388346, %v974_v48  ;;  %v976_v5 = vpop.f32.mrb[27].mxu0  ;;  %16064 = vst [vmem:[#allocation80_spill] sm:$0xff] %v10740_v50 }
 0x1fd   : > { %v1758_v63 = vmax.f32 %v10703_v12, %v10707_v52  ;;  %v10718_v45 = vmul.f32 0.088388346, %v976_v5  ;;  %16060 = vst [vmem:[#allocation76_spill] sm:$0xff] %v10721_v36  ;;  %v10723_v11 = vpop.f32.mrb[27].mxu1 }
 0x1fe   : > { %16058 = vst [vmem:[#allocation74_spill] sm:$0xff] %v10714_v0 }
 0x1ff   : > { %16059 = vst [vmem:[#allocation75_spill] sm:$0xff] %v10718_v45  ;;  %v1762_v33 = vmax.f32 %v10714_v0, %v10718_v45  ;;  %v1759_v48 = vmax.f32 %v1758_v63, %v10710_v3 }
 0x201   : > { %v1763_v44 = vmax.f32 %v1762_v33, %v10721_v36  ;;  %1760 = vmax.xlane.f32.xlu0 %v1759_v48  ;;  %v980_v5 = vpop.f32.mrb[28].mxu0 }
 0x202   : > { %v10733_v39 = vpop.f32.mrb[28].mxu1  ;;  %v10735_v19 = vmul.f32 0.088388346, %v980_v5  ;;  %v982_v34 = vpop.f32.mrb[29].mxu0  ;;  %v10751_v5 = vmul.f32 0.088388346, %v10605_v27 }
 0x203   : > { %v10737_v35 = vpop.f32.mrb[29].mxu1  ;;  %v10742_v30 = vmul.f32 0.088388346, %v982_v34  ;;  %1764 = vmax.xlane.f32.xlu1 %v1763_v44  ;;  %v984_v63 = vpop.f32.mrb[30].mxu0 }
 0x204   : > { %16063 = vst [vmem:[#allocation79_spill] sm:$0xff] %v10735_v19  ;;  %v10744_v3 = vpop.f32.mrb[30].mxu1  ;;  %v10746_v14 = vmul.f32 0.088388346, %v984_v63  ;;  %v986_v33 = vpop.f32.mrb[31].mxu0  ;;  %16067 = vst [vmem:[#allocation83_spill] sm:$0xff] %v10751_v5 }
 0x205   : > { %16065 = vst [vmem:[#allocation81_spill] sm:$0xff] %v10742_v30  ;;  %v10748_v48 = vpop.f32.mrb[31].mxu1  ;;  %v1766_v36 = vmax.f32 %v10735_v19, %v10742_v30  ;;  %v10755_v38 = vmul.f32 0.088388346, %v986_v33  ;;  %v10760_v44 = vpop.permute.xlu1 %4605 }
 0x206   : > { %16066 = vst [vmem:[#allocation82_spill] sm:$0xff] %v10746_v14  ;;  %16069 = vst [vmem:[#allocation85_spill] sm:$0xff] %v10760_v44  ;;  %v10762_v63 = vpop.permute.xlu0 %4617 }
 0x207   : > { %16068 = vst [vmem:[#allocation84_spill] sm:$0xff] %v10755_v38  ;;  %v1770_v34 = vmax.f32 %v10746_v14, %v10755_v38  ;;  %v1767_v54 = vmax.f32 %v1766_v36, %v10740_v50  ;;  %16070 = vst [vmem:[#allocation86_spill] sm:$0xff] %v10762_v63  ;;  %v10774_v36 = vmul.f32 0.088388346, %v10634_v58 }
 0x209   : > { %1768 = vmax.xlane.f32.xlu0 %v1767_v54  ;;  %v990_v28 = vpop.f32.mrb[32].mxu0  ;;  %v1771_v32 = vmax.f32 %v1770_v34, %v10751_v5  ;;  %16073 = vst [vmem:[#allocation89_spill] sm:$0xff] %v10774_v36  ;;  %v10792_v44 = vpop.permute.xlu1 %4613 }
 0x20a   : > { %v10765_v27 = vpop.f32.mrb[32].mxu1  ;;  %v10767_v42 = vmul.f32 0.088388346, %v990_v28  ;;  %v992_v17 = vpop.f32.mrb[33].mxu0  ;;  %16077 = vst [vmem:[#allocation93_spill] sm:$0xff] %v10792_v44 }
 0x20b   : > { %v10769_v33 = vpop.f32.mrb[33].mxu1  ;;  %v10771_v25 = vmul.f32 0.088388346, %v992_v17  ;;  %1772 = vmax.xlane.f32.xlu1 %v1771_v32  ;;  %v994_v21 = vpop.f32.mrb[34].mxu0  ;;  %v10787_v17 = vmul.f32 0.088388346, %v10652_v62 }
 0x20c   : > { %16071 = vst [vmem:[#allocation87_spill] sm:$0xff] %v10767_v42  ;;  %v10776_v50 = vpop.f32.mrb[34].mxu1  ;;  %v10778_v54 = vmul.f32 0.088388346, %v994_v21  ;;  %v996_v63 = vpop.f32.mrb[35].mxu0 }
 0x20d   : > { %16072 = vst [vmem:[#allocation88_spill] sm:$0xff] %v10771_v25  ;;  %v10780_v34 = vpop.f32.mrb[35].mxu1  ;;  %v1774_v28 = vmax.f32 %v10767_v42, %v10771_v25  ;;  %v10784_v5 = vmul.f32 0.088388346, %v996_v63  ;;  %16076 = vst [vmem:[#allocation92_spill] sm:$0xff] %v10787_v17  ;;  %v10794_v21 = vpop.permute.xlu0 %4625 }
 0x20e   : > { %16074 = vst [vmem:[#allocation90_spill] sm:$0xff] %v10778_v54  ;;  %16078 = vst [vmem:[#allocation94_spill] sm:$0xff] %v10794_v21  ;;  %v10804_v42 = vmul.f32 0.088388346, %v10630_v51  ;;  %v10824_v51 = vpop.permute.xlu1 %4621 }
 0x20f   : > { %16075 = vst [vmem:[#allocation91_spill] sm:$0xff] %v10784_v5  ;;  %v1778_v32 = vmax.f32 %v10778_v54, %v10784_v5  ;;  %v1775_v58 = vmax.f32 %v1774_v28, %v10774_v36  ;;  %16085 = vst [vmem:[#allocation101_spill] sm:$0xff] %v10824_v51 }
 0x210   : > { %16080 = vst [vmem:[#allocation96_spill] sm:$0xff] %v10804_v42 }
 0x211   : > { %v1779_v22 = vmax.f32 %v1778_v32, %v10787_v17  ;;  %1776 = vmax.xlane.f32.xlu0 %v1775_v58  ;;  %v1000_v38 = vpop.f32.mrb[36].mxu0 }
 0x212   : > { %v10797_v14 = vpop.f32.mrb[36].mxu1  ;;  %v10799_v63 = vmul.f32 0.088388346, %v1000_v38  ;;  %v1002_v25 = vpop.f32.mrb[37].mxu0  ;;  %v10815_v38 = vmul.f32 0.088388346, %v10641_v16 }
 0x213   : > { %v10801_v62 = vpop.f32.mrb[37].mxu1  ;;  %v10806_v5 = vmul.f32 0.088388346, %v1002_v25  ;;  %1780 = vmax.xlane.f32.xlu1 %v1779_v22  ;;  %v1004_v28 = vpop.f32.mrb[38].mxu0 }
 0x214   : > { %16079 = vst [vmem:[#allocation95_spill] sm:$0xff] %v10799_v63  ;;  %v10808_v36 = vpop.f32.mrb[38].mxu1  ;;  %v10810_v21 = vmul.f32 0.088388346, %v1004_v28  ;;  %v1006_v32 = vpop.f32.mrb[39].mxu0  ;;  %16083 = vst [vmem:[#allocation99_spill] sm:$0xff] %v10815_v38 }
 0x215   : > { %16081 = vst [vmem:[#allocation97_spill] sm:$0xff] %v10806_v5  ;;  %v10812_v58 = vpop.f32.mrb[39].mxu1  ;;  %v1782_v17 = vmax.f32 %v10799_v63, %v10806_v5  ;;  %v10819_v44 = vmul.f32 0.088388346, %v1006_v32  ;;  %v10826_v28 = vpop.permute.xlu0 %4633 }
 0x216   : > { %16082 = vst [vmem:[#allocation98_spill] sm:$0xff] %v10810_v21  ;;  %16086 = vst [vmem:[#allocation102_spill] sm:$0xff] %v10826_v28  ;;  %v10856_v51 = vpop.permute.xlu1 %4629 }
 0x217   : > { %16084 = vst [vmem:[#allocation100_spill] sm:$0xff] %v10819_v44  ;;  %v1786_v25 = vmax.f32 %v10810_v21, %v10819_v44  ;;  %v1783_v22 = vmax.f32 %v1782_v17, %v10804_v42  ;;  %v10838_v17 = vmul.f32 0.088388346, %v10669_v56  ;;  %16093 = vst [vmem:[#allocation109_spill] sm:$0xff] %v10856_v51 }
 0x219   : > { %1784 = vmax.xlane.f32.xlu0 %v1783_v22  ;;  %v1010_v54 = vpop.f32.mrb[40].mxu0  ;;  %v1787_v30 = vmax.f32 %v1786_v25, %v10815_v38  ;;  %16089 = vst [vmem:[#allocation105_spill] sm:$0xff] %v10838_v17 }
 0x21a   : > { %v10829_v16 = vpop.f32.mrb[40].mxu1  ;;  %v10831_v19 = vmul.f32 0.088388346, %v1010_v54  ;;  %v1012_v5 = vpop.f32.mrb[41].mxu0 }
 0x21b   : > { %v10833_v32 = vpop.f32.mrb[41].mxu1  ;;  %v10835_v63 = vmul.f32 0.088388346, %v1012_v5  ;;  %1788 = vmax.xlane.f32.xlu1 %v1787_v30  ;;  %v1014_v44 = vpop.f32.mrb[42].mxu0  ;;  %v10851_v5 = vmul.f32 0.088388346, %v10687_v29 }
 0x21c   : > { %16087 = vst [vmem:[#allocation103_spill] sm:$0xff] %v10831_v19  ;;  %v10840_v42 = vpop.f32.mrb[42].mxu1  ;;  %v10842_v22 = vmul.f32 0.088388346, %v1014_v44  ;;  %v1016_v28 = vpop.f32.mrb[43].mxu0 }
 0x21d   : > { %16088 = vst [vmem:[#allocation104_spill] sm:$0xff] %v10835_v63  ;;  %v10844_v25 = vpop.f32.mrb[43].mxu1  ;;  %v1790_v54 = vmax.f32 %v10831_v19, %v10835_v63  ;;  %v10848_v38 = vmul.f32 0.088388346, %v1016_v28  ;;  %16092 = vst [vmem:[#allocation108_spill] sm:$0xff] %v10851_v5  ;;  %v10858_v44 = vpop.permute.xlu0 %4641 }
 0x21e   : > { %16090 = vst [vmem:[#allocation106_spill] sm:$0xff] %v10842_v22  ;;  %16094 = vst [vmem:[#allocation110_spill] sm:$0xff] %v10858_v44  ;;  %v10868_v19 = vmul.f32 0.088388346, %v10663_v46 }
 0x21f   : > { %16091 = vst [vmem:[#allocation107_spill] sm:$0xff] %v10848_v38  ;;  %v1794_v30 = vmax.f32 %v10842_v22, %v10848_v38  ;;  %v1791_v56 = vmax.f32 %v1790_v54, %v10838_v17 }
 0x220   : > { %16097 = vst [vmem:[#allocation113_spill] sm:$0xff] %v10868_v19 }
 0x221   : > { %v1795_v21 = vmax.f32 %v1794_v30, %v10851_v5  ;;  %1792 = vmax.xlane.f32.xlu0 %v1791_v56  ;;  %v1020_v45 = vpop.f32.mrb[44].mxu0 }
 0x222   : > { %v10861_v0 = vpop.f32.mrb[44].mxu1  ;;  %v10863_v28 = vmul.f32 0.088388346, %v1020_v45  ;;  %v1022_v63 = vpop.f32.mrb[45].mxu0  ;;  %v10879_v45 = vmul.f32 0.088388346, %v10676_v7 }
 0x223   : > { %16095 = vst [vmem:[#allocation111_spill] sm:$0xff] %v10861_v0  ;;  %v10865_v29 = vpop.f32.mrb[45].mxu1  ;;  %v10870_v38 = vmul.f32 0.088388346, %v1022_v63  ;;  %1796 = vmax.xlane.f32.xlu1 %v1795_v21  ;;  %v1024_v54 = vpop.f32.mrb[46].mxu0 }
 0x224   : > { %16096 = vst [vmem:[#allocation112_spill] sm:$0xff] %v10863_v28  ;;  %v10872_v51 = vpop.f32.mrb[46].mxu1  ;;  %v10874_v17 = vmul.f32 0.088388346, %v1024_v54  ;;  %v1026_v30 = vpop.f32.mrb[47].mxu0  ;;  %16101 = vst [vmem:[#allocation117_spill] sm:$0xff] %v10879_v45 }
 0x225   : > { %16098 = vst [vmem:[#allocation114_spill] sm:$0xff] %v10870_v38  ;;  %16099 = vst [vmem:[#allocation115_spill] sm:$0xff] %v10872_v51  ;;  %v10876_v56 = vpop.f32.mrb[47].mxu1  ;;  %v1798_v5 = vmax.f32 %v10863_v28, %v10870_v38  ;;  %v10883_v44 = vmul.f32 0.088388346, %v1026_v30  ;;  %v10888_v63 = vpop.permute.xlu1 %4637 }
 0x226   : > { %16100 = vst [vmem:[#allocation116_spill] sm:$0xff] %v10874_v17  ;;  %16103 = vst [vmem:[#allocation119_spill] sm:$0xff] %v10888_v63  ;;  %v10890_v54 = vpop.permute.xlu0 %4649 }
 0x227   : > { %16102 = vst [vmem:[#allocation118_spill] sm:$0xff] %v10883_v44  ;;  %v1802_v46 = vmax.f32 %v10874_v17, %v10883_v44  ;;  %v1799_v21 = vmax.f32 %v1798_v5, %v10868_v19  ;;  %16104 = vst [vmem:[#allocation120_spill] sm:$0xff] %v10890_v54  ;;  %v10902_v5 = vmul.f32 0.088388346, %v10705_v8 }
 0x229   : > { %1800 = vmax.xlane.f32.xlu0 %v1799_v21  ;;  %v1030_v22 = vpop.f32.mrb[48].mxu0  ;;  %v1803_v51 = vmax.f32 %v1802_v46, %v10879_v45  ;;  %16107 = vst [vmem:[#allocation123_spill] sm:$0xff] %v10902_v5 }
 0x22a   : > { %v10893_v7 = vpop.f32.mrb[48].mxu1  ;;  %v10895_v0 = vmul.f32 0.088388346, %v1030_v22  ;;  %v1032_v38 = vpop.f32.mrb[49].mxu0 }
 0x22b   : > { %16105 = vst [vmem:[#allocation121_spill] sm:$0xff] %v10893_v7  ;;  %v10897_v30 = vpop.f32.mrb[49].mxu1  ;;  %v10899_v28 = vmul.f32 0.088388346, %v1032_v38  ;;  %1804 = vmax.xlane.f32.xlu1 %v1803_v51  ;;  %v1034_v44 = vpop.f32.mrb[50].mxu0 }
 0x22c   : > { %v10904_v63 = vpop.f32.mrb[50].mxu1  ;;  %v10906_v21 = vmul.f32 0.088388346, %v1034_v44  ;;  %v1036_v19 = vpop.f32.mrb[51].mxu0  ;;  %v10915_v38 = vmul.f32 0.088388346, %v10723_v11 }
 0x22d   : > { %16106 = vst [vmem:[#allocation122_spill] sm:$0xff] %v10899_v28  ;;  %16108 = vst [vmem:[#allocation124_spill] sm:$0xff] %v10904_v63  ;;  %v10908_v46 = vpop.f32.mrb[51].mxu1  ;;  %v1806_v22 = vmax.f32 %v10895_v0, %v10899_v28  ;;  %v10912_v45 = vmul.f32 0.088388346, %v1036_v19  ;;  %v10920_v54 = vpop.permute.xlu0 %4657 }
 0x22e   : > { %16109 = vst [vmem:[#allocation125_spill] sm:$0xff] %v10906_v21  ;;  %16111 = vst [vmem:[#allocation127_spill] sm:$0xff] %v10915_v38  ;;  %v10922_v44 = vpop.permute.xlu1 %4645  ;;  %v10928_v28 = vmul.f32 0.088388346, %v10699_v9 }
 0x22f   : > { %16110 = vst [vmem:[#allocation126_spill] sm:$0xff] %v10912_v45  ;;  %v1810_v51 = vmax.f32 %v10906_v21, %v10912_v45  ;;  %v1807_v8 = vmax.f32 %v1806_v22, %v10902_v5  ;;  %16112 = vst [vmem:[#allocation128_spill] sm:$0xff] %v10920_v54  ;;  %v10935_v5 = vmul.f32 0.088388346, %v10712_v55 }
 0x230   : > { %16113 = vst [vmem:[#allocation129_spill] sm:$0xff] %v10922_v44  ;;  %16114 = vst [vmem:[#allocation130_spill] sm:$0xff] %v10928_v28 }
 0x231   : > { %v1811_v17 = vmax.f32 %v1810_v51, %v10915_v38  ;;  %1808 = vmax.xlane.f32.xlu0 %v1807_v8  ;;  %v1040_v63 = vpop.f32.mrb[52].mxu0  ;;  %16117 = vst [vmem:[#allocation133_spill] sm:$0xff] %v10935_v5 }
 0x232   : > { %v10925_v7 = vmul.f32 0.088388346, %v1040_v63  ;;  %v1042_v19 = vpop.f32.mrb[53].mxu0  ;;  %v10941_v63 = vpop.permute.xlu0 %4665 }
 0x233   : > { %v10930_v11 = vmul.f32 0.088388346, %v1042_v19  ;;  %1812 = vmax.xlane.f32.xlu1 %v1811_v17  ;;  %v1044_v45 = vpop.f32.mrb[54].mxu0  ;;  %16119 = vst [vmem:[#allocation135_spill] sm:$0xff] %v10941_v63  ;;  %v10943_v44 = vpop.permute.xlu1 %4653  ;;  %v10958_v63 = vmul.f32 0.088388346, %v10737_v35 }
 0x234   : > { %v10932_v21 = vmul.f32 0.088388346, %v1044_v45  ;;  %v1046_v22 = vpop.f32.mrb[55].mxu0  ;;  %16120 = vst [vmem:[#allocation136_spill] sm:$0xff] %v10943_v44  ;;  %v10948_v45 = vpop.f32.mrb[52].mxu1 }
 0x235   : > { %16115 = vst [vmem:[#allocation131_spill] sm:$0xff] %v10930_v11  ;;  %v1814_v51 = vmax.f32 %v10925_v7, %v10930_v11  ;;  %v10939_v8 = vmul.f32 0.088388346, %v1046_v22  ;;  %v10951_v38 = vpop.f32.mrb[53].mxu1  ;;  %16123 = vst [vmem:[#allocation139_spill] sm:$0xff] %v10958_v63 }
 0x236   : > { %16116 = vst [vmem:[#allocation132_spill] sm:$0xff] %v10932_v21 }
 0x237   : > { %16118 = vst [vmem:[#allocation134_spill] sm:$0xff] %v10939_v8  ;;  %v1818_v9 = vmax.f32 %v10932_v21, %v10939_v8  ;;  %v1815_v17 = vmax.f32 %v1814_v51, %v10928_v28  ;;  %v10960_v8 = vpop.permute.xlu0 %4673  ;;  %v10964_v28 = vpop.permute.xlu1 %4661 }
 0x238   : > { %16124 = vst [vmem:[#allocation140_spill] sm:$0xff] %v10960_v8  ;;  %16126 = vst [vmem:[#allocation142_spill] sm:$0xff] %v10964_v28 }
 0x239   : > { %1816 = vmax.xlane.f32.xlu0 %v1815_v17  ;;  %v1050_v19 = vpop.f32.mrb[56].mxu0  ;;  %v1819_v55 = vmax.f32 %v1818_v9, %v10935_v5 }
 0x23a   : > { %v10953_v54 = vmul.f32 0.088388346, %v1050_v19  ;;  %v1052_v22 = vpop.f32.mrb[57].mxu0 }
 0x23b   : > { %v10955_v11 = vmul.f32 0.088388346, %v1052_v22  ;;  %1820 = vmax.xlane.f32.xlu1 %v1819_v55  ;;  %v1054_v44 = vpop.f32.mrb[58].mxu0  ;;  %v10971_v22 = vmul.f32 0.088388346, %v10748_v48  ;;  %v10973_v55 = vpop.f32.mrb[54].mxu1 }
 0x23c   : > { %16121 = vst [vmem:[#allocation137_spill] sm:$0xff] %v10953_v54  ;;  %v10962_v51 = vmul.f32 0.088388346, %v1054_v44  ;;  %v1056_v17 = vpop.f32.mrb[59].mxu0  ;;  %16129 = vst [vmem:[#allocation145_spill] sm:$0xff] %v10973_v55  ;;  %v10975_v5 = vpop.f32.mrb[55].mxu1 }
 0x23d   : > { %16122 = vst [vmem:[#allocation138_spill] sm:$0xff] %v10955_v11  ;;  %v1822_v9 = vmax.f32 %v10953_v54, %v10955_v11  ;;  %v10968_v19 = vmul.f32 0.088388346, %v1056_v17  ;;  %16128 = vst [vmem:[#allocation144_spill] sm:$0xff] %v10971_v22  ;;  %v10981_v21 = vpop.permute.xlu0 %4681  ;;  %v10985_v48 = vpop.permute.xlu1 %4669  ;;  %v10988_v54 = vmul.f32 0.088388346, %v10733_v39 }
 0x23e   : > { %16125 = vst [vmem:[#allocation141_spill] sm:$0xff] %v10962_v51  ;;  %16130 = vst [vmem:[#allocation146_spill] sm:$0xff] %v10981_v21 }
 0x23f   : > { %16127 = vst [vmem:[#allocation143_spill] sm:$0xff] %v10968_v19  ;;  %v1826_v35 = vmax.f32 %v10962_v51, %v10968_v19  ;;  %v1823_v44 = vmax.f32 %v1822_v9, %v10958_v63  ;;  %16131 = vst [vmem:[#allocation147_spill] sm:$0xff] %v10985_v48 }
 0x240   : > { %16132 = vst [vmem:[#allocation148_spill] sm:$0xff] %v10988_v54 }
 0x241   : > { %v1827_v8 = vmax.f32 %v1826_v35, %v10971_v22  ;;  %1824 = vmax.xlane.f32.xlu0 %v1823_v44  ;;  %v1060_v28 = vpop.f32.mrb[60].mxu0  ;;  %v10995_v35 = vmul.f32 0.088388346, %v10744_v3 }
 0x242   : > { %v10983_v17 = vmul.f32 0.088388346, %v1060_v28  ;;  %v1062_v11 = vpop.f32.mrb[61].mxu0 }
 0x243   : > { %v10990_v55 = vmul.f32 0.088388346, %v1062_v11  ;;  %1828 = vmax.xlane.f32.xlu1 %v1827_v8  ;;  %v1064_v19 = vpop.f32.mrb[62].mxu0  ;;  %16134 = vst [vmem:[#allocation150_spill] sm:$0xff] %v10995_v35  ;;  %v11004_v11 = vpop.permute.xlu0 %4689 }
 0x244   : > { %v10992_v51 = vmul.f32 0.088388346, %v1064_v19  ;;  %v1066_v9 = vpop.f32.mrb[63].mxu0  ;;  %16136 = vst [vmem:[#allocation152_spill] sm:$0xff] %v11004_v11  ;;  %v11006_v8 = vpop.permute.xlu1 %4677 }
 0x245   : > { %16133 = vst [vmem:[#allocation149_spill] sm:$0xff] %v10990_v55  ;;  %v1830_v28 = vmax.f32 %v10983_v17, %v10990_v55  ;;  %v10999_v44 = vmul.f32 0.088388346, %v1066_v9  ;;  %16137 = vst [vmem:[#allocation153_spill] sm:$0xff] %v11006_v8  ;;  %v11014_v55 = vmul.f32 0.088388346, %v10769_v33 }
 0x247   : > { %16135 = vst [vmem:[#allocation151_spill] sm:$0xff] %v10999_v44  ;;  %v1834_v48 = vmax.f32 %v10992_v51, %v10999_v44  ;;  %v1831_v39 = vmax.f32 %v1830_v28, %v10988_v54  ;;  %16140 = vst [vmem:[#allocation156_spill] sm:$0xff] %v11014_v55 }
 0x249   : > { %1832 = vmax.xlane.f32.xlu0 %v1831_v39  ;;  %v1070_v19 = vpop.f32.mrb[64].mxu0  ;;  %v1835_v63 = vmax.f32 %v1834_v48, %v10995_v35  ;;  %v11023_v48 = vmul.f32 0.088388346, %v10780_v34 }
 0x24a   : > { %v11009_v3 = vmul.f32 0.088388346, %v1070_v19  ;;  %v1072_v22 = vpop.f32.mrb[65].mxu0  ;;  %v11025_v19 = vpop.permute.xlu0 %4697 }
 0x24b   : > { %v11011_v21 = vmul.f32 0.088388346, %v1072_v22  ;;  %1836 = vmax.xlane.f32.xlu1 %v1835_v63  ;;  %v1074_v9 = vpop.f32.mrb[66].mxu0  ;;  %16143 = vst [vmem:[#allocation159_spill] sm:$0xff] %v11023_v48  ;;  %16144 = vst [vmem:[#allocation160_spill] sm:$0xff] %v11025_v19  ;;  %v11027_v22 = vpop.permute.xlu1 %4685 }
 0x24c   : > { %16138 = vst [vmem:[#allocation154_spill] sm:$0xff] %v11009_v3  ;;  %v11016_v44 = vmul.f32 0.088388346, %v1074_v9  ;;  %v1076_v28 = vpop.f32.mrb[67].mxu0  ;;  %16145 = vst [vmem:[#allocation161_spill] sm:$0xff] %v11027_v22  ;;  %v11032_v9 = vpop.f32.mrb[56].mxu1 }
 0x24d   : > { %16139 = vst [vmem:[#allocation155_spill] sm:$0xff] %v11011_v21  ;;  %v1838_v8 = vmax.f32 %v11009_v3, %v11011_v21  ;;  %v11020_v39 = vmul.f32 0.088388346, %v1076_v28  ;;  %v11035_v28 = vpop.f32.mrb[57].mxu1  ;;  %v11040_v19 = vmul.f32 0.088388346, %v10765_v27 }
 0x24e   : > { %16141 = vst [vmem:[#allocation157_spill] sm:$0xff] %v11016_v44  ;;  %v11057_v27 = vpop.f32.mrb[58].mxu1 }
 0x24f   : > { %16142 = vst [vmem:[#allocation158_spill] sm:$0xff] %v11020_v39  ;;  %v1842_v63 = vmax.f32 %v11016_v44, %v11020_v39  ;;  %v1839_v33 = vmax.f32 %v1838_v8, %v11014_v55  ;;  %16147 = vst [vmem:[#allocation163_spill] sm:$0xff] %v11040_v19  ;;  %v11044_v44 = vpop.permute.xlu0 %4705 }
 0x250   : > { %16149 = vst [vmem:[#allocation165_spill] sm:$0xff] %v11044_v44  ;;  %16153 = vst [vmem:[#allocation169_spill] sm:$0xff] %v11057_v27 }
 0x251   : > { %v1843_v54 = vmax.f32 %v1842_v63, %v11023_v48  ;;  %1840 = vmax.xlane.f32.xlu0 %v1839_v33  ;;  %v1080_v35 = vpop.f32.mrb[68].mxu0  ;;  %v11048_v63 = vpop.permute.xlu1 %4693  ;;  %v11051_v33 = vmul.f32 0.088388346, %v10776_v50 }
 0x252   : > { %v11037_v11 = vmul.f32 0.088388346, %v1080_v35  ;;  %v1082_v34 = vpop.f32.mrb[69].mxu0  ;;  %16150 = vst [vmem:[#allocation166_spill] sm:$0xff] %v11048_v63 }
 0x253   : > { %v11042_v22 = vmul.f32 0.088388346, %v1082_v34  ;;  %1844 = vmax.xlane.f32.xlu1 %v1843_v54  ;;  %v1084_v39 = vpop.f32.mrb[70].mxu0  ;;  %16151 = vst [vmem:[#allocation167_spill] sm:$0xff] %v11051_v33  ;;  %v11059_v34 = vpop.f32.mrb[59].mxu1 }
 0x254   : > { %16146 = vst [vmem:[#allocation162_spill] sm:$0xff] %v11037_v11  ;;  %v11046_v8 = vmul.f32 0.088388346, %v1084_v39  ;;  %v1086_v55 = vpop.f32.mrb[71].mxu0  ;;  %v11065_v50 = vpop.permute.xlu0 %4713 }
 0x255   : > { %16148 = vst [vmem:[#allocation164_spill] sm:$0xff] %v11042_v22  ;;  %v1846_v35 = vmax.f32 %v11037_v11, %v11042_v22  ;;  %v11055_v48 = vmul.f32 0.088388346, %v1086_v55  ;;  %16154 = vst [vmem:[#allocation170_spill] sm:$0xff] %v11065_v50  ;;  %v11069_v55 = vpop.permute.xlu1 %4701 }
 0x256   : > { %16155 = vst [vmem:[#allocation171_spill] sm:$0xff] %v11069_v55 }
 0x257   : > { %16152 = vst [vmem:[#allocation168_spill] sm:$0xff] %v11055_v48  ;;  %v1850_v54 = vmax.f32 %v11046_v8, %v11055_v48  ;;  %v1847_v39 = vmax.f32 %v1846_v35, %v11040_v19  ;;  %v11076_v35 = vmul.f32 0.088388346, %v10801_v62 }
 0x259   : > { %1848 = vmax.xlane.f32.xlu0 %v1847_v39  ;;  %v1090_v44 = vpop.f32.mrb[72].mxu0  ;;  %v1851_v63 = vmax.f32 %v1850_v54, %v11051_v33  ;;  %16157 = vst [vmem:[#allocation173_spill] sm:$0xff] %v11076_v35  ;;  %v11094_v55 = vpop.permute.xlu1 %4709 }
 0x25a   : > { %v11067_v21 = vmul.f32 0.088388346, %v1090_v44  ;;  %v1092_v22 = vpop.f32.mrb[73].mxu0  ;;  %v11083_v44 = vmul.f32 0.088388346, %v10812_v58  ;;  %16161 = vst [vmem:[#allocation177_spill] sm:$0xff] %v11094_v55 }
 0x25b   : > { %v11071_v11 = vmul.f32 0.088388346, %v1092_v22  ;;  %1852 = vmax.xlane.f32.xlu1 %v1851_v63  ;;  %v1094_v27 = vpop.f32.mrb[74].mxu0 }
 0x25c   : > { %v11073_v3 = vmul.f32 0.088388346, %v1094_v27  ;;  %v1096_v48 = vpop.f32.mrb[75].mxu0  ;;  %16159 = vst [vmem:[#allocation175_spill] sm:$0xff] %v11083_v44 }
 0x25d   : > { %16156 = vst [vmem:[#allocation172_spill] sm:$0xff] %v11071_v11  ;;  %v1854_v54 = vmax.f32 %v11067_v21, %v11071_v11  ;;  %v11080_v39 = vmul.f32 0.088388346, %v1096_v48 }
 0x25e   : > { %v11085_v19 = vpop.xlane.xlu0 %1712 }
 0x25f   : > { %16158 = vst [vmem:[#allocation174_spill] sm:$0xff] %v11080_v39  ;;  %16160 = vst [vmem:[#allocation176_spill] sm:$0xff] %v11085_v19  ;;  %v1858_v22 = vmax.f32 %v11073_v3, %v11080_v39  ;;  %v1966_v63 = vsub.f32 %v10515_v15, %v11085_v19  ;;  %v1967_v62 = vsub.f32 %v10517_v20, %v11085_v19 }
 0x260   : > { %v1855_v27 = vmax.f32 %v1854_v54, %v11076_v35 }
 0x261   : > { %v1859_v48 = vmax.f32 %v1858_v22, %v11083_v44  ;;  %v2158_v33 = vmul.f32 1.442695, %v1966_v63  ;;  %v2160_v58 = vmul.f32 1.442695, %v1967_v62  ;;  %v1100_v50 = vpop.f32.mrb[76].mxu0 }
 0x262   : > { %1856 = vmax.xlane.f32.xlu0 %v1855_v27  ;;  %v11097_v11 = vpop.xlane.xlu0 %1716  ;;  %v11099_v39 = vmul.f32 0.088388346, %v1100_v50  ;;  %v1102_v54 = vpop.f32.mrb[77].mxu0 }
 0x263   : > { %16162 = vst [vmem:[#allocation178_spill] sm:$0xff] %v11097_v11  ;;  %8820 = vpow2.f32 %v2158_v33  ;;  %v1969_v15 = vsub.f32 %v10521_v26, %v11097_v11  ;;  %v1970_v20 = vsub.f32 %v10525_v31, %v11097_v11  ;;  %1860 = vmax.xlane.f32.xlu1 %v1859_v48  ;;  %v11105_v55 = vmul.f32 0.088388346, %v1102_v54  ;;  %v1104_v22 = vpop.f32.mrb[78].mxu0 }
 0x264   : > { %8822 = vpow2.f32 %v2160_v58  ;;  %v11107_v27 = vmul.f32 0.088388346, %v1104_v22  ;;  %v11110_v33 = vmul.f32 0.088388346, %v10797_v14  ;;  %v1106_v26 = vpop.f32.mrb[79].mxu0  ;;  %v11123_v14 = vpop.f32.mrb[60].mxu1 }
 0x265   : > { %v2164_v63 = vmul.f32 1.442695, %v1969_v15  ;;  %v2166_v62 = vmul.f32 1.442695, %v1970_v20  ;;  %v1862_v50 = vmax.f32 %v11099_v39, %v11105_v55  ;;  %v11116_v31 = vmul.f32 0.088388346, %v1106_v26 }
 0x266   : > { %16163 = vst [vmem:[#allocation179_spill] sm:$0xff] %v11107_v27  ;;  %16164 = vst [vmem:[#allocation180_spill] sm:$0xff] %v11110_v33  ;;  %v11114_v35 = vpop.xlane.xlu1 %1720  ;;  %v11127_v44 = vpop.f32.mrb[61].mxu1 }
 0x267   : > { %16165 = vst [vmem:[#allocation181_spill] sm:$0xff] %v11114_v35  ;;  %8824 = vpow2.f32 %v2164_v63  ;;  %16166 = vst [vmem:[#allocation182_spill] sm:$0xff] %v11116_v31  ;;  %v1972_v48 = vsub.f32 %v10536_v40, %v11114_v35  ;;  %v1973_v58 = vsub.f32 %v10538_v47, %v11114_v35  ;;  %v1863_v15 = vmax.f32 %v1862_v50, %v11110_v33 }
 0x268   : > { %8826 = vpow2.f32 %v2166_v62  ;;  %v1866_v20 = vmax.f32 %v11107_v27, %v11116_v31  ;;  %v11130_v63 = vmul.f32 0.088388346, %v10808_v36  ;;  %v11144_v31 = vmul.f32 0.088388346, %v10833_v32 }
 0x269   : > { %v2170_v54 = vmul.f32 1.442695, %v1972_v48  ;;  %v1110_v22 = vpop.f32.mrb[80].mxu0  ;;  %v2172_v26 = vmul.f32 1.442695, %v1973_v58  ;;  %1864 = vmax.xlane.f32.xlu0 %v1863_v15 }
 0x26a   : > { %16167 = vst [vmem:[#allocation183_spill] sm:$0xff] %v11130_v63  ;;  %v11132_v40 = vpop.xlane.xlu1 %1724  ;;  %v1112_v47 = vpop.f32.mrb[81].mxu0  ;;  %v11138_v33 = vmul.f32 0.088388346, %v1110_v22  ;;  %v1867_v35 = vmax.f32 %v1866_v20, %v11130_v63  ;;  %16171 = vst [vmem:[#allocation187_spill] sm:$0xff] %v11144_v31 }
 0x26b   : > { %16168 = vst [vmem:[#allocation184_spill] sm:$0xff] %v11132_v40  ;;  %v1975_v62 = vsub.f32 %v10543_v53, %v11132_v40  ;;  %v1976_v50 = vsub.f32 %v10549_v18, %v11132_v40  ;;  %v1114_v48 = vpop.f32.mrb[82].mxu0  ;;  %v11141_v11 = vmul.f32 0.088388346, %v1112_v47  ;;  %8828 = vpow2.f32 %v2170_v54  ;;  %v11154_v47 = vpop.f32.mrb[62].mxu1 }
 0x26c   : > { %16169 = vst [vmem:[#allocation185_spill] sm:$0xff] %v11138_v33  ;;  %v1116_v36 = vpop.f32.mrb[83].mxu0  ;;  %8830 = vpow2.f32 %v2172_v26  ;;  %1868 = vmax.xlane.f32.xlu1 %v1867_v35  ;;  %v11156_v35 = vmul.f32 0.088388346, %v1114_v48  ;;  %v11169_v48 = vmul.f32 0.088388346, %v10844_v25 }
 0x26d   : > { %16170 = vst [vmem:[#allocation186_spill] sm:$0xff] %v11141_v11  ;;  %v8821_v19 = vpop.eup %8820  ;;  %v2176_v58 = vmul.f32 1.442695, %v1975_v62  ;;  %v2178_v15 = vmul.f32 1.442695, %v1976_v50  ;;  %v1870_v20 = vmax.f32 %v11138_v33, %v11141_v11  ;;  %v11162_v62 = vpop.f32.mrb[63].mxu1 }
 0x26e   : > { %v11146_v53 = vpop.xlane.xlu0 %1728  ;;  %2702 = vadd.xlane.f32.xlu0 %v8821_v19  ;;  %v8823_v18 = vpop.eup %8822  ;;  %16173 = vst [vmem:[#allocation189_spill] sm:$0xff] %v11156_v35  ;;  %v11158_v32 = vmul.f32 0.088388346, %v1116_v36  ;;  %16176 = vst [vmem:[#allocation192_spill] sm:$0xff] %v11169_v48 }
 0x26f   : > { %16172 = vst [vmem:[#allocation188_spill] sm:$0xff] %v11146_v53  ;;  %8832 = vpow2.f32 %v2176_v58  ;;  %v1978_v22 = vsub.f32 %v10562_v37, %v11146_v53  ;;  %v1979_v54 = vsub.f32 %v10566_v41, %v11146_v53  ;;  %v1871_v33 = vmax.f32 %v1870_v20, %v11144_v31 }
 0x270   : > { %8834 = vpow2.f32 %v2178_v15  ;;  %16174 = vst [vmem:[#allocation190_spill] sm:$0xff] %v11158_v32  ;;  %v11160_v26 = vpop.xlane.xlu1 %1732  ;;  %3743 = vadd.xlane.f32.xlu1 %v8823_v18 }
 0x271   : > { %16175 = vst [vmem:[#allocation191_spill] sm:$0xff] %v11160_v26  ;;  %v8825_v50 = vpop.eup %8824  ;;  %v2182_v58 = vmul.f32 1.442695, %v1978_v22  ;;  %v2184_v63 = vmul.f32 1.442695, %v1979_v54  ;;  %v1981_v37 = vsub.f32 %v10573_v24, %v11160_v26  ;;  %v1982_v41 = vsub.f32 %v10578_v13, %v11160_v26  ;;  %v1120_v15 = vpop.f32.mrb[84].mxu0 }
 0x272   : > { %v8827_v40 = vpop.eup %8826  ;;  %v1122_v36 = vpop.f32.mrb[85].mxu0  ;;  %v2542_v53 = vpack.c.bf16 %v8825_v50, %v8821_v19  ;;  %v1874_v22 = vmax.f32 %v11156_v35, %v11158_v32  ;;  %v11179_v20 = vmul.f32 0.088388346, %v1120_v15 }
 0x273   : > { %3745 = vadd.xlane.f32.xlu0 %v8827_v40  ;;  %v2543_v11 = vpack.c.bf16 %v8827_v40, %v8823_v18  ;;  %8836 = vpow2.f32 %v2182_v58  ;;  %v2188_v54 = vmul.f32 1.442695, %v1981_v37  ;;  %v2190_v27 = vmul.f32 1.442695, %v1982_v41  ;;  %v1124_v24 = vpop.f32.mrb[86].mxu0 }
 0x274   : > { %8838 = vpow2.f32 %v2184_v63  ;;  %8374 = vmatprep.mubr.bf16.mxu1 %v2542_v53  ;;  %2704 = vadd.xlane.f32.xlu1 %v8825_v50  ;;  %v1126_v13 = vpop.f32.mrb[87].mxu0  ;;  %v1875_v18 = vmax.f32 %v1874_v22, %v11169_v48  ;;  %16178 = vst [vmem:[#allocation194_spill] sm:$0xff] %v11179_v20  ;;  %v11185_v50 = vmul.f32 0.088388346, %v1122_v36  ;;  %v11191_v31 = vmul.f32 0.088388346, %v1124_v24 }
 0x275   : > { %8454 = vmatprep.mubr.bf16.mxu0 %v2543_v11  ;;  %8840 = vpow2.f32 %v2188_v54  ;;  %v8829_v26 = vpop.eup %8828  ;;  %v11193_v36 = vmul.f32 0.088388346, %v1126_v13 }
 0x276   : > { %v11174_v25 = vpop.xlane.xlu0 %1736  ;;  %8842 = vpow2.f32 %v2190_v27  ;;  %v8831_v40 = vpop.eup %8830  ;;  %16180 = vst [vmem:[#allocation196_spill] sm:$0xff] %v11185_v50  ;;  %16181 = vst [vmem:[#allocation197_spill] sm:$0xff] %v11191_v31 }
 0x277   : > { %16177 = vst [vmem:[#allocation193_spill] sm:$0xff] %v11174_v25  ;;  %v1984_v19 = vsub.f32 %v10597_v6, %v11174_v25  ;;  %1872 = vmax.xlane.f32.xlu0 %v1871_v33  ;;  %v1985_v63 = vsub.f32 %v10603_v10, %v11174_v25  ;;  %16182 = vst [vmem:[#allocation198_spill] sm:$0xff] %v11193_v36 }
 0x278   : > { %v11183_v11 = vpop.xlane.xlu1 %1740  ;;  %1876 = vmax.xlane.f32.xlu1 %v1875_v18 }
 0x279   : > { %16179 = vst [vmem:[#allocation195_spill] sm:$0xff] %v11183_v11  ;;  %v8833_v53 = vpop.eup %8832  ;;  %v2194_v58 = vmul.f32 1.442695, %v1984_v19  ;;  %v1987_v27 = vsub.f32 %v10607_v49, %v11183_v11  ;;  %v1988_v6 = vsub.f32 %v10612_v1, %v11183_v11  ;;  %v1130_v33 = vpop.f32.mrb[88].mxu0  ;;  %v2196_v19 = vmul.f32 1.442695, %v1985_v63 }
 0x27a   : > { %v8835_v37 = vpop.eup %8834  ;;  %v2545_v41 = vpack.c.bf16 %v8833_v53, %v8829_v26  ;;  %v1132_v15 = vpop.f32.mrb[89].mxu0  ;;  %v1878_v49 = vmax.f32 %v11179_v20, %v11185_v50 }
 0x27b   : > { %v2200_v22 = vmul.f32 1.442695, %v1987_v27  ;;  %v2202_v54 = vmul.f32 1.442695, %v1988_v6  ;;  %2706 = vadd.xlane.f32.xlu0 %v8829_v26  ;;  %v2546_v10 = vpack.c.bf16 %v8835_v37, %v8831_v40  ;;  %v1134_v48 = vpop.f32.mrb[90].mxu0  ;;  %8844 = vpow2.f32 %v2194_v58 }
 0x27c   : > { %8375 = vmatmul.mubr.bf16.vlgmr.msra.gmra.mrb[64].mxu1 %v2545_v41  ;;  %v1136_v1 = vpop.f32.mrb[91].mxu0  ;;  %2708 = vadd.xlane.f32.xlu1 %v8833_v53  ;;  %v11200_v6 = vmul.f32 0.088388346, %v10829_v16  ;;  %v11207_v58 = vmul.f32 0.088388346, %v10840_v42  ;;  %v1882_v53 = vmax.f32 %v11191_v31, %v11193_v36 }
 0x27d   : > { %8455 = vmatmul.mubr.bf16.vlgmr.msra.gmra.mrb[128].mxu0 %v2546_v10  ;;  %v8837_v18 = vpop.eup %8836  ;;  %8846 = vpow2.f32 %v2200_v22  ;;  %v11220_v11 = vmul.f32 0.088388346, %v1132_v15 }
 0x27e   : > { %v11197_v27 = vpop.xlane.xlu0 %1744  ;;  %v8839_v26 = vpop.eup %8838  ;;  %16184 = vst [vmem:[#allocation200_spill] sm:$0xff] %v11200_v6  ;;  %8848 = vpow2.f32 %v2202_v54  ;;  %16185 = vst [vmem:[#allocation201_spill] sm:$0xff] %v11207_v58  ;;  %v1879_v10 = vmax.f32 %v1878_v49, %v11200_v6 }
 0x27f   : > { %16183 = vst [vmem:[#allocation199_spill] sm:$0xff] %v11197_v27  ;;  %v1990_v24 = vsub.f32 %v10632_v60, %v11197_v27  ;;  %v1991_v13 = vsub.f32 %v10636_v2, %v11197_v27  ;;  %3747 = vadd.xlane.f32.xlu0 %v8831_v40  ;;  %v8841_v63 = vpop.eup %8840  ;;  %8850 = vpow2.f32 %v2196_v19  ;;  %v11216_v2 = vmul.f32 0.088388346, %v1130_v33  ;;  %16188 = vst [vmem:[#allocation204_spill] sm:$0xff] %v11220_v11 }
 0x280   : > { %v11211_v41 = vpop.xlane.xlu1 %1748  ;;  %v8843_v16 = vpop.eup %8842  ;;  %3749 = vadd.xlane.f32.xlu1 %v8835_v37  ;;  %v2548_v40 = vpack.c.bf16 %v8841_v63, %v8837_v18 }
 0x281   : > { %16186 = vst [vmem:[#allocation202_spill] sm:$0xff] %v11211_v41  ;;  %v2206_v22 = vmul.f32 1.442695, %v1990_v24  ;;  %v2208_v54 = vmul.f32 1.442695, %v1991_v13  ;;  %v1993_v60 = vsub.f32 %v10643_v23, %v11211_v41  ;;  %16187 = vst [vmem:[#allocation203_spill] sm:$0xff] %v11216_v2  ;;  %v1994_v42 = vsub.f32 %v10650_v57, %v11211_v41 }
 0x282   : > { %v2549_v27 = vpack.c.bf16 %v8843_v16, %v8839_v26  ;;  %v1140_v25 = vpop.f32.mrb[92].mxu0  ;;  %8378 = vmatprep.mubr.bf16.mxu1 %v2548_v40  ;;  %v1883_v23 = vmax.f32 %v1882_v53, %v11207_v58  ;;  %v11226_v57 = vmul.f32 0.088388346, %v10865_v29  ;;  %v11240_v29 = vmul.f32 0.088388346, %v1136_v1 }
 0x283   : > { %v2212_v19 = vmul.f32 1.442695, %v1993_v60  ;;  %1880 = vmax.xlane.f32.xlu0 %v1879_v10  ;;  %v1142_v24 = vpop.f32.mrb[93].mxu0  ;;  %8852 = vpow2.f32 %v2206_v22  ;;  %v2214_v13 = vmul.f32 1.442695, %v1994_v42  ;;  %v1886_v22 = vmax.f32 %v11216_v2, %v11220_v11 }
 0x284   : > { %8458 = vmatprep.mubr.bf16.mxu0 %v2549_v27  ;;  %8854 = vpow2.f32 %v2208_v54  ;;  %v11223_v33 = vpop.f32.mrb[94].mxu0  ;;  %1884 = vmax.xlane.f32.xlu1 %v1883_v23  ;;  %16189 = vst [vmem:[#allocation205_spill] sm:$0xff] %v11226_v57  ;;  %v11238_v60 = vmul.f32 0.088388346, %v1134_v48  ;;  %16192 = vst [vmem:[#allocation208_spill] sm:$0xff] %v11240_v29 }
 0x285   : > { %8856 = vpow2.f32 %v2212_v19  ;;  %v1146_v15 = vpop.f32.mrb[95].mxu0  ;;  %v8845_v49 = vpop.eup %8844 }
 0x286   : > { %v11228_v37 = vpop.xlane.xlu0 %1752  ;;  %8858 = vpow2.f32 %v2214_v13  ;;  %16191 = vst [vmem:[#allocation207_spill] sm:$0xff] %v11238_v60 }
 0x287   : > { %16190 = vst [vmem:[#allocation206_spill] sm:$0xff] %v11228_v37  ;;  %v1996_v27 = vsub.f32 %v10667_v61, %v11228_v37  ;;  %v1997_v53 = vsub.f32 %v10674_v43, %v11228_v37  ;;  %2710 = vadd.xlane.f32.xlu0 %v8837_v18  ;;  %v11236_v54 = vpop.eup %8846 }
 0x288   : > { %v11242_v10 = vpop.xlane.xlu1 %1756  ;;  %v11244_v42 = vpop.eup %8848  ;;  %2712 = vadd.xlane.f32.xlu1 %v8841_v63  ;;  %v2551_v48 = vpack.c.bf16 %v11236_v54, %v8845_v49  ;;  %v11263_v63 = vmul.f32 0.088388346, %v10876_v56 }
 0x289   : > { %16193 = vst [vmem:[#allocation209_spill] sm:$0xff] %v11242_v10  ;;  %v2218_v40 = vmul.f32 1.442695, %v1996_v27  ;;  %v2220_v19 = vmul.f32 1.442695, %v1997_v53  ;;  %v1999_v13 = vsub.f32 %v10681_v59, %v11242_v10  ;;  %v11248_v61 = vpop.eup %8850  ;;  %v2000_v43 = vsub.f32 %v10685_v4, %v11242_v10  ;;  %v11253_v18 = vpop.f32.mrb[96].mxu0 }
 0x28a   : > { %v2552_v23 = vpack.c.bf16 %v11244_v42, %v11248_v61  ;;  %v1887_v27 = vmax.f32 %v1886_v22, %v11226_v57  ;;  %v11258_v53 = vpop.f32.mrb[97].mxu0  ;;  %v1890_v59 = vmax.f32 %v11238_v60, %v11240_v29  ;;  %16194 = vst [vmem:[#allocation210_spill] sm:$0xff] %v11263_v63  ;;  %8379 = vmatmul.mubr.bf16.gmra.mrb[68].mxu1 %v2551_v48 }
 0x28b   : > { %v2224_v1 = vmul.f32 1.442695, %v1999_v13  ;;  %3751 = vadd.xlane.f32.xlu0 %v8839_v26  ;;  %8860 = vpow2.f32 %v2218_v40  ;;  %v2226_v4 = vmul.f32 1.442695, %v2000_v43  ;;  %v11265_v58 = vpop.f32.mrb[98].mxu0 }
 0x28c   : > { %8862 = vpow2.f32 %v2220_v19  ;;  %8459 = vmatmul.mubr.bf16.gmra.mrb[132].mxu0 %v2552_v23  ;;  %v11267_v13 = vpop.f32.mrb[99].mxu0  ;;  %3753 = vadd.xlane.f32.xlu1 %v8843_v16  ;;  %v11281_v43 = vmul.f32 0.088388346, %v1140_v25  ;;  %v1891_v48 = vmax.f32 %v1890_v59, %v11263_v63  ;;  %v11288_v23 = vmul.f32 0.088388346, %v1142_v24 }
 0x28d   : > { %v11269_v26 = vpop.eup %8852  ;;  %8864 = vpow2.f32 %v2224_v1 }
 0x28e   : > { %v11271_v22 = vpop.xlane.xlu0 %1760  ;;  %v11273_v57 = vpop.eup %8854  ;;  %8866 = vpow2.f32 %v2226_v4  ;;  %16196 = vst [vmem:[#allocation212_spill] sm:$0xff] %v11281_v43  ;;  %16198 = vst [vmem:[#allocation214_spill] sm:$0xff] %v11288_v23 }
 0x28f   : > { %16195 = vst [vmem:[#allocation211_spill] sm:$0xff] %v11271_v22  ;;  %v2002_v56 = vsub.f32 %v10703_v12, %v11271_v22  ;;  %v2003_v40 = vsub.f32 %v10707_v52, %v11271_v22  ;;  %1888 = vmax.xlane.f32.xlu0 %v1887_v27  ;;  %v11279_v19 = vpop.eup %8856  ;;  %v16199_v12 = vld [vmem:[#allocation74_spill] sm:$0xff]  ;;  %v16200_v52 = vld [vmem:[#allocation75_spill] sm:$0xff] }
 0x290   : > { %v11284_v1 = vpop.xlane.xlu1 %1764  ;;  %v11286_v16 = vpop.eup %8858  ;;  %1892 = vmax.xlane.f32.xlu1 %v1891_v48  ;;  %v2554_v25 = vpack.c.bf16 %v11279_v19, %v11269_v26 }
 0x291   : > { %16197 = vst [vmem:[#allocation213_spill] sm:$0xff] %v11284_v1  ;;  %v2230_v4 = vmul.f32 1.442695, %v2002_v56  ;;  %v2232_v6 = vmul.f32 1.442695, %v2003_v40  ;;  %v2005_v37 = vsub.f32 %v16199_v12, %v11284_v1  ;;  %v2006_v27 = vsub.f32 %v16200_v52, %v11284_v1  ;;  %v11298_v63 = vpop.f32.mrb[100].mxu0 }
 0x292   : > { %v2555_v59 = vpack.c.bf16 %v11286_v16, %v11273_v57  ;;  %v11300_v24 = vpop.f32.mrb[101].mxu0  ;;  %v11303_v56 = vmul.f32 0.088388346, %v11223_v33  ;;  %v11305_v40 = vmul.f32 0.088388346, %v1146_v15  ;;  %8382 = vmatprep.mubr.bf16.mxu1 %v2554_v25  ;;  %v1894_v12 = vmax.f32 %v11281_v43, %v11288_v23  ;;  %v16203_v52 = vld [vmem:[#allocation111_spill] sm:$0xff] }
 0x293   : > { %v2236_v22 = vmul.f32 1.442695, %v2005_v37  ;;  %2714 = vadd.xlane.f32.xlu0 %v8845_v49  ;;  %8868 = vpow2.f32 %v2230_v4  ;;  %v2238_v48 = vmul.f32 1.442695, %v2006_v27  ;;  %v11310_v1 = vmul.f32 0.088388346, %v16203_v52 }
 0x294   : > { %16201 = vst [vmem:[#allocation74_spill] sm:$0xff] %v11303_v56  ;;  %16202 = vst [vmem:[#allocation75_spill] sm:$0xff] %v11305_v40  ;;  %8462 = vmatprep.mubr.bf16.mxu0 %v2555_v59  ;;  %8870 = vpow2.f32 %v2232_v6  ;;  %v11312_v37 = vpop.f32.mrb[102].mxu0  ;;  %2716 = vadd.xlane.f32.xlu1 %v11236_v54  ;;  %v16206_v27 = vld [vmem:[#allocation79_spill] sm:$0xff]  ;;  %v16207_v59 = vld [vmem:[#allocation81_spill] sm:$0xff]  ;;  %v1898_v54 = vmax.f32 %v11303_v56, %v11305_v40 }
 0x295   : > { %16204 = vst [vmem:[#allocation111_spill] sm:$0xff] %v11310_v1  ;;  %v11314_v49 = vpop.eup %8860  ;;  %8872 = vpow2.f32 %v2236_v22  ;;  %v11319_v15 = vpop.f32.mrb[103].mxu0  ;;  %v16208_v22 = vld [vmem:[#allocation115_spill] sm:$0xff] }
 0x296   : > { %v11317_v33 = vpop.xlane.xlu0 %1768  ;;  %v11321_v4 = vpop.eup %8862  ;;  %8874 = vpow2.f32 %v2238_v48  ;;  %v11333_v10 = vmul.f32 0.088388346, %v16208_v22 }
 0x297   : > { %16205 = vst [vmem:[#allocation215_spill] sm:$0xff] %v11317_v33  ;;  %v2008_v25 = vsub.f32 %v16206_v27, %v11317_v33  ;;  %v2009_v6 = vsub.f32 %v16207_v59, %v11317_v33  ;;  %3755 = vadd.xlane.f32.xlu0 %v11248_v61  ;;  %v11328_v52 = vpop.eup %8864  ;;  %v16211_v27 = vld [vmem:[#allocation82_spill] sm:$0xff]  ;;  %v1895_v59 = vmax.f32 %v1894_v12, %v11310_v1  ;;  %v11344_v61 = vmul.f32 0.088388346, %v11253_v18  ;;  %v16213_v33 = vld [vmem:[#allocation84_spill] sm:$0xff] }
 0x298   : > { %16209 = vst [vmem:[#allocation79_spill] sm:$0xff] %v11333_v10  ;;  %v11335_v41 = vpop.xlane.xlu1 %1772  ;;  %v11337_v23 = vpop.eup %8866  ;;  %3757 = vadd.xlane.f32.xlu1 %v11244_v42  ;;  %v2557_v40 = vpack.c.bf16 %v11328_v52, %v11314_v49  ;;  %v1899_v18 = vmax.f32 %v1898_v54, %v11333_v10 }
 0x299   : > { %16210 = vst [vmem:[#allocation81_spill] sm:$0xff] %v11335_v41  ;;  %v2242_v48 = vmul.f32 1.442695, %v2008_v25  ;;  %v2244_v43 = vmul.f32 1.442695, %v2009_v6  ;;  %v2011_v29 = vsub.f32 %v16211_v27, %v11335_v41  ;;  %16212 = vst [vmem:[#allocation115_spill] sm:$0xff] %v11344_v61  ;;  %v2012_v22 = vsub.f32 %v16213_v33, %v11335_v41 }
 0x29a   : > { %v2558_v25 = vpack.c.bf16 %v11337_v23, %v11321_v4  ;;  %v11352_v6 = vpop.f32.mrb[104].mxu0  ;;  %v11355_v27 = vmul.f32 0.088388346, %v11258_v53  ;;  %8383 = vmatmul.mubr.bf16.gmra.mrb[72].mxu1 %v2557_v40 }
 0x29b   : > { %v2248_v56 = vmul.f32 1.442695, %v2011_v29  ;;  %1896 = vmax.xlane.f32.xlu0 %v1895_v59  ;;  %v11357_v42 = vpop.f32.mrb[105].mxu0  ;;  %8876 = vpow2.f32 %v2242_v48  ;;  %v2250_v12 = vmul.f32 1.442695, %v2012_v22  ;;  %v16218_v48 = vld [vmem:[#allocation88_spill] sm:$0xff] }
 0x29c   : > { %16214 = vst [vmem:[#allocation82_spill] sm:$0xff] %v11355_v27  ;;  %8463 = vmatmul.mubr.bf16.gmra.mrb[136].mxu0 %v2558_v25  ;;  %8878 = vpow2.f32 %v2244_v43  ;;  %v11360_v33 = vpop.f32.mrb[106].mxu0  ;;  %1900 = vmax.xlane.f32.xlu1 %v1899_v18  ;;  %v11365_v29 = vmul.f32 0.088388346, %v10897_v30  ;;  %v1902_v40 = vmax.f32 %v11344_v61, %v11355_v27  ;;  %v16217_v43 = vld [vmem:[#allocation87_spill] sm:$0xff] }
 0x29d   : > { %v11362_v1 = vpop.eup %8868  ;;  %8880 = vpow2.f32 %v2248_v56  ;;  %v11369_v59 = vpop.f32.mrb[107].mxu0  ;;  %v11383_v22 = vmul.f32 0.088388346, %v11265_v58  ;;  %v11386_v25 = vmul.f32 0.088388346, %v11267_v13 }
 0x29e   : > { %16215 = vst [vmem:[#allocation84_spill] sm:$0xff] %v11365_v29  ;;  %v11367_v53 = vpop.xlane.xlu0 %1776  ;;  %v11371_v41 = vpop.eup %8870  ;;  %8882 = vpow2.f32 %v2250_v12  ;;  %v1903_v60 = vmax.f32 %v1902_v40, %v11365_v29 }
 0x29f   : > { %16216 = vst [vmem:[#allocation216_spill] sm:$0xff] %v11367_v53  ;;  %v2014_v54 = vsub.f32 %v16217_v43, %v11367_v53  ;;  %v2015_v56 = vsub.f32 %v16218_v48, %v11367_v53  ;;  %2718 = vadd.xlane.f32.xlu0 %v11269_v26  ;;  %v11380_v30 = vpop.eup %8872  ;;  %16219 = vst [vmem:[#allocation87_spill] sm:$0xff] %v11383_v22  ;;  %v16222_v43 = vld [vmem:[#allocation90_spill] sm:$0xff]  ;;  %v16223_v26 = vld [vmem:[#allocation91_spill] sm:$0xff] }
 0x2a0   : > { %16220 = vst [vmem:[#allocation88_spill] sm:$0xff] %v11386_v25  ;;  %v11388_v18 = vpop.xlane.xlu1 %1780  ;;  %v11390_v12 = vpop.eup %8874  ;;  %2720 = vadd.xlane.f32.xlu1 %v11279_v19  ;;  %v2560_v58 = vpack.c.bf16 %v11380_v30, %v11362_v1  ;;  %v1906_v19 = vmax.f32 %v11383_v22, %v11386_v25  ;;  %v16231_v22 = vld [vmem:[#allocation98_spill] sm:$0xff] }
 0x2a1   : > { %16221 = vst [vmem:[#allocation217_spill] sm:$0xff] %v11388_v18  ;;  %v2254_v10 = vmul.f32 1.442695, %v2014_v54  ;;  %v2256_v27 = vmul.f32 1.442695, %v2015_v56  ;;  %v2017_v61 = vsub.f32 %v16222_v43, %v11388_v18  ;;  %v2018_v48 = vsub.f32 %v16223_v26, %v11388_v18  ;;  %v11401_v53 = vpop.f32.mrb[108].mxu0 }
 0x2a2   : > { %v2561_v13 = vpack.c.bf16 %v11390_v12, %v11371_v41  ;;  %v11405_v56 = vpop.f32.mrb[109].mxu0  ;;  %v11410_v43 = vmul.f32 0.088388346, %v10908_v46  ;;  %8386 = vmatprep.mubr.bf16.mxu1 %v2560_v58  ;;  %v16226_v46 = vld [vmem:[#allocation95_spill] sm:$0xff] }
 0x2a3   : > { %v2260_v54 = vmul.f32 1.442695, %v2017_v61  ;;  %3759 = vadd.xlane.f32.xlu0 %v11273_v57  ;;  %8884 = vpow2.f32 %v2254_v10  ;;  %v2262_v26 = vmul.f32 1.442695, %v2018_v48  ;;  %v11412_v18 = vpop.f32.mrb[110].mxu0  ;;  %v16227_v48 = vld [vmem:[#allocation97_spill] sm:$0xff] }
 0x2a4   : > { %16224 = vst [vmem:[#allocation90_spill] sm:$0xff] %v11410_v43  ;;  %8466 = vmatprep.mubr.bf16.mxu0 %v2561_v13  ;;  %8886 = vpow2.f32 %v2256_v27  ;;  %3761 = vadd.xlane.f32.xlu1 %v11286_v16  ;;  %v11419_v61 = vpop.f32.mrb[111].mxu0  ;;  %v11430_v13 = vmul.f32 0.088388346, %v11298_v63  ;;  %v1907_v16 = vmax.f32 %v1906_v19, %v11410_v43 }
 0x2a5   : > { %v11414_v11 = vpop.eup %8876  ;;  %8888 = vpow2.f32 %v2260_v54 }
 0x2a6   : > { %v11417_v57 = vpop.xlane.xlu0 %1784  ;;  %v11421_v40 = vpop.eup %8878  ;;  %8890 = vpow2.f32 %v2262_v26  ;;  %16228 = vst [vmem:[#allocation95_spill] sm:$0xff] %v11430_v13  ;;  %v11438_v26 = vmul.f32 0.088388346, %v11300_v24 }
 0x2a7   : > { %16225 = vst [vmem:[#allocation91_spill] sm:$0xff] %v11417_v57  ;;  %v2020_v10 = vsub.f32 %v16226_v46, %v11417_v57  ;;  %v2021_v27 = vsub.f32 %v16227_v48, %v11417_v57  ;;  %1904 = vmax.xlane.f32.xlu0 %v1903_v60  ;;  %v11427_v58 = vpop.eup %8880  ;;  %v16232_v60 = vld [vmem:[#allocation100_spill] sm:$0xff] }
 0x2a8   : > { %v11433_v54 = vpop.xlane.xlu1 %1788  ;;  %v11435_v29 = vpop.eup %8882  ;;  %16230 = vst [vmem:[#allocation218_spill] sm:$0xff] %v11438_v26  ;;  %1908 = vmax.xlane.f32.xlu1 %v1907_v16  ;;  %v2563_v63 = vpack.c.bf16 %v11427_v58, %v11414_v11  ;;  %v1910_v16 = vmax.f32 %v11430_v13, %v11438_v26 }
 0x2a9   : > { %16229 = vst [vmem:[#allocation97_spill] sm:$0xff] %v11433_v54  ;;  %v2266_v25 = vmul.f32 1.442695, %v2020_v10  ;;  %v2268_v46 = vmul.f32 1.442695, %v2021_v27  ;;  %v2023_v48 = vsub.f32 %v16231_v22, %v11433_v54  ;;  %v2024_v57 = vsub.f32 %v16232_v60, %v11433_v54  ;;  %v11448_v43 = vpop.f32.mrb[112].mxu0 }
 0x2aa   : > { %v2564_v19 = vpack.c.bf16 %v11435_v29, %v11421_v40  ;;  %v11451_v24 = vpop.f32.mrb[113].mxu0  ;;  %v11454_v10 = vmul.f32 0.088388346, %v11312_v37  ;;  %v11457_v22 = vmul.f32 0.088388346, %v11319_v15  ;;  %8387 = vmatmul.mubr.bf16.gmra.mrb[76].mxu1 %v2563_v63  ;;  %v16235_v60 = vld [vmem:[#allocation121_spill] sm:$0xff] }
 0x2ab   : > { %v2272_v2 = vmul.f32 1.442695, %v2023_v48  ;;  %2722 = vadd.xlane.f32.xlu0 %v11314_v49  ;;  %8892 = vpow2.f32 %v2266_v25  ;;  %v2274_v27 = vmul.f32 1.442695, %v2024_v57  ;;  %v11462_v54 = vmul.f32 0.088388346, %v16235_v60 }
 0x2ac   : > { %16233 = vst [vmem:[#allocation98_spill] sm:$0xff] %v11454_v10  ;;  %16234 = vst [vmem:[#allocation100_spill] sm:$0xff] %v11457_v22  ;;  %8467 = vmatmul.mubr.bf16.gmra.mrb[140].mxu0 %v2564_v19  ;;  %8894 = vpow2.f32 %v2268_v46  ;;  %v11464_v49 = vpop.f32.mrb[114].mxu0  ;;  %2724 = vadd.xlane.f32.xlu1 %v11328_v52  ;;  %v16238_v57 = vld [vmem:[#allocation103_spill] sm:$0xff]  ;;  %v16239_v19 = vld [vmem:[#allocation104_spill] sm:$0xff] }
 0x2ad   : > { %16236 = vst [vmem:[#allocation121_spill] sm:$0xff] %v11462_v54  ;;  %v11466_v48 = vpop.eup %8884  ;;  %8896 = vpow2.f32 %v2272_v2  ;;  %v11471_v15 = vpop.f32.mrb[115].mxu0  ;;  %v1914_v2 = vmax.f32 %v11454_v10, %v11457_v22  ;;  %v16240_v52 = vld [vmem:[#allocation124_spill] sm:$0xff]  ;;  %v16245_v22 = vld [vmem:[#allocation107_spill] sm:$0xff] }
 0x2ae   : > { %v11469_v37 = vpop.xlane.xlu0 %1792  ;;  %v11473_v25 = vpop.eup %8886  ;;  %8898 = vpow2.f32 %v2274_v27  ;;  %v11485_v26 = vmul.f32 0.088388346, %v16240_v52  ;;  %v1911_v27 = vmax.f32 %v1910_v16, %v11462_v54 }
 0x2af   : > { %16237 = vst [vmem:[#allocation219_spill] sm:$0xff] %v11469_v37  ;;  %v2026_v63 = vsub.f32 %v16238_v57, %v11469_v37  ;;  %v2027_v46 = vsub.f32 %v16239_v19, %v11469_v37  ;;  %3763 = vadd.xlane.f32.xlu0 %v11321_v4  ;;  %v11480_v60 = vpop.eup %8888  ;;  %v16243_v19 = vld [vmem:[#allocation106_spill] sm:$0xff]  ;;  %v11496_v4 = vmul.f32 0.088388346, %v11352_v6 }
 0x2b0   : > { %16241 = vst [vmem:[#allocation103_spill] sm:$0xff] %v11485_v26  ;;  %v11487_v13 = vpop.xlane.xlu1 %1796  ;;  %v11489_v36 = vpop.eup %8890  ;;  %3765 = vadd.xlane.f32.xlu1 %v11337_v23  ;;  %v2566_v10 = vpack.c.bf16 %v11480_v60, %v11466_v48  ;;  %v1915_v6 = vmax.f32 %v1914_v2, %v11485_v26  ;;  %v16250_v2 = vld [vmem:[#allocation114_spill] sm:$0xff] }
 0x2b1   : > { %16242 = vst [vmem:[#allocation104_spill] sm:$0xff] %v11487_v13  ;;  %v2278_v57 = vmul.f32 1.442695, %v2026_v63  ;;  %v2280_v31 = vmul.f32 1.442695, %v2027_v46  ;;  %v2029_v37 = vsub.f32 %v16243_v19, %v11487_v13  ;;  %16244 = vst [vmem:[#allocation124_spill] sm:$0xff] %v11496_v4  ;;  %v2030_v52 = vsub.f32 %v16245_v22, %v11487_v13 }
 0x2b2   : > { %v2567_v50 = vpack.c.bf16 %v11489_v36, %v11473_v25  ;;  %v11504_v16 = vpop.f32.mrb[116].mxu0  ;;  %v11507_v46 = vmul.f32 0.088388346, %v11357_v42  ;;  %8390 = vmatprep.mubr.bf16.mxu1 %v2566_v10 }
 0x2b3   : > { %v2284_v63 = vmul.f32 1.442695, %v2029_v37  ;;  %1912 = vmax.xlane.f32.xlu0 %v1911_v27  ;;  %v11509_v23 = vpop.f32.mrb[117].mxu0  ;;  %8900 = vpow2.f32 %v2278_v57  ;;  %v2286_v19 = vmul.f32 1.442695, %v2030_v52 }
 0x2b4   : > { %16246 = vst [vmem:[#allocation106_spill] sm:$0xff] %v11507_v46  ;;  %8470 = vmatprep.mubr.bf16.mxu0 %v2567_v50  ;;  %8902 = vpow2.f32 %v2280_v31  ;;  %v11512_v22 = vpop.f32.mrb[118].mxu0  ;;  %1916 = vmax.xlane.f32.xlu1 %v1915_v6  ;;  %v11517_v37 = vmul.f32 0.088388346, %v10951_v38  ;;  %v1918_v50 = vmax.f32 %v11496_v4, %v11507_v46  ;;  %v16249_v31 = vld [vmem:[#allocation112_spill] sm:$0xff] }
 0x2b5   : > { %v11514_v54 = vpop.eup %8892  ;;  %8904 = vpow2.f32 %v2284_v63  ;;  %v11521_v27 = vpop.f32.mrb[119].mxu0  ;;  %v11535_v52 = vmul.f32 0.088388346, %v11360_v33  ;;  %v11538_v63 = vmul.f32 0.088388346, %v11369_v59 }
 0x2b6   : > { %16247 = vst [vmem:[#allocation107_spill] sm:$0xff] %v11517_v37  ;;  %v11519_v42 = vpop.xlane.xlu0 %1800  ;;  %v11523_v13 = vpop.eup %8894  ;;  %8906 = vpow2.f32 %v2286_v19  ;;  %v1919_v20 = vmax.f32 %v1918_v50, %v11517_v37 }
 0x2b7   : > { %16248 = vst [vmem:[#allocation220_spill] sm:$0xff] %v11519_v42  ;;  %v2032_v10 = vsub.f32 %v16249_v31, %v11519_v42  ;;  %v2033_v57 = vsub.f32 %v16250_v2, %v11519_v42  ;;  %2726 = vadd.xlane.f32.xlu0 %v11362_v1  ;;  %v11532_v38 = vpop.eup %8896  ;;  %16251 = vst [vmem:[#allocation112_spill] sm:$0xff] %v11535_v52  ;;  %v16254_v31 = vld [vmem:[#allocation116_spill] sm:$0xff]  ;;  %v16255_v1 = vld [vmem:[#allocation118_spill] sm:$0xff] }
 0x2b8   : > { %16252 = vst [vmem:[#allocation114_spill] sm:$0xff] %v11538_v63  ;;  %v11540_v6 = vpop.xlane.xlu1 %1804  ;;  %v11542_v19 = vpop.eup %8898  ;;  %2728 = vadd.xlane.f32.xlu1 %v11380_v30  ;;  %v2569_v33 = vpack.c.bf16 %v11532_v38, %v11514_v54  ;;  %v1922_v30 = vmax.f32 %v11535_v52, %v11538_v63  ;;  %v16262_v63 = vld [vmem:[#allocation125_spill] sm:$0xff] }
 0x2b9   : > { %16253 = vst [vmem:[#allocation221_spill] sm:$0xff] %v11540_v6  ;;  %v2290_v26 = vmul.f32 1.442695, %v2032_v10  ;;  %v2292_v46 = vmul.f32 1.442695, %v2033_v57  ;;  %v2035_v4 = vsub.f32 %v16254_v31, %v11540_v6  ;;  %v2036_v2 = vsub.f32 %v16255_v1, %v11540_v6  ;;  %v11553_v42 = vpop.f32.mrb[120].mxu0 }
 0x2ba   : > { %v2570_v59 = vpack.c.bf16 %v11542_v19, %v11523_v13  ;;  %v11557_v57 = vpop.f32.mrb[121].mxu0  ;;  %v11562_v31 = vmul.f32 0.088388346, %v10975_v5  ;;  %8391 = vmatmul.mubr.bf16.gmra.mrb[80].mxu1 %v2569_v33  ;;  %v11582_v33 = vmul.f32 0.088388346, %v11401_v53 }
 0x2bb   : > { %v2296_v10 = vmul.f32 1.442695, %v2035_v4  ;;  %3767 = vadd.xlane.f32.xlu0 %v11371_v41  ;;  %8908 = vpow2.f32 %v2290_v26  ;;  %v2298_v1 = vmul.f32 1.442695, %v2036_v2  ;;  %v11564_v6 = vpop.f32.mrb[122].mxu0  ;;  %v16258_v26 = vld [vmem:[#allocation122_spill] sm:$0xff] }
 0x2bc   : > { %16256 = vst [vmem:[#allocation116_spill] sm:$0xff] %v11562_v31  ;;  %8471 = vmatmul.mubr.bf16.gmra.mrb[144].mxu0 %v2570_v59  ;;  %8910 = vpow2.f32 %v2292_v46  ;;  %3769 = vadd.xlane.f32.xlu1 %v11390_v12  ;;  %v11571_v4 = vpop.f32.mrb[123].mxu0  ;;  %16259 = vst [vmem:[#allocation122_spill] sm:$0xff] %v11582_v33  ;;  %v1923_v12 = vmax.f32 %v1922_v30, %v11562_v31 }
 0x2bd   : > { %v11566_v32 = vpop.eup %8900  ;;  %8912 = vpow2.f32 %v2296_v10 }
 0x2be   : > { %v11569_v41 = vpop.xlane.xlu0 %1808  ;;  %v11573_v50 = vpop.eup %8902  ;;  %8914 = vpow2.f32 %v2298_v1  ;;  %v11590_v1 = vmul.f32 0.088388346, %v11405_v56 }
 0x2bf   : > { %16257 = vst [vmem:[#allocation118_spill] sm:$0xff] %v11569_v41  ;;  %v2038_v5 = vsub.f32 %v10895_v0, %v11569_v41  ;;  %v2039_v46 = vsub.f32 %v16258_v26, %v11569_v41  ;;  %1920 = vmax.xlane.f32.xlu0 %v1919_v20  ;;  %v11579_v2 = vpop.eup %8904  ;;  %v16263_v20 = vld [vmem:[#allocation126_spill] sm:$0xff] }
 0x2c0   : > { %v11585_v59 = vpop.xlane.xlu1 %1812  ;;  %v11587_v10 = vpop.eup %8906  ;;  %16261 = vst [vmem:[#allocation223_spill] sm:$0xff] %v11590_v1  ;;  %1924 = vmax.xlane.f32.xlu1 %v1923_v12  ;;  %v2572_v53 = vpack.c.bf16 %v11579_v2, %v11566_v32  ;;  %v1926_v12 = vmax.f32 %v11582_v33, %v11590_v1 }
 0x2c1   : > { %16260 = vst [vmem:[#allocation222_spill] sm:$0xff] %v11585_v59  ;;  %v2302_v37 = vmul.f32 1.442695, %v2038_v5  ;;  %v2304_v0 = vmul.f32 1.442695, %v2039_v46  ;;  %v2041_v26 = vsub.f32 %v16262_v63, %v11585_v59  ;;  %v2042_v41 = vsub.f32 %v16263_v20, %v11585_v59  ;;  %v11600_v31 = vpop.f32.mrb[124].mxu0 }
 0x2c2   : > { %v2573_v30 = vpack.c.bf16 %v11587_v10, %v11573_v50  ;;  %v11603_v56 = vpop.f32.mrb[125].mxu0  ;;  %v11606_v5 = vmul.f32 0.088388346, %v11412_v18  ;;  %v11609_v63 = vmul.f32 0.088388346, %v11419_v61  ;;  %8394 = vmatprep.mubr.bf16.mxu1 %v2572_v53 }
 0x2c3   : > { %v2308_v52 = vmul.f32 1.442695, %v2041_v26  ;;  %2730 = vadd.xlane.f32.xlu0 %v11414_v11  ;;  %8916 = vpow2.f32 %v2302_v37  ;;  %v2310_v46 = vmul.f32 1.442695, %v2042_v41  ;;  %v11614_v20 = vmul.f32 0.088388346, %v10948_v45 }
 0x2c4   : > { %16264 = vst [vmem:[#allocation125_spill] sm:$0xff] %v11606_v5  ;;  %16265 = vst [vmem:[#allocation126_spill] sm:$0xff] %v11609_v63  ;;  %8474 = vmatprep.mubr.bf16.mxu0 %v2573_v30  ;;  %8918 = vpow2.f32 %v2304_v0  ;;  %v11616_v11 = vpop.f32.mrb[126].mxu0  ;;  %2732 = vadd.xlane.f32.xlu1 %v11427_v58  ;;  %v16268_v45 = vld [vmem:[#allocation131_spill] sm:$0xff]  ;;  %v1930_v58 = vmax.f32 %v11606_v5, %v11609_v63  ;;  %v11654_v5 = vmul.f32 0.088388346, %v11448_v43 }
 0x2c5   : > { %16266 = vst [vmem:[#allocation224_spill] sm:$0xff] %v11614_v20  ;;  %v11618_v26 = vpop.eup %8908  ;;  %8920 = vpow2.f32 %v2308_v52  ;;  %v11623_v61 = vpop.f32.mrb[127].mxu0  ;;  %v16269_v52 = vld [vmem:[#allocation145_spill] sm:$0xff] }
 0x2c6   : > { %v11621_v18 = vpop.xlane.xlu0 %1816  ;;  %v11625_v37 = vpop.eup %8910  ;;  %8922 = vpow2.f32 %v2310_v46  ;;  %v11637_v30 = vmul.f32 0.088388346, %v16269_v52  ;;  %v1927_v46 = vmax.f32 %v1926_v12, %v11614_v20 }
 0x2c7   : > { %16267 = vst [vmem:[#allocation225_spill] sm:$0xff] %v11621_v18  ;;  %v2044_v41 = vsub.f32 %v10925_v7, %v11621_v18  ;;  %v2045_v0 = vsub.f32 %v16268_v45, %v11621_v18  ;;  %3771 = vadd.xlane.f32.xlu0 %v11421_v40  ;;  %v11632_v53 = vpop.eup %8912  ;;  %v16271_v45 = vld [vmem:[#allocation132_spill] sm:$0xff]  ;;  %v16272_v40 = vld [vmem:[#allocation134_spill] sm:$0xff] }
 0x2c8   : > { %16270 = vst [vmem:[#allocation131_spill] sm:$0xff] %v11637_v30  ;;  %v11639_v59 = vpop.xlane.xlu1 %1820  ;;  %v11641_v1 = vpop.eup %8914  ;;  %3773 = vadd.xlane.f32.xlu1 %v11435_v29  ;;  %v2575_v52 = vpack.c.bf16 %v11632_v53, %v11618_v26 }
 0x2c9   : > { %v2314_v7 = vmul.f32 1.442695, %v2044_v41  ;;  %v2316_v33 = vmul.f32 1.442695, %v2045_v0  ;;  %v2047_v18 = vsub.f32 %v16271_v45, %v11639_v59  ;;  %v2048_v35 = vsub.f32 %v16272_v40, %v11639_v59 }
 0x2ca   : > { %v2576_v63 = vpack.c.bf16 %v11641_v1, %v11625_v37  ;;  %v11657_v41 = vmul.f32 0.088388346, %v11451_v24  ;;  %v1931_v0 = vmax.f32 %v1930_v58, %v11637_v30  ;;  %8395 = vmatmul.mubr.bf16.gmra.mrb[84].mxu1 %v2575_v52  ;;  %v11663_v40 = vmul.f32 0.088388346, %v11035_v28 }
 0x2cb   : > { %v2320_v12 = vmul.f32 1.442695, %v2047_v18  ;;  %1928 = vmax.xlane.f32.xlu0 %v1927_v46  ;;  %8924 = vpow2.f32 %v2314_v7  ;;  %v2322_v29 = vmul.f32 1.442695, %v2048_v35  ;;  %v16275_v35 = vld [vmem:[#allocation137_spill] sm:$0xff] }
 0x2cc   : > { %8475 = vmatmul.mubr.bf16.gmra.mrb[148].mxu0 %v2576_v63  ;;  %8926 = vpow2.f32 %v2316_v33  ;;  %1932 = vmax.xlane.f32.xlu1 %v1931_v0  ;;  %16273 = vst [vmem:[#allocation145_spill] sm:$0xff] %v11663_v40  ;;  %v1934_v24 = vmax.f32 %v11654_v5, %v11657_v41  ;;  %v16276_v33 = vld [vmem:[#allocation138_spill] sm:$0xff]  ;;  %v11679_v28 = vmul.f32 0.088388346, %v11464_v49  ;;  %v11682_v7 = vmul.f32 0.088388346, %v11471_v15 }
 0x2cd   : > { %v11660_v45 = vpop.eup %8916  ;;  %8928 = vpow2.f32 %v2320_v12 }
 0x2ce   : > { %v11665_v43 = vpop.xlane.xlu0 %1824  ;;  %v11667_v18 = vpop.eup %8918  ;;  %8930 = vpow2.f32 %v2322_v29  ;;  %v1935_v20 = vmax.f32 %v1934_v24, %v11663_v40 }
 0x2cf   : > { %16274 = vst [vmem:[#allocation132_spill] sm:$0xff] %v11665_v43  ;;  %v2050_v58 = vsub.f32 %v16275_v35, %v11665_v43  ;;  %v2051_v63 = vsub.f32 %v16276_v33, %v11665_v43  ;;  %2734 = vadd.xlane.f32.xlu0 %v11466_v48  ;;  %v11676_v46 = vpop.eup %8920  ;;  %v16278_v35 = vld [vmem:[#allocation141_spill] sm:$0xff]  ;;  %v16279_v48 = vld [vmem:[#allocation143_spill] sm:$0xff] }
 0x2d0   : > { %v11684_v52 = vpop.xlane.xlu1 %1828  ;;  %v11686_v12 = vpop.eup %8922  ;;  %2736 = vadd.xlane.f32.xlu1 %v11480_v60  ;;  %v2578_v49 = vpack.c.bf16 %v11676_v46, %v11660_v45  ;;  %v11702_v60 = vmul.f32 0.088388346, %v11059_v34  ;;  %v16282_v34 = vld [vmem:[#allocation149_spill] sm:$0xff] }
 0x2d1   : > { %16277 = vst [vmem:[#allocation134_spill] sm:$0xff] %v11684_v52  ;;  %v2326_v0 = vmul.f32 1.442695, %v2050_v58  ;;  %v2328_v29 = vmul.f32 1.442695, %v2051_v63  ;;  %v2053_v30 = vsub.f32 %v16278_v35, %v11684_v52  ;;  %v2054_v33 = vsub.f32 %v16279_v48, %v11684_v52 }
 0x2d2   : > { %v2579_v15 = vpack.c.bf16 %v11686_v12, %v11667_v18  ;;  %v1938_v58 = vmax.f32 %v11679_v28, %v11682_v7  ;;  %16280 = vst [vmem:[#allocation137_spill] sm:$0xff] %v11702_v60  ;;  %8398 = vmatprep.mubr.bf16.mxu1 %v2578_v49  ;;  %v11726_v49 = vmul.f32 0.088388346, %v11509_v23  ;;  %v11738_v23 = vmul.f32 0.088388346, %v11512_v22 }
 0x2d3   : > { %v2332_v43 = vmul.f32 1.442695, %v2053_v30  ;;  %3775 = vadd.xlane.f32.xlu0 %v11473_v25  ;;  %8932 = vpow2.f32 %v2326_v0  ;;  %v2334_v63 = vmul.f32 1.442695, %v2054_v33  ;;  %v11782_v52 = vmul.f32 0.088388346, %v11553_v42 }
 0x2d4   : > { %8478 = vmatprep.mubr.bf16.mxu0 %v2579_v15  ;;  %8934 = vpow2.f32 %v2328_v29  ;;  %3777 = vadd.xlane.f32.xlu1 %v11489_v36  ;;  %v11718_v29 = vmul.f32 0.088388346, %v11504_v16 }
 0x2d5   : > { %v11704_v35 = vpop.eup %8924  ;;  %8936 = vpow2.f32 %v2332_v43  ;;  %v1939_v43 = vmax.f32 %v1938_v58, %v11702_v60 }
 0x2d6   : > { %v11707_v24 = vpop.xlane.xlu0 %1832  ;;  %v11709_v30 = vpop.eup %8926  ;;  %8938 = vpow2.f32 %v2334_v63 }
 0x2d7   : > { %16281 = vst [vmem:[#allocation138_spill] sm:$0xff] %v11707_v24  ;;  %v2056_v25 = vsub.f32 %v10983_v17, %v11707_v24  ;;  %v2057_v0 = vsub.f32 %v16282_v34, %v11707_v24  ;;  %1936 = vmax.xlane.f32.xlu0 %v1935_v20  ;;  %v11715_v48 = vpop.eup %8928  ;;  %v16284_v20 = vld [vmem:[#allocation151_spill] sm:$0xff] }
 0x2d8   : > { %v11721_v36 = vpop.xlane.xlu1 %1836  ;;  %v11723_v33 = vpop.eup %8930  ;;  %1940 = vmax.xlane.f32.xlu1 %v1939_v43  ;;  %v2581_v16 = vpack.c.bf16 %v11715_v48, %v11704_v35  ;;  %v11746_v43 = vmul.f32 0.088388346, %v11032_v9 }
 0x2d9   : > { %16283 = vst [vmem:[#allocation141_spill] sm:$0xff] %v11721_v36  ;;  %v2338_v15 = vmul.f32 1.442695, %v2056_v25  ;;  %v2340_v17 = vmul.f32 1.442695, %v2057_v0  ;;  %v2059_v63 = vsub.f32 %v10992_v51, %v11721_v36  ;;  %v2060_v34 = vsub.f32 %v16284_v20, %v11721_v36  ;;  %v16288_v20 = vld [vmem:[#allocation155_spill] sm:$0xff] }
 0x2da   : > { %v2582_v58 = vpack.c.bf16 %v11723_v33, %v11709_v30  ;;  %v11741_v25 = vmul.f32 0.088388346, %v11521_v27  ;;  %8399 = vmatmul.mubr.bf16.gmra.mrb[88].mxu1 %v2581_v16  ;;  %v1942_v0 = vmax.f32 %v11718_v29, %v11726_v49  ;;  %16285 = vst [vmem:[#allocation143_spill] sm:$0xff] %v11746_v43  ;;  %v16287_v27 = vld [vmem:[#allocation154_spill] sm:$0xff] }
 0x2db   : > { %v2344_v60 = vmul.f32 1.442695, %v2059_v63  ;;  %2738 = vadd.xlane.f32.xlu0 %v11514_v54  ;;  %8940 = vpow2.f32 %v2338_v15  ;;  %v2346_v51 = vmul.f32 1.442695, %v2060_v34 }
 0x2dc   : > { %8479 = vmatmul.mubr.bf16.gmra.mrb[152].mxu0 %v2582_v58  ;;  %8942 = vpow2.f32 %v2340_v17  ;;  %2740 = vadd.xlane.f32.xlu1 %v11532_v38  ;;  %v16289_v17 = vld [vmem:[#allocation169_spill] sm:$0xff] }
 0x2dd   : > { %v11748_v63 = vpop.eup %8932  ;;  %8944 = vpow2.f32 %v2344_v60  ;;  %v1946_v60 = vmax.f32 %v11738_v23, %v11741_v25  ;;  %v11765_v38 = vmul.f32 0.088388346, %v16289_v17 }
 0x2de   : > { %v11751_v54 = vpop.xlane.xlu0 %1840  ;;  %v11753_v22 = vpop.eup %8934  ;;  %8946 = vpow2.f32 %v2346_v51  ;;  %v1943_v51 = vmax.f32 %v1942_v0, %v11746_v43 }
 0x2df   : > { %16286 = vst [vmem:[#allocation149_spill] sm:$0xff] %v11751_v54  ;;  %v2062_v15 = vsub.f32 %v16287_v27, %v11751_v54  ;;  %v2063_v34 = vsub.f32 %v16288_v20, %v11751_v54  ;;  %3779 = vadd.xlane.f32.xlu0 %v11523_v13  ;;  %v11760_v9 = vpop.eup %8936  ;;  %16290 = vst [vmem:[#allocation151_spill] sm:$0xff] %v11765_v38  ;;  %v16291_v20 = vld [vmem:[#allocation157_spill] sm:$0xff]  ;;  %v16292_v13 = vld [vmem:[#allocation158_spill] sm:$0xff] }
 0x2e0   : > { %v11767_v16 = vpop.xlane.xlu1 %1844  ;;  %v11769_v58 = vpop.eup %8938  ;;  %3781 = vadd.xlane.f32.xlu1 %v11542_v19  ;;  %v2584_v17 = vpack.c.bf16 %v11760_v9, %v11748_v63 }
 0x2e1   : > { %v2350_v27 = vmul.f32 1.442695, %v2062_v15  ;;  %v2352_v40 = vmul.f32 1.442695, %v2063_v34  ;;  %v2065_v54 = vsub.f32 %v16291_v20, %v11767_v16  ;;  %v2066_v24 = vsub.f32 %v16292_v13, %v11767_v16 }
 0x2e2   : > { %v2585_v36 = vpack.c.bf16 %v11769_v58, %v11753_v22  ;;  %v11785_v15 = vmul.f32 0.088388346, %v11557_v57  ;;  %v1947_v34 = vmax.f32 %v1946_v60, %v11765_v38  ;;  %8402 = vmatprep.mubr.bf16.mxu1 %v2584_v17  ;;  %v11791_v13 = vmul.f32 0.088388346, %v11127_v44 }
 0x2e3   : > { %v2356_v0 = vmul.f32 1.442695, %v2065_v54  ;;  %1944 = vmax.xlane.f32.xlu0 %v1943_v51  ;;  %8948 = vpow2.f32 %v2350_v27  ;;  %v2358_v19 = vmul.f32 1.442695, %v2066_v24  ;;  %v16294_v24 = vld [vmem:[#allocation162_spill] sm:$0xff] }
 0x2e4   : > { %8482 = vmatprep.mubr.bf16.mxu0 %v2585_v36  ;;  %8950 = vpow2.f32 %v2352_v40  ;;  %1948 = vmax.xlane.f32.xlu1 %v1947_v34  ;;  %16293 = vst [vmem:[#allocation154_spill] sm:$0xff] %v11791_v13  ;;  %v1950_v57 = vmax.f32 %v11782_v52, %v11785_v15  ;;  %v16295_v40 = vld [vmem:[#allocation164_spill] sm:$0xff]  ;;  %v11807_v44 = vmul.f32 0.088388346, %v11564_v6  ;;  %v11810_v27 = vmul.f32 0.088388346, %v11571_v4 }
 0x2e5   : > { %v11788_v20 = vpop.eup %8940  ;;  %8952 = vpow2.f32 %v2356_v0 }
 0x2e6   : > { %v11793_v42 = vpop.xlane.xlu0 %1848  ;;  %v11795_v54 = vpop.eup %8942  ;;  %8954 = vpow2.f32 %v2358_v19  ;;  %v1951_v38 = vmax.f32 %v1950_v57, %v11791_v13 }
 0x2e7   : > { %v2068_v60 = vsub.f32 %v16294_v24, %v11793_v42  ;;  %v2069_v36 = vsub.f32 %v16295_v40, %v11793_v42  ;;  %2742 = vadd.xlane.f32.xlu0 %v11566_v32  ;;  %v11804_v51 = vpop.eup %8944  ;;  %v16296_v32 = vld [vmem:[#allocation168_spill] sm:$0xff] }
 0x2e8   : > { %v11812_v17 = vpop.xlane.xlu1 %1852  ;;  %v11814_v0 = vpop.eup %8946  ;;  %2744 = vadd.xlane.f32.xlu1 %v11579_v2  ;;  %v2587_v6 = vpack.c.bf16 %v11804_v51, %v11788_v20 }
 0x2e9   : > { %v2362_v34 = vmul.f32 1.442695, %v2068_v60  ;;  %v2364_v19 = vmul.f32 1.442695, %v2069_v36  ;;  %v2071_v24 = vsub.f32 %v11046_v8, %v11812_v17  ;;  %v2072_v40 = vsub.f32 %v16296_v32, %v11812_v17 }
 0x2ea   : > { %v2588_v4 = vpack.c.bf16 %v11814_v0, %v11795_v54  ;;  %v1954_v60 = vmax.f32 %v11807_v44, %v11810_v27  ;;  %v11830_v8 = vmul.f32 0.088388346, %v11162_v62  ;;  %8403 = vmatmul.mubr.bf16.gmra.mrb[92].mxu1 %v2587_v6  ;;  %v11842_v62 = vmul.f32 0.088388346, %v11600_v31  ;;  %v16299_v31 = vld [vmem:[#allocation174_spill] sm:$0xff] }
 0x2eb   : > { %v2368_v43 = vmul.f32 1.442695, %v2071_v24  ;;  %3783 = vadd.xlane.f32.xlu0 %v11573_v50  ;;  %8956 = vpow2.f32 %v2362_v34  ;;  %v2370_v2 = vmul.f32 1.442695, %v2072_v40  ;;  %v11854_v6 = vmul.f32 0.088388346, %v11603_v56 }
 0x2ec   : > { %16297 = vst [vmem:[#allocation155_spill] sm:$0xff] %v11830_v8  ;;  %8483 = vmatmul.mubr.bf16.gmra.mrb[156].mxu0 %v2588_v4  ;;  %8958 = vpow2.f32 %v2364_v19  ;;  %3785 = vadd.xlane.f32.xlu1 %v11587_v10  ;;  %v1955_v34 = vmax.f32 %v1954_v60, %v11830_v8  ;;  %v11866_v56 = vmul.f32 0.088388346, %v11616_v11  ;;  %v11882_v11 = vmul.f32 0.088388346, %v11154_v47 }
 0x2ed   : > { %v11832_v36 = vpop.eup %8948  ;;  %8960 = vpow2.f32 %v2368_v43  ;;  %v16298_v43 = vld [vmem:[#allocation172_spill] sm:$0xff] }
 0x2ee   : > { %v11835_v57 = vpop.eup %8950  ;;  %8962 = vpow2.f32 %v2370_v2  ;;  %16301 = vst [vmem:[#allocation157_spill] sm:$0xff] %v11882_v11 }
 0x2ef   : > { %v11837_v50 = vpop.xlane.xlu0 %1856  ;;  %1952 = vmax.xlane.f32.xlu0 %v1951_v38  ;;  %v11839_v24 = vpop.eup %8952 }
 0x2f0   : > { %v2074_v19 = vsub.f32 %v11067_v21, %v11837_v50  ;;  %v2075_v32 = vsub.f32 %v16298_v43, %v11837_v50  ;;  %v11849_v10 = vpop.xlane.xlu1 %1860  ;;  %v11851_v40 = vpop.eup %8954  ;;  %v2590_v60 = vpack.c.bf16 %v11839_v24, %v11832_v36  ;;  %1956 = vmax.xlane.f32.xlu1 %v1955_v34  ;;  %v11874_v34 = vmul.f32 0.088388346, %v11123_v14 }
 0x2f1   : > { %v2077_v38 = vsub.f32 %v11073_v3, %v11849_v10  ;;  %v2078_v4 = vsub.f32 %v16299_v31, %v11849_v10  ;;  %v2591_v43 = vpack.c.bf16 %v11851_v40, %v11835_v57  ;;  %v11869_v3 = vmul.f32 0.088388346, %v11623_v61 }
 0x2f2   : > { %v2374_v21 = vmul.f32 1.442695, %v2074_v19  ;;  %v2376_v2 = vmul.f32 1.442695, %v2075_v32  ;;  %8406 = vmatprep.mubr.bf16.mxu1 %v2590_v60  ;;  %v1958_v19 = vmax.f32 %v11842_v62, %v11854_v6  ;;  %16300 = vst [vmem:[#allocation169_spill] sm:$0xff] %v11874_v34 }
 0x2f3   : > { %v2380_v8 = vmul.f32 1.442695, %v2077_v38  ;;  %2746 = vadd.xlane.f32.xlu0 %v11618_v26  ;;  %v2382_v31 = vmul.f32 1.442695, %v2078_v4  ;;  %8486 = vmatprep.mubr.bf16.mxu0 %v2591_v43  ;;  %v1962_v14 = vmax.f32 %v11866_v56, %v11869_v3 }
 0x2f4   : > { %8964 = vpow2.f32 %v2374_v21  ;;  %2748 = vadd.xlane.f32.xlu1 %v11632_v53  ;;  %v1959_v47 = vmax.f32 %v1958_v19, %v11874_v34  ;;  %v16306_v34 = vld [vmem:[#allocation182_spill] sm:$0xff] }
 0x2f5   : > { %v11876_v32 = vpop.eup %8956  ;;  %8966 = vpow2.f32 %v2376_v2 }
 0x2f6   : > { %v11879_v26 = vpop.eup %8958  ;;  %8968 = vpow2.f32 %v2380_v8  ;;  %v11884_v61 = vpop.xlane.xlu0 %1864 }
 0x2f7   : > { %16302 = vst [vmem:[#allocation158_spill] sm:$0xff] %v11884_v61  ;;  %3787 = vadd.xlane.f32.xlu0 %v11625_v37  ;;  %v11887_v38 = vpop.eup %8960  ;;  %8970 = vpow2.f32 %v2382_v31  ;;  %v2080_v4 = vsub.f32 %v11099_v39, %v11884_v61  ;;  %v2081_v53 = vsub.f32 %v11105_v55, %v11884_v61  ;;  %v1963_v55 = vmax.f32 %v1962_v14, %v11882_v11  ;;  %v16305_v31 = vld [vmem:[#allocation179_spill] sm:$0xff] }
 0x2f8   : > { %v11895_v60 = vpop.eup %8962  ;;  %v2593_v8 = vpack.c.bf16 %v11887_v38, %v11876_v32  ;;  %3789 = vadd.xlane.f32.xlu1 %v11641_v1 }
 0x2f9   : > { %v2386_v37 = vmul.f32 1.442695, %v2080_v4  ;;  %v2594_v21 = vpack.c.bf16 %v11895_v60, %v11879_v26  ;;  %v2388_v2 = vmul.f32 1.442695, %v2081_v53  ;;  %v11903_v43 = vpop.xlane.xlu1 %1868 }
 0x2fa   : > { %16303 = vst [vmem:[#allocation162_spill] sm:$0xff] %v11903_v43  ;;  %8407 = vmatmul.mubr.bf16.gmra.mrb[96].mxu1 %v2593_v8  ;;  %v2083_v19 = vsub.f32 %v16305_v31, %v11903_v43  ;;  %v2084_v4 = vsub.f32 %v16306_v34, %v11903_v43 }
 0x2fb   : > { %1960 = vmax.xlane.f32.xlu0 %v1959_v47  ;;  %v11905_v39 = vpop.xlane.xlu0 %2702  ;;  %8487 = vmatmul.mubr.bf16.gmra.mrb[160].mxu0 %v2594_v21  ;;  %8972 = vpow2.f32 %v2386_v37 }
 0x2fc   : > { %16304 = vst [vmem:[#allocation164_spill] sm:$0xff] %v11905_v39  ;;  %v2392_v1 = vmul.f32 1.442695, %v2083_v19  ;;  %v2394_v13 = vmul.f32 1.442695, %v2084_v4  ;;  %1964 = vmax.xlane.f32.xlu1 %v1963_v55  ;;  %8974 = vpow2.f32 %v2388_v2 }
 0x2fd   : > { %v11914_v8 = vpop.xlane.xlu1 %3743 }
 0x2fe   : > { %v11912_v53 = vpop.eup %8964  ;;  %8976 = vpow2.f32 %v2392_v1 }
 0x2ff   : > { %2750 = vadd.xlane.f32.xlu0 %v11660_v45  ;;  %v11917_v47 = vpop.eup %8966  ;;  %8978 = vpow2.f32 %v2394_v13  ;;  %v16309_v13 = vld [vmem:[#allocation185_spill] sm:$0xff] }
 0x300   : > { %v11919_v14 = vpop.xlane.xlu0 %3745  ;;  %v11921_v31 = vpop.eup %8968  ;;  %2752 = vadd.xlane.f32.xlu1 %v11676_v46  ;;  %v16310_v46 = vld [vmem:[#allocation186_spill] sm:$0xff] }
 0x301   : > { %v11923_v34 = vpop.eup %8970  ;;  %v2596_v37 = vpack.c.bf16 %v11921_v31, %v11912_v53  ;;  %v11928_v21 = vpop.xlane.xlu1 %2704 }
 0x302   : > { %16307 = vst [vmem:[#allocation168_spill] sm:$0xff] %v11928_v21  ;;  %v2597_v45 = vpack.c.bf16 %v11923_v34, %v11917_v47 }
 0x303   : > { %3791 = vadd.xlane.f32.xlu0 %v11667_v18  ;;  %8410 = vmatprep.mubr.bf16.mxu1 %v2596_v37  ;;  %v16312_v37 = vld [vmem:[#allocation189_spill] sm:$0xff] }
 0x304   : > { %v11933_v2 = vpop.xlane.xlu0 %1872  ;;  %8490 = vmatprep.mubr.bf16.mxu0 %v2597_v45  ;;  %3793 = vadd.xlane.f32.xlu1 %v11686_v12  ;;  %v16313_v45 = vld [vmem:[#allocation190_spill] sm:$0xff]  ;;  %v8812_v12 = vld [vmem:[%s10224_s12 + $0x80] sm:$0xff]  }
 0x305   : > { %16308 = vst [vmem:[#allocation172_spill] sm:$0xff] %v11933_v2  ;;  %v2086_v55 = vsub.f32 %v16309_v13, %v11933_v2  ;;  %v2087_v19 = vsub.f32 %v16310_v46, %v11933_v2  ;;  %v11940_v21 = vpop.xlane.xlu1 %1876  ;;  %v11943_v18 = vpop.eup %8972  ;;  %8518 = vmatprep.subr.bf16.mxu1 %v8812_v12 }
 0x306   : > { %16311 = vst [vmem:[#allocation174_spill] sm:$0xff] %v11940_v21  ;;  %v2089_v11 = vsub.f32 %v16312_v37, %v11940_v21  ;;  %v2090_v13 = vsub.f32 %v16313_v45, %v11940_v21  ;;  %v11951_v46 = vpop.eup %8974  ;;  %8519 = vmatpush3.bf16.msra.mxu1 %v8812_v12 }
 0x307   : > { %v2398_v4 = vmul.f32 1.442695, %v2086_v55  ;;  %v2400_v1 = vmul.f32 1.442695, %v2087_v19  ;;  %2754 = vadd.xlane.f32.xlu0 %v11704_v35 }
 0x308   : > { %v11949_v61 = vpop.xlane.xlu0 %2706  ;;  %v11954_v55 = vpop.eup %8976  ;;  %v2404_v19 = vmul.f32 1.442695, %v2089_v11  ;;  %v2406_v2 = vmul.f32 1.442695, %v2090_v13  ;;  %2756 = vadd.xlane.f32.xlu1 %v11715_v48 }
 0x309   : > { %16314 = vst [vmem:[#allocation179_spill] sm:$0xff] %v11949_v61  ;;  %8980 = vpow2.f32 %v2398_v4  ;;  %v11957_v35 = vpop.eup %8978  ;;  %v11959_v37 = vpop.xlane.xlu1 %2708  ;;  %v2599_v45 = vpack.c.bf16 %v11954_v55, %v11943_v18  ;;  %v8813_v61 = vld [vmem:[%s10224_s12 + $0x88] sm:$0xff]  }
 0x30a   : > { %8982 = vpow2.f32 %v2400_v1  ;;  %16315 = vst [vmem:[#allocation182_spill] sm:$0xff] %v11959_v37  ;;  %v2600_v11 = vpack.c.bf16 %v11957_v35, %v11951_v46  ;;  %8520 = vmatprep.subr.bf16.mxu1 %v8813_v61  ;;  %v16317_v1 = vld [vmem:[#allocation194_spill] sm:$0xff] }
 0x30b   : > { %3795 = vadd.xlane.f32.xlu0 %v11709_v30  ;;  %8984 = vpow2.f32 %v2404_v19  ;;  %8411 = vmatmul.mubr.bf16.gmra.mrb[100].mxu1 %v2599_v45  ;;  %v16318_v19 = vld [vmem:[#allocation196_spill] sm:$0xff] }
 0x30c   : > { %v11967_v4 = vpop.xlane.xlu0 %3747  ;;  %8986 = vpow2.f32 %v2406_v2  ;;  %8491 = vmatmul.mubr.bf16.gmra.mrb[164].mxu0 %v2600_v11  ;;  %3797 = vadd.xlane.f32.xlu1 %v11723_v33  ;;  %v8814_v2 = vld [vmem:[%s10224_s12 + $0x90] sm:$0xff]  }
 0x30d   : > { %v11970_v48 = vpop.xlane.xlu1 %3749  ;;  %8521 = vmatpush3.bf16.msra.mxu1 %v8813_v61  ;;  %v16320_v61 = vld [vmem:[#allocation197_spill] sm:$0xff] }
 0x30e   : > { %8522 = vmatprep.subr.bf16.mxu1 %v8814_v2 }
 0x30f   : > { %2758 = vadd.xlane.f32.xlu0 %v11748_v63 }
 0x310   : > { %v11973_v30 = vpop.xlane.xlu0 %1880  ;;  %2760 = vadd.xlane.f32.xlu1 %v11760_v9 }
 0x311   : > { %16316 = vst [vmem:[#allocation185_spill] sm:$0xff] %v11973_v30  ;;  %v2092_v13 = vsub.f32 %v16317_v1, %v11973_v30  ;;  %v2093_v12 = vsub.f32 %v16318_v19, %v11973_v30  ;;  %v11981_v33 = vpop.xlane.xlu1 %1884  ;;  %v16321_v1 = vld [vmem:[#allocation198_spill] sm:$0xff]  ;;  %8523 = vmatpush3.bf16.msra.mxu1 %v8814_v2  ;;  %v8816_v2 = vld [vmem:[%s10224_s12 + $0xa0] sm:$0xff]  }
 0x312   : > { %16319 = vst [vmem:[#allocation186_spill] sm:$0xff] %v11981_v33  ;;  %v2095_v37 = vsub.f32 %v16320_v61, %v11981_v33  ;;  %v2096_v21 = vsub.f32 %v16321_v1, %v11981_v33 }
 0x313   : > { %v2410_v45 = vmul.f32 1.442695, %v2092_v13  ;;  %v2412_v11 = vmul.f32 1.442695, %v2093_v12  ;;  %3799 = vadd.xlane.f32.xlu0 %v11753_v22  ;;  %v11984_v63 = vpop.eup %8980  ;;  %v8815_v13 = vld [vmem:[%s10224_s12 + $0x98] sm:$0xff]  }
 0x314   : > { %v11990_v19 = vpop.xlane.xlu0 %2710  ;;  %v11992_v9 = vpop.eup %8982  ;;  %v2416_v22 = vmul.f32 1.442695, %v2095_v37  ;;  %v2418_v30 = vmul.f32 1.442695, %v2096_v21  ;;  %3801 = vadd.xlane.f32.xlu1 %v11769_v58  ;;  %8524 = vmatprep.subr.bf16.mxu1 %v8815_v13 }
 0x315   : > { %16322 = vst [vmem:[#allocation189_spill] sm:$0xff] %v11990_v19  ;;  %v11995_v12 = vpop.eup %8984  ;;  %8988 = vpow2.f32 %v2410_v45  ;;  %v12000_v61 = vpop.xlane.xlu1 %2712  ;;  %8525 = vmatpush3.bf16.msra.mxu1 %v8815_v13  ;;  %v8817_v45 = vld [vmem:[%s10224_s12 + $0xa8] sm:$0xff]   ;;  %v16326_v13 = vld [vmem:[#allocation204_spill] sm:$0xff] }
 0x316   : > { %v11998_v43 = vpop.eup %8986  ;;  %8990 = vpow2.f32 %v2412_v11  ;;  %16323 = vst [vmem:[#allocation190_spill] sm:$0xff] %v12000_v61  ;;  %v2602_v1 = vpack.c.bf16 %v11995_v12, %v11984_v63  ;;  %8526 = vmatprep.subr.bf16.mxu1 %v8816_v2  ;;  %v16325_v11 = vld [vmem:[#allocation203_spill] sm:$0xff]  ;;  %v16328_v61 = vld [vmem:[#allocation208_spill] sm:$0xff] }
 0x317   : > { %2762 = vadd.xlane.f32.xlu0 %v11788_v20  ;;  %8992 = vpow2.f32 %v2416_v22  ;;  %v2603_v37 = vpack.c.bf16 %v11998_v43, %v11992_v9 }
 0x318   : > { %v12008_v21 = vpop.xlane.xlu0 %3751  ;;  %8994 = vpow2.f32 %v2418_v30  ;;  %8414 = vmatprep.mubr.bf16.mxu1 %v2602_v1  ;;  %2764 = vadd.xlane.f32.xlu1 %v11804_v51 }
 0x319   : > { %8494 = vmatprep.mubr.bf16.mxu0 %v2603_v37  ;;  %v12011_v58 = vpop.xlane.xlu1 %3753  ;;  %8527 = vmatpush3.bf16.msra.mxu1 %v8816_v2  ;;  %v16327_v2 = vld [vmem:[#allocation207_spill] sm:$0xff] }
 0x31a   : > { %8528 = vmatprep.subr.bf16.mxu1 %v8817_v45 }
 0x31b   : > { %3803 = vadd.xlane.f32.xlu0 %v11795_v54 }
 0x31c   : > { %v12014_v20 = vpop.xlane.xlu0 %1888  ;;  %3805 = vadd.xlane.f32.xlu1 %v11814_v0 }
 0x31d   : > { %16324 = vst [vmem:[#allocation194_spill] sm:$0xff] %v12014_v20  ;;  %v2098_v22 = vsub.f32 %v16325_v11, %v12014_v20  ;;  %v2099_v30 = vsub.f32 %v16326_v13, %v12014_v20  ;;  %v12022_v37 = vpop.xlane.xlu1 %1892  ;;  %8529 = vmatpush3.bf16.msra.mxu1 %v8817_v45  ;;  %v8818_v13 = vld [vmem:[%s10224_s12 + $0xb0] sm:$0xff]  }
 0x31e   : > { %v2101_v19 = vsub.f32 %v16327_v2, %v12022_v37  ;;  %v2102_v11 = vsub.f32 %v16328_v61, %v12022_v37  ;;  %8530 = vmatprep.subr.bf16.mxu1 %v8818_v13 }
 0x31f   : > { %v2422_v1 = vmul.f32 1.442695, %v2098_v22  ;;  %v2424_v51 = vmul.f32 1.442695, %v2099_v30  ;;  %2766 = vadd.xlane.f32.xlu0 %v11832_v36  ;;  %v12025_v54 = vpop.eup %8988 }
 0x320   : > { %v12031_v33 = vpop.xlane.xlu0 %2714  ;;  %v12034_v0 = vpop.eup %8990  ;;  %v2428_v30 = vmul.f32 1.442695, %v2101_v19  ;;  %v2430_v36 = vmul.f32 1.442695, %v2102_v11  ;;  %2768 = vadd.xlane.f32.xlu1 %v11839_v24  ;;  %v8819_v19 = vld [vmem:[%s10224_s12 + $0xb8] sm:$0xff]   ;;  %s7426_s12 = scalar_lea.sflag [#allocation4], %s10203_s1 }
 0x321   : > { %16329 = vst [vmem:[#allocation196_spill] sm:$0xff] %v12031_v33  ;;  %v12036_v22 = vpop.eup %8992  ;;  %8996 = vpow2.f32 %v2422_v1  ;;  %v12041_v2 = vpop.xlane.xlu1 %2716  ;;  %8531 = vmatpush3.bf16.msra.mxu1 %v8818_v13 }
 0x322   : > { %v12039_v20 = vpop.eup %8994  ;;  %8998 = vpow2.f32 %v2424_v51  ;;  %16330 = vst [vmem:[#allocation197_spill] sm:$0xff] %v12041_v2  ;;  %v2605_v61 = vpack.c.bf16 %v12036_v22, %v12025_v54  ;;  %8532 = vmatprep.subr.bf16.mxu1 %v8819_v19 }
 0x323   : > { %3807 = vadd.xlane.f32.xlu0 %v11835_v57  ;;  %9000 = vpow2.f32 %v2428_v30  ;;  %v2606_v45 = vpack.c.bf16 %v12039_v20, %v12034_v0  ;;  %v16332_v57 = vld [vmem:[#allocation212_spill] sm:$0xff]  ;;  %v16333_v30 = vld [vmem:[#allocation214_spill] sm:$0xff] }
 0x324   : > { %v12048_v1 = vpop.xlane.xlu0 %3755  ;;  %9002 = vpow2.f32 %v2430_v36  ;;  %8415 = vmatmul.mubr.bf16.gmra.mrb[104].mxu1 %v2605_v61  ;;  %3809 = vadd.xlane.f32.xlu1 %v11851_v40 }
 0x325   : > { %8495 = vmatmul.mubr.bf16.gmra.mrb[168].mxu0 %v2606_v45  ;;  %v12052_v24 = vpop.xlane.xlu1 %3757  ;;  %8533 = vmatpush3.bf16.msra.mxu1 %v8819_v19  ;;  %v16336_v19 = vld [vmem:[#allocation75_spill] sm:$0xff] }
 0x326   : > { %16331 = vst [vmem:[#allocation198_spill] sm:$0xff] %v12052_v24 }
 0x327   : > { %2770 = vadd.xlane.f32.xlu0 %v11876_v32  ;;  %v16335_v32 = vld [vmem:[#allocation74_spill] sm:$0xff] }
 0x328   : > { %v12055_v51 = vpop.xlane.xlu0 %1896  ;;  %2772 = vadd.xlane.f32.xlu1 %v11887_v38 }
 0x329   : > { %v2104_v11 = vsub.f32 %v16332_v57, %v12055_v51  ;;  %v2105_v13 = vsub.f32 %v16333_v30, %v12055_v51  ;;  %v12062_v45 = vpop.xlane.xlu1 %1900 }
 0x32a   : > { %v2107_v33 = vsub.f32 %v16335_v32, %v12062_v45  ;;  %v2108_v2 = vsub.f32 %v16336_v19, %v12062_v45 }
 0x32b   : > { %v2434_v36 = vmul.f32 1.442695, %v2104_v11  ;;  %v2436_v61 = vmul.f32 1.442695, %v2105_v13  ;;  %3811 = vadd.xlane.f32.xlu0 %v11879_v26  ;;  %v12065_v40 = vpop.eup %8996 }
 0x32c   : > { %16334 = vst [vmem:[#allocation203_spill] sm:$0xff] %v12065_v40  ;;  %v12071_v57 = vpop.xlane.xlu0 %2718  ;;  %v12073_v24 = vpop.eup %8998  ;;  %v2440_v38 = vmul.f32 1.442695, %v2107_v33  ;;  %v2442_v11 = vmul.f32 1.442695, %v2108_v2  ;;  %3813 = vadd.xlane.f32.xlu1 %v11895_v60  ;;  %v16344_v2 = vld [vmem:[#allocation115_spill] sm:$0xff] }
 0x32d   : > { %16337 = vst [vmem:[#allocation204_spill] sm:$0xff] %v12071_v57  ;;  %16338 = vst [vmem:[#allocation207_spill] sm:$0xff] %v12073_v24  ;;  %v12075_v30 = vpop.eup %9000  ;;  %9004 = vpow2.f32 %v2434_v36  ;;  %v12080_v13 = vpop.xlane.xlu1 %2720  ;;  %v16345_v36 = vld [vmem:[#allocation82_spill] sm:$0xff] }
 0x32e   : > { %16339 = vst [vmem:[#allocation208_spill] sm:$0xff] %v12075_v30  ;;  %v12078_v26 = vpop.eup %9002  ;;  %9006 = vpow2.f32 %v2436_v61  ;;  %16341 = vst [vmem:[#allocation214_spill] sm:$0xff] %v12080_v13  ;;  %v2608_v32 = vpack.c.bf16 %v12075_v30, %v12065_v40 }
 0x32f   : > { %16340 = vst [vmem:[#allocation212_spill] sm:$0xff] %v12078_v26  ;;  %2774 = vadd.xlane.f32.xlu0 %v11912_v53  ;;  %9008 = vpow2.f32 %v2440_v38  ;;  %v2609_v19 = vpack.c.bf16 %v12078_v26, %v12073_v24  ;;  %v9460_v24 = vld [vmem:[%s10226_s28 + $0x8] sm:$0xff] }
 0x330   : > { %v12087_v57 = vpop.xlane.xlu0 %3759  ;;  %9010 = vpow2.f32 %v2442_v11  ;;  %8418 = vmatprep.mubr.bf16.mxu1 %v2608_v32  ;;  %2776 = vadd.xlane.f32.xlu1 %v11921_v31  ;;  %v16347_v31 = vld [vmem:[#allocation87_spill] sm:$0xff] }
 0x331   : > { %16342 = vst [vmem:[#allocation74_spill] sm:$0xff] %v12087_v57  ;;  %8498 = vmatprep.mubr.bf16.mxu0 %v2609_v19  ;;  %v12090_v60 = vpop.xlane.xlu1 %3761 }
 0x332   : > { %16343 = vst [vmem:[#allocation75_spill] sm:$0xff] %v12090_v60 }
 0x333   : > { %3815 = vadd.xlane.f32.xlu0 %v11917_v47  ;;  %v16348_v47 = vld [vmem:[#allocation88_spill] sm:$0xff] }
 0x334   : > { %v12093_v33 = vpop.xlane.xlu0 %1904  ;;  %3817 = vadd.xlane.f32.xlu1 %v11923_v34 }
 0x335   : > { %v2110_v53 = vsub.f32 %v16344_v2, %v12093_v33  ;;  %v2111_v61 = vsub.f32 %v16345_v36, %v12093_v33  ;;  %v12100_v32 = vpop.xlane.xlu1 %1908 }
 0x336   : > { %v2113_v13 = vsub.f32 %v16347_v31, %v12100_v32  ;;  %v2114_v60 = vsub.f32 %v16348_v47, %v12100_v32 }
 0x337   : > { %v2446_v38 = vmul.f32 1.442695, %v2110_v53  ;;  %v2448_v11 = vmul.f32 1.442695, %v2111_v61  ;;  %v12102_v19 = vpop.eup %9004 }
 0x338   : > { %16346 = vst [vmem:[#allocation115_spill] sm:$0xff] %v12102_v19  ;;  %v12108_v26 = vpop.xlane.xlu0 %2722  ;;  %v12110_v2 = vpop.eup %9006  ;;  %v2452_v34 = vmul.f32 1.442695, %v2113_v13  ;;  %v2454_v53 = vmul.f32 1.442695, %v2114_v60 }
 0x339   : > { %16349 = vst [vmem:[#allocation82_spill] sm:$0xff] %v12108_v26  ;;  %16350 = vst [vmem:[#allocation87_spill] sm:$0xff] %v12110_v2  ;;  %v12112_v30 = vpop.eup %9008  ;;  %9012 = vpow2.f32 %v2446_v38  ;;  %v12116_v61 = vpop.xlane.xlu1 %2724  ;;  %v6401_v60 = vmax.f32 %v11905_v39, 1e-30  ;;  %v16362_v39 = vld [vmem:[#allocation100_spill] sm:$0xff] }
 0x33a   : > { %16351 = vst [vmem:[#allocation88_spill] sm:$0xff] %v12112_v30  ;;  %v12114_v36 = vpop.eup %9010  ;;  %9014 = vpow2.f32 %v2448_v11  ;;  %16353 = vst [vmem:[#allocation227_spill] sm:$0xff] %v12116_v61  ;;  %v2611_v31 = vpack.c.bf16 %v12112_v30, %v12102_v19  ;;  %v16357_v11 = vld [vmem:[#allocation95_spill] sm:$0xff] }
 0x33b   : > { %16352 = vst [vmem:[#allocation226_spill] sm:$0xff] %v12114_v36  ;;  %9016 = vpow2.f32 %v2452_v34  ;;  %v2612_v47 = vpack.c.bf16 %v12114_v36, %v12110_v2  ;;  %v16358_v34 = vld [vmem:[#allocation218_spill] sm:$0xff] }
 0x33c   : > { %v12122_v26 = vpop.xlane.xlu0 %3763  ;;  %9018 = vpow2.f32 %v2454_v53  ;;  %8419 = vmatmul.mubr.bf16.gmra.mrb[108].mxu1 %v2611_v31 }
 0x33d   : > { %16354 = vst [vmem:[#allocation228_spill] sm:$0xff] %v12122_v26  ;;  %8499 = vmatmul.mubr.bf16.gmra.mrb[172].mxu0 %v2612_v47  ;;  %v12124_v13 = vpop.xlane.xlu1 %3765  ;;  %9020 = vrcp.f32 %v6401_v60  ;;  %v16361_v47 = vld [vmem:[#allocation98_spill] sm:$0xff] }
 0x33e   : > { %16355 = vst [vmem:[#allocation229_spill] sm:$0xff] %v12124_v13 }
 0x340   : > { %v12127_v38 = vpop.xlane.xlu0 %1912 }
 0x341   : > { %16356 = vst [vmem:[#allocation230_spill] sm:$0xff] %v12127_v38  ;;  %v2116_v61 = vsub.f32 %v16357_v11, %v12127_v38  ;;  %v2117_v30 = vsub.f32 %v16358_v34, %v12127_v38  ;;  %v12133_v2 = vpop.xlane.xlu1 %1916 }
 0x342   : > { %16359 = vst [vmem:[#allocation95_spill] sm:$0xff] %v12133_v2  ;;  %v2119_v13 = vsub.f32 %v16361_v47, %v12133_v2  ;;  %v2120_v19 = vsub.f32 %v16362_v39, %v12133_v2  ;;  %v16395_v2 = vld [vmem:[#allocation72_spill] sm:$0xff] }
 0x343   : > { %v2458_v36 = vmul.f32 1.442695, %v2116_v61  ;;  %v12135_v53 = vpop.eup %9012  ;;  %v2460_v31 = vmul.f32 1.442695, %v2117_v30  ;;  %v4209_v61 = vmul.f32 %v9460_v24, %v11919_v14  ;;  %v9461_v30 = vld [vmem:[%s10226_s28] sm:$0xff] }
 0x344   : > { %16360 = vst [vmem:[#allocation218_spill] sm:$0xff] %v12135_v53  ;;  %v12141_v26 = vpop.xlane.xlu0 %2726  ;;  %v12143_v11 = vpop.eup %9014  ;;  %v2464_v40 = vmul.f32 1.442695, %v2119_v13  ;;  %v2466_v57 = vmul.f32 1.442695, %v2120_v19  ;;  %v4208_v47 = vmul.f32 %v9461_v30, %v11914_v8  ;;  %v9462_v19 = vld [vmem:[%s10226_s28 + $0x10] sm:$0xff] }
 0x345   : > { %16363 = vst [vmem:[#allocation98_spill] sm:$0xff] %v12141_v26  ;;  %16364 = vst [vmem:[#allocation100_spill] sm:$0xff] %v12143_v11  ;;  %v12147_v34 = vpop.eup %9016  ;;  %9022 = vpow2.f32 %v2458_v36  ;;  %v12153_v38 = vpop.xlane.xlu1 %2728  ;;  %4338 = vrot.lane.b32.xlu1 %v4209_v61, %s9864_s26  ;;  %v4210_v13 = vmul.f32 %v9462_v19, %v11967_v4  ;;  %v16372_v30 = vld [vmem:[#allocation106_spill] sm:$0xff] }
 0x346   : > { %16365 = vst [vmem:[#allocation231_spill] sm:$0xff] %v12147_v34  ;;  %v12149_v60 = vpop.eup %9018  ;;  %16367 = vst [vmem:[#allocation233_spill] sm:$0xff] %v12153_v38  ;;  %v2614_v39 = vpack.c.bf16 %v12147_v34, %v12135_v53  ;;  %9024 = vpow2.f32 %v2460_v31  ;;  %v16371_v31 = vld [vmem:[#allocation124_spill] sm:$0xff] }
 0x347   : > { %16366 = vst [vmem:[#allocation232_spill] sm:$0xff] %v12149_v60  ;;  %v2615_v14 = vpack.c.bf16 %v12149_v60, %v12143_v11  ;;  %9026 = vpow2.f32 %v2464_v40  ;;  %v9021_v38 = vpop.eup %9020 }
 0x348   : > { %v12160_v24 = vpop.xlane.xlu0 %3767  ;;  %8422 = vmatprep.mubr.bf16.mxu1 %v2614_v39  ;;  %9028 = vpow2.f32 %v2466_v57  ;;  %v16374_v57 = vld [vmem:[#allocation112_spill] sm:$0xff] }
 0x349   : > { %16368 = vst [vmem:[#allocation234_spill] sm:$0xff] %v12160_v24  ;;  %4336 = vrot.lane.b32.xlu0 %v4208_v47, %s9864_s26  ;;  %8502 = vmatprep.mubr.bf16.mxu0 %v2615_v14  ;;  %v12165_v8 = vpop.xlane.xlu1 %3769  ;;  %v16375_v14 = vld [vmem:[#allocation114_spill] sm:$0xff] }
 0x34a   : > { %16369 = vst [vmem:[#allocation235_spill] sm:$0xff] %v12165_v8  ;;  %4340 = vrot.lane.b32.xlu1 %v4210_v13, %s9864_s26 }
 0x34c   : > { %v12168_v36 = vpop.xlane.xlu0 %1920 }
 0x34d   : > { %16370 = vst [vmem:[#allocation236_spill] sm:$0xff] %v12168_v36  ;;  %v2122_v61 = vsub.f32 %v16371_v31, %v12168_v36  ;;  %v2123_v26 = vsub.f32 %v16372_v30, %v12168_v36  ;;  %v12174_v39 = vpop.xlane.xlu1 %1924  ;;  %v16379_v31 = vld [vmem:[#allocation25_spill] sm:$0xff] }
 0x34e   : > { %16373 = vst [vmem:[#allocation124_spill] sm:$0xff] %v12174_v39  ;;  %v2125_v47 = vsub.f32 %v16374_v57, %v12174_v39  ;;  %v2126_v19 = vsub.f32 %v16375_v14, %v12174_v39  ;;  %v16383_v14 = vld [vmem:[#allocation77_spill] sm:$0xff] }
 0x34f   : > { %v2470_v4 = vmul.f32 1.442695, %v2122_v61  ;;  %v2472_v40 = vmul.f32 1.442695, %v2123_v26  ;;  %v12180_v13 = vpop.f32.mrb[64].mxu1  ;;  %v12184_v60 = vpop.eup %9022  ;;  %v6529_v26 = vmul.f32 0.5, %v9021_v38 }
 0x350   : > { %16376 = vst [vmem:[#allocation106_spill] sm:$0xff] %v12180_v13  ;;  %v12182_v8 = vpop.xlane.xlu0 %2730  ;;  %16378 = vst [vmem:[#allocation114_spill] sm:$0xff] %v12184_v60  ;;  %v3617_v30 = vmul.f32 %v12180_v13, %v16379_v31  ;;  %v8456_v34 = vpop.f32.mrb[128].mxu0  ;;  %v2476_v57 = vmul.f32 1.442695, %v2125_v47 }
 0x351   : > { %16377 = vst [vmem:[#allocation112_spill] sm:$0xff] %v12182_v8  ;;  %v12188_v61 = vpop.f32.mrb[65].mxu1  ;;  %v12190_v11 = vpop.eup %9024  ;;  %9030 = vpow2.f32 %v2470_v4  ;;  %v2478_v53 = vmul.f32 1.442695, %v2126_v19  ;;  %v4850_v39 = vmul.f32 %v8456_v34, %v16383_v14  ;;  %v16390_v19 = vld [vmem:[#allocation26_spill] sm:$0xff]  ;;  %v16392_v14 = vld [vmem:[#allocation85_spill] sm:$0xff] }
 0x352   : > { %16380 = vst [vmem:[#allocation25_spill] sm:$0xff] %v12188_v61  ;;  %16381 = vst [vmem:[#allocation237_spill] sm:$0xff] %v12190_v11  ;;  %v12192_v24 = vpop.eup %9026  ;;  %9032 = vpow2.f32 %v2472_v40  ;;  %v12196_v8 = vmul.f32 %v6529_v26, %v12188_v61  ;;  %v12198_v36 = vpop.xlane.xlu1 %2732  ;;  %v16393_v61 = vld [vmem:[#allocation24_spill] sm:$0xff] }
 0x353   : > { %16382 = vst [vmem:[#allocation238_spill] sm:$0xff] %v12192_v24  ;;  %16385 = vst [vmem:[#allocation239_spill] sm:$0xff] %v12198_v36  ;;  %v12200_v31 = vpop.f32.mrb[129].mxu0  ;;  %v12202_v13 = vpop.eup %9028  ;;  %9034 = vpow2.f32 %v2476_v57  ;;  %v12206_v47 = vadd.f32 %v4850_v39, %v3617_v30  ;;  %v2617_v57 = vpack.c.bf16 %v12192_v24, %v12184_v60 }
 0x354   : > { %16384 = vst [vmem:[#allocation77_spill] sm:$0xff] %v12196_v8  ;;  %16386 = vst [vmem:[#allocation240_spill] sm:$0xff] %v12200_v31  ;;  %v12204_v38 = vpop.f32.mrb[66].mxu1  ;;  %v8457_v4 = vpop.f32.mrb[130].mxu0  ;;  %9036 = vpow2.f32 %v2478_v53  ;;  %v2618_v39 = vpack.c.bf16 %v12202_v13, %v12190_v11 }
 0x355   : > { %16387 = vst [vmem:[#allocation241_spill] sm:$0xff] %v12202_v13  ;;  %16388 = vst [vmem:[#allocation242_spill] sm:$0xff] %v12204_v38  ;;  %v3618_v40 = vmul.f32 %v12204_v38, %v16390_v19  ;;  %v12210_v34 = vpop.f32.mrb[67].mxu1  ;;  %v3956_v26 = vpop.f32.mrb[131].mxu0  ;;  %v4851_v8 = vmul.f32 %v8457_v4, %v16392_v14  ;;  %8423 = vmatmul.mubr.bf16.gmra.mrb[112].mxu1 %v2617_v57 }
 0x356   : > { %16389 = vst [vmem:[#allocation243_spill] sm:$0xff] %v12206_v47  ;;  %16391 = vst [vmem:[#allocation26_spill] sm:$0xff] %v12210_v34  ;;  %v3616_v31 = vmul.f32 %v16393_v61, %v12210_v34  ;;  %v12215_v36 = vpop.xlane.xlu0 %3771  ;;  %v4849_v53 = vmul.f32 %v16395_v2, %v3956_v26  ;;  %v12222_v30 = vpop.xlane.xlu1 %3773  ;;  %8503 = vmatmul.mubr.bf16.gmra.mrb[176].mxu0 %v2618_v39  ;;  %v16400_v61 = vld [vmem:[#allocation122_spill] sm:$0xff]  ;;  %v16401_v34 = vld [vmem:[#allocation223_spill] sm:$0xff] }
 0x357   : > { %16394 = vst [vmem:[#allocation85_spill] sm:$0xff] %v12215_v36  ;;  %16396 = vst [vmem:[#allocation24_spill] sm:$0xff] %v12222_v30  ;;  %v12224_v19 = vadd.f32 %v4851_v8, %v3618_v40  ;;  %v16404_v30 = vld [vmem:[#allocation125_spill] sm:$0xff]  ;;  %v16405_v40 = vld [vmem:[#allocation126_spill] sm:$0xff] }
 0x358   : > { %v12226_v38 = vadd.f32 %v4849_v53, %v3616_v31  ;;  %v16415_v36 = vld [vmem:[#allocation27_spill] sm:$0xff] }
 0x359   : > { %16397 = vst [vmem:[#allocation72_spill] sm:$0xff] %v12224_v19 }
 0x35a   : > { %16398 = vst [vmem:[#allocation244_spill] sm:$0xff] %v12226_v38  ;;  %v12228_v4 = vpop.xlane.xlu0 %1928  ;;  %v12234_v2 = vpop.xlane.xlu1 %1932 }
 0x35b   : > { %16399 = vst [vmem:[#allocation245_spill] sm:$0xff] %v12228_v4  ;;  %v2128_v14 = vsub.f32 %v16400_v61, %v12228_v4  ;;  %v2129_v47 = vsub.f32 %v16401_v34, %v12228_v4  ;;  %16402 = vst [vmem:[#allocation122_spill] sm:$0xff] %v12234_v2  ;;  %v12236_v26 = vpop.eup %9030  ;;  %v2131_v8 = vsub.f32 %v16404_v30, %v12234_v2  ;;  %v16417_v4 = vld [vmem:[#allocation78_spill] sm:$0xff] }
 0x35c   : > { %16403 = vst [vmem:[#allocation223_spill] sm:$0xff] %v12236_v26  ;;  %v2132_v31 = vsub.f32 %v16405_v40, %v12234_v2  ;;  %v12242_v57 = vpop.eup %9032  ;;  %v16412_v40 = vld [vmem:[#allocation29_spill] sm:$0xff] }
 0x35d   : > { %16406 = vst [vmem:[#allocation125_spill] sm:$0xff] %v12242_v57  ;;  %v2482_v53 = vmul.f32 1.442695, %v2128_v14  ;;  %v2484_v39 = vmul.f32 1.442695, %v2129_v47  ;;  %v12244_v19 = vpop.eup %9034  ;;  %v12252_v11 = vpop.f32.mrb[68].mxu1 }
 0x35e   : > { %16407 = vst [vmem:[#allocation126_spill] sm:$0xff] %v12244_v19  ;;  %v2488_v61 = vmul.f32 1.442695, %v2131_v8  ;;  %v12246_v38 = vpop.xlane.xlu0 %2734  ;;  %v12248_v34 = vpop.eup %9036  ;;  %v2490_v13 = vmul.f32 1.442695, %v2132_v31  ;;  %16411 = vst [vmem:[#allocation249_spill] sm:$0xff] %v12252_v11  ;;  %v2620_v30 = vpack.c.bf16 %v12244_v19, %v12236_v26  ;;  %v3621_v14 = vmul.f32 %v12252_v11, %v16412_v40 }
 0x35f   : > { %16408 = vst [vmem:[#allocation246_spill] sm:$0xff] %v12246_v38  ;;  %16409 = vst [vmem:[#allocation247_spill] sm:$0xff] %v12248_v34  ;;  %v12250_v24 = vpop.xlane.xlu1 %2736  ;;  %9038 = vpow2.f32 %v2482_v53  ;;  %v8460_v47 = vpop.f32.mrb[132].mxu0  ;;  %v16414_v8 = vld [vmem:[#allocation86_spill] sm:$0xff]  ;;  %v2621_v53 = vpack.c.bf16 %v12248_v34, %v12242_v57  ;;  %v16423_v34 = vld [vmem:[#allocation28_spill] sm:$0xff] }
 0x360   : > { %16410 = vst [vmem:[#allocation248_spill] sm:$0xff] %v12250_v24  ;;  %v12258_v60 = vpop.f32.mrb[69].mxu1  ;;  %9040 = vpow2.f32 %v2484_v39  ;;  %v4854_v38 = vmul.f32 %v8460_v47, %v16414_v8  ;;  %8426 = vmatprep.mubr.bf16.mxu1 %v2620_v30  ;;  %v3969_v24 = vpop.f32.mrb[133].mxu0  ;;  %v16419_v47 = vld [vmem:[#allocation30_spill] sm:$0xff] }
 0x361   : > { %16413 = vst [vmem:[#allocation29_spill] sm:$0xff] %v12258_v60  ;;  %v3619_v31 = vmul.f32 %v16415_v36, %v12258_v60  ;;  %v12263_v2 = vpop.f32.mrb[70].mxu1  ;;  %9042 = vpow2.f32 %v2488_v61  ;;  %v4852_v19 = vmul.f32 %v16417_v4, %v3969_v24  ;;  %v8461_v11 = vpop.f32.mrb[134].mxu0  ;;  %8506 = vmatprep.mubr.bf16.mxu0 %v2621_v53  ;;  %v16422_v24 = vld [vmem:[#allocation101_spill] sm:$0xff] }
 0x362   : > { %16416 = vst [vmem:[#allocation86_spill] sm:$0xff] %v12263_v2  ;;  %v12268_v40 = vpop.xlane.xlu0 %3775  ;;  %9044 = vpow2.f32 %v2490_v13  ;;  %v12270_v39 = vadd.f32 %v4854_v38, %v3621_v14  ;;  %v3622_v8 = vmul.f32 %v12263_v2, %v16419_v47  ;;  %v12274_v36 = vpop.f32.mrb[71].mxu1  ;;  %v4855_v4 = vmul.f32 %v8461_v11, %v16422_v24  ;;  %v16425_v13 = vld [vmem:[#allocation93_spill] sm:$0xff]  ;;  %v16433_v2 = vld [vmem:[#allocation31_spill] sm:$0xff] }
 0x363   : > { %16420 = vst [vmem:[#allocation78_spill] sm:$0xff] %v12274_v36  ;;  %v12276_v30 = vpop.xlane.xlu1 %3777  ;;  %v12278_v60 = vadd.f32 %v4852_v19, %v3619_v31  ;;  %v3972_v61 = vpop.f32.mrb[135].mxu0  ;;  %v3620_v57 = vmul.f32 %v16423_v34, %v12274_v36 }
 0x364   : > { %16418 = vst [vmem:[#allocation27_spill] sm:$0xff] %v12270_v39  ;;  %v12283_v26 = vadd.f32 %v4855_v4, %v3622_v8  ;;  %v4853_v38 = vmul.f32 %v16425_v13, %v3972_v61 }
 0x365   : > { %16421 = vst [vmem:[#allocation30_spill] sm:$0xff] %v12278_v60  ;;  %v9464_v60 = vld [vmem:[%s10226_s28 + $0x20] sm:$0xff] }
 0x366   : > { %16424 = vst [vmem:[#allocation101_spill] sm:$0xff] %v12283_v26  ;;  %v12286_v14 = vpop.xlane.xlu0 %1936  ;;  %v12294_v53 = vadd.f32 %v4853_v38, %v3620_v57  ;;  %v16435_v26 = vld [vmem:[#allocation94_spill] sm:$0xff] }
 0x367   : > { %v2134_v47 = vsub.f32 %v11654_v5, %v12286_v14  ;;  %v2135_v19 = vsub.f32 %v11657_v41, %v12286_v14  ;;  %v12292_v31 = vpop.xlane.xlu1 %1940 }
 0x368   : > { %16426 = vst [vmem:[#allocation28_spill] sm:$0xff] %v12294_v53  ;;  %v2137_v11 = vsub.f32 %v11679_v28, %v12292_v31  ;;  %v2138_v34 = vsub.f32 %v11682_v7, %v12292_v31  ;;  %2778 = vadd.xlane.f32.xlu0 %v11943_v18 }
 0x369   : > { %v2494_v8 = vmul.f32 1.442695, %v2134_v47  ;;  %v2496_v24 = vmul.f32 1.442695, %v2135_v19  ;;  %v12301_v4 = vpop.eup %9038 }
 0x36a   : > { %v2500_v5 = vmul.f32 1.442695, %v2137_v11  ;;  %v12303_v61 = vpop.xlane.xlu0 %2738  ;;  %v12305_v41 = vpop.eup %9040  ;;  %v2502_v13 = vmul.f32 1.442695, %v2138_v34 }
 0x36b   : > { %16427 = vst [vmem:[#allocation93_spill] sm:$0xff] %v12303_v61  ;;  %v12307_v57 = vpop.xlane.xlu1 %2740  ;;  %v12309_v38 = vpop.eup %9042  ;;  %9046 = vpow2.f32 %v2494_v8 }
 0x36c   : > { %16428 = vst [vmem:[#allocation250_spill] sm:$0xff] %v12307_v57  ;;  %3819 = vadd.xlane.f32.xlu0 %v11951_v46  ;;  %v12312_v28 = vpop.eup %9044  ;;  %9048 = vpow2.f32 %v2496_v24  ;;  %v2623_v7 = vpack.c.bf16 %v12309_v38, %v12301_v4  ;;  %v16430_v46 = vld [vmem:[#allocation32_spill] sm:$0xff] }
 0x36d   : > { %9050 = vpow2.f32 %v2500_v5  ;;  %v2624_v18 = vpack.c.bf16 %v12312_v28, %v12305_v41  ;;  %v12323_v11 = vpop.f32.mrb[72].mxu1  ;;  %v16432_v5 = vld [vmem:[#allocation102_spill] sm:$0xff] }
 0x36e   : > { %v12318_v47 = vpop.xlane.xlu0 %3779  ;;  %9052 = vpow2.f32 %v2502_v13  ;;  %8427 = vmatmul.mubr.bf16.gmra.mrb[116].mxu1 %v2623_v7  ;;  %2780 = vadd.xlane.f32.xlu1 %v11954_v55  ;;  %16429 = vst [vmem:[#allocation251_spill] sm:$0xff] %v12323_v11  ;;  %v3625_v34 = vmul.f32 %v12323_v11, %v16430_v46  ;;  %v12327_v24 = vpop.f32.mrb[73].mxu1 }
 0x36f   : > { %v12320_v19 = vpop.xlane.xlu1 %3781  ;;  %8507 = vmatmul.mubr.bf16.gmra.mrb[180].mxu0 %v2624_v18  ;;  %v8464_v8 = vpop.f32.mrb[136].mxu0  ;;  %16431 = vst [vmem:[#allocation32_spill] sm:$0xff] %v12327_v24  ;;  %v3623_v61 = vmul.f32 %v16433_v2, %v12327_v24 }
 0x370   : > { %v4858_v36 = vmul.f32 %v8464_v8, %v16432_v5  ;;  %v3985_v13 = vpop.f32.mrb[137].mxu0  ;;  %v12332_v7 = vpop.f32.mrb[74].mxu1 }
 0x371   : > { %16434 = vst [vmem:[#allocation102_spill] sm:$0xff] %v12332_v7  ;;  %v4856_v39 = vmul.f32 %v16435_v26, %v3985_v13  ;;  %v12337_v57 = vpop.f32.mrb[138].mxu0  ;;  %v12345_v5 = vpop.f32.mrb[75].mxu1  ;;  %v9463_v7 = vld [vmem:[%s10226_s28 + $0x18] sm:$0xff] }
 0x372   : > { %v12335_v55 = vpop.xlane.xlu0 %1944  ;;  %16436 = vst [vmem:[#allocation31_spill] sm:$0xff] %v12337_v57  ;;  %v12339_v18 = vadd.f32 %v4858_v36, %v3625_v34  ;;  %16438 = vst [vmem:[#allocation252_spill] sm:$0xff] %v12345_v5  ;;  %3821 = vadd.xlane.f32.xlu1 %v11957_v35  ;;  %v12354_v13 = vpop.f32.mrb[139].mxu0 }
 0x373   : > { %v2140_v46 = vsub.f32 %v11718_v29, %v12335_v55  ;;  %v2141_v8 = vsub.f32 %v11726_v49, %v12335_v55  ;;  %v12347_v2 = vpop.xlane.xlu1 %1948  ;;  %v12350_v11 = vadd.f32 %v4856_v39, %v3623_v61  ;;  %16440 = vst [vmem:[#allocation254_spill] sm:$0xff] %v12354_v13 }
 0x374   : > { %16437 = vst [vmem:[#allocation94_spill] sm:$0xff] %v12339_v18  ;;  %v2143_v26 = vsub.f32 %v11738_v23, %v12347_v2  ;;  %v2144_v29 = vsub.f32 %v11741_v25, %v12347_v2 }
 0x375   : > { %16439 = vst [vmem:[#allocation253_spill] sm:$0xff] %v12350_v11  ;;  %v2506_v36 = vmul.f32 1.442695, %v2140_v46  ;;  %v2508_v34 = vmul.f32 1.442695, %v2141_v8  ;;  %v12358_v24 = vpop.eup %9046 }
 0x376   : > { %16441 = vst [vmem:[#allocation255_spill] sm:$0xff] %v12358_v24  ;;  %v2512_v49 = vmul.f32 1.442695, %v2143_v26  ;;  %v12360_v5 = vpop.xlane.xlu0 %2742  ;;  %v12362_v57 = vpop.eup %9048  ;;  %v2514_v35 = vmul.f32 1.442695, %v2144_v29 }
 0x377   : > { %16442 = vst [vmem:[#allocation256_spill] sm:$0xff] %v12360_v5  ;;  %16443 = vst [vmem:[#allocation257_spill] sm:$0xff] %v12362_v57  ;;  %v12364_v39 = vpop.xlane.xlu1 %2744  ;;  %v12366_v61 = vpop.eup %9050  ;;  %9054 = vpow2.f32 %v2506_v36  ;;  %v16449_v5 = vld [vmem:[#allocation34_spill] sm:$0xff] }
 0x378   : > { %16444 = vst [vmem:[#allocation258_spill] sm:$0xff] %v12364_v39  ;;  %16445 = vst [vmem:[#allocation259_spill] sm:$0xff] %v12366_v61  ;;  %v12368_v23 = vpop.eup %9052  ;;  %9056 = vpow2.f32 %v2508_v34  ;;  %v2626_v25 = vpack.c.bf16 %v12366_v61, %v12358_v24 }
 0x379   : > { %16446 = vst [vmem:[#allocation260_spill] sm:$0xff] %v12368_v23  ;;  %9058 = vpow2.f32 %v2512_v49  ;;  %v2627_v46 = vpack.c.bf16 %v12368_v23, %v12362_v57 }
 0x37a   : > { %v12374_v8 = vpop.xlane.xlu0 %3783  ;;  %9060 = vpow2.f32 %v2514_v35  ;;  %8430 = vmatprep.mubr.bf16.mxu1 %v2626_v25  ;;  %v4211_v35 = vmul.f32 %v9463_v7, %v11970_v48  ;;  %v16452_v7 = vld [vmem:[#allocation120_spill] sm:$0xff] }
 0x37b   : > { %v12376_v26 = vpop.xlane.xlu1 %3785  ;;  %8510 = vmatprep.mubr.bf16.mxu0 %v2627_v46 }
 0x37c   : > { %16447 = vst [vmem:[#allocation261_spill] sm:$0xff] %v12376_v26  ;;  %v4212_v26 = vmul.f32 %v9464_v60, %v12008_v21  ;;  %v16459_v60 = vld [vmem:[#allocation110_spill] sm:$0xff] }
 0x37d   : > { %v12386_v13 = vpop.f32.mrb[76].mxu1 }
 0x37e   : > { %v12378_v36 = vpop.xlane.xlu0 %1952  ;;  %16448 = vst [vmem:[#allocation262_spill] sm:$0xff] %v12386_v13  ;;  %v3629_v18 = vmul.f32 %v12386_v13, %v16449_v5  ;;  %v12396_v11 = vpop.f32.mrb[77].mxu1  ;;  %v16455_v13 = vld [vmem:[#allocation33_spill] sm:$0xff] }
 0x37f   : > { %v2146_v34 = vsub.f32 %v11782_v52, %v12378_v36  ;;  %v2147_v29 = vsub.f32 %v11785_v15, %v12378_v36  ;;  %v12384_v49 = vpop.xlane.xlu1 %1956  ;;  %v8468_v52 = vpop.f32.mrb[140].mxu0  ;;  %16450 = vst [vmem:[#allocation34_spill] sm:$0xff] %v12396_v11  ;;  %v3627_v61 = vmul.f32 %v16455_v13, %v12396_v11  ;;  %v16465_v11 = vld [vmem:[#allocation176_spill] sm:$0xff] }
 0x380   : > { %v2149_v25 = vsub.f32 %v11807_v44, %v12384_v49  ;;  %v2150_v46 = vsub.f32 %v11810_v27, %v12384_v49  ;;  %v4862_v23 = vmul.f32 %v8468_v52, %v16452_v7 }
 0x381   : > { %v2518_v15 = vmul.f32 1.442695, %v2146_v34  ;;  %v2520_v39 = vmul.f32 1.442695, %v2147_v29  ;;  %v12398_v53 = vpop.eup %9054  ;;  %v4001_v34 = vpop.f32.mrb[141].mxu0 }
 0x382   : > { %16451 = vst [vmem:[#allocation263_spill] sm:$0xff] %v12398_v53  ;;  %v2524_v48 = vmul.f32 1.442695, %v2149_v25  ;;  %v12403_v44 = vpop.xlane.xlu0 %2746  ;;  %4342 = vrot.lane.b32.xlu0 %v4211_v35, %s9864_s26  ;;  %v12406_v27 = vpop.eup %9056  ;;  %v2526_v5 = vmul.f32 1.442695, %v2150_v46  ;;  %v12414_v21 = vadd.f32 %v4862_v23, %v3629_v18  ;;  %v4860_v25 = vmul.f32 %v16459_v60, %v4001_v34  ;;  %v16469_v34 = vld [vmem:[#allocation178_spill] sm:$0xff] }
 0x383   : > { %16453 = vst [vmem:[#allocation120_spill] sm:$0xff] %v12403_v44  ;;  %16454 = vst [vmem:[#allocation264_spill] sm:$0xff] %v12406_v27  ;;  %v12410_v29 = vpop.f32.mrb[78].mxu1  ;;  %v12412_v57 = vpop.eup %9058  ;;  %9062 = vpow2.f32 %v2518_v15  ;;  %4344 = vrot.lane.b32.xlu1 %v4212_v26, %s9864_s26  ;;  %v16470_v60 = vld [vmem:[#allocation56_spill] sm:$0xff] }
 0x384   : > { %16456 = vst [vmem:[#allocation33_spill] sm:$0xff] %v12410_v29  ;;  %16457 = vst [vmem:[#allocation265_spill] sm:$0xff] %v12412_v57  ;;  %v12417_v52 = vpop.f32.mrb[142].mxu0  ;;  %v12419_v7 = vpop.f32.mrb[79].mxu1  ;;  %9064 = vpow2.f32 %v2520_v39  ;;  %v16466_v29 = vld [vmem:[#allocation54_spill] sm:$0xff]  ;;  %v12430_v18 = vadd.f32 %v4860_v25, %v3627_v61  ;;  %v2629_v26 = vpack.c.bf16 %v12412_v57, %v12398_v53  ;;  %v16480_v53 = vld [vmem:[#allocation181_spill] sm:$0xff] }
 0x385   : > { %16458 = vst [vmem:[#allocation266_spill] sm:$0xff] %v12414_v21  ;;  %16460 = vst [vmem:[#allocation110_spill] sm:$0xff] %v12417_v52  ;;  %v12422_v35 = vpop.eup %9060  ;;  %v12424_v13 = vpop.xlane.xlu1 %2748  ;;  %v1968_v15 = vsub.f32 %v16466_v29, %v16465_v11  ;;  %9066 = vpow2.f32 %v2524_v48 }
 0x386   : > { %16461 = vst [vmem:[#allocation267_spill] sm:$0xff] %v12419_v7  ;;  %16462 = vst [vmem:[#allocation268_spill] sm:$0xff] %v12422_v35  ;;  %v12426_v46 = vpop.f32.mrb[143].mxu0  ;;  %v12432_v23 = vpop.xlane.xlu0 %3787  ;;  %v1971_v7 = vsub.f32 %v16470_v60, %v16469_v34  ;;  %9068 = vpow2.f32 %v2526_v5  ;;  %v2630_v39 = vpack.c.bf16 %v12422_v35, %v12406_v27  ;;  %8431 = vmatmul.mubr.bf16.gmra.mrb[120].mxu1 %v2629_v26  ;;  %v16478_v35 = vld [vmem:[#allocation135_spill] sm:$0xff] }
 0x387   : > { %16463 = vst [vmem:[#allocation269_spill] sm:$0xff] %v12424_v13  ;;  %16464 = vst [vmem:[#allocation270_spill] sm:$0xff] %v12426_v46  ;;  %v2162_v11 = vmul.f32 1.442695, %v1968_v15  ;;  %v16476_v13 = vld [vmem:[#allocation61_spill] sm:$0xff] }
 0x388   : > { %16467 = vst [vmem:[#allocation176_spill] sm:$0xff] %v12430_v18  ;;  %16468 = vst [vmem:[#allocation54_spill] sm:$0xff] %v12432_v23  ;;  %8511 = vmatmul.mubr.bf16.gmra.mrb[184].mxu0 %v2630_v39  ;;  %v2168_v61 = vmul.f32 1.442695, %v1971_v7  ;;  %v16481_v23 = vld [vmem:[#allocation57_spill] sm:$0xff] }
 0x389   : > { %v12440_v46 = vpop.xlane.xlu1 %3789  ;;  %9070 = vpow2.f32 %v2162_v11  ;;  %v1974_v24 = vsub.f32 %v16481_v23, %v16480_v53  ;;  %v16488_v53 = vld [vmem:[#allocation128_spill] sm:$0xff] }
 0x38a   : > { %16471 = vst [vmem:[#allocation178_spill] sm:$0xff] %v12440_v46  ;;  %v12442_v48 = vpop.xlane.xlu0 %1960  ;;  %9072 = vpow2.f32 %v2168_v61 }
 0x38b   : > { %v2152_v29 = vsub.f32 %v11842_v62, %v12442_v48  ;;  %v2153_v5 = vsub.f32 %v11854_v6, %v12442_v48 }
 0x38d   : > { %v2530_v25 = vmul.f32 1.442695, %v2152_v29  ;;  %v2532_v34 = vmul.f32 1.442695, %v2153_v5  ;;  %v12448_v60 = vpop.xlane.xlu1 %1964  ;;  %v12450_v52 = vpop.eup %9062  ;;  %v16473_v29 = vld [vmem:[#allocation184_spill] sm:$0xff]  ;;  %v16474_v5 = vld [vmem:[#allocation59_spill] sm:$0xff] }
 0x38e   : > { %v2155_v26 = vsub.f32 %v11866_v56, %v12448_v60  ;;  %v2156_v15 = vsub.f32 %v11869_v3, %v12448_v60  ;;  %v12456_v7 = vpop.eup %9064  ;;  %v12458_v62 = vpop.f32.mrb[80].mxu1  ;;  %v1977_v44 = vsub.f32 %v16474_v5, %v16473_v29  ;;  %v16475_v56 = vld [vmem:[#allocation191_spill] sm:$0xff]  ;;  %v16477_v3 = vld [vmem:[#allocation36_spill] sm:$0xff] }
 0x38f   : > { %16472 = vst [vmem:[#allocation56_spill] sm:$0xff] %v12458_v62  ;;  %v8472_v39 = vpop.f32.mrb[144].mxu0  ;;  %v12460_v6 = vpop.eup %9066  ;;  %9074 = vpow2.f32 %v2530_v25  ;;  %v1983_v46 = vsub.f32 %v16476_v13, %v16475_v56  ;;  %v3633_v61 = vmul.f32 %v12458_v62, %v16477_v3  ;;  %v16482_v25 = vld [vmem:[#allocation35_spill] sm:$0xff]  ;;  %v16484_v5 = vld [vmem:[#allocation188_spill] sm:$0xff] }
 0x390   : > { %v2536_v21 = vmul.f32 1.442695, %v2155_v26  ;;  %v2538_v11 = vmul.f32 1.442695, %v2156_v15  ;;  %v12464_v18 = vpop.eup %9068  ;;  %9076 = vpow2.f32 %v2532_v34  ;;  %v4866_v57 = vmul.f32 %v8472_v39, %v16478_v35  ;;  %v12471_v27 = vpop.f32.mrb[81].mxu1  ;;  %v16485_v13 = vld [vmem:[#allocation60_spill] sm:$0xff] }
 0x391   : > { %16479 = vst [vmem:[#allocation184_spill] sm:$0xff] %v12471_v27  ;;  %v3631_v26 = vmul.f32 %v16482_v25, %v12471_v27  ;;  %v4017_v15 = vpop.f32.mrb[145].mxu0  ;;  %v12477_v29 = vpop.f32.mrb[82].mxu1  ;;  %v1980_v34 = vsub.f32 %v16485_v13, %v16484_v5  ;;  %v2632_v35 = vpack.c.bf16 %v12460_v6, %v12450_v52  ;;  %v2180_v3 = vmul.f32 1.442695, %v1977_v44  ;;  %v16493_v44 = vld [vmem:[#allocation195_spill] sm:$0xff] }
 0x392   : > { %9078 = vpow2.f32 %v2536_v21  ;;  %16483 = vst [vmem:[#allocation59_spill] sm:$0xff] %v12477_v29  ;;  %v12481_v56 = vadd.f32 %v4866_v57, %v3633_v61  ;;  %v12485_v39 = vpop.f32.mrb[146].mxu0  ;;  %v4864_v21 = vmul.f32 %v16488_v53, %v4017_v15  ;;  %v2633_v23 = vpack.c.bf16 %v12464_v18, %v12456_v7  ;;  %v12490_v25 = vpop.f32.mrb[83].mxu1  ;;  %v16494_v13 = vld [vmem:[#allocation64_spill] sm:$0xff] }
 0x393   : > { %9080 = vpow2.f32 %v2538_v11  ;;  %16487 = vst [vmem:[#allocation61_spill] sm:$0xff] %v12485_v39  ;;  %16489 = vst [vmem:[#allocation36_spill] sm:$0xff] %v12490_v25  ;;  %v12492_v62 = vpop.f32.mrb[147].mxu0  ;;  %v2192_v27 = vmul.f32 1.442695, %v1983_v46  ;;  %8434 = vmatprep.mubr.bf16.mxu1 %v2632_v35  ;;  %v12496_v5 = vpop.eup %9070  ;;  %v1989_v15 = vsub.f32 %v16494_v13, %v16493_v44  ;;  %v16496_v39 = vld [vmem:[#allocation202_spill] sm:$0xff] }
 0x394   : > { %16486 = vst [vmem:[#allocation191_spill] sm:$0xff] %v12481_v56  ;;  %16490 = vst [vmem:[#allocation135_spill] sm:$0xff] %v12492_v62  ;;  %v2174_v11 = vmul.f32 1.442695, %v1974_v24  ;;  %v12494_v57 = vadd.f32 %v4864_v21, %v3631_v26  ;;  %8514 = vmatprep.mubr.bf16.mxu0 %v2633_v23  ;;  %v2186_v61 = vmul.f32 1.442695, %v1980_v34  ;;  %9082 = vpow2.f32 %v2180_v3  ;;  %v12500_v53 = vpop.eup %9072 }
 0x395   : > { %16492 = vst [vmem:[#allocation57_spill] sm:$0xff] %v12496_v5  ;;  %16495 = vst [vmem:[#allocation35_spill] sm:$0xff] %v12500_v53  ;;  %9084 = vpow2.f32 %v2192_v27  ;;  %v16497_v25 = vld [vmem:[#allocation67_spill] sm:$0xff]  ;;  %v16499_v24 = vld [vmem:[#allocation193_spill] sm:$0xff]  ;;  %v2204_v44 = vmul.f32 1.442695, %v1989_v15 }
 0x396   : > { %16491 = vst [vmem:[#allocation181_spill] sm:$0xff] %v12494_v57  ;;  %v1995_v29 = vsub.f32 %v16497_v25, %v16496_v39  ;;  %9086 = vpow2.f32 %v2174_v11  ;;  %v16500_v46 = vld [vmem:[#allocation63_spill] sm:$0xff]  ;;  %v16503_v3 = vld [vmem:[#allocation66_spill] sm:$0xff] }
 0x397   : > { %v1986_v26 = vsub.f32 %v16500_v46, %v16499_v24  ;;  %9088 = vpow2.f32 %v2186_v61  ;;  %v16502_v34 = vld [vmem:[#allocation199_spill] sm:$0xff]  ;;  %v2544_v24 = vpack.c.bf16 %v12500_v53, %v12496_v5  ;;  %v16508_v15 = vld [vmem:[#allocation70_spill] sm:$0xff]  ;;  %v16514_v5 = vld [vmem:[#allocation37_spill] sm:$0xff] }
 0x398   : > { %v1992_v21 = vsub.f32 %v16503_v3, %v16502_v34  ;;  %v2216_v27 = vmul.f32 1.442695, %v1995_v29  ;;  %9090 = vpow2.f32 %v2204_v44  ;;  %v16507_v34 = vld [vmem:[#allocation209_spill] sm:$0xff]  ;;  %v16509_v29 = vld [vmem:[#allocation38_spill] sm:$0xff] }
 0x399   : > { %v12504_v62 = vpop.eup %9074  ;;  %v2198_v25 = vmul.f32 1.442695, %v1986_v26  ;;  %v2001_v3 = vsub.f32 %v16508_v15, %v16507_v34  ;;  %v16517_v34 = vld [vmem:[#allocation69_spill] sm:$0xff] }
 0x39a   : > { %16498 = vst [vmem:[#allocation188_spill] sm:$0xff] %v12504_v62  ;;  %v12508_v35 = vpop.eup %9076  ;;  %v2210_v61 = vmul.f32 1.442695, %v1992_v21  ;;  %9092 = vpow2.f32 %v2216_v27  ;;  %v16513_v21 = vld [vmem:[#allocation146_spill] sm:$0xff] }
 0x39b   : > { %16501 = vst [vmem:[#allocation60_spill] sm:$0xff] %v12508_v35  ;;  %9094 = vpow2.f32 %v2198_v25 }
 0x39c   : > { %v12512_v23 = vpop.eup %9078  ;;  %9096 = vpow2.f32 %v2210_v61 }
 0x39d   : > { %16504 = vst [vmem:[#allocation128_spill] sm:$0xff] %v12512_v23  ;;  %v12514_v13 = vpop.eup %9080  ;;  %v2635_v39 = vpack.c.bf16 %v12512_v23, %v12504_v62  ;;  %v12522_v46 = vpop.f32.mrb[84].mxu1  ;;  %v16512_v23 = vld [vmem:[#allocation76_spill] sm:$0xff] }
 0x39e   : > { %16505 = vst [vmem:[#allocation195_spill] sm:$0xff] %v12514_v13  ;;  %v2636_v11 = vpack.c.bf16 %v12514_v13, %v12508_v35  ;;  %16506 = vst [vmem:[#allocation64_spill] sm:$0xff] %v12522_v46  ;;  %v3637_v56 = vmul.f32 %v12522_v46, %v16509_v29  ;;  %v12528_v57 = vpop.f32.mrb[85].mxu1  ;;  %v16511_v13 = vld [vmem:[#allocation213_spill] sm:$0xff]  ;;  %v16518_v29 = vld [vmem:[#allocation140_spill] sm:$0xff] }
 0x39f   : > { %8435 = vmatmul.mubr.bf16.gmra.mrb[124].mxu1 %v2635_v39  ;;  %v8476_v26 = vpop.f32.mrb[148].mxu0  ;;  %16510 = vst [vmem:[#allocation202_spill] sm:$0xff] %v12528_v57  ;;  %v2007_v53 = vsub.f32 %v16512_v23, %v16511_v13  ;;  %v3635_v44 = vmul.f32 %v16514_v5, %v12528_v57  ;;  %v12541_v27 = vpop.f32.mrb[86].mxu1  ;;  %v16522_v13 = vld [vmem:[#allocation211_spill] sm:$0xff]  ;;  %v16523_v5 = vld [vmem:[#allocation73_spill] sm:$0xff] }
 0x3a0   : > { %8515 = vmatmul.mubr.bf16.gmra.mrb[188].mxu0 %v2636_v11  ;;  %8534 = vmatprep.mubr.bf16.mxu1 %v2544_v24  ;;  %v4870_v39 = vmul.f32 %v8476_v26, %v16513_v21  ;;  %v4033_v35 = vpop.f32.mrb[149].mxu0  ;;  %v12536_v11 = vpop.eup %9082  ;;  %v16516_v24 = vld [vmem:[#allocation206_spill] sm:$0xff]  ;;  %16519 = vst [vmem:[#allocation193_spill] sm:$0xff] %v12541_v27  ;;  %v2004_v26 = vsub.f32 %v16523_v5, %v16522_v13  ;;  %v2228_v57 = vmul.f32 1.442695, %v2001_v3  ;;  %v16529_v3 = vld [vmem:[#allocation81_spill] sm:$0xff] }
 0x3a1   : > { %2782 = vadd.xlane.f32.xlu0 %v11984_v63  ;;  %16515 = vst [vmem:[#allocation67_spill] sm:$0xff] %v12536_v11  ;;  %v1998_v15 = vsub.f32 %v16517_v34, %v16516_v24  ;;  %v4868_v46 = vmul.f32 %v16518_v29, %v4033_v35  ;;  %v12543_v62 = vpop.f32.mrb[150].mxu0  ;;  %v12545_v23 = vpop.eup %9084  ;;  %v2240_v29 = vmul.f32 1.442695, %v2007_v53  ;;  %v16531_v53 = vld [vmem:[#allocation217_spill] sm:$0xff]  ;;  %v16532_v5 = vld [vmem:[#allocation92_spill] sm:$0xff] }
 0x3a2   : > { %16520 = vst [vmem:[#allocation63_spill] sm:$0xff] %v12543_v62  ;;  %16521 = vst [vmem:[#allocation199_spill] sm:$0xff] %v12545_v23  ;;  %v12549_v21 = vadd.f32 %v4870_v39, %v3637_v56  ;;  %v12551_v63 = vpop.f32.mrb[87].mxu1  ;;  %v12553_v25 = vpop.eup %9086  ;;  %v2234_v39 = vmul.f32 1.442695, %v2004_v26  ;;  %9098 = vpow2.f32 %v2228_v57  ;;  %v16537_v57 = vld [vmem:[#allocation216_spill] sm:$0xff] }
 0x3a3   : > { %16525 = vst [vmem:[#allocation209_spill] sm:$0xff] %v12551_v63  ;;  %16526 = vst [vmem:[#allocation70_spill] sm:$0xff] %v12553_v25  ;;  %v12555_v24 = vadd.f32 %v4868_v46, %v3635_v44  ;;  %v12557_v35 = vpop.f32.mrb[151].mxu0  ;;  %v12559_v34 = vpop.eup %9088  ;;  %v2547_v61 = vpack.c.bf16 %v12536_v11, %v12553_v25  ;;  %v2222_v13 = vmul.f32 1.442695, %v1998_v15  ;;  %v16530_v46 = vld [vmem:[#allocation83_spill] sm:$0xff]  ;;  %9100 = vpow2.f32 %v2240_v29 }
 0x3a4   : > { %16524 = vst [vmem:[#allocation66_spill] sm:$0xff] %v12549_v21  ;;  %16528 = vst [vmem:[#allocation213_spill] sm:$0xff] %v12557_v35  ;;  %v2550_v56 = vpack.c.bf16 %v12545_v23, %v12559_v34  ;;  %v2013_v44 = vsub.f32 %v16530_v46, %v16529_v3  ;;  %v2019_v63 = vsub.f32 %v16532_v5, %v16531_v53  ;;  %v12571_v35 = vpop.eup %9090  ;;  %v16535_v15 = vld [vmem:[#allocation80_spill] sm:$0xff]  ;;  %v16538_v26 = vld [vmem:[#allocation89_spill] sm:$0xff] }
 0x3a5   : > { %16527 = vst [vmem:[#allocation38_spill] sm:$0xff] %v12555_v24  ;;  %3823 = vadd.xlane.f32.xlu0 %v11992_v9  ;;  %16533 = vst [vmem:[#allocation76_spill] sm:$0xff] %v12571_v35  ;;  %9102 = vpow2.f32 %v2222_v13  ;;  %v16534_v9 = vld [vmem:[#allocation215_spill] sm:$0xff]  ;;  %v12575_v27 = vpop.eup %9092  ;;  %v16545_v21 = vld [vmem:[#allocation108_spill] sm:$0xff] }
 0x3a6   : > { %v2010_v62 = vsub.f32 %v16535_v15, %v16534_v9  ;;  %16536 = vst [vmem:[#allocation146_spill] sm:$0xff] %v12575_v27  ;;  %9104 = vpow2.f32 %v2234_v39  ;;  %v12579_v3 = vpop.eup %9094  ;;  %v2264_v29 = vmul.f32 1.442695, %v2019_v63  ;;  %v16540_v9 = vld [vmem:[#allocation97_spill] sm:$0xff]  ;;  %v16541_v15 = vld [vmem:[#allocation99_spill] sm:$0xff] }
 0x3a7   : > { %8535 = vmatmul.mubr.bf16.vlgmr.msra.gmra.mrb[128].mxu1 %v2547_v61  ;;  %2784 = vadd.xlane.f32.xlu1 %v11995_v12  ;;  %v2016_v61 = vsub.f32 %v16538_v26, %v16537_v57  ;;  %v12582_v12 = vpop.eup %9096  ;;  %v2553_v13 = vpack.c.bf16 %v12571_v35, %v12579_v3 }
 0x3a8   : > { %8538 = vmatprep.mubr.bf16.mxu1 %v2550_v56  ;;  %v2252_v56 = vmul.f32 1.442695, %v2013_v44  ;;  %v2246_v46 = vmul.f32 1.442695, %v2010_v62  ;;  %v2556_v53 = vpack.c.bf16 %v12575_v27, %v12582_v12  ;;  %v2025_v44 = vsub.f32 %v16541_v15, %v16540_v9  ;;  %v16544_v62 = vld [vmem:[#allocation104_spill] sm:$0xff] }
 0x3a9   : > { %v2258_v5 = vmul.f32 1.442695, %v2016_v61  ;;  %v2031_v24 = vsub.f32 %v16545_v21, %v16544_v62  ;;  %v16546_v27 = vld [vmem:[#allocation160_spill] sm:$0xff]  ;;  %v16556_v21 = vld [vmem:[#allocation105_spill] sm:$0xff] }
 0x3aa   : > { %9106 = vpow2.f32 %v2252_v56  ;;  %v16550_v9 = vld [vmem:[#allocation96_spill] sm:$0xff] }
 0x3ab   : > { %3825 = vadd.xlane.f32.xlu1 %v11998_v43  ;;  %v16542_v43 = vld [vmem:[#allocation40_spill] sm:$0xff]  ;;  %9108 = vpow2.f32 %v2264_v29 }
 0x3ac   : > { %v12601_v23 = vpop.eup %9098  ;;  %9110 = vpow2.f32 %v2246_v46 }
 0x3ad   : > { %v12588_v39 = vpop.f32.mrb[88].mxu1  ;;  %16548 = vst [vmem:[#allocation69_spill] sm:$0xff] %v12601_v23  ;;  %v12610_v25 = vpop.eup %9100  ;;  %9112 = vpow2.f32 %v2258_v5 }
 0x3ae   : > { %16539 = vst [vmem:[#allocation37_spill] sm:$0xff] %v12588_v39  ;;  %v3641_v57 = vmul.f32 %v12588_v39, %v16542_v43  ;;  %v12594_v26 = vpop.f32.mrb[89].mxu1  ;;  %v16551_v43 = vld [vmem:[#allocation152_spill] sm:$0xff]  ;;  %16554 = vst [vmem:[#allocation73_spill] sm:$0xff] %v12610_v25 }
 0x3af   : > { %8539 = vmatmul.mubr.bf16.gmra.mrb[132].mxu1 %v2553_v13  ;;  %v8480_v63 = vpop.f32.mrb[152].mxu0  ;;  %16543 = vst [vmem:[#allocation206_spill] sm:$0xff] %v12594_v26  ;;  %v16547_v13 = vld [vmem:[#allocation39_spill] sm:$0xff]  ;;  %v12606_v11 = vpop.f32.mrb[90].mxu1 }
 0x3b0   : > { %8542 = vmatprep.mubr.bf16.mxu1 %v2556_v53  ;;  %v4874_v61 = vmul.f32 %v8480_v63, %v16546_v27  ;;  %v3639_v35 = vmul.f32 %v16547_v13, %v12594_v26  ;;  %v4049_v56 = vpop.f32.mrb[153].mxu0  ;;  %v16549_v53 = vld [vmem:[#allocation91_spill] sm:$0xff]  ;;  %16552 = vst [vmem:[#allocation140_spill] sm:$0xff] %v12606_v11  ;;  %v12616_v13 = vpop.f32.mrb[91].mxu1  ;;  %v2288_v26 = vmul.f32 1.442695, %v2031_v24 }
 0x3b1   : > { %v2022_v15 = vsub.f32 %v16550_v9, %v16549_v53  ;;  %v4872_v39 = vmul.f32 %v16551_v43, %v4049_v56  ;;  %v12608_v29 = vpop.f32.mrb[154].mxu0  ;;  %v16555_v27 = vld [vmem:[#allocation219_spill] sm:$0xff]  ;;  %16558 = vst [vmem:[#allocation83_spill] sm:$0xff] %v12616_v13  ;;  %v12618_v46 = vpop.eup %9102  ;;  %v2276_v53 = vmul.f32 1.442695, %v2025_v44  ;;  %v16562_v44 = vld [vmem:[#allocation117_spill] sm:$0xff] }
 0x3b2   : > { %16553 = vst [vmem:[#allocation211_spill] sm:$0xff] %v12608_v29  ;;  %v2028_v63 = vsub.f32 %v16556_v21, %v16555_v27  ;;  %v12614_v62 = vadd.f32 %v4874_v61, %v3641_v57  ;;  %v12622_v56 = vpop.f32.mrb[155].mxu0  ;;  %v12624_v43 = vpop.eup %9104  ;;  %v2559_v5 = vpack.c.bf16 %v12601_v23, %v12618_v46  ;;  %v16561_v27 = vld [vmem:[#allocation221_spill] sm:$0xff]  ;;  %v16564_v21 = vld [vmem:[#allocation127_spill] sm:$0xff] }
 0x3b3   : > { %v12620_v9 = vadd.f32 %v4872_v39, %v3639_v35  ;;  %16560 = vst [vmem:[#allocation92_spill] sm:$0xff] %v12622_v56  ;;  %v2270_v11 = vmul.f32 1.442695, %v2022_v15  ;;  %v2562_v57 = vpack.c.bf16 %v12610_v25, %v12624_v43  ;;  %9114 = vpow2.f32 %v2276_v53  ;;  %v16563_v39 = vld [vmem:[#allocation222_spill] sm:$0xff]  ;;  %v9465_v24 = vld [vmem:[%s10226_s28 + $0x28] sm:$0xff]  ;;  %v16566_v15 = vld [vmem:[#allocation220_spill] sm:$0xff] }
 0x3b4   : > { %16557 = vst [vmem:[#allocation81_spill] sm:$0xff] %v12614_v62  ;;  %v2282_v61 = vmul.f32 1.442695, %v2028_v63  ;;  %v2037_v35 = vsub.f32 %v16562_v44, %v16561_v27  ;;  %9116 = vpow2.f32 %v2288_v26  ;;  %v2043_v29 = vsub.f32 %v16564_v21, %v16563_v39  ;;  %v12636_v56 = vpop.eup %9106  ;;  %v16567_v62 = vld [vmem:[#allocation113_spill] sm:$0xff]  ;;  %v16569_v53 = vld [vmem:[#allocation118_spill] sm:$0xff] }
 0x3b5   : > { %16559 = vst [vmem:[#allocation217_spill] sm:$0xff] %v12620_v9  ;;  %v4213_v13 = vmul.f32 %v9465_v24, %v12011_v58  ;;  %16565 = vst [vmem:[#allocation215_spill] sm:$0xff] %v12636_v56  ;;  %9118 = vpow2.f32 %v2270_v11  ;;  %v2034_v9 = vsub.f32 %v16567_v62, %v16566_v15  ;;  %v12640_v63 = vpop.eup %9108  ;;  %v16574_v15 = vld [vmem:[#allocation42_spill] sm:$0xff] }
 0x3b6   : > { %16568 = vst [vmem:[#allocation80_spill] sm:$0xff] %v12640_v63  ;;  %9120 = vpow2.f32 %v2282_v61  ;;  %v12647_v44 = vpop.eup %9110  ;;  %v2300_v58 = vmul.f32 1.442695, %v2037_v35  ;;  %v2312_v11 = vmul.f32 1.442695, %v2043_v29 }
 0x3b7   : > { %8543 = vmatmul.mubr.bf16.gmra.mrb[136].mxu1 %v2559_v5  ;;  %v16570_v5 = vld [vmem:[#allocation123_spill] sm:$0xff]  ;;  %v12649_v39 = vpop.eup %9112  ;;  %v2565_v62 = vpack.c.bf16 %v12636_v56, %v12647_v44  ;;  %v2294_v61 = vmul.f32 1.442695, %v2034_v9  ;;  %v16576_v9 = vld [vmem:[#allocation134_spill] sm:$0xff] }
 0x3b8   : > { %8546 = vmatprep.mubr.bf16.mxu1 %v2562_v57  ;;  %v2040_v27 = vsub.f32 %v16570_v5, %v16569_v53  ;;  %v9466_v57 = vld [vmem:[%s10226_s28 + $0x30] sm:$0xff]  ;;  %16571 = vst [vmem:[#allocation216_spill] sm:$0xff] %v12649_v39  ;;  %v2568_v21 = vpack.c.bf16 %v12640_v63, %v12649_v39  ;;  %9122 = vpow2.f32 %v2300_v58 }
 0x3b9   : > { %v4214_v26 = vmul.f32 %v9466_v57, %v12048_v1  ;;  %9124 = vpow2.f32 %v2312_v11  ;;  %v16577_v57 = vld [vmem:[#allocation144_spill] sm:$0xff]  ;;  %v16578_v63 = vld [vmem:[#allocation170_spill] sm:$0xff] }
 0x3ba   : > { %v2306_v24 = vmul.f32 1.442695, %v2040_v27  ;;  %9126 = vpow2.f32 %v2294_v61 }
 0x3bb   : > { %4346 = vrot.lane.b32.xlu0 %v4213_v13, %s9864_s26  ;;  %v16573_v13 = vld [vmem:[#allocation133_spill] sm:$0xff] }
 0x3bc   : > { %4348 = vrot.lane.b32.xlu1 %v4214_v26, %s9864_s26  ;;  %v2049_v35 = vsub.f32 %v16573_v13, %v11639_v59  ;;  %v2055_v26 = vsub.f32 %v16577_v57, %v16576_v9  ;;  %v16581_v59 = vld [vmem:[#allocation225_spill] sm:$0xff]  ;;  %9128 = vpow2.f32 %v2306_v24 }
 0x3bd   : > { %v12656_v1 = vpop.f32.mrb[92].mxu1  ;;  %v12669_v25 = vpop.eup %9114 }
 0x3be   : > { %16572 = vst [vmem:[#allocation89_spill] sm:$0xff] %v12656_v1  ;;  %v3645_v29 = vmul.f32 %v12656_v1, %v16574_v15  ;;  %v12662_v5 = vpop.f32.mrb[93].mxu1  ;;  %16580 = vst [vmem:[#allocation99_spill] sm:$0xff] %v12669_v25  ;;  %v16583_v15 = vld [vmem:[#allocation165_spill] sm:$0xff]  ;;  %v12678_v39 = vpop.eup %9116 }
 0x3bf   : > { %8547 = vmatmul.mubr.bf16.gmra.mrb[140].mxu1 %v2565_v62  ;;  %v8484_v53 = vpop.f32.mrb[156].mxu0  ;;  %16575 = vst [vmem:[#allocation97_spill] sm:$0xff] %v12662_v5  ;;  %v16579_v62 = vld [vmem:[#allocation41_spill] sm:$0xff]  ;;  %v12674_v23 = vpop.f32.mrb[94].mxu1  ;;  %16586 = vst [vmem:[#allocation108_spill] sm:$0xff] %v12678_v39 }
 0x3c0   : > { %8550 = vmatprep.mubr.bf16.mxu1 %v2568_v21  ;;  %v4878_v27 = vmul.f32 %v8484_v53, %v16578_v63  ;;  %v3643_v56 = vmul.f32 %v16579_v62, %v12662_v5  ;;  %v4065_v58 = vpop.f32.mrb[157].mxu0  ;;  %v16582_v21 = vld [vmem:[#allocation130_spill] sm:$0xff]  ;;  %16584 = vst [vmem:[#allocation40_spill] sm:$0xff] %v12674_v23  ;;  %v16587_v63 = vld [vmem:[#allocation132_spill] sm:$0xff]  ;;  %v16588_v53 = vld [vmem:[#allocation139_spill] sm:$0xff]  ;;  %v12684_v62 = vpop.f32.mrb[95].mxu1 }
 0x3c1   : > { %v2046_v13 = vsub.f32 %v16582_v21, %v16581_v59  ;;  %v4876_v1 = vmul.f32 %v16583_v15, %v4065_v58  ;;  %v12676_v11 = vpop.f32.mrb[158].mxu0  ;;  %v2052_v9 = vsub.f32 %v16588_v53, %v16587_v63  ;;  %16590 = vst [vmem:[#allocation39_spill] sm:$0xff] %v12684_v62  ;;  %v12686_v61 = vpop.eup %9118  ;;  %v2324_v5 = vmul.f32 1.442695, %v2049_v35  ;;  %v16593_v63 = vld [vmem:[#allocation141_spill] sm:$0xff]  ;;  %v16594_v53 = vld [vmem:[#allocation150_spill] sm:$0xff] }
 0x3c2   : > { %16585 = vst [vmem:[#allocation104_spill] sm:$0xff] %v12676_v11  ;;  %v12682_v57 = vadd.f32 %v4878_v27, %v3645_v29  ;;  %v12690_v58 = vpop.f32.mrb[159].mxu0  ;;  %v12692_v21 = vpop.eup %9120  ;;  %v2336_v15 = vmul.f32 1.442695, %v2055_v26  ;;  %v2571_v24 = vpack.c.bf16 %v12669_v25, %v12686_v61  ;;  %v2061_v35 = vsub.f32 %v16594_v53, %v16593_v63  ;;  %v16597_v26 = vld [vmem:[#allocation138_spill] sm:$0xff]  ;;  %v16598_v62 = vld [vmem:[#allocation148_spill] sm:$0xff] }
 0x3c3   : > { %v12688_v59 = vadd.f32 %v4876_v1, %v3643_v56  ;;  %16592 = vst [vmem:[#allocation96_spill] sm:$0xff] %v12690_v58  ;;  %v2318_v23 = vmul.f32 1.442695, %v2046_v13  ;;  %v2574_v29 = vpack.c.bf16 %v12678_v39, %v12692_v21  ;;  %v2330_v27 = vmul.f32 1.442695, %v2052_v9  ;;  %v16595_v56 = vld [vmem:[#allocation159_spill] sm:$0xff]  ;;  %v12702_v11 = vpop.eup %9122 }
 0x3c4   : > { %16589 = vst [vmem:[#allocation160_spill] sm:$0xff] %v12682_v57  ;;  %9130 = vpow2.f32 %v2324_v5  ;;  %v2067_v1 = vsub.f32 %v16595_v56, %v11767_v16  ;;  %16596 = vst [vmem:[#allocation152_spill] sm:$0xff] %v12702_v11  ;;  %v2058_v13 = vsub.f32 %v16598_v62, %v16597_v26  ;;  %v12706_v58 = vpop.eup %9124  ;;  %v16600_v9 = vld [vmem:[#allocation149_spill] sm:$0xff]  ;;  %v2348_v63 = vmul.f32 1.442695, %v2061_v35  ;;  %v16606_v35 = vld [vmem:[#allocation167_spill] sm:$0xff] }
 0x3c5   : > { %16591 = vst [vmem:[#allocation91_spill] sm:$0xff] %v12688_v59  ;;  %9132 = vpow2.f32 %v2336_v15  ;;  %16599 = vst [vmem:[#allocation219_spill] sm:$0xff] %v12706_v58  ;;  %v12710_v57 = vpop.eup %9126  ;;  %v16618_v39 = vld [vmem:[#allocation183_spill] sm:$0xff] }
 0x3c6   : > { %9134 = vpow2.f32 %v2318_v23  ;;  %16602 = vst [vmem:[#allocation105_spill] sm:$0xff] %v12710_v57  ;;  %v2360_v15 = vmul.f32 1.442695, %v2067_v1  ;;  %v2577_v16 = vpack.c.bf16 %v12702_v11, %v12710_v57  ;;  %v2342_v53 = vmul.f32 1.442695, %v2058_v13  ;;  %v16608_v13 = vld [vmem:[#allocation175_spill] sm:$0xff] }
 0x3c7   : > { %8551 = vmatmul.mubr.bf16.gmra.mrb[144].mxu1 %v2571_v24  ;;  %9136 = vpow2.f32 %v2330_v27  ;;  %v16601_v24 = vld [vmem:[#allocation156_spill] sm:$0xff]  ;;  %v2079_v59 = vsub.f32 %v16608_v13, %v11849_v10 }
 0x3c8   : > { %8554 = vmatprep.mubr.bf16.mxu1 %v2574_v29  ;;  %v2064_v5 = vsub.f32 %v16601_v24, %v16600_v9  ;;  %v12712_v29 = vpop.eup %9128  ;;  %9138 = vpow2.f32 %v2348_v63  ;;  %v2073_v9 = vsub.f32 %v16606_v35, %v11812_v17  ;;  %v16612_v63 = vld [vmem:[#allocation163_spill] sm:$0xff] }
 0x3c9   : > { %16603 = vst [vmem:[#allocation221_spill] sm:$0xff] %v12712_v29  ;;  %v2580_v23 = vpack.c.bf16 %v12706_v58, %v12712_v29  ;;  %9140 = vpow2.f32 %v2360_v15  ;;  %v2070_v11 = vsub.f32 %v16612_v63, %v11793_v42  ;;  %v16615_v15 = vld [vmem:[#allocation173_spill] sm:$0xff] }
 0x3ca   : > { %v2354_v56 = vmul.f32 1.442695, %v2064_v5  ;;  %9142 = vpow2.f32 %v2342_v53  ;;  %v2076_v35 = vsub.f32 %v16615_v15, %v11837_v50  ;;  %v2372_v10 = vmul.f32 1.442695, %v2073_v9  ;;  %v16619_v50 = vld [vmem:[#allocation172_spill] sm:$0xff]  ;;  %v16620_v15 = vld [vmem:[#allocation187_spill] sm:$0xff] }
 0x3cb   : > { %v2088_v25 = vsub.f32 %v16620_v15, %v16619_v50  ;;  %v16621_v9 = vld [vmem:[#allocation174_spill] sm:$0xff]  ;;  %v16630_v15 = vld [vmem:[#allocation200_spill] sm:$0xff] }
 0x3cc   : > { %9144 = vpow2.f32 %v2354_v56  ;;  %v2378_v63 = vmul.f32 1.442695, %v2076_v35 }
 0x3cd   : > { %v12718_v62 = vpop.f32.mrb[96].mxu1  ;;  %9146 = vpow2.f32 %v2372_v10  ;;  %v2402_v10 = vmul.f32 1.442695, %v2088_v25  ;;  %v16633_v25 = vld [vmem:[#allocation194_spill] sm:$0xff] }
 0x3ce   : > { %16604 = vst [vmem:[#allocation117_spill] sm:$0xff] %v12718_v62  ;;  %v12720_v27 = vpop.f32.mrb[160].mxu0  ;;  %v12722_v26 = vpop.f32.mrb[97].mxu1 }
 0x3cf   : > { %8555 = vmatmul.mubr.bf16.gmra.mrb[148].mxu1 %v2577_v16  ;;  %16605 = vst [vmem:[#allocation222_spill] sm:$0xff] %v12722_v26  ;;  %v12726_v1 = vpop.f32.mrb[161].mxu0  ;;  %v12728_v24 = vpop.f32.mrb[98].mxu1 }
 0x3d0   : > { %8558 = vmatprep.mubr.bf16.mxu1 %v2580_v23  ;;  %16607 = vst [vmem:[#allocation127_spill] sm:$0xff] %v12728_v24  ;;  %v12732_v58 = vpop.f32.mrb[162].mxu0  ;;  %v12734_v5 = vpop.f32.mrb[99].mxu1 }
 0x3d1   : > { %16609 = vst [vmem:[#allocation220_spill] sm:$0xff] %v12732_v58  ;;  %16610 = vst [vmem:[#allocation113_spill] sm:$0xff] %v12734_v5  ;;  %v12736_v16 = vpop.eup %9130  ;;  %v12740_v17 = vpop.f32.mrb[163].mxu0  ;;  %v2384_v58 = vmul.f32 1.442695, %v2079_v59  ;;  %v16622_v59 = vld [vmem:[#allocation192_spill] sm:$0xff] }
 0x3d2   : > { %16611 = vst [vmem:[#allocation118_spill] sm:$0xff] %v12736_v16  ;;  %16613 = vst [vmem:[#allocation123_spill] sm:$0xff] %v12740_v17  ;;  %v12742_v23 = vpop.eup %9132  ;;  %v2366_v5 = vmul.f32 1.442695, %v2070_v11  ;;  %v16617_v17 = vld [vmem:[#allocation162_spill] sm:$0xff]  ;;  %v2091_v29 = vsub.f32 %v16622_v59, %v16621_v9 }
 0x3d3   : > { %16614 = vst [vmem:[#allocation133_spill] sm:$0xff] %v12742_v23  ;;  %v12746_v24 = vpop.eup %9134  ;;  %v2085_v56 = vsub.f32 %v16618_v39, %v16617_v17  ;;  %9148 = vpow2.f32 %v2384_v58  ;;  %v16624_v11 = vld [vmem:[#allocation158_spill] sm:$0xff] }
 0x3d4   : > { %v12748_v13 = vpop.eup %9136  ;;  %v2583_v53 = vpack.c.bf16 %v12736_v16, %v12746_v24  ;;  %9150 = vpow2.f32 %v2366_v5  ;;  %v16625_v16 = vld [vmem:[#allocation180_spill] sm:$0xff]  ;;  %v2408_v58 = vmul.f32 1.442695, %v2091_v29  ;;  %v16629_v5 = vld [vmem:[#allocation185_spill] sm:$0xff] }
 0x3d5   : > { %16616 = vst [vmem:[#allocation42_spill] sm:$0xff] %v12748_v13  ;;  %v2586_v42 = vpack.c.bf16 %v12742_v23, %v12748_v13  ;;  %v12760_v57 = vpop.eup %9138  ;;  %v2082_v23 = vsub.f32 %v16625_v16, %v16624_v11  ;;  %9152 = vpow2.f32 %v2378_v63  ;;  %v2396_v39 = vmul.f32 1.442695, %v2085_v56  ;;  %v16631_v16 = vld [vmem:[#allocation186_spill] sm:$0xff]  ;;  %v16632_v63 = vld [vmem:[#allocation201_spill] sm:$0xff] }
 0x3d6   : > { %16623 = vst [vmem:[#allocation134_spill] sm:$0xff] %v12760_v57  ;;  %v12765_v35 = vpop.eup %9140  ;;  %v2094_v9 = vsub.f32 %v16630_v15, %v16629_v5  ;;  %v2097_v56 = vsub.f32 %v16632_v63, %v16631_v16  ;;  %v16634_v29 = vld [vmem:[#allocation205_spill] sm:$0xff] }
 0x3d7   : > { %8559 = vmatmul.mubr.bf16.gmra.mrb[152].mxu1 %v2583_v53  ;;  %16626 = vst [vmem:[#allocation144_spill] sm:$0xff] %v12765_v35  ;;  %v12767_v17 = vpop.eup %9142  ;;  %v2390_v50 = vmul.f32 1.442695, %v2082_v23  ;;  %9154 = vpow2.f32 %v2396_v39  ;;  %v2100_v59 = vsub.f32 %v16634_v29, %v16633_v25  ;;  %v16636_v23 = vld [vmem:[#allocation210_spill] sm:$0xff] }
 0x3d8   : > { %8562 = vmatprep.mubr.bf16.mxu1 %v2586_v42  ;;  %16627 = vst [vmem:[#allocation170_spill] sm:$0xff] %v12767_v17  ;;  %v12769_v53 = vpop.eup %9144  ;;  %v2589_v42 = vpack.c.bf16 %v12760_v57, %v12767_v17  ;;  %9156 = vpow2.f32 %v2402_v10  ;;  %v2103_v5 = vsub.f32 %v16636_v23, %v12022_v37  ;;  %v2414_v39 = vmul.f32 1.442695, %v2094_v9  ;;  %v16665_v57 = vld [vmem:[#allocation198_spill] sm:$0xff] }
 0x3d9   : > { %16628 = vst [vmem:[#allocation41_spill] sm:$0xff] %v12769_v53  ;;  %9158 = vpow2.f32 %v2408_v58  ;;  %v2420_v58 = vmul.f32 1.442695, %v2097_v56  ;;  %v2426_v25 = vmul.f32 1.442695, %v2100_v59  ;;  %v16646_v56 = vld [vmem:[#allocation111_spill] sm:$0xff] }
 0x3da   : > { %2786 = vadd.xlane.f32.xlu0 %v12025_v54  ;;  %v2592_v54 = vpack.c.bf16 %v12765_v35, %v12769_v53  ;;  %9160 = vpow2.f32 %v2390_v50  ;;  %v2432_v50 = vmul.f32 1.442695, %v2103_v5  ;;  %v2106_v23 = vsub.f32 %v16646_v56, %v12055_v51  ;;  %v16647_v59 = vld [vmem:[#allocation79_spill] sm:$0xff]  ;;  %v16648_v5 = vld [vmem:[#allocation84_spill] sm:$0xff] }
 0x3db   : > { %9162 = vpow2.f32 %v2414_v39  ;;  %v16650_v39 = vld [vmem:[#allocation90_spill] sm:$0xff] }
 0x3dc   : > { %9164 = vpow2.f32 %v2420_v58  ;;  %v2438_v56 = vmul.f32 1.442695, %v2106_v23  ;;  %v16656_v23 = vld [vmem:[#allocation95_spill] sm:$0xff] }
 0x3dd   : > { %9166 = vpow2.f32 %v2426_v25 }
 0x3de   : > { %3827 = vadd.xlane.f32.xlu0 %v12034_v0  ;;  %v12782_v11 = vpop.f32.mrb[100].mxu1  ;;  %v12791_v0 = vpop.eup %9146  ;;  %9168 = vpow2.f32 %v2432_v50  ;;  %v16655_v50 = vld [vmem:[#allocation121_spill] sm:$0xff] }
 0x3df   : > { %8563 = vmatmul.mubr.bf16.gmra.mrb[156].mxu1 %v2589_v42  ;;  %16635 = vst [vmem:[#allocation225_spill] sm:$0xff] %v12782_v11  ;;  %v12786_v15 = vpop.f32.mrb[164].mxu0  ;;  %v12788_v35 = vpop.f32.mrb[101].mxu1  ;;  %16638 = vst [vmem:[#allocation165_spill] sm:$0xff] %v12791_v0  ;;  %9170 = vpow2.f32 %v2438_v56 }
 0x3e0   : > { %8566 = vmatprep.mubr.bf16.mxu1 %v2592_v54  ;;  %16637 = vst [vmem:[#allocation130_spill] sm:$0xff] %v12788_v35  ;;  %2788 = vadd.xlane.f32.xlu1 %v12036_v22  ;;  %v12793_v10 = vpop.f32.mrb[165].mxu0  ;;  %v12795_v42 = vpop.f32.mrb[102].mxu1 }
 0x3e1   : > { %16639 = vst [vmem:[#allocation132_spill] sm:$0xff] %v12795_v42  ;;  %v12797_v54 = vpop.eup %9148  ;;  %v12799_v16 = vpop.f32.mrb[166].mxu0 }
 0x3e2   : > { %16640 = vst [vmem:[#allocation139_spill] sm:$0xff] %v12797_v54  ;;  %16641 = vst [vmem:[#allocation141_spill] sm:$0xff] %v12799_v16  ;;  %v12801_v37 = vpop.f32.mrb[103].mxu1  ;;  %v12803_v63 = vpop.eup %9150  ;;  %v2109_v16 = vsub.f32 %v16647_v59, %v12062_v45  ;;  %v16657_v59 = vld [vmem:[#allocation103_spill] sm:$0xff] }
 0x3e3   : > { %16642 = vst [vmem:[#allocation150_spill] sm:$0xff] %v12801_v37  ;;  %16643 = vst [vmem:[#allocation159_spill] sm:$0xff] %v12803_v63  ;;  %v12805_v29 = vpop.f32.mrb[167].mxu0  ;;  %v12807_v22 = vpop.eup %9152  ;;  %v2595_v9 = vpack.c.bf16 %v12791_v0, %v12803_v63  ;;  %v2112_v37 = vsub.f32 %v16648_v5, %v12093_v33 }
 0x3e4   : > { %16644 = vst [vmem:[#allocation138_spill] sm:$0xff] %v12805_v29  ;;  %16645 = vst [vmem:[#allocation148_spill] sm:$0xff] %v12807_v22  ;;  %3829 = vadd.xlane.f32.xlu1 %v12039_v20  ;;  %v2598_v42 = vpack.c.bf16 %v12797_v54, %v12807_v22  ;;  %v12820_v20 = vpop.eup %9154  ;;  %v2115_v29 = vsub.f32 %v16650_v39, %v12100_v32  ;;  %v2444_v58 = vmul.f32 1.442695, %v2109_v16 }
 0x3e5   : > { %16649 = vst [vmem:[#allocation149_spill] sm:$0xff] %v12820_v20  ;;  %v12824_v51 = vpop.eup %9156  ;;  %v2450_v45 = vmul.f32 1.442695, %v2112_v37  ;;  %v2121_v16 = vsub.f32 %v16657_v59, %v16656_v23  ;;  %v16659_v37 = vld [vmem:[#allocation236_spill] sm:$0xff] }
 0x3e6   : > { %16651 = vst [vmem:[#allocation156_spill] sm:$0xff] %v12824_v51  ;;  %v12826_v54 = vpop.eup %9158  ;;  %v2456_v25 = vmul.f32 1.442695, %v2115_v29  ;;  %9172 = vpow2.f32 %v2444_v58  ;;  %v16660_v29 = vld [vmem:[#allocation107_spill] sm:$0xff] }
 0x3e7   : > { %8567 = vmatmul.mubr.bf16.gmra.mrb[160].mxu1 %v2595_v9  ;;  %16652 = vst [vmem:[#allocation167_spill] sm:$0xff] %v12826_v54  ;;  %v12828_v0 = vpop.eup %9160  ;;  %v2604_v32 = vpack.c.bf16 %v12826_v54, %v12824_v51  ;;  %9174 = vpow2.f32 %v2450_v45  ;;  %v2124_v39 = vsub.f32 %v16660_v29, %v16659_v37  ;;  %v9467_v58 = vld [vmem:[%s10226_s28 + $0x38] sm:$0xff]  ;;  %v2468_v59 = vmul.f32 1.442695, %v2121_v16  ;;  %v9468_v45 = vld [vmem:[%s10226_s28 + $0x40] sm:$0xff]  ;;  %v16668_v29 = vld [vmem:[#allocation245_spill] sm:$0xff] }
 0x3e8   : > { %8570 = vmatprep.mubr.bf16.mxu1 %v2598_v42  ;;  %16653 = vst [vmem:[#allocation175_spill] sm:$0xff] %v12828_v0  ;;  %v2601_v33 = vpack.c.bf16 %v12820_v20, %v12828_v0  ;;  %v16654_v42 = vld [vmem:[#allocation230_spill] sm:$0xff]  ;;  %v12838_v5 = vpop.eup %9162  ;;  %9176 = vpow2.f32 %v2456_v25  ;;  %v4215_v51 = vmul.f32 %v9467_v58, %v16665_v57  ;;  %v16671_v16 = vld [vmem:[#allocation131_spill] sm:$0xff] }
 0x3e9   : > { %v2118_v9 = vsub.f32 %v16655_v50, %v16654_v42  ;;  %16658 = vst [vmem:[#allocation163_spill] sm:$0xff] %v12838_v5  ;;  %v12842_v56 = vpop.eup %9164  ;;  %v16662_v42 = vld [vmem:[#allocation124_spill] sm:$0xff]  ;;  %v16667_v0 = vld [vmem:[#allocation74_spill] sm:$0xff]  ;;  %v2474_v37 = vmul.f32 1.442695, %v2124_v39 }
 0x3ea   : > { %16661 = vst [vmem:[#allocation173_spill] sm:$0xff] %v12842_v56  ;;  %v16663_v50 = vld [vmem:[#allocation116_spill] sm:$0xff]  ;;  %v12846_v54 = vpop.eup %9166  ;;  %v4216_v22 = vmul.f32 %v9468_v45, %v16667_v0  ;;  %v2607_v25 = vpack.c.bf16 %v12842_v56, %v12838_v5 }
 0x3eb   : > { %v2127_v20 = vsub.f32 %v16663_v50, %v16662_v42  ;;  %16664 = vst [vmem:[#allocation162_spill] sm:$0xff] %v12846_v54  ;;  %v2462_v23 = vmul.f32 1.442695, %v2118_v9  ;;  %v16669_v42 = vld [vmem:[#allocation224_spill] sm:$0xff]  ;;  %v16670_v9 = vld [vmem:[#allocation122_spill] sm:$0xff] }
 0x3ec   : > { %v2130_v50 = vsub.f32 %v16669_v42, %v16668_v29  ;;  %v2133_v0 = vsub.f32 %v16671_v16, %v16670_v9 }
 0x3ed   : > { %9178 = vpow2.f32 %v2462_v23 }
 0x3ee   : > { %9180 = vpow2.f32 %v2468_v59  ;;  %v2486_v42 = vmul.f32 1.442695, %v2130_v50  ;;  %v16684_v50 = vld [vmem:[#allocation143_spill] sm:$0xff] }
 0x3ef   : > { %8571 = vmatmul.mubr.bf16.gmra.mrb[164].mxu1 %v2601_v33  ;;  %v12850_v33 = vpop.eup %9168  ;;  %9182 = vpow2.f32 %v2474_v37  ;;  %v2142_v56 = vsub.f32 %v16684_v50, %v12335_v55  ;;  %v16689_v55 = vld [vmem:[#allocation155_spill] sm:$0xff] }
 0x3f0   : > { %8574 = vmatprep.mubr.bf16.mxu1 %v2604_v32  ;;  %16666 = vst [vmem:[#allocation183_spill] sm:$0xff] %v12850_v33  ;;  %v2480_v32 = vmul.f32 1.442695, %v2127_v20  ;;  %v2610_v57 = vpack.c.bf16 %v12850_v33, %v12846_v54  ;;  %v12864_v39 = vpop.eup %9170  ;;  %v16673_v20 = vld [vmem:[#allocation145_spill] sm:$0xff]  ;;  %v16741_v54 = vld [vmem:[#allocation234_spill] sm:$0xff] }
 0x3f1   : > { %16672 = vst [vmem:[#allocation172_spill] sm:$0xff] %v12864_v39  ;;  %v12870_v23 = vpop.eup %9172 }
 0x3f2   : > { %16675 = vst [vmem:[#allocation174_spill] sm:$0xff] %v12870_v23  ;;  %9184 = vpow2.f32 %v2480_v32  ;;  %v2613_v33 = vpack.c.bf16 %v12870_v23, %v12864_v39 }
 0x3f3   : > { %9186 = vpow2.f32 %v2486_v42  ;;  %v2151_v42 = vsub.f32 %v16689_v55, %v12384_v49 }
 0x3f4   : > { %4350 = vrot.lane.b32.xlu0 %v4215_v51, %s9864_s26  ;;  %v2136_v51 = vsub.f32 %v16673_v20, %v12286_v14 }
 0x3f5   : > { %4352 = vrot.lane.b32.xlu1 %v4216_v22, %s9864_s26  ;;  %v16676_v22 = vld [vmem:[#allocation137_spill] sm:$0xff] }
 0x3f6   : > { %v2139_v45 = vsub.f32 %v16676_v22, %v12292_v31  ;;  %v2498_v20 = vmul.f32 1.442695, %v2136_v51  ;;  %v16687_v51 = vld [vmem:[#allocation154_spill] sm:$0xff] }
 0x3f7   : > { %8575 = vmatmul.mubr.bf16.gmra.mrb[168].mxu1 %v2607_v25  ;;  %v12868_v58 = vpop.f32.mrb[104].mxu1  ;;  %v12878_v25 = vpop.eup %9174 }
 0x3f8   : > { %8578 = vmatprep.mubr.bf16.mxu1 %v2610_v57  ;;  %16674 = vst [vmem:[#allocation187_spill] sm:$0xff] %v12868_v58  ;;  %v12874_v59 = vpop.f32.mrb[168].mxu0  ;;  %v12876_v29 = vpop.f32.mrb[105].mxu1  ;;  %16678 = vst [vmem:[#allocation158_spill] sm:$0xff] %v12878_v25  ;;  %v2492_v57 = vmul.f32 1.442695, %v2133_v0 }
 0x3f9   : > { %16677 = vst [vmem:[#allocation192_spill] sm:$0xff] %v12876_v29  ;;  %v12880_v37 = vpop.f32.mrb[169].mxu0  ;;  %v12882_v9 = vpop.f32.mrb[106].mxu1  ;;  %v2504_v22 = vmul.f32 1.442695, %v2139_v45  ;;  %v16685_v0 = vld [vmem:[#allocation151_spill] sm:$0xff]  ;;  %v2148_v45 = vsub.f32 %v16687_v51, %v12378_v36 }
 0x3fa   : > { %16679 = vst [vmem:[#allocation180_spill] sm:$0xff] %v12882_v9  ;;  %v12884_v14 = vpop.eup %9176  ;;  %v12886_v16 = vpop.f32.mrb[170].mxu0  ;;  %9188 = vpow2.f32 %v2492_v57  ;;  %v2510_v57 = vmul.f32 1.442695, %v2142_v56  ;;  %v16694_v56 = vld [vmem:[#allocation157_spill] sm:$0xff] }
 0x3fb   : > { %16680 = vst [vmem:[#allocation185_spill] sm:$0xff] %v12884_v14  ;;  %16681 = vst [vmem:[#allocation200_spill] sm:$0xff] %v12886_v16  ;;  %v12888_v32 = vpop.f32.mrb[107].mxu1  ;;  %v12890_v31 = vpop.f32.mrb[171].mxu0  ;;  %v2616_v9 = vpack.c.bf16 %v12884_v14, %v12878_v25  ;;  %v2145_v16 = vsub.f32 %v16685_v0, %v12347_v2  ;;  %9190 = vpow2.f32 %v2498_v20  ;;  %v2528_v0 = vmul.f32 1.442695, %v2151_v42 }
 0x3fc   : > { %16682 = vst [vmem:[#allocation186_spill] sm:$0xff] %v12888_v32  ;;  %16683 = vst [vmem:[#allocation201_spill] sm:$0xff] %v12890_v31  ;;  %v12900_v32 = vpop.eup %9178  ;;  %9192 = vpow2.f32 %v2504_v22 }
 0x3fd   : > { %16686 = vst [vmem:[#allocation194_spill] sm:$0xff] %v12900_v32  ;;  %v12904_v31 = vpop.eup %9180  ;;  %v2516_v2 = vmul.f32 1.442695, %v2145_v16  ;;  %9194 = vpow2.f32 %v2510_v57  ;;  %v2157_v16 = vsub.f32 %v16694_v56, %v12448_v60 }
 0x3fe   : > { %16688 = vst [vmem:[#allocation205_spill] sm:$0xff] %v12904_v31  ;;  %v12908_v50 = vpop.eup %9182  ;;  %v2619_v20 = vpack.c.bf16 %v12904_v31, %v12900_v32  ;;  %v16714_v31 = vld [vmem:[#allocation75_spill] sm:$0xff] }
 0x3ff   : > { %8579 = vmatmul.mubr.bf16.gmra.mrb[172].mxu1 %v2613_v33  ;;  %16690 = vst [vmem:[#allocation210_spill] sm:$0xff] %v12908_v50  ;;  %v12910_v14 = vpop.eup %9184  ;;  %v2522_v33 = vmul.f32 1.442695, %v2148_v45  ;;  %9196 = vpow2.f32 %v2516_v2  ;;  %v2540_v57 = vmul.f32 1.442695, %v2157_v16 }
 0x400   : > { %8582 = vmatprep.mubr.bf16.mxu1 %v2616_v9  ;;  %16691 = vst [vmem:[#allocation111_spill] sm:$0xff] %v12910_v14  ;;  %v2622_v36 = vpack.c.bf16 %v12910_v14, %v12908_v50  ;;  %v16692_v9 = vld [vmem:[#allocation169_spill] sm:$0xff]  ;;  %v12918_v49 = vpop.eup %9186 }
 0x401   : > { %v2154_v22 = vsub.f32 %v16692_v9, %v12442_v48  ;;  %16693 = vst [vmem:[#allocation79_spill] sm:$0xff] %v12918_v49  ;;  %9198 = vpow2.f32 %v2522_v33 }
 0x402   : > { %9200 = vpow2.f32 %v2528_v0 }
 0x403   : > { %v2534_v42 = vmul.f32 1.442695, %v2154_v22 }
 0x404   : > { %v12922_v51 = vpop.eup %9188 }
 0x405   : > { %16695 = vst [vmem:[#allocation84_spill] sm:$0xff] %v12922_v51  ;;  %v12924_v45 = vpop.eup %9190  ;;  %v2625_v48 = vpack.c.bf16 %v12922_v51, %v12918_v49  ;;  %9202 = vpow2.f32 %v2534_v42  ;;  %v16731_v49 = vld [vmem:[#allocation226_spill] sm:$0xff] }
 0x406   : > { %16696 = vst [vmem:[#allocation90_spill] sm:$0xff] %v12924_v45  ;;  %v12926_v55 = vpop.eup %9192  ;;  %9204 = vpow2.f32 %v2540_v57 }
 0x407   : > { %8583 = vmatmul.mubr.bf16.gmra.mrb[176].mxu1 %v2619_v20  ;;  %16697 = vst [vmem:[#allocation230_spill] sm:$0xff] %v12926_v55  ;;  %v2628_v2 = vpack.c.bf16 %v12926_v55, %v12924_v45  ;;  %v12932_v33 = vpop.eup %9194 }
 0x408   : > { %8586 = vmatprep.mubr.bf16.mxu1 %v2622_v36  ;;  %16698 = vst [vmem:[#allocation121_spill] sm:$0xff] %v12932_v33 }
 0x409   : > { %v12936_v0 = vpop.eup %9196 }
 0x40a   : > { %16700 = vst [vmem:[#allocation103_spill] sm:$0xff] %v12936_v0  ;;  %v2631_v55 = vpack.c.bf16 %v12936_v0, %v12932_v33  ;;  %v9469_v0 = vld [vmem:[%s10226_s28 + $0x48] sm:$0xff] }
 0x40b   : > { %v12942_v9 = vpop.eup %9198  ;;  %v4217_v23 = vmul.f32 %v9469_v0, %v16714_v31 }
 0x40c   : > { %16702 = vst [vmem:[#allocation107_spill] sm:$0xff] %v12942_v9  ;;  %v12948_v16 = vpop.eup %9200 }
 0x40d   : > { %16704 = vst [vmem:[#allocation116_spill] sm:$0xff] %v12948_v16  ;;  %v2634_v51 = vpack.c.bf16 %v12948_v16, %v12942_v9 }
 0x40f   : > { %8587 = vmatmul.mubr.bf16.gmra.mrb[180].mxu1 %v2625_v48  ;;  %v12934_v60 = vpop.f32.mrb[108].mxu1  ;;  %v16707_v48 = vld [vmem:[#allocation203_spill] sm:$0xff]  ;;  %v12962_v14 = vpop.eup %9202 }
 0x410   : > { %8590 = vmatprep.mubr.bf16.mxu1 %v2628_v2  ;;  %16699 = vst [vmem:[#allocation95_spill] sm:$0xff] %v12934_v60  ;;  %v12938_v20 = vpop.f32.mrb[172].mxu0  ;;  %v12940_v36 = vpop.f32.mrb[109].mxu1  ;;  %16710 = vst [vmem:[#allocation224_spill] sm:$0xff] %v12962_v14 }
 0x411   : > { %16701 = vst [vmem:[#allocation236_spill] sm:$0xff] %v12940_v36  ;;  %v12944_v22 = vpop.f32.mrb[173].mxu0  ;;  %v12946_v56 = vpop.f32.mrb[110].mxu1 }
 0x412   : > { %16703 = vst [vmem:[#allocation124_spill] sm:$0xff] %v12946_v56  ;;  %v12950_v42 = vpop.f32.mrb[174].mxu0  ;;  %v12952_v57 = vpop.f32.mrb[111].mxu1  ;;  %v16709_v56 = vld [vmem:[#allocation207_spill] sm:$0xff] }
 0x413   : > { %16705 = vst [vmem:[#allocation198_spill] sm:$0xff] %v12950_v42  ;;  %16706 = vst [vmem:[#allocation74_spill] sm:$0xff] %v12952_v57  ;;  %2790 = vadd.xlane.f32.xlu0 %v16707_v48  ;;  %v12955_v2 = vpop.f32.mrb[175].mxu0  ;;  %v12964_v42 = vpop.eup %9204  ;;  %v16712_v57 = vld [vmem:[#allocation208_spill] sm:$0xff] }
 0x414   : > { %16708 = vst [vmem:[#allocation245_spill] sm:$0xff] %v12955_v2  ;;  %16711 = vst [vmem:[#allocation122_spill] sm:$0xff] %v12964_v42  ;;  %v2637_v48 = vpack.c.bf16 %v12964_v42, %v12962_v14  ;;  %v16713_v2 = vld [vmem:[#allocation212_spill] sm:$0xff] }
 0x417   : > { %8591 = vmatmul.mubr.bf16.gmra.mrb[184].mxu1 %v2631_v55  ;;  %3831 = vadd.xlane.f32.xlu0 %v16709_v56  ;;  %v16716_v56 = vld [vmem:[#allocation228_spill] sm:$0xff] }
 0x418   : > { %8594 = vmatprep.mubr.bf16.mxu1 %v2634_v51  ;;  %v9470_v51 = vld [vmem:[%s10226_s28 + $0x50] sm:$0xff] }
 0x419   : > { %2792 = vadd.xlane.f32.xlu1 %v16712_v57  ;;  %v4218_v9 = vmul.f32 %v9470_v51, %v16716_v56 }
 0x41d   : > { %3833 = vadd.xlane.f32.xlu1 %v16713_v2 }
 0x41f   : > { %8595 = vmatmul.mubr.bf16.gmra.mrb[188].mxu1 %v2637_v48 }
 0x428   : > { %v12972_v16 = vpop.f32.mrb[112].mxu1 }
 0x429   : > { %16715 = vst [vmem:[#allocation131_spill] sm:$0xff] %v12972_v16  ;;  %v12974_v55 = vpop.f32.mrb[176].mxu0  ;;  %v12978_v33 = vpop.f32.mrb[113].mxu1 }
 0x42a   : > { %16717 = vst [vmem:[#allocation145_spill] sm:$0xff] %v12978_v33  ;;  %v12980_v45 = vpop.f32.mrb[177].mxu0  ;;  %v12983_v57 = vpop.f32.mrb[114].mxu1 }
 0x42b   : > { %16718 = vst [vmem:[#allocation137_spill] sm:$0xff] %v12983_v57  ;;  %v12985_v2 = vpop.f32.mrb[178].mxu0  ;;  %v12987_v48 = vpop.f32.mrb[115].mxu1 }
 0x42c   : > { %16719 = vst [vmem:[#allocation143_spill] sm:$0xff] %v12985_v2  ;;  %16720 = vst [vmem:[#allocation151_spill] sm:$0xff] %v12987_v48  ;;  %v12989_v31 = vpop.f32.mrb[179].mxu0  ;;  %v16728_v48 = vld [vmem:[#allocation115_spill] sm:$0xff] }
 0x42d   : > { %4354 = vrot.lane.b32.xlu0 %v4217_v23, %s9864_s26  ;;  %16721 = vst [vmem:[#allocation154_spill] sm:$0xff] %v12989_v31  ;;  %v16730_v31 = vld [vmem:[#allocation88_spill] sm:$0xff] }
 0x42e   : > { %4356 = vrot.lane.b32.xlu1 %v4218_v9, %s9864_s26  ;;  %v16729_v9 = vld [vmem:[#allocation87_spill] sm:$0xff] }
 0x441   : > { %v12992_v0 = vpop.f32.mrb[116].mxu1 }
 0x442   : > { %16722 = vst [vmem:[#allocation155_spill] sm:$0xff] %v12992_v0  ;;  %v12994_v42 = vpop.f32.mrb[180].mxu0  ;;  %v12996_v51 = vpop.f32.mrb[117].mxu1 }
 0x443   : > { %16723 = vst [vmem:[#allocation169_spill] sm:$0xff] %v12996_v51  ;;  %v12998_v56 = vpop.f32.mrb[181].mxu0  ;;  %v13000_v14 = vpop.f32.mrb[118].mxu1 }
 0x444   : > { %16724 = vst [vmem:[#allocation157_spill] sm:$0xff] %v13000_v14  ;;  %v13002_v23 = vpop.f32.mrb[182].mxu0  ;;  %v13004_v57 = vpop.f32.mrb[119].mxu1 }
 0x445   : > { %16725 = vst [vmem:[#allocation203_spill] sm:$0xff] %v13002_v23  ;;  %16726 = vst [vmem:[#allocation207_spill] sm:$0xff] %v13004_v57  ;;  %v13006_v2 = vpop.f32.mrb[183].mxu0 }
 0x446   : > { %16727 = vst [vmem:[#allocation208_spill] sm:$0xff] %v13006_v2 }
 0x44c   : > { %2794 = vadd.xlane.f32.xlu0 %v16728_v48 }
 0x450   : > { %3835 = vadd.xlane.f32.xlu0 %v16729_v9  ;;  %v9471_v9 = vld [vmem:[%s10226_s28 + $0x58] sm:$0xff] }
 0x452   : > { %2796 = vadd.xlane.f32.xlu1 %v16730_v31  ;;  %v16740_v31 = vld [vmem:[#allocation229_spill] sm:$0xff] }
 0x453   : > { %v4219_v39 = vmul.f32 %v9471_v9, %v16740_v31 }
 0x456   : > { %3837 = vadd.xlane.f32.xlu1 %v16731_v49  ;;  %v9472_v49 = vld [vmem:[%s10226_s28 + $0x60] sm:$0xff] }
 0x457   : > { %v4220_v5 = vmul.f32 %v9472_v49, %v16741_v54 }
 0x459   : > { %v13012_v50 = vpop.f32.mrb[120].mxu1 }
 0x45a   : > { %16732 = vst [vmem:[#allocation212_spill] sm:$0xff] %v13012_v50  ;;  %v13016_v14 = vpop.f32.mrb[121].mxu1 }
 0x45b   : > { %v13014_v32 = vpop.f32.mrb[184].mxu0  ;;  %16734 = vst [vmem:[#allocation228_spill] sm:$0xff] %v13016_v14  ;;  %v13020_v57 = vpop.f32.mrb[122].mxu1 }
 0x45c   : > { %16733 = vst [vmem:[#allocation75_spill] sm:$0xff] %v13014_v32  ;;  %v13018_v23 = vpop.f32.mrb[185].mxu0  ;;  %16736 = vst [vmem:[#allocation87_spill] sm:$0xff] %v13020_v57  ;;  %v13024_v2 = vpop.f32.mrb[123].mxu1  ;;  %v16775_v32 = vld [vmem:[#allocation85_spill] sm:$0xff] }
 0x45d   : > { %16735 = vst [vmem:[#allocation115_spill] sm:$0xff] %v13018_v23  ;;  %v13022_v25 = vpop.f32.mrb[186].mxu0  ;;  %16738 = vst [vmem:[#allocation226_spill] sm:$0xff] %v13024_v2 }
 0x45e   : > { %16737 = vst [vmem:[#allocation88_spill] sm:$0xff] %v13022_v25  ;;  %v13026_v48 = vpop.f32.mrb[187].mxu0 }
 0x45f   : > { %16739 = vst [vmem:[#allocation271_spill] sm:$0xff] %v13026_v48 }
 0x466   : > { %4358 = vrot.lane.b32.xlu0 %v4219_v39, %s9864_s26 }
 0x467   : > { %4360 = vrot.lane.b32.xlu1 %v4220_v5, %s9864_s26 }
 0x472   : > { %v13034_v63 = vpop.f32.mrb[124].mxu1 }
 0x473   : > { %16742 = vst [vmem:[#allocation229_spill] sm:$0xff] %v13034_v63  ;;  %v13036_v53 = vpop.f32.mrb[188].mxu0  ;;  %v13038_v57 = vpop.f32.mrb[125].mxu1 }
 0x474   : > { %16743 = vst [vmem:[#allocation234_spill] sm:$0xff] %v13036_v53  ;;  %16744 = vst [vmem:[#allocation272_spill] sm:$0xff] %v13038_v57  ;;  %v13040_v25 = vpop.f32.mrb[189].mxu0  ;;  %v13042_v2 = vpop.f32.mrb[126].mxu1 }
 0x475   : > { %16745 = vst [vmem:[#allocation273_spill] sm:$0xff] %v13040_v25  ;;  %16746 = vst [vmem:[#allocation274_spill] sm:$0xff] %v13042_v2  ;;  %v13044_v48 = vpop.f32.mrb[190].mxu0  ;;  %v13046_v9 = vpop.f32.mrb[127].mxu1 }
 0x476   : > { %16747 = vst [vmem:[#allocation275_spill] sm:$0xff] %v13044_v48  ;;  %16748 = vst [vmem:[#allocation276_spill] sm:$0xff] %v13046_v9  ;;  %v13048_v31 = vpop.f32.mrb[191].mxu0  ;;  %v16758_v48 = vld [vmem:[#allocation218_spill] sm:$0xff]  ;;  %v16759_v9 = vld [vmem:[#allocation100_spill] sm:$0xff] }
 0x477   : > { %16749 = vst [vmem:[#allocation277_spill] sm:$0xff] %v13048_v31 }
 0x47a   : > { %v13050_v54 = vpop.f32.mrb[128].mxu1 }
 0x47b   : > { %16750 = vst [vmem:[#allocation278_spill] sm:$0xff] %v13050_v54  ;;  %v13052_v39 = vpop.f32.mrb[129].mxu1  ;;  %v16763_v54 = vld [vmem:[#allocation231_spill] sm:$0xff] }
 0x47c   : > { %16751 = vst [vmem:[#allocation279_spill] sm:$0xff] %v13052_v39  ;;  %v13054_v5 = vpop.f32.mrb[130].mxu1 }
 0x47d   : > { %16752 = vst [vmem:[#allocation280_spill] sm:$0xff] %v13054_v5  ;;  %v13056_v49 = vpop.f32.mrb[131].mxu1 }
 0x47e   : > { %16753 = vst [vmem:[#allocation281_spill] sm:$0xff] %v13056_v49 }
 0x482   : > { %v13058_v53 = vpop.f32.mrb[132].mxu1 }
 0x483   : > { %16754 = vst [vmem:[#allocation282_spill] sm:$0xff] %v13058_v53  ;;  %v13060_v63 = vpop.f32.mrb[133].mxu1 }
 0x484   : > { %16755 = vst [vmem:[#allocation283_spill] sm:$0xff] %v13060_v63  ;;  %v13062_v25 = vpop.f32.mrb[134].mxu1  ;;  %v16765_v63 = vld [vmem:[#allocation232_spill] sm:$0xff] }
 0x485   : > { %16756 = vst [vmem:[#allocation284_spill] sm:$0xff] %v13062_v25  ;;  %v13064_v2 = vpop.f32.mrb[135].mxu1  ;;  %2798 = vadd.xlane.f32.xlu0 %v16758_v48 }
 0x486   : > { %16757 = vst [vmem:[#allocation285_spill] sm:$0xff] %v13064_v2 }
 0x489   : > { %3839 = vadd.xlane.f32.xlu0 %v16759_v9 }
 0x48a   : > { %v13068_v31 = vpop.f32.mrb[136].mxu1 }
 0x48b   : > { %16760 = vst [vmem:[#allocation218_spill] sm:$0xff] %v13068_v31  ;;  %v13070_v39 = vpop.f32.mrb[137].mxu1  ;;  %2800 = vadd.xlane.f32.xlu1 %v16763_v54  ;;  %v16773_v54 = vld [vmem:[#allocation235_spill] sm:$0xff] }
 0x48c   : > { %16761 = vst [vmem:[#allocation100_spill] sm:$0xff] %v13070_v39  ;;  %v13072_v5 = vpop.f32.mrb[138].mxu1 }
 0x48d   : > { %16762 = vst [vmem:[#allocation286_spill] sm:$0xff] %v13072_v5  ;;  %v13075_v53 = vpop.f32.mrb[139].mxu1  ;;  %v9473_v5 = vld [vmem:[%s10226_s28 + $0x68] sm:$0xff] }
 0x48e   : > { %16764 = vst [vmem:[#allocation231_spill] sm:$0xff] %v13075_v53  ;;  %v4221_v57 = vmul.f32 %v9473_v5, %v16773_v54 }
 0x48f   : > { %3841 = vadd.xlane.f32.xlu1 %v16765_v63  ;;  %v9474_v63 = vld [vmem:[%s10226_s28 + $0x70] sm:$0xff] }
 0x492   : > { %v13078_v25 = vpop.f32.mrb[140].mxu1 }
 0x493   : > { %16766 = vst [vmem:[#allocation232_spill] sm:$0xff] %v13078_v25  ;;  %v13080_v2 = vpop.f32.mrb[141].mxu1  ;;  %v4222_v25 = vmul.f32 %v9474_v63, %v16775_v32 }
 0x494   : > { %16767 = vst [vmem:[#allocation287_spill] sm:$0xff] %v13080_v2  ;;  %v13082_v48 = vpop.f32.mrb[142].mxu1 }
 0x495   : > { %16768 = vst [vmem:[#allocation288_spill] sm:$0xff] %v13082_v48  ;;  %v13084_v9 = vpop.f32.mrb[143].mxu1 }
 0x496   : > { %16769 = vst [vmem:[#allocation289_spill] sm:$0xff] %v13084_v9 }
 0x49a   : > { %v13086_v31 = vpop.f32.mrb[144].mxu1 }
 0x49b   : > { %16770 = vst [vmem:[#allocation290_spill] sm:$0xff] %v13086_v31  ;;  %v13088_v49 = vpop.f32.mrb[145].mxu1 }
 0x49c   : > { %16771 = vst [vmem:[#allocation291_spill] sm:$0xff] %v13088_v49  ;;  %v13090_v39 = vpop.f32.mrb[146].mxu1 }
 0x49d   : > { %16772 = vst [vmem:[#allocation292_spill] sm:$0xff] %v13090_v39  ;;  %v13094_v53 = vpop.f32.mrb[147].mxu1 }
 0x49e   : > { %16774 = vst [vmem:[#allocation235_spill] sm:$0xff] %v13094_v53 }
 0x49f   : > { %4362 = vrot.lane.b32.xlu0 %v4221_v57, %s9864_s26 }
 0x4a0   : > { %4364 = vrot.lane.b32.xlu1 %v4222_v25, %s9864_s26 }
 0x4a2   : > { %v13100_v48 = vpop.f32.mrb[148].mxu1 }
 0x4a3   : > { %16776 = vst [vmem:[#allocation85_spill] sm:$0xff] %v13100_v48  ;;  %v13102_v9 = vpop.f32.mrb[149].mxu1 }
 0x4a4   : > { %16777 = vst [vmem:[#allocation293_spill] sm:$0xff] %v13102_v9  ;;  %v13104_v31 = vpop.f32.mrb[150].mxu1 }
 0x4a5   : > { %16778 = vst [vmem:[#allocation294_spill] sm:$0xff] %v13104_v31  ;;  %v13106_v49 = vpop.f32.mrb[151].mxu1 }
 0x4a6   : > { %16779 = vst [vmem:[#allocation295_spill] sm:$0xff] %v13106_v49 }
 0x4aa   : > { %v13108_v39 = vpop.f32.mrb[152].mxu1 }
 0x4ab   : > { %16780 = vst [vmem:[#allocation296_spill] sm:$0xff] %v13108_v39  ;;  %v13110_v5 = vpop.f32.mrb[153].mxu1 }
 0x4ac   : > { %16781 = vst [vmem:[#allocation297_spill] sm:$0xff] %v13110_v5  ;;  %v13112_v54 = vpop.f32.mrb[154].mxu1  ;;  %v16792_v5 = vld [vmem:[#allocation114_spill] sm:$0xff] }
 0x4ad   : > { %16782 = vst [vmem:[#allocation298_spill] sm:$0xff] %v13112_v54  ;;  %v13114_v53 = vpop.f32.mrb[155].mxu1 }
 0x4ae   : > { %16783 = vst [vmem:[#allocation299_spill] sm:$0xff] %v13114_v53  ;;  %v16794_v53 = vld [vmem:[#allocation237_spill] sm:$0xff] }
 0x4b2   : > { %v13116_v32 = vpop.f32.mrb[156].mxu1 }
 0x4b3   : > { %16784 = vst [vmem:[#allocation300_spill] sm:$0xff] %v13116_v32  ;;  %v13118_v57 = vpop.f32.mrb[157].mxu1 }
 0x4b4   : > { %16785 = vst [vmem:[#allocation301_spill] sm:$0xff] %v13118_v57  ;;  %v13120_v25 = vpop.f32.mrb[158].mxu1 }
 0x4b5   : > { %16786 = vst [vmem:[#allocation302_spill] sm:$0xff] %v13120_v25  ;;  %v13122_v63 = vpop.f32.mrb[159].mxu1 }
 0x4b6   : > { %16787 = vst [vmem:[#allocation303_spill] sm:$0xff] %v13122_v63 }
 0x4ba   : > { %v13124_v48 = vpop.f32.mrb[160].mxu1 }
 0x4bb   : > { %16788 = vst [vmem:[#allocation304_spill] sm:$0xff] %v13124_v48  ;;  %v13126_v31 = vpop.f32.mrb[161].mxu1  ;;  %v16798_v48 = vld [vmem:[#allocation238_spill] sm:$0xff] }
 0x4bc   : > { %16789 = vst [vmem:[#allocation305_spill] sm:$0xff] %v13126_v31  ;;  %v13128_v49 = vpop.f32.mrb[162].mxu1  ;;  %v16799_v31 = vld [vmem:[#allocation241_spill] sm:$0xff] }
 0x4bd   : > { %16790 = vst [vmem:[#allocation306_spill] sm:$0xff] %v13128_v49  ;;  %v13130_v39 = vpop.f32.mrb[163].mxu1 }
 0x4be   : > { %16791 = vst [vmem:[#allocation307_spill] sm:$0xff] %v13130_v39  ;;  %2802 = vadd.xlane.f32.xlu0 %v16792_v5 }
 0x4c2   : > { %v13133_v54 = vpop.f32.mrb[164].mxu1  ;;  %3843 = vadd.xlane.f32.xlu0 %v16794_v53 }
 0x4c3   : > { %16793 = vst [vmem:[#allocation114_spill] sm:$0xff] %v13133_v54  ;;  %v13136_v32 = vpop.f32.mrb[165].mxu1 }
 0x4c4   : > { %16795 = vst [vmem:[#allocation237_spill] sm:$0xff] %v13136_v32  ;;  %v13138_v25 = vpop.f32.mrb[166].mxu1  ;;  %2804 = vadd.xlane.f32.xlu1 %v16798_v48  ;;  %v16808_v48 = vld [vmem:[#allocation24_spill] sm:$0xff] }
 0x4c5   : > { %16796 = vst [vmem:[#allocation308_spill] sm:$0xff] %v13138_v25  ;;  %v13140_v63 = vpop.f32.mrb[167].mxu1 }
 0x4c6   : > { %16797 = vst [vmem:[#allocation309_spill] sm:$0xff] %v13140_v63  ;;  %v9475_v63 = vld [vmem:[%s10226_s28 + $0x78] sm:$0xff] }
 0x4c7   : > { %v4223_v9 = vmul.f32 %v9475_v63, %v16808_v48 }
 0x4c8   : > { %3845 = vadd.xlane.f32.xlu1 %v16799_v31  ;;  %v9476_v31 = vld [vmem:[%s10226_s28 + $0x80] sm:$0xff] }
 0x4ca   : > { %v13144_v49 = vpop.f32.mrb[168].mxu1 }
 0x4cb   : > { %16800 = vst [vmem:[#allocation238_spill] sm:$0xff] %v13144_v49  ;;  %v13146_v39 = vpop.f32.mrb[169].mxu1  ;;  %v4224_v49 = vmul.f32 %v9476_v31, %v12268_v40 }
 0x4cc   : > { %16801 = vst [vmem:[#allocation241_spill] sm:$0xff] %v13146_v39  ;;  %v13148_v5 = vpop.f32.mrb[170].mxu1 }
 0x4cd   : > { %16802 = vst [vmem:[#allocation310_spill] sm:$0xff] %v13148_v5  ;;  %v13150_v54 = vpop.f32.mrb[171].mxu1 }
 0x4ce   : > { %16803 = vst [vmem:[#allocation311_spill] sm:$0xff] %v13150_v54 }
 0x4d2   : > { %v13152_v53 = vpop.f32.mrb[172].mxu1 }
 0x4d3   : > { %16804 = vst [vmem:[#allocation312_spill] sm:$0xff] %v13152_v53  ;;  %v13154_v57 = vpop.f32.mrb[173].mxu1 }
 0x4d4   : > { %16805 = vst [vmem:[#allocation313_spill] sm:$0xff] %v13154_v57  ;;  %v13156_v32 = vpop.f32.mrb[174].mxu1 }
 0x4d5   : > { %16806 = vst [vmem:[#allocation314_spill] sm:$0xff] %v13156_v32  ;;  %v13158_v25 = vpop.f32.mrb[175].mxu1 }
 0x4d6   : > { %16807 = vst [vmem:[#allocation315_spill] sm:$0xff] %v13158_v25 }
 0x4d8   : > { %4366 = vrot.lane.b32.xlu0 %v4223_v9, %s9864_s26 }
 0x4d9   : > { %4368 = vrot.lane.b32.xlu1 %v4224_v49, %s9864_s26 }
 0x4da   : > { %v13165_v39 = vpop.f32.mrb[176].mxu1 }
 0x4db   : > { %16809 = vst [vmem:[#allocation24_spill] sm:$0xff] %v13165_v39  ;;  %v13168_v5 = vpop.f32.mrb[177].mxu1 }
 0x4dc   : > { %16810 = vst [vmem:[#allocation316_spill] sm:$0xff] %v13168_v5  ;;  %v13170_v54 = vpop.f32.mrb[178].mxu1 }
 0x4dd   : > { %16811 = vst [vmem:[#allocation317_spill] sm:$0xff] %v13170_v54  ;;  %v13172_v53 = vpop.f32.mrb[179].mxu1 }
 0x4de   : > { %16812 = vst [vmem:[#allocation318_spill] sm:$0xff] %v13172_v53 }
 0x4e2   : > { %v13174_v32 = vpop.f32.mrb[180].mxu1 }
 0x4e3   : > { %16813 = vst [vmem:[#allocation319_spill] sm:$0xff] %v13174_v32  ;;  %v13176_v25 = vpop.f32.mrb[181].mxu1 }
 0x4e4   : > { %16814 = vst [vmem:[#allocation320_spill] sm:$0xff] %v13176_v25  ;;  %v13178_v63 = vpop.f32.mrb[182].mxu1 }
 0x4e5   : > { %16815 = vst [vmem:[#allocation321_spill] sm:$0xff] %v13178_v63  ;;  %v13180_v40 = vpop.f32.mrb[183].mxu1  ;;  %v16825_v63 = vld [vmem:[#allocation223_spill] sm:$0xff] }
 0x4e6   : > { %16816 = vst [vmem:[#allocation322_spill] sm:$0xff] %v13180_v40  ;;  %v16826_v40 = vld [vmem:[#allocation125_spill] sm:$0xff] }
 0x4ea   : > { %v13182_v9 = vpop.f32.mrb[184].mxu1 }
 0x4eb   : > { %16817 = vst [vmem:[#allocation323_spill] sm:$0xff] %v13182_v9  ;;  %v13184_v48 = vpop.f32.mrb[185].mxu1  ;;  %v16827_v9 = vld [vmem:[#allocation126_spill] sm:$0xff] }
 0x4ec   : > { %16818 = vst [vmem:[#allocation324_spill] sm:$0xff] %v13184_v48  ;;  %v13186_v49 = vpop.f32.mrb[186].mxu1  ;;  %v16828_v48 = vld [vmem:[#allocation247_spill] sm:$0xff] }
 0x4ed   : > { %16819 = vst [vmem:[#allocation325_spill] sm:$0xff] %v13186_v49  ;;  %v13188_v31 = vpop.f32.mrb[187].mxu1  ;;  %v9477_v49 = vld [vmem:[%s10226_s28 + $0x88] sm:$0xff] }
 0x4ee   : > { %16820 = vst [vmem:[#allocation326_spill] sm:$0xff] %v13188_v31  ;;  %v4225_v31 = vmul.f32 %v9477_v49, %v12276_v30  ;;  %v13231_v49 = vpop.xlane.xlu1 %2752 }
 0x4ef   : > { %16836 = vst [vmem:[#allocation125_spill] sm:$0xff] %v13231_v49 }
 0x4f2   : > { %v13190_v54 = vpop.f32.mrb[188].mxu1 }
 0x4f3   : > { %16821 = vst [vmem:[#allocation327_spill] sm:$0xff] %v13190_v54  ;;  %v13192_v53 = vpop.f32.mrb[189].mxu1  ;;  %v9478_v54 = vld [vmem:[%s10226_s28 + $0x90] sm:$0xff] }
 0x4f4   : > { %16822 = vst [vmem:[#allocation328_spill] sm:$0xff] %v13192_v53  ;;  %v13194_v32 = vpop.f32.mrb[190].mxu1  ;;  %v4226_v53 = vmul.f32 %v9478_v54, %v12318_v47  ;;  %v16829_v54 = vld [vmem:[#allocation255_spill] sm:$0xff] }
 0x4f5   : > { %16823 = vst [vmem:[#allocation329_spill] sm:$0xff] %v13194_v32  ;;  %v13196_v25 = vpop.f32.mrb[191].mxu1  ;;  %v16845_v32 = vld [vmem:[#allocation268_spill] sm:$0xff] }
 0x4f6   : > { %16824 = vst [vmem:[#allocation330_spill] sm:$0xff] %v13196_v25 }
 0x4f7   : > { %2806 = vadd.xlane.f32.xlu0 %v16825_v63  ;;  %v9479_v63 = vld [vmem:[%s10226_s28 + $0x98] sm:$0xff] }
 0x4f8   : > { %v4227_v30 = vmul.f32 %v9479_v63, %v12320_v19  ;;  %v3794_v63 = vpop.xlane.xlu1 %3793 }
 0x4fb   : > { %3847 = vadd.xlane.f32.xlu0 %v16826_v40  ;;  %v9480_v40 = vld [vmem:[%s10226_s28 + $0xa0] sm:$0xff] }
 0x4fc   : > { %v4228_v47 = vmul.f32 %v9480_v40, %v12374_v8  ;;  %v13235_v40 = vpop.xlane.xlu1 %2756 }
 0x4fd   : > { %2808 = vadd.xlane.f32.xlu1 %v16827_v9  ;;  %v9482_v9 = vld [vmem:[%s10226_s28 + $0xb0] sm:$0xff]  ;;  %16838 = vst [vmem:[#allocation247_spill] sm:$0xff] %v13235_v40 }
 0x501   : > { %3849 = vadd.xlane.f32.xlu1 %v16828_v48  ;;  %v16835_v48 = vld [vmem:[#allocation54_spill] sm:$0xff] }
 0x502   : > { %v4230_v8 = vmul.f32 %v9482_v9, %v16835_v48 }
 0x511   : > { %4370 = vrot.lane.b32.xlu0 %v4225_v31, %s9864_s26  ;;  %v13233_v31 = vpop.xlane.xlu0 %2750 }
 0x512   : > { %4372 = vrot.lane.b32.xlu1 %v4226_v53, %s9864_s26  ;;  %v16831_v53 = vld [vmem:[#allocation259_spill] sm:$0xff]  ;;  %16837 = vst [vmem:[#allocation126_spill] sm:$0xff] %v13233_v31 }
 0x530   : > { %2810 = vadd.xlane.f32.xlu0 %v12301_v4  ;;  %v16830_v4 = vld [vmem:[#allocation257_spill] sm:$0xff] }
 0x534   : > { %3851 = vadd.xlane.f32.xlu0 %v12305_v41  ;;  %v16832_v41 = vld [vmem:[#allocation260_spill] sm:$0xff] }
 0x536   : > { %2812 = vadd.xlane.f32.xlu1 %v12309_v38  ;;  %v13223_v38 = vld [vmem:[%s10226_s28 + $0xa8] sm:$0xff] }
 0x537   : > { %16833 = vst [vmem:[#allocation223_spill] sm:$0xff] %v13223_v38 }
 0x53a   : > { %3853 = vadd.xlane.f32.xlu1 %v12312_v28  ;;  %v16834_v28 = vld [vmem:[#allocation261_spill] sm:$0xff] }
 0x53b   : > { %v4229_v19 = vmul.f32 %v13223_v38, %v16834_v28 }
 0x54a   : > { %4374 = vrot.lane.b32.xlu0 %v4227_v30, %s9864_s26  ;;  %v3792_v30 = vpop.xlane.xlu0 %3791 }
 0x54b   : > { %4376 = vrot.lane.b32.xlu1 %v4228_v47, %s9864_s26 }
 0x54e   : > { %v13237_v47 = vpop.xlane.xlu0 %2754 }
 0x54f   : > { %16839 = vst [vmem:[#allocation255_spill] sm:$0xff] %v13237_v47 }
 0x569   : > { %2814 = vadd.xlane.f32.xlu0 %v16829_v54  ;;  %v13239_v54 = vpop.xlane.xlu1 %3797 }
 0x56d   : > { %3855 = vadd.xlane.f32.xlu0 %v16830_v4  ;;  %v3796_v4 = vpop.xlane.xlu0 %3795 }
 0x56f   : > { %2816 = vadd.xlane.f32.xlu1 %v16831_v53  ;;  %v13241_v53 = vpop.xlane.xlu1 %2760 }
 0x570   : > { %16840 = vst [vmem:[#allocation257_spill] sm:$0xff] %v13241_v53 }
 0x571   : > { %v13244_v28 = vpop.xlane.xlu0 %2758 }
 0x572   : > { %16842 = vst [vmem:[#allocation259_spill] sm:$0xff] %v13244_v28  ;;  %v16849_v28 = vld [vmem:[#allocation178_spill] sm:$0xff] }
 0x573   : > { %3857 = vadd.xlane.f32.xlu1 %v16832_v41  ;;  %v16841_v41 = vld [vmem:[#allocation263_spill] sm:$0xff]  ;;  %v13247_v9 = vpop.xlane.xlu1 %3801 }
 0x575   : > { %v13249_v48 = vpop.xlane.xlu0 %3799 }
 0x577   : > { %v13253_v25 = vpop.xlane.xlu1 %2764 }
 0x578   : > { %16846 = vst [vmem:[#allocation260_spill] sm:$0xff] %v13253_v25 }
 0x579   : > { %v13255_v47 = vpop.xlane.xlu0 %2762 }
 0x57a   : > { %16847 = vst [vmem:[#allocation261_spill] sm:$0xff] %v13255_v47 }
 0x57b   : > { %v13257_v31 = vpop.xlane.xlu1 %3805 }
 0x57d   : > { %v13259_v39 = vpop.xlane.xlu0 %3803 }
 0x57f   : > { %v13266_v5 = vpop.xlane.xlu1 %2768 }
 0x580   : > { %16850 = vst [vmem:[#allocation263_spill] sm:$0xff] %v13266_v5 }
 0x581   : > { %v13268_v57 = vpop.xlane.xlu0 %2766 }
 0x583   : > { %4378 = vrot.lane.b32.xlu0 %v4229_v19, %s9864_s26  ;;  %v16843_v19 = vld [vmem:[#allocation264_spill] sm:$0xff]  ;;  %v13276_v47 = vpop.xlane.xlu1 %3809 }
 0x584   : > { %4380 = vrot.lane.b32.xlu1 %v4230_v8, %s9864_s26  ;;  %v16844_v8 = vld [vmem:[#allocation265_spill] sm:$0xff]  ;;  %16851 = vst [vmem:[#allocation264_spill] sm:$0xff] %v13268_v57 }
 0x585   : > { %v13278_v25 = vpop.xlane.xlu0 %3807 }
 0x587   : > { %v13280_v53 = vpop.xlane.xlu1 %2772 }
 0x588   : > { %16853 = vst [vmem:[#allocation268_spill] sm:$0xff] %v13280_v53 }
 0x589   : > { %v13282_v40 = vpop.xlane.xlu0 %2770 }
 0x58a   : > { %16854 = vst [vmem:[#allocation178_spill] sm:$0xff] %v13282_v40 }
 0x58d   : > { %v13286_v5 = vpop.xlane.xlu0 %3811 }
 0x5a2   : > { %2818 = vadd.xlane.f32.xlu0 %v16841_v41  ;;  %v13262_v41 = vld [vmem:[%s10226_s28 + $0xb8] sm:$0xff] }
 0x5a3   : > { %16848 = vst [vmem:[#allocation54_spill] sm:$0xff] %v13262_v41 }
 0x5a6   : > { %3859 = vadd.xlane.f32.xlu0 %v16843_v19  ;;  %v4231_v19 = vmul.f32 %v13262_v41, %v16849_v28  ;;  %v13284_v28 = vpop.xlane.xlu1 %3813 }
 0x5a8   : > { %2820 = vadd.xlane.f32.xlu1 %v16844_v8  ;;  %v13271_v8 = vld [vmem:[%s10226_s28 + $0xc0] sm:$0xff] }
 0x5a9   : > { %16852 = vst [vmem:[#allocation265_spill] sm:$0xff] %v13271_v8 }
 0x5aa   : > { %v13288_v57 = vpop.xlane.xlu1 %2776 }
 0x5ab   : > { %16855 = vst [vmem:[#allocation331_spill] sm:$0xff] %v13288_v57 }
 0x5ac   : > { %3861 = vadd.xlane.f32.xlu1 %v16845_v32  ;;  %v4232_v32 = vmul.f32 %v13271_v8, %v3792_v30  ;;  %v13290_v30 = vpop.xlane.xlu0 %2774 }
 0x5ad   : > { %16856 = vst [vmem:[#allocation332_spill] sm:$0xff] %v13290_v30 }
 0x5bc   : > { %4382 = vrot.lane.b32.xlu0 %v4231_v19, %s9864_s26  ;;  %v13292_v19 = vpop.xlane.xlu1 %3817 }
 0x5bd   : > { %4384 = vrot.lane.b32.xlu1 %v4232_v32, %s9864_s26  ;;  %v13294_v32 = vpop.xlane.xlu0 %3815 }
 0x5c0   : > { %v13297_v49 = vpop.permute.xlu1 %4338 }
 0x5c1   : > { %16857 = vst [vmem:[#allocation333_spill] sm:$0xff] %v13297_v49  ;;  %v13299_v53 = vpop.permute.xlu0 %4336  ;;  %v13317_v49 = vld [vmem:[%s10226_s28 + $0xc8] sm:$0xff] }
 0x5c2   : > { %16858 = vst [vmem:[#allocation334_spill] sm:$0xff] %v13299_v53  ;;  %16863 = vst [vmem:[#allocation339_spill] sm:$0xff] %v13317_v49 }
 0x5c4   : > { %v13305_v57 = vpop.permute.xlu1 %4340 }
 0x5c5   : > { %v13303_v40 = vpop.xlane.xlu0 %2778  ;;  %16860 = vst [vmem:[#allocation336_spill] sm:$0xff] %v13305_v57 }
 0x5c6   : > { %16859 = vst [vmem:[#allocation335_spill] sm:$0xff] %v13303_v40  ;;  %v13325_v40 = vld [vmem:[%s10226_s28 + $0xd0] sm:$0xff] }
 0x5c7   : > { %16866 = vst [vmem:[#allocation342_spill] sm:$0xff] %v13325_v40 }
 0x5c8   : > { %v13308_v30 = vpop.xlane.xlu1 %2780 }
 0x5c9   : > { %16861 = vst [vmem:[#allocation337_spill] sm:$0xff] %v13308_v30  ;;  %v13310_v2 = vpop.xlane.xlu0 %3819 }
 0x5cd   : > { %v13314_v8 = vpop.permute.xlu0 %4342 }
 0x5ce   : > { %16862 = vst [vmem:[#allocation338_spill] sm:$0xff] %v13314_v8 }
 0x5d1   : > { %v13320_v53 = vpop.xlane.xlu0 %2782 }
 0x5d2   : > { %16864 = vst [vmem:[#allocation340_spill] sm:$0xff] %v13320_v53 }
 0x5d5   : > { %v13332_v57 = vpop.xlane.xlu0 %3823 }
 0x5d9   : > { %v13336_v41 = vpop.permute.xlu0 %4346 }
 0x5da   : > { %16868 = vst [vmem:[#allocation344_spill] sm:$0xff] %v13336_v41 }
 0x5db   : > { %2822 = vadd.xlane.f32.xlu0 %v12450_v52  ;;  %v13312_v52 = vpop.xlane.xlu1 %3821 }
 0x5df   : > { %3863 = vadd.xlane.f32.xlu0 %v12456_v7  ;;  %v4233_v7 = vmul.f32 %v13317_v49, %v3794_v63  ;;  %v13338_v63 = vpop.xlane.xlu0 %2786 }
 0x5e0   : > { %16869 = vst [vmem:[#allocation345_spill] sm:$0xff] %v13338_v63  ;;  %v16877_v63 = vld [vmem:[#allocation60_spill] sm:$0xff] }
 0x5e1   : > { %2824 = vadd.xlane.f32.xlu1 %v12460_v6  ;;  %v13322_v6 = vpop.permute.xlu1 %4344 }
 0x5e2   : > { %16865 = vst [vmem:[#allocation341_spill] sm:$0xff] %v13322_v6 }
 0x5e3   : > { %v13344_v49 = vpop.xlane.xlu0 %3827 }
 0x5e5   : > { %3865 = vadd.xlane.f32.xlu1 %v12464_v18  ;;  %v4234_v18 = vmul.f32 %v13325_v40, %v3796_v4  ;;  %v13330_v30 = vpop.xlane.xlu1 %2784  ;;  %v16875_v40 = vld [vmem:[#allocation188_spill] sm:$0xff] }
 0x5e6   : > { %16867 = vst [vmem:[#allocation343_spill] sm:$0xff] %v13330_v30 }
 0x5e9   : > { %v13334_v8 = vpop.xlane.xlu1 %3825 }
 0x5ed   : > { %v13340_v53 = vpop.permute.xlu1 %4348 }
 0x5ee   : > { %16870 = vst [vmem:[#allocation346_spill] sm:$0xff] %v13340_v53 }
 0x5f1   : > { %v13342_v6 = vpop.xlane.xlu1 %2788 }
 0x5f2   : > { %16871 = vst [vmem:[#allocation347_spill] sm:$0xff] %v13342_v6  ;;  %v16878_v6 = vld [vmem:[#allocation128_spill] sm:$0xff] }
 0x5f5   : > { %4386 = vrot.lane.b32.xlu0 %v4233_v7, %s9864_s26  ;;  %v13346_v4 = vpop.xlane.xlu1 %3829  ;;  %v13348_v7 = vpop.permute.xlu0 %4350 }
 0x5f6   : > { %4388 = vrot.lane.b32.xlu1 %v4234_v18, %s9864_s26  ;;  %16872 = vst [vmem:[#allocation348_spill] sm:$0xff] %v13348_v7 }
 0x5f9   : > { %v13350_v18 = vpop.xlane.xlu0 %2790  ;;  %v13352_v30 = vpop.permute.xlu1 %4352 }
 0x5fa   : > { %16873 = vst [vmem:[#allocation349_spill] sm:$0xff] %v13350_v18  ;;  %16874 = vst [vmem:[#allocation350_spill] sm:$0xff] %v13352_v30  ;;  %v16880_v18 = vld [vmem:[#allocation195_spill] sm:$0xff] }
 0x5fd   : > { %v13355_v41 = vpop.xlane.xlu1 %2792  ;;  %v13358_v53 = vpop.xlane.xlu0 %3831 }
 0x5fe   : > { %16876 = vst [vmem:[#allocation188_spill] sm:$0xff] %v13355_v41 }
 0x601   : > { %v13361_v38 = vpop.xlane.xlu1 %3833  ;;  %v13363_v7 = vpop.permute.xlu0 %4354 }
 0x602   : > { %16879 = vst [vmem:[#allocation60_spill] sm:$0xff] %v13363_v7  ;;  %v13381_v7 = vld [vmem:[%s10226_s28 + $0xf8] sm:$0xff] }
 0x603   : > { %v4239_v14 = vmul.f32 %v13257_v31, %v13381_v7  ;;  %v13453_v31 = vld [vmem:[%s10226_s28 + $0x128] sm:$0xff] }
 0x605   : > { %v13366_v30 = vpop.xlane.xlu0 %2794  ;;  %v13368_v50 = vpop.permute.xlu1 %4356 }
 0x606   : > { %16881 = vst [vmem:[#allocation128_spill] sm:$0xff] %v13366_v30  ;;  %16882 = vst [vmem:[#allocation195_spill] sm:$0xff] %v13368_v50  ;;  %v13386_v30 = vld [vmem:[%s10226_s28 + $0xd8] sm:$0xff] }
 0x607   : > { %16886 = vst [vmem:[#allocation354_spill] sm:$0xff] %v13386_v30  ;;  %v4235_v50 = vmul.f32 %v13386_v30, %v13239_v54  ;;  %v13407_v54 = vld [vmem:[%s10226_s28 + $0x108] sm:$0xff] }
 0x608   : > { %v13410_v30 = vld [vmem:[%s10226_s28 + $0xe8] sm:$0xff] }
 0x609   : > { %v13372_v41 = vpop.xlane.xlu0 %3835  ;;  %16891 = vst [vmem:[#allocation359_spill] sm:$0xff] %v13410_v30 }
 0x614   : > { %2826 = vadd.xlane.f32.xlu0 %v16875_v40  ;;  %v13370_v40 = vpop.xlane.xlu1 %2796 }
 0x615   : > { %16883 = vst [vmem:[#allocation351_spill] sm:$0xff] %v13370_v40  ;;  %v13392_v40 = vld [vmem:[%s10226_s28 + $0xe0] sm:$0xff] }
 0x616   : > { %16887 = vst [vmem:[#allocation355_spill] sm:$0xff] %v13392_v40  ;;  %v4236_v17 = vmul.f32 %v13392_v40, %v13249_v48  ;;  %v4237_v48 = vmul.f32 %v13410_v30, %v13247_v9  ;;  %v13429_v9 = vld [vmem:[%s10226_s28 + $0x120] sm:$0xff] }
 0x617   : > { %16894 = vst [vmem:[#allocation362_spill] sm:$0xff] %v13429_v9 }
 0x618   : > { %3867 = vadd.xlane.f32.xlu0 %v16877_v63  ;;  %v13374_v63 = vpop.xlane.xlu1 %3837 }
 0x61a   : > { %2828 = vadd.xlane.f32.xlu1 %v16878_v6  ;;  %v13377_v6 = vld [vmem:[%s10226_s28 + $0x100] sm:$0xff] }
 0x61b   : > { %16884 = vst [vmem:[#allocation352_spill] sm:$0xff] %v13377_v6 }
 0x61c   : > { %v13399_v23 = vpop.permute.xlu1 %4360 }
 0x61d   : > { %16889 = vst [vmem:[#allocation357_spill] sm:$0xff] %v13399_v23  ;;  %v13420_v23 = vld [vmem:[%s10226_s28 + $0xf0] sm:$0xff] }
 0x61e   : > { %3869 = vadd.xlane.f32.xlu1 %v16880_v18  ;;  %v13383_v18 = vpop.permute.xlu0 %4358  ;;  %16893 = vst [vmem:[#allocation361_spill] sm:$0xff] %v13420_v23 }
 0x61f   : > { %16885 = vst [vmem:[#allocation353_spill] sm:$0xff] %v13383_v18  ;;  %v13403_v18 = vld [vmem:[%s10226_s28 + $0x110] sm:$0xff] }
 0x620   : > { %16890 = vst [vmem:[#allocation358_spill] sm:$0xff] %v13403_v18 }
 0x622   : > { %v13397_v13 = vpop.xlane.xlu0 %2798 }
 0x623   : > { %16888 = vst [vmem:[#allocation356_spill] sm:$0xff] %v13397_v13 }
 0x626   : > { %v13417_v13 = vpop.xlane.xlu0 %3839 }
 0x62a   : > { %v13435_v30 = vpop.permute.xlu0 %4362 }
 0x62b   : > { %16895 = vst [vmem:[#allocation363_spill] sm:$0xff] %v13435_v30  ;;  %v4241_v30 = vmul.f32 %v13276_v47, %v13407_v54  ;;  %v13473_v47 = vld [vmem:[%s10226_s28 + $0x138] sm:$0xff] }
 0x62e   : > { %4721 = vperm.xlu0 %8735, %v13377_v6  }
 0x62f   : > { %4717 = vperm.xlu1 %8734, %v13381_v7  }
 0x632   : > { %4390 = vrot.lane.b32.xlu0 %v4235_v50, %s9864_s26  ;;  %v13414_v50 = vpop.xlane.xlu1 %2800 }
 0x633   : > { %4392 = vrot.lane.b32.xlu1 %v4236_v17, %s9864_s26  ;;  %16892 = vst [vmem:[#allocation360_spill] sm:$0xff] %v13414_v50  ;;  %v4238_v17 = vmul.f32 %v13420_v23, %v13259_v39  ;;  %v13433_v50 = vld [vmem:[%s10226_s28 + $0x118] sm:$0xff]  ;;  %v4240_v39 = vmul.f32 %v13377_v6, %v13278_v25  ;;  %v13449_v23 = vld [vmem:[%s10226_s28 + $0x130] sm:$0xff] }
 0x634   : > { %16898 = vst [vmem:[#allocation366_spill] sm:$0xff] %v13449_v23  ;;  %v4243_v6 = vmul.f32 %v13284_v28, %v13433_v50  ;;  %v13493_v28 = vld [vmem:[%s10226_s28 + $0x148] sm:$0xff] }
 0x636   : > { %4729 = vperm.xlu0 %8735, %v13403_v18   ;;  %v13426_v40 = vpop.xlane.xlu1 %3841 }
 0x637   : > { %4725 = vperm.xlu1 %8734, %v13407_v54  }
 0x63a   : > { %4394 = vrot.lane.b32.xlu0 %v4237_v48, %s9864_s26  ;;  %v13443_v48 = vpop.xlane.xlu0 %2802 }
 0x63b   : > { %4396 = vrot.lane.b32.xlu1 %v4238_v17, %s9864_s26  ;;  %16896 = vst [vmem:[#allocation364_spill] sm:$0xff] %v13443_v48  ;;  %v13445_v17 = vpop.permute.xlu1 %4364  ;;  %v4242_v48 = vmul.f32 %v13403_v18, %v13286_v5  ;;  %v4244_v5 = vmul.f32 %v13429_v9, %v13294_v32  ;;  %v13489_v18 = vld [vmem:[%s10226_s28 + $0x150] sm:$0xff] }
 0x63c   : > { %16897 = vst [vmem:[#allocation365_spill] sm:$0xff] %v13445_v17  ;;  %v13469_v17 = vld [vmem:[%s10226_s28 + $0x140] sm:$0xff]  ;;  %16904 = vst [vmem:[#allocation372_spill] sm:$0xff] %v13489_v18 }
 0x63d   : > { %16900 = vst [vmem:[#allocation368_spill] sm:$0xff] %v13469_v17 }
 0x63e   : > { %4737 = vperm.xlu0 %8735, %v13429_v9   ;;  %v4247_v9 = vmul.f32 %v13312_v52, %v13473_v47  ;;  %v13533_v52 = vld [vmem:[%s10226_s28 + $0x168] sm:$0xff] }
 0x63f   : > { %4733 = vperm.xlu1 %8734, %v13433_v50   ;;  %v13457_v25 = vpop.xlane.xlu1 %2804 }
 0x640   : > { %16899 = vst [vmem:[#allocation367_spill] sm:$0xff] %v13457_v25 }
 0x642   : > { %4398 = vrot.lane.b32.xlu0 %v4239_v14, %s9864_s26  ;;  %v13460_v14 = vpop.xlane.xlu0 %3843 }
 0x643   : > { %4400 = vrot.lane.b32.xlu1 %v4240_v39, %s9864_s26  ;;  %v13466_v39 = vpop.xlane.xlu1 %3845 }
 0x646   : > { %4745 = vperm.xlu0 %8735, %v13449_v23   ;;  %v13475_v25 = vpop.permute.xlu0 %4366 }
 0x647   : > { %4741 = vperm.xlu1 %8734, %v13453_v31   ;;  %16901 = vst [vmem:[#allocation369_spill] sm:$0xff] %v13475_v25  ;;  %v4245_v25 = vmul.f32 %v13292_v19, %v13453_v31  ;;  %v13513_v19 = vld [vmem:[%s10226_s28 + $0x158] sm:$0xff] }
 0x64a   : > { %4402 = vrot.lane.b32.xlu0 %v4241_v30, %s9864_s26  ;;  %v13483_v30 = vpop.xlane.xlu0 %2806 }
 0x64b   : > { %4404 = vrot.lane.b32.xlu1 %v4242_v48, %s9864_s26  ;;  %16902 = vst [vmem:[#allocation370_spill] sm:$0xff] %v13483_v30  ;;  %v13485_v48 = vpop.permute.xlu1 %4368  ;;  %v4246_v30 = vmul.f32 %v13449_v23, %v13310_v2  ;;  %v4248_v2 = vmul.f32 %v13469_v17, %v13332_v57  ;;  %v13529_v23 = vld [vmem:[%s10226_s28 + $0x170] sm:$0xff] }
 0x64c   : > { %16903 = vst [vmem:[#allocation371_spill] sm:$0xff] %v13485_v48  ;;  %v13509_v48 = vld [vmem:[%s10226_s28 + $0x160] sm:$0xff]  ;;  %16910 = vst [vmem:[#allocation378_spill] sm:$0xff] %v13529_v23 }
 0x64d   : > { %16906 = vst [vmem:[#allocation374_spill] sm:$0xff] %v13509_v48 }
 0x64e   : > { %4753 = vperm.xlu0 %8735, %v13469_v17   ;;  %v4251_v17 = vmul.f32 %v13346_v4, %v13513_v19  ;;  %v13573_v4 = vld [vmem:[%s10226_s28 + $0x188] sm:$0xff] }
 0x64f   : > { %4749 = vperm.xlu1 %8734, %v13473_v47   ;;  %v13497_v32 = vpop.xlane.xlu1 %2808 }
 0x650   : > { %16905 = vst [vmem:[#allocation373_spill] sm:$0xff] %v13497_v32 }
 0x652   : > { %4406 = vrot.lane.b32.xlu0 %v4243_v6, %s9864_s26  ;;  %v13500_v6 = vpop.xlane.xlu0 %3847 }
 0x653   : > { %4408 = vrot.lane.b32.xlu1 %v4244_v5, %s9864_s26  ;;  %v13506_v5 = vpop.xlane.xlu1 %3849 }
 0x656   : > { %4761 = vperm.xlu0 %8735, %v13489_v18   ;;  %v13515_v32 = vpop.permute.xlu0 %4370 }
 0x657   : > { %4757 = vperm.xlu1 %8734, %v13493_v28   ;;  %16907 = vst [vmem:[#allocation375_spill] sm:$0xff] %v13515_v32  ;;  %v4249_v32 = vmul.f32 %v13334_v8, %v13493_v28  ;;  %v13553_v8 = vld [vmem:[%s10226_s28 + $0x178] sm:$0xff] }
 0x65a   : > { %4410 = vrot.lane.b32.xlu0 %v4245_v25, %s9864_s26  ;;  %v13523_v25 = vpop.xlane.xlu0 %2810 }
 0x65b   : > { %4412 = vrot.lane.b32.xlu1 %v4246_v30, %s9864_s26  ;;  %16908 = vst [vmem:[#allocation376_spill] sm:$0xff] %v13523_v25  ;;  %v13525_v30 = vpop.permute.xlu1 %4372  ;;  %v4250_v25 = vmul.f32 %v13489_v18, %v13344_v49  ;;  %v4252_v49 = vmul.f32 %v13509_v48, %v13358_v53  ;;  %v13569_v18 = vld [vmem:[%s10226_s28 + $0x190] sm:$0xff] }
 0x65c   : > { %16909 = vst [vmem:[#allocation377_spill] sm:$0xff] %v13525_v30  ;;  %v13549_v30 = vld [vmem:[%s10226_s28 + $0x180] sm:$0xff]  ;;  %16916 = vst [vmem:[#allocation384_spill] sm:$0xff] %v13569_v18 }
 0x65d   : > { %16912 = vst [vmem:[#allocation380_spill] sm:$0xff] %v13549_v30 }
 0x65e   : > { %4769 = vperm.xlu0 %8735, %v13509_v48   ;;  %v4255_v48 = vmul.f32 %v13374_v63, %v13553_v8  ;;  %v13609_v63 = vld [vmem:[%s10226_s28 + $0x1a8] sm:$0xff] }
 0x65f   : > { %4765 = vperm.xlu1 %8734, %v13513_v19   ;;  %v13537_v57 = vpop.xlane.xlu1 %2812  ;;  %16923 = vst [vmem:[#allocation391_spill] sm:$0xff] %v13609_v63 }
 0x660   : > { %16911 = vst [vmem:[#allocation379_spill] sm:$0xff] %v13537_v57 }
 0x662   : > { %4414 = vrot.lane.b32.xlu0 %v4247_v9, %s9864_s26  ;;  %v13540_v9 = vpop.xlane.xlu0 %3851 }
 0x663   : > { %4416 = vrot.lane.b32.xlu1 %v4248_v2, %s9864_s26  ;;  %v13546_v2 = vpop.xlane.xlu1 %3853 }
 0x666   : > { %4777 = vperm.xlu0 %8735, %v13529_v23   ;;  %v13555_v57 = vpop.permute.xlu0 %4374 }
 0x667   : > { %4773 = vperm.xlu1 %8734, %v13533_v52   ;;  %16913 = vst [vmem:[#allocation381_spill] sm:$0xff] %v13555_v57  ;;  %v4253_v57 = vmul.f32 %v13361_v38, %v13533_v52  ;;  %v13589_v38 = vld [vmem:[%s10226_s28 + $0x198] sm:$0xff] }
 0x66a   : > { %4418 = vrot.lane.b32.xlu0 %v4249_v32, %s9864_s26  ;;  %v13563_v32 = vpop.xlane.xlu0 %2814 }
 0x66b   : > { %4420 = vrot.lane.b32.xlu1 %v4250_v25, %s9864_s26  ;;  %16914 = vst [vmem:[#allocation382_spill] sm:$0xff] %v13563_v32  ;;  %v13565_v25 = vpop.permute.xlu1 %4376  ;;  %v4254_v32 = vmul.f32 %v13529_v23, %v13372_v41  ;;  %v4256_v41 = vmul.f32 %v13549_v30, %v13417_v13  ;;  %v13605_v23 = vld [vmem:[%s10226_s28 + $0x1b0] sm:$0xff] }
 0x66c   : > { %16915 = vst [vmem:[#allocation383_spill] sm:$0xff] %v13565_v25  ;;  %v13585_v25 = vld [vmem:[%s10226_s28 + $0x1a0] sm:$0xff]  ;;  %16922 = vst [vmem:[#allocation390_spill] sm:$0xff] %v13605_v23 }
 0x66d   : > { %16918 = vst [vmem:[#allocation386_spill] sm:$0xff] %v13585_v25 }
 0x66e   : > { %4785 = vperm.xlu0 %8735, %v13549_v30   ;;  %v4259_v30 = vmul.f32 %v13466_v39, %v13589_v38  ;;  %v13647_v39 = vld [vmem:[%s10226_s28 + $0x1c8] sm:$0xff] }
 0x66f   : > { %4781 = vperm.xlu1 %8734, %v13553_v8   ;;  %v13577_v53 = vpop.xlane.xlu1 %2816  ;;  %16931 = vst [vmem:[#allocation399_spill] sm:$0xff] %v13647_v39 }
 0x670   : > { %16917 = vst [vmem:[#allocation385_spill] sm:$0xff] %v13577_v53 }
 0x672   : > { %4422 = vrot.lane.b32.xlu0 %v4251_v17, %s9864_s26  ;;  %v3856_v17 = vpop.xlane.xlu0 %3855 }
 0x673   : > { %4424 = vrot.lane.b32.xlu1 %v4252_v49, %s9864_s26  ;;  %v3858_v49 = vpop.xlane.xlu1 %3857 }
 0x676   : > { %4793 = vperm.xlu0 %8735, %v13569_v18   ;;  %v13591_v53 = vpop.permute.xlu0 %4378 }
 0x677   : > { %4789 = vperm.xlu1 %8734, %v13573_v4   ;;  %16919 = vst [vmem:[#allocation387_spill] sm:$0xff] %v13591_v53  ;;  %v4257_v53 = vmul.f32 %v13426_v40, %v13573_v4  ;;  %v13627_v40 = vld [vmem:[%s10226_s28 + $0x1b8] sm:$0xff] }
 0x678   : > { %16926 = vst [vmem:[#allocation394_spill] sm:$0xff] %v13627_v40 }
 0x67a   : > { %4426 = vrot.lane.b32.xlu0 %v4253_v57, %s9864_s26  ;;  %v13599_v57 = vpop.xlane.xlu0 %2818 }
 0x67b   : > { %4428 = vrot.lane.b32.xlu1 %v4254_v32, %s9864_s26  ;;  %16920 = vst [vmem:[#allocation388_spill] sm:$0xff] %v13599_v57  ;;  %v13601_v32 = vpop.permute.xlu1 %4380  ;;  %v4258_v57 = vmul.f32 %v13569_v18, %v13460_v14  ;;  %v4260_v14 = vmul.f32 %v13585_v25, %v13500_v6  ;;  %v13643_v18 = vld [vmem:[%s10226_s28 + $0x1d0] sm:$0xff] }
 0x67c   : > { %16921 = vst [vmem:[#allocation389_spill] sm:$0xff] %v13601_v32  ;;  %v13623_v32 = vld [vmem:[%s10226_s28 + $0x1c0] sm:$0xff]  ;;  %16930 = vst [vmem:[#allocation398_spill] sm:$0xff] %v13643_v18 }
 0x67d   : > { %16925 = vst [vmem:[#allocation393_spill] sm:$0xff] %v13623_v32 }
 0x67e   : > { %4801 = vperm.xlu0 %8735, %v13585_v25   ;;  %v4263_v25 = vmul.f32 %v13546_v2, %v13627_v40  ;;  %v4265_v2 = vmul.f32 %v3858_v49, %v13647_v39  ;;  %v13699_v49 = vld [vmem:[%s10226_s28 + $0x1f8] sm:$0xff] }
 0x67f   : > { %4797 = vperm.xlu1 %8734, %v13589_v38   ;;  %v13613_v13 = vpop.xlane.xlu1 %2820 }
 0x680   : > { %16924 = vst [vmem:[#allocation392_spill] sm:$0xff] %v13613_v13 }
 0x682   : > { %4430 = vrot.lane.b32.xlu0 %v4255_v48, %s9864_s26  ;;  %v3860_v48 = vpop.xlane.xlu0 %3859 }
 0x683   : > { %4432 = vrot.lane.b32.xlu1 %v4256_v41, %s9864_s26  ;;  %v13620_v41 = vpop.xlane.xlu1 %3861 }
 0x686   : > { %4809 = vperm.xlu0 %8735, %v13605_v23   ;;  %v13629_v13 = vpop.permute.xlu0 %4382 }
 0x687   : > { %4805 = vperm.xlu1 %8734, %v13609_v63   ;;  %16927 = vst [vmem:[#allocation395_spill] sm:$0xff] %v13629_v13  ;;  %v4261_v13 = vmul.f32 %v13506_v5, %v13609_v63  ;;  %v13665_v5 = vld [vmem:[%s10226_s28 + $0x1d8] sm:$0xff] }
 0x68a   : > { %4434 = vrot.lane.b32.xlu0 %v4257_v53, %s9864_s26  ;;  %v13637_v53 = vpop.xlane.xlu0 %2822 }
 0x68b   : > { %4436 = vrot.lane.b32.xlu1 %v4258_v57, %s9864_s26  ;;  %16928 = vst [vmem:[#allocation396_spill] sm:$0xff] %v13637_v53  ;;  %v13639_v57 = vpop.permute.xlu1 %4384  ;;  %v4262_v53 = vmul.f32 %v13605_v23, %v13540_v9  ;;  %v4264_v9 = vmul.f32 %v13623_v32, %v3856_v17  ;;  %v13680_v23 = vld [vmem:[%s10226_s28 + $0x1f0] sm:$0xff] }
 0x68c   : > { %16929 = vst [vmem:[#allocation397_spill] sm:$0xff] %v13639_v57  ;;  %v13661_v57 = vld [vmem:[%s10226_s28 + $0x1e0] sm:$0xff] }
 0x68e   : > { %4817 = vperm.xlu0 %8735, %v13623_v32   ;;  %v16937_v32 = vld [vmem:[#allocation43_spill] sm:$0xff] }
 0x68f   : > { %4813 = vperm.xlu1 %8734, %v13627_v40   ;;  %v13651_v6 = vpop.xlane.xlu1 %2824  ;;  %v3647_v40 = vmul.f32 %v16937_v32, %v12722_v26  ;;  %v16941_v32 = vld [vmem:[#allocation44_spill] sm:$0xff] }
 0x690   : > { %16932 = vst [vmem:[#allocation400_spill] sm:$0xff] %v13651_v6 }
 0x692   : > { %4438 = vrot.lane.b32.xlu0 %v4259_v30, %s9864_s26  ;;  %v3864_v30 = vpop.xlane.xlu0 %3863 }
 0x693   : > { %4440 = vrot.lane.b32.xlu1 %v4260_v14, %s9864_s26  ;;  %v13658_v14 = vpop.xlane.xlu1 %3865 }
 0x696   : > { %4825 = vperm.xlu0 %8735, %v13643_v18   ;;  %v13667_v6 = vpop.permute.xlu0 %4386 }
 0x697   : > { %4821 = vperm.xlu1 %8734, %v13647_v39   ;;  %16933 = vst [vmem:[#allocation401_spill] sm:$0xff] %v13667_v6  ;;  %v13684_v6 = vld [vmem:[%s10226_s28 + $0x1e8] sm:$0xff] }
 0x69a   : > { %4442 = vrot.lane.b32.xlu0 %v4261_v13, %s9864_s26 }
 0x69b   : > { %4444 = vrot.lane.b32.xlu1 %v4262_v53, %s9864_s26  ;;  %v13676_v53 = vpop.permute.xlu1 %4388 }
 0x69c   : > { %16935 = vst [vmem:[#allocation403_spill] sm:$0xff] %v13676_v53 }
 0x69e   : > { %4833 = vperm.xlu0 %8735, %v13661_v57  }
 0x69f   : > { %4829 = vperm.xlu1 %8734, %v13665_v5  }
 0x6a1   : > { %v13674_v13 = vpop.xlane.xlu0 %2826 }
 0x6a2   : > { %4446 = vrot.lane.b32.xlu0 %v4263_v25, %s9864_s26  ;;  %16934 = vst [vmem:[#allocation402_spill] sm:$0xff] %v13674_v13  ;;  %v4266_v13 = vmul.f32 %v13643_v18, %v3860_v48 }
 0x6a3   : > { %4448 = vrot.lane.b32.xlu1 %v4264_v9, %s9864_s26 }
 0x6a5   : > { %v3868_v25 = vpop.xlane.xlu0 %3867 }
 0x6a6   : > { %4841 = vperm.xlu0 %8735, %v13680_v23  }
 0x6a7   : > { %4837 = vperm.xlu1 %8734, %v13684_v6   ;;  %v13688_v17 = vpop.xlane.xlu1 %2828 }
 0x6a8   : > { %16936 = vst [vmem:[#allocation404_spill] sm:$0xff] %v13688_v17 }
 0x6aa   : > { %4450 = vrot.lane.b32.xlu0 %v4265_v2, %s9864_s26 }
 0x6ab   : > { %4452 = vrot.lane.b32.xlu1 %v4266_v13, %s9864_s26  ;;  %v13693_v9 = vpop.xlane.xlu1 %3869  ;;  %v4268_v13 = vmul.f32 %v13661_v57, %v3864_v30 }
 0x6ad   : > { %v4722_v53 = vpop.permute.xlu0 %4721 }
 0x6ae   : > { %v4880_v63 = vmul.f32 %v4722_v53, %v12726_v1  ;;  %v3649_v1 = vmul.f32 %v12718_v62, %v16941_v32  ;;  %v4270_v53 = vmul.f32 %v13680_v23, %v3868_v25 }
 0x6af   : > { %4845 = vperm.xlu1 %8734, %v13699_v49   ;;  %v13704_v17 = vpop.permute.xlu1 %4717 }
 0x6b0   : > { %v13701_v39 = vadd.f32 %v4880_v63, %v3647_v40  ;;  %16939 = vst [vmem:[#allocation405_spill] sm:$0xff] %v13704_v17 }
 0x6b1   : > { %v13706_v48 = vpop.permute.xlu0 %4390 }
 0x6b2   : > { %16938 = vst [vmem:[#allocation43_spill] sm:$0xff] %v13701_v39 }
 0x6b3   : > { %4456 = vrot.lane.b32.xlu1 %v4268_v13, %s9864_s26  ;;  %v13710_v2 = vpop.permute.xlu1 %4392 }
 0x6b4   : > { %16940 = vst [vmem:[#allocation406_spill] sm:$0xff] %v13710_v2  ;;  %v16945_v2 = vld [vmem:[#allocation45_spill] sm:$0xff] }
 0x6b5   : > { %v4730_v18 = vpop.permute.xlu0 %4729  ;;  %v3651_v39 = vmul.f32 %v16945_v2, %v12788_v35 }
 0x6b6   : > { %v4882_v63 = vmul.f32 %v12720_v27, %v4730_v18 }
 0x6b7   : > { %4460 = vrot.lane.b32.xlu1 %v4270_v53, %s9864_s26  ;;  %v13719_v26 = vpop.permute.xlu1 %4725  ;;  %v16949_v53 = vld [vmem:[#allocation46_spill] sm:$0xff] }
 0x6b8   : > { %v13716_v40 = vadd.f32 %v4882_v63, %v3649_v1  ;;  %16943 = vst [vmem:[#allocation407_spill] sm:$0xff] %v13719_v26  ;;  %v3653_v63 = vmul.f32 %v12782_v11, %v16949_v53 }
 0x6b9   : > { %v13721_v17 = vpop.permute.xlu0 %4394 }
 0x6ba   : > { %16942 = vst [vmem:[#allocation44_spill] sm:$0xff] %v13716_v40 }
 0x6bb   : > { %v13723_v30 = vpop.permute.xlu1 %4396 }
 0x6bc   : > { %16944 = vst [vmem:[#allocation408_spill] sm:$0xff] %v13723_v30 }
 0x6bd   : > { %v4738_v13 = vpop.permute.xlu0 %4737 }
 0x6be   : > { %v4884_v32 = vmul.f32 %v4738_v13, %v12793_v10  ;;  %v16953_v10 = vld [vmem:[#allocation57_spill] sm:$0xff] }
 0x6bf   : > { %v13730_v25 = vpop.permute.xlu1 %4733 }
 0x6c0   : > { %v13728_v62 = vadd.f32 %v4884_v32, %v3651_v39  ;;  %16947 = vst [vmem:[#allocation409_spill] sm:$0xff] %v13730_v25  ;;  %v16955_v32 = vld [vmem:[#allocation47_spill] sm:$0xff] }
 0x6c1   : > { %v13732_v27 = vpop.permute.xlu0 %4398  ;;  %v3655_v35 = vmul.f32 %v16955_v32, %v12876_v29  ;;  %v16966_v29 = vld [vmem:[#allocation49_spill] sm:$0xff] }
 0x6c2   : > { %16946 = vst [vmem:[#allocation45_spill] sm:$0xff] %v13728_v62  ;;  %v14083_v62 = vld [vmem:[%s10226_s28 + $0x98] sm:$0xff] }
 0x6c3   : > { %v13734_v18 = vpop.permute.xlu1 %4400 }
 0x6c4   : > { %16948 = vst [vmem:[#allocation410_spill] sm:$0xff] %v13734_v18 }
 0x6c5   : > { %v4746_v1 = vpop.permute.xlu0 %4745 }
 0x6c6   : > { %v4886_v26 = vmul.f32 %v12786_v15, %v4746_v1 }
 0x6c7   : > { %v13741_v40 = vpop.permute.xlu1 %4741 }
 0x6c8   : > { %v13739_v30 = vadd.f32 %v4886_v26, %v3653_v63  ;;  %16951 = vst [vmem:[#allocation411_spill] sm:$0xff] %v13741_v40  ;;  %v16960_v63 = vld [vmem:[#allocation48_spill] sm:$0xff] }
 0x6c9   : > { %v13743_v2 = vpop.permute.xlu0 %4402  ;;  %4976 = vadd.xlane.f32.xlu0 %v16953_v10  ;;  %v3657_v10 = vmul.f32 %v12868_v58, %v16960_v63  ;;  %v17007_v58 = vld [vmem:[#allocation170_spill] sm:$0xff] }
 0x6ca   : > { %16950 = vst [vmem:[#allocation46_spill] sm:$0xff] %v13739_v30  ;;  %16952 = vst [vmem:[#allocation412_spill] sm:$0xff] %v13743_v2 }
 0x6cb   : > { %v13746_v39 = vpop.permute.xlu1 %4404 }
 0x6cc   : > { %16954 = vst [vmem:[#allocation57_spill] sm:$0xff] %v13746_v39 }
 0x6cd   : > { %v4754_v13 = vpop.permute.xlu0 %4753 }
 0x6ce   : > { %v4888_v25 = vmul.f32 %v4754_v13, %v12880_v37 }
 0x6cf   : > { %v13753_v53 = vpop.permute.xlu1 %4749 }
 0x6d0   : > { %v13751_v18 = vadd.f32 %v4888_v25, %v3655_v35  ;;  %16957 = vst [vmem:[#allocation413_spill] sm:$0xff] %v13753_v53  ;;  %v16964_v35 = vld [vmem:[#allocation35_spill] sm:$0xff]  ;;  %v4267_v25 = vmul.f32 %v13620_v41, %v13665_v5  ;;  %v3659_v53 = vmul.f32 %v16966_v29, %v12940_v36  ;;  %v16970_v41 = vld [vmem:[#allocation50_spill] sm:$0xff] }
 0x6d1   : > { %v13755_v26 = vpop.permute.xlu0 %4406  ;;  %v16999_v36 = vld [vmem:[#allocation58_spill] sm:$0xff] }
 0x6d2   : > { %16956 = vst [vmem:[#allocation47_spill] sm:$0xff] %v13751_v18  ;;  %16958 = vst [vmem:[#allocation414_spill] sm:$0xff] %v13755_v26 }
 0x6d3   : > { %v13757_v15 = vpop.permute.xlu1 %4408 }
 0x6d4   : > { %16959 = vst [vmem:[#allocation415_spill] sm:$0xff] %v13757_v15 }
 0x6d5   : > { %v4762_v1 = vpop.permute.xlu0 %4761 }
 0x6d6   : > { %v4890_v11 = vmul.f32 %v12874_v59, %v4762_v1  ;;  %v4269_v59 = vmul.f32 %v13658_v14, %v13684_v6 }
 0x6d7   : > { %v13764_v39 = vpop.permute.xlu1 %4757 }
 0x6d8   : > { %v13762_v40 = vadd.f32 %v4890_v11, %v3657_v10  ;;  %16962 = vst [vmem:[#allocation416_spill] sm:$0xff] %v13764_v39  ;;  %v17026_v39 = vld [vmem:[#allocation80_spill] sm:$0xff] }
 0x6d9   : > { %v13766_v32 = vpop.permute.xlu0 %4410 }
 0x6da   : > { %16961 = vst [vmem:[#allocation48_spill] sm:$0xff] %v13762_v40  ;;  %16963 = vst [vmem:[#allocation417_spill] sm:$0xff] %v13766_v32  ;;  %v14044_v40 = vld [vmem:[%s10226_s28 + $0x68] sm:$0xff] }
 0x6db   : > { %4978 = vadd.xlane.f32.xlu1 %v16964_v35  ;;  %v13769_v37 = vpop.permute.xlu1 %4412 }
 0x6dc   : > { %16965 = vst [vmem:[#allocation35_spill] sm:$0xff] %v13769_v37  ;;  %v13975_v37 = vld [vmem:[%s10226_s28 + $0x10] sm:$0xff] }
 0x6dd   : > { %v4770_v13 = vpop.permute.xlu0 %4769 }
 0x6de   : > { %v4892_v63 = vmul.f32 %v4770_v13, %v12944_v22  ;;  %v3661_v22 = vmul.f32 %v12934_v60, %v16970_v41 }
 0x6df   : > { %4454 = vrot.lane.b32.xlu0 %v4267_v25, %s9864_s26  ;;  %4984 = vadd.xlane.f32.xlu1 %v12559_v34  ;;  %v13782_v1 = vpop.permute.xlu1 %4765 }
 0x6e0   : > { %v13777_v11 = vadd.f32 %v4892_v63, %v3659_v53  ;;  %16968 = vst [vmem:[#allocation418_spill] sm:$0xff] %v13782_v1  ;;  %v17022_v1 = vld [vmem:[#allocation215_spill] sm:$0xff] }
 0x6e1   : > { %v13784_v10 = vpop.permute.xlu0 %4414 }
 0x6e2   : > { %16967 = vst [vmem:[#allocation49_spill] sm:$0xff] %v13777_v11  ;;  %16969 = vst [vmem:[#allocation419_spill] sm:$0xff] %v13784_v10  ;;  %v14032_v11 = vld [vmem:[%s10226_s28 + $0x58] sm:$0xff] }
 0x6e3   : > { %4458 = vrot.lane.b32.xlu0 %v4269_v59, %s9864_s26  ;;  %4988 = vadd.xlane.f32.xlu1 %v12579_v3  ;;  %v13791_v35 = vpop.permute.xlu1 %4416  ;;  %v16975_v3 = vld [vmem:[#allocation51_spill] sm:$0xff] }
 0x6e4   : > { %16971 = vst [vmem:[#allocation50_spill] sm:$0xff] %v13791_v35  ;;  %v3663_v63 = vmul.f32 %v16975_v3, %v12978_v33  ;;  %v16981_v3 = vld [vmem:[#allocation216_spill] sm:$0xff] }
 0x6e5   : > { %v4778_v29 = vpop.permute.xlu0 %4777 }
 0x6e6   : > { %v4894_v53 = vmul.f32 %v12938_v20, %v4778_v29 }
 0x6e7   : > { %4992 = vadd.xlane.f32.xlu1 %v12582_v12  ;;  %v13799_v25 = vpop.permute.xlu1 %4773 }
 0x6e8   : > { %v13793_v34 = vadd.f32 %v4894_v53, %v3661_v22  ;;  %16974 = vst [vmem:[#allocation422_spill] sm:$0xff] %v13799_v25 }
 0x6e9   : > { %v13796_v14 = vpop.permute.xlu0 %4418 }
 0x6ea   : > { %16972 = vst [vmem:[#allocation420_spill] sm:$0xff] %v13793_v34  ;;  %16973 = vst [vmem:[#allocation421_spill] sm:$0xff] %v13796_v14  ;;  %v14020_v34 = vld [vmem:[%s10226_s28 + $0x48] sm:$0xff]  ;;  %v17083_v14 = vld [vmem:[#allocation54_spill] sm:$0xff] }
 0x6eb   : > { %4996 = vadd.xlane.f32.xlu1 %v12618_v46  ;;  %v13809_v29 = vpop.permute.xlu1 %4420  ;;  %v16979_v46 = vld [vmem:[#allocation52_spill] sm:$0xff] }
 0x6ec   : > { %16978 = vst [vmem:[#allocation424_spill] sm:$0xff] %v13809_v29  ;;  %v3665_v22 = vmul.f32 %v12972_v16, %v16979_v46  ;;  %v16998_v16 = vld [vmem:[#allocation228_spill] sm:$0xff] }
 0x6ed   : > { %v4786_v13 = vpop.permute.xlu0 %4785 }
 0x6ee   : > { %v4896_v59 = vmul.f32 %v4786_v13, %v12980_v45 }
 0x6ef   : > { %5000 = vadd.xlane.f32.xlu1 %v12624_v43  ;;  %v13818_v45 = vpop.permute.xlu1 %4781 }
 0x6f0   : > { %v13804_v41 = vadd.f32 %v4896_v59, %v3663_v63  ;;  %16982 = vst [vmem:[#allocation216_spill] sm:$0xff] %v13818_v45  ;;  %v16984_v63 = vld [vmem:[#allocation53_spill] sm:$0xff]  ;;  %v17009_v45 = vld [vmem:[#allocation212_spill] sm:$0xff] }
 0x6f1   : > { %v13807_v20 = vpop.permute.xlu0 %4422 }
 0x6f2   : > { %16976 = vst [vmem:[#allocation51_spill] sm:$0xff] %v13804_v41  ;;  %16977 = vst [vmem:[#allocation423_spill] sm:$0xff] %v13807_v20 }
 0x6f3   : > { %5004 = vadd.xlane.f32.xlu1 %v12647_v44  ;;  %v3667_v44 = vmul.f32 %v16984_v63, %v12996_v51  ;;  %v13826_v33 = vpop.permute.xlu1 %4424  ;;  %v16996_v51 = vld [vmem:[#allocation199_spill] sm:$0xff] }
 0x6f4   : > { %16985 = vst [vmem:[#allocation53_spill] sm:$0xff] %v13826_v33  ;;  %v17040_v33 = vld [vmem:[#allocation162_spill] sm:$0xff] }
 0x6f5   : > { %v4794_v12 = vpop.permute.xlu0 %4793 }
 0x6f6   : > { %v4898_v53 = vmul.f32 %v12974_v55, %v4794_v12  ;;  %v16988_v12 = vld [vmem:[#allocation70_spill] sm:$0xff] }
 0x6f7   : > { %5008 = vadd.xlane.f32.xlu1 %v16981_v3  ;;  %v16991_v3 = vld [vmem:[#allocation55_spill] sm:$0xff] }
 0x6f8   : > { %v13815_v60 = vadd.f32 %v4898_v53, %v3665_v22  ;;  %v16989_v22 = vld [vmem:[#allocation105_spill] sm:$0xff]  ;;  %v13835_v53 = vpop.permute.xlu1 %4789  ;;  %v3669_v63 = vmul.f32 %v12992_v0, %v16991_v3  ;;  %v3671_v3 = vmul.f32 %v16999_v36, %v16998_v16  ;;  %v17000_v0 = vld [vmem:[#allocation115_spill] sm:$0xff] }
 0x6f9   : > { %v13820_v13 = vpop.permute.xlu0 %4426  ;;  %16990 = vst [vmem:[#allocation70_spill] sm:$0xff] %v13835_v53  ;;  %v17008_v53 = vld [vmem:[#allocation62_spill] sm:$0xff]  ;;  %v17010_v16 = vld [vmem:[#allocation75_spill] sm:$0xff] }
 0x6fa   : > { %16980 = vst [vmem:[#allocation52_spill] sm:$0xff] %v13815_v60  ;;  %16983 = vst [vmem:[#allocation425_spill] sm:$0xff] %v13820_v13  ;;  %v3673_v36 = vmul.f32 %v17009_v45, %v17008_v53  ;;  %v17019_v53 = vld [vmem:[#allocation272_spill] sm:$0xff]  ;;  %v17020_v45 = vld [vmem:[#allocation65_spill] sm:$0xff] }
 0x6fb   : > { %5012 = vadd.xlane.f32.xlu1 %v12686_v61  ;;  %v17082_v13 = vld [vmem:[#allocation223_spill] sm:$0xff] }
 0x6fd   : > { %v4802_v43 = vpop.permute.xlu0 %4801 }
 0x6fe   : > { %v4900_v59 = vmul.f32 %v4802_v43, %v12998_v56  ;;  %v16992_v43 = vld [vmem:[#allocation67_spill] sm:$0xff] }
 0x6ff   : > { %5016 = vadd.xlane.f32.xlu1 %v12692_v21 }
 0x700   : > { %v13828_v46 = vadd.f32 %v4900_v59, %v3667_v44  ;;  %v16994_v59 = vld [vmem:[#allocation221_spill] sm:$0xff] }
 0x701   : > { %v13831_v55 = vpop.permute.xlu0 %4430 }
 0x702   : > { %16986 = vst [vmem:[#allocation426_spill] sm:$0xff] %v13828_v46  ;;  %16987 = vst [vmem:[#allocation427_spill] sm:$0xff] %v13831_v55  ;;  %4980 = vadd.xlane.f32.xlu0 %v16988_v12  ;;  %v13847_v12 = vpop.permute.xlu1 %4428  ;;  %v13991_v46 = vld [vmem:[%s10226_s28 + $0x8] sm:$0xff] }
 0x703   : > { %5020 = vadd.xlane.f32.xlu1 %v16989_v22  ;;  %16997 = vst [vmem:[#allocation67_spill] sm:$0xff] %v13847_v12  ;;  %v17030_v12 = vld [vmem:[#allocation229_spill] sm:$0xff] }
 0x705   : > { %v4810_v61 = vpop.permute.xlu0 %4809 }
 0x706   : > { %v4902_v56 = vmul.f32 %v12994_v42, %v4810_v61  ;;  %4982 = vadd.xlane.f32.xlu0 %v16992_v43  ;;  %v17001_v61 = vld [vmem:[#allocation76_spill] sm:$0xff]  ;;  %v13857_v43 = vpop.permute.xlu1 %4797 }
 0x707   : > { %5024 = vadd.xlane.f32.xlu1 %v16994_v59  ;;  %17004 = vst [vmem:[#allocation199_spill] sm:$0xff] %v13857_v43  ;;  %v17016_v43 = vld [vmem:[#allocation73_spill] sm:$0xff] }
 0x708   : > { %v13841_v44 = vadd.f32 %v4902_v56, %v3669_v63  ;;  %v17003_v56 = vld [vmem:[#allocation42_spill] sm:$0xff] }
 0x709   : > { %v13844_v21 = vpop.permute.xlu0 %4434 }
 0x70a   : > { %16993 = vst [vmem:[#allocation105_spill] sm:$0xff] %v13841_v44  ;;  %16995 = vst [vmem:[#allocation55_spill] sm:$0xff] %v13844_v21  ;;  %4986 = vadd.xlane.f32.xlu0 %v16996_v51  ;;  %v17006_v51 = vld [vmem:[#allocation146_spill] sm:$0xff] }
 0x70b   : > { %5028 = vadd.xlane.f32.xlu1 %v12746_v24 }
 0x70d   : > { %v4818_v22 = vpop.permute.xlu0 %4817 }
 0x70e   : > { %v4904_v42 = vmul.f32 %v4818_v22, %v17000_v0  ;;  %4990 = vadd.xlane.f32.xlu0 %v17001_v61  ;;  %v17011_v22 = vld [vmem:[#allocation69_spill] sm:$0xff] }
 0x70f   : > { %5032 = vadd.xlane.f32.xlu1 %v17003_v56  ;;  %v17014_v61 = vld [vmem:[#allocation41_spill] sm:$0xff] }
 0x710   : > { %v13854_v63 = vadd.f32 %v4904_v42, %v3671_v3  ;;  %v13867_v3 = vpop.permute.xlu1 %4432 }
 0x711   : > { %v13859_v59 = vpop.permute.xlu0 %4438  ;;  %17012 = vst [vmem:[#allocation115_spill] sm:$0xff] %v13867_v3  ;;  %v17029_v3 = vld [vmem:[#allocation68_spill] sm:$0xff] }
 0x712   : > { %17002 = vst [vmem:[#allocation221_spill] sm:$0xff] %v13854_v63  ;;  %17005 = vst [vmem:[#allocation58_spill] sm:$0xff] %v13859_v59  ;;  %4994 = vadd.xlane.f32.xlu0 %v17006_v51  ;;  %v17017_v51 = vld [vmem:[#allocation159_spill] sm:$0xff] }
 0x713   : > { %5036 = vadd.xlane.f32.xlu1 %v17007_v58 }
 0x714   : > { %v13876_v58 = vpop.permute.xlu1 %4805 }
 0x715   : > { %v4826_v24 = vpop.permute.xlu0 %4825  ;;  %17018 = vst [vmem:[#allocation146_spill] sm:$0xff] %v13876_v58 }
 0x716   : > { %v4906_v0 = vmul.f32 %v17010_v16, %v4826_v24  ;;  %4998 = vadd.xlane.f32.xlu0 %v17011_v22  ;;  %v3675_v16 = vmul.f32 %v17020_v45, %v17019_v53  ;;  %v17021_v24 = vld [vmem:[#allocation273_spill] sm:$0xff]  ;;  %v3677_v45 = vmul.f32 %v17030_v12, %v17029_v3  ;;  %v17031_v53 = vld [vmem:[#allocation234_spill] sm:$0xff]  ;;  %v17041_v3 = vld [vmem:[#allocation219_spill] sm:$0xff] }
 0x717   : > { %5040 = vadd.xlane.f32.xlu1 %v17014_v61  ;;  %v17054_v12 = vld [vmem:[#allocation165_spill] sm:$0xff] }
 0x718   : > { %v13869_v42 = vadd.f32 %v4906_v0, %v3673_v36  ;;  %v17024_v0 = vld [vmem:[#allocation148_spill] sm:$0xff] }
 0x719   : > { %v13872_v56 = vpop.permute.xlu0 %4442 }
 0x71a   : > { %17013 = vst [vmem:[#allocation76_spill] sm:$0xff] %v13869_v42  ;;  %17015 = vst [vmem:[#allocation42_spill] sm:$0xff] %v13872_v56  ;;  %5002 = vadd.xlane.f32.xlu0 %v17016_v43  ;;  %v13888_v43 = vpop.permute.xlu1 %4436  ;;  %v13984_v42 = vld [vmem:[%s10226_s28 + $0x18] sm:$0xff] }
 0x71b   : > { %5044 = vadd.xlane.f32.xlu1 %v17017_v51  ;;  %17027 = vst [vmem:[#allocation75_spill] sm:$0xff] %v13888_v43  ;;  %v17028_v51 = vld [vmem:[#allocation175_spill] sm:$0xff]  ;;  %v17038_v43 = vld [vmem:[#allocation152_spill] sm:$0xff] }
 0x71d   : > { %v4834_v25 = vpop.permute.xlu0 %4833 }
 0x71e   : > { %v4908_v22 = vmul.f32 %v4834_v25, %v17021_v24  ;;  %5006 = vadd.xlane.f32.xlu0 %v17022_v1  ;;  %v17032_v24 = vld [vmem:[#allocation99_spill] sm:$0xff] }
 0x71f   : > { %5048 = vadd.xlane.f32.xlu1 %v17024_v0  ;;  %v17036_v0 = vld [vmem:[#allocation108_spill] sm:$0xff] }
 0x720   : > { %v13882_v36 = vadd.f32 %v4908_v22, %v3675_v16  ;;  %v17034_v16 = vld [vmem:[#allocation156_spill] sm:$0xff]  ;;  %v13898_v22 = vpop.permute.xlu1 %4813 }
 0x721   : > { %v13885_v61 = vpop.permute.xlu0 %4446  ;;  %17035 = vst [vmem:[#allocation41_spill] sm:$0xff] %v13898_v22 }
 0x722   : > { %17023 = vst [vmem:[#allocation170_spill] sm:$0xff] %v13882_v36  ;;  %17025 = vst [vmem:[#allocation62_spill] sm:$0xff] %v13885_v61  ;;  %5010 = vadd.xlane.f32.xlu0 %v17026_v39  ;;  %v17037_v39 = vld [vmem:[#allocation163_spill] sm:$0xff] }
 0x723   : > { %5052 = vadd.xlane.f32.xlu1 %v17028_v51 }
 0x724   : > { %v13903_v51 = vpop.permute.xlu1 %4440 }
 0x725   : > { %v4842_v58 = vpop.permute.xlu0 %4841  ;;  %17039 = vst [vmem:[#allocation73_spill] sm:$0xff] %v13903_v51  ;;  %v17077_v51 = vld [vmem:[#allocation103_spill] sm:$0xff] }
 0x726   : > { %v4910_v25 = vmul.f32 %v17031_v53, %v4842_v58  ;;  %5014 = vadd.xlane.f32.xlu0 %v17032_v24  ;;  %v17042_v58 = vld [vmem:[#allocation172_spill] sm:$0xff]  ;;  %v17046_v24 = vld [vmem:[#allocation133_spill] sm:$0xff] }
 0x727   : > { %5056 = vadd.xlane.f32.xlu1 %v17034_v16 }
 0x728   : > { %v13895_v1 = vadd.f32 %v4910_v25, %v3677_v45  ;;  %v13908_v53 = vpop.permute.xlu1 %4821  ;;  %v17044_v45 = vld [vmem:[#allocation118_spill] sm:$0xff] }
 0x729   : > { %17043 = vst [vmem:[#allocation159_spill] sm:$0xff] %v13908_v53  ;;  %v17045_v25 = vld [vmem:[#allocation158_spill] sm:$0xff]  ;;  %v17058_v53 = vld [vmem:[#allocation121_spill] sm:$0xff]  ;;  %v13940_v22 = vpop.permute.xlu0 %4450 }
 0x72a   : > { %17033 = vst [vmem:[#allocation69_spill] sm:$0xff] %v13895_v1  ;;  %5018 = vadd.xlane.f32.xlu0 %v17036_v0  ;;  %v17048_v0 = vld [vmem:[#allocation194_spill] sm:$0xff]  ;;  %17068 = vst [vmem:[#allocation68_spill] sm:$0xff] %v13940_v22  ;;  %v4271_v1 = vmul.f32 %v13693_v9, %v13699_v49  ;;  %v13996_v9 = vld [vmem:[%s10226_s28 + $0x28] sm:$0xff] }
 0x72b   : > { %5060 = vadd.xlane.f32.xlu1 %v17037_v39  ;;  %v17050_v39 = vld [vmem:[#allocation210_spill] sm:$0xff]  ;;  %v14027_v22 = vld [vmem:[%s10226_s28 + $0x40] sm:$0xff] }
 0x72c   : > { %v13913_v16 = vpop.permute.xlu1 %4444 }
 0x72d   : > { %17047 = vst [vmem:[#allocation65_spill] sm:$0xff] %v13913_v16 }
 0x72e   : > { %5022 = vadd.xlane.f32.xlu0 %v17038_v43  ;;  %v17049_v43 = vld [vmem:[#allocation134_spill] sm:$0xff] }
 0x72f   : > { %5064 = vadd.xlane.f32.xlu1 %v17040_v33 }
 0x730   : > { %v13918_v33 = vpop.permute.xlu1 %4829 }
 0x731   : > { %17051 = vst [vmem:[#allocation273_spill] sm:$0xff] %v13918_v33  ;;  %v17065_v33 = vld [vmem:[#allocation173_spill] sm:$0xff] }
 0x732   : > { %5026 = vadd.xlane.f32.xlu0 %v17041_v3  ;;  %v17052_v3 = vld [vmem:[#allocation144_spill] sm:$0xff] }
 0x733   : > { %5068 = vadd.xlane.f32.xlu1 %v17042_v58  ;;  %v17053_v58 = vld [vmem:[#allocation79_spill] sm:$0xff] }
 0x736   : > { %5030 = vadd.xlane.f32.xlu0 %v17044_v45  ;;  %v13923_v45 = vpop.permute.xlu1 %4448 }
 0x737   : > { %5072 = vadd.xlane.f32.xlu1 %v17045_v25  ;;  %17055 = vst [vmem:[#allocation215_spill] sm:$0xff] %v13923_v45  ;;  %v17056_v25 = vld [vmem:[#allocation90_spill] sm:$0xff]  ;;  %v17075_v45 = vld [vmem:[#allocation84_spill] sm:$0xff] }
 0x73a   : > { %5034 = vadd.xlane.f32.xlu0 %v17046_v24  ;;  %v17057_v24 = vld [vmem:[#allocation139_spill] sm:$0xff] }
 0x73b   : > { %5076 = vadd.xlane.f32.xlu1 %v17048_v0  ;;  %v13928_v0 = vpop.permute.xlu1 %4837 }
 0x73c   : > { %17059 = vst [vmem:[#allocation148_spill] sm:$0xff] %v13928_v0 }
 0x73e   : > { %5038 = vadd.xlane.f32.xlu0 %v17049_v43  ;;  %v17060_v43 = vld [vmem:[#allocation149_spill] sm:$0xff] }
 0x73f   : > { %5080 = vadd.xlane.f32.xlu1 %v17050_v39  ;;  %v17061_v39 = vld [vmem:[#allocation107_spill] sm:$0xff] }
 0x742   : > { %5042 = vadd.xlane.f32.xlu0 %v17052_v3  ;;  %v17062_v3 = vld [vmem:[#allocation167_spill] sm:$0xff] }
 0x743   : > { %5084 = vadd.xlane.f32.xlu1 %v17053_v58  ;;  %v13933_v58 = vpop.permute.xlu1 %4452 }
 0x744   : > { %17063 = vst [vmem:[#allocation80_spill] sm:$0xff] %v13933_v58 }
 0x746   : > { %5046 = vadd.xlane.f32.xlu0 %v17054_v12  ;;  %v17064_v12 = vld [vmem:[#allocation224_spill] sm:$0xff] }
 0x747   : > { %5088 = vadd.xlane.f32.xlu1 %v17056_v25  ;;  %v13937_v25 = vpop.permute.xlu1 %4845 }
 0x748   : > { %17066 = vst [vmem:[#allocation175_spill] sm:$0xff] %v13937_v25  ;;  %v17074_v25 = vld [vmem:[#allocation111_spill] sm:$0xff] }
 0x74a   : > { %5050 = vadd.xlane.f32.xlu0 %v17057_v24  ;;  %v17067_v24 = vld [vmem:[#allocation183_spill] sm:$0xff] }
 0x74b   : > { %5092 = vadd.xlane.f32.xlu1 %v17058_v53  ;;  %v17069_v53 = vld [vmem:[#allocation174_spill] sm:$0xff]  ;;  %v13943_v0 = vpop.permute.xlu1 %4456 }
 0x74c   : > { %17070 = vst [vmem:[#allocation234_spill] sm:$0xff] %v13943_v0 }
 0x74e   : > { %5054 = vadd.xlane.f32.xlu0 %v17060_v43 }
 0x74f   : > { %5096 = vadd.xlane.f32.xlu1 %v17061_v39  ;;  %v17071_v39 = vld [vmem:[#allocation185_spill] sm:$0xff] }
 0x752   : > { %5058 = vadd.xlane.f32.xlu0 %v17062_v3  ;;  %v13947_v3 = vld [vmem:[%s10226_s28] sm:$0xff] }
 0x753   : > { %5100 = vadd.xlane.f32.xlu1 %v17064_v12  ;;  %v13950_v12 = vpop.permute.xlu1 %4460 }
 0x754   : > { %17072 = vst [vmem:[#allocation99_spill] sm:$0xff] %v13950_v12  ;;  %v17078_v12 = vld [vmem:[#allocation116_spill] sm:$0xff] }
 0x756   : > { %5062 = vadd.xlane.f32.xlu0 %v17065_v33  ;;  %v4977_v43 = vpop.xlane.xlu0 %4976  ;;  %v17073_v33 = vld [vmem:[#allocation205_spill] sm:$0xff] }
 0x757   : > { %v5441_v58 = vmul.f32 %v13947_v3, %v4977_v43 }
 0x75a   : > { %5066 = vadd.xlane.f32.xlu0 %v17067_v24 }
 0x75e   : > { %5070 = vadd.xlane.f32.xlu0 %v17069_v53 }
 0x762   : > { %5074 = vadd.xlane.f32.xlu0 %v17071_v39  ;;  %v17076_v39 = vld [vmem:[#allocation230_spill] sm:$0xff] }
 0x764   : > { %5569 = vrot.lane.b32.xlu1 %v5441_v58, %s9865_s10 }
 0x766   : > { %5078 = vadd.xlane.f32.xlu0 %v17073_v33  ;;  %v17079_v33 = vld [vmem:[#allocation122_spill] sm:$0xff] }
 0x768   : > { %v4979_v24 = vpop.xlane.xlu1 %4978 }
 0x76a   : > { %5082 = vadd.xlane.f32.xlu0 %v17074_v25  ;;  %v13964_v25 = vpop.permute.xlu0 %4454 }
 0x76b   : > { %17080 = vst [vmem:[#allocation156_spill] sm:$0xff] %v13964_v25  ;;  %v14015_v25 = vld [vmem:[%s10226_s28 + $0x30] sm:$0xff] }
 0x76c   : > { %v4985_v53 = vpop.xlane.xlu1 %4984 }
 0x76e   : > { %5086 = vadd.xlane.f32.xlu0 %v17075_v45 }
 0x770   : > { %v4989_v0 = vpop.xlane.xlu1 %4988 }
 0x772   : > { %5090 = vadd.xlane.f32.xlu0 %v17076_v39  ;;  %v13970_v39 = vpop.permute.xlu0 %4458 }
 0x773   : > { %17081 = vst [vmem:[#allocation108_spill] sm:$0xff] %v13970_v39 }
 0x774   : > { %v4993_v16 = vpop.xlane.xlu1 %4992 }
 0x776   : > { %5094 = vadd.xlane.f32.xlu0 %v17077_v51 }
 0x778   : > { %v4997_v43 = vpop.xlane.xlu1 %4996 }
 0x77a   : > { %5098 = vadd.xlane.f32.xlu0 %v17078_v12 }
 0x77c   : > { %v13959_v58 = vpop.xlane.xlu1 %5000 }
 0x77e   : > { %5102 = vadd.xlane.f32.xlu0 %v17079_v33 }
 0x780   : > { %v13962_v29 = vpop.xlane.xlu1 %5004 }
 0x784   : > { %v13966_v45 = vpop.xlane.xlu1 %5008 }
 0x788   : > { %v13968_v35 = vpop.xlane.xlu1 %5012 }
 0x78c   : > { %v13972_v51 = vpop.xlane.xlu1 %5016 }
 0x78f   : > { %v4981_v12 = vpop.xlane.xlu0 %4980 }
 0x790   : > { %v5443_v15 = vmul.f32 %v13975_v37, %v4981_v12  ;;  %v13978_v33 = vpop.xlane.xlu1 %5020  ;;  %v5442_v12 = vmul.f32 %v13991_v46, %v4979_v24 }
 0x792   : > { %5573 = vrot.lane.b32.xlu1 %v5443_v15, %s9865_s10 }
 0x793   : > { %v4983_v36 = vpop.xlane.xlu0 %4982 }
 0x794   : > { %v5444_v63 = vmul.f32 %v13984_v42, %v4983_v36  ;;  %4462 = vrot.lane.b32.xlu0 %v4271_v1, %s9864_s26  ;;  %v13988_v44 = vpop.xlane.xlu1 %5024  ;;  %v14003_v36 = vld [vmem:[%s10226_s28 + $0x20] sm:$0xff] }
 0x795   : > { %v5445_v1 = vmul.f32 %v14003_v36, %v4985_v53  ;;  %v5447_v53 = vmul.f32 %v14015_v25, %v4989_v0 }
 0x796   : > { %5575 = vrot.lane.b32.xlu1 %v5444_v63, %s9865_s10  ;;  %v14008_v63 = vld [vmem:[%s10226_s28 + $0x38] sm:$0xff] }
 0x797   : > { %v4987_v60 = vpop.xlane.xlu0 %4986 }
 0x798   : > { %v5446_v15 = vmul.f32 %v13996_v9, %v4987_v60  ;;  %5571 = vrot.lane.b32.xlu0 %v5442_v12, %s9865_s10  ;;  %v14000_v39 = vpop.xlane.xlu1 %5028  ;;  %v9866_v12 = vmov 2  }
 0x799   : > { %8737 = vset.pattern.permute.xlu1 %v9866_v12  ;;  %8736 = vset.pattern.permute.xlu0 %v9866_v12  ;;  %v5449_v12 = vmul.f32 %v14027_v22, %v4993_v16 }
 0x79a   : > { %5579 = vrot.lane.b32.xlu1 %v5446_v15, %s9865_s10 }
 0x79b   : > { %v4991_v24 = vpop.xlane.xlu0 %4990 }
 0x79c   : > { %v5448_v41 = vmul.f32 %v14008_v63, %v4991_v24  ;;  %5577 = vrot.lane.b32.xlu0 %v5445_v1, %s9865_s10  ;;  %v14012_v60 = vpop.xlane.xlu1 %5032 }
 0x79e   : > { %5583 = vrot.lane.b32.xlu1 %v5448_v41, %s9865_s10 }
 0x79f   : > { %v4995_v15 = vpop.xlane.xlu0 %4994 }
 0x7a0   : > { %v5450_v24 = vmul.f32 %v14020_v34, %v4995_v15  ;;  %5581 = vrot.lane.b32.xlu0 %v5447_v53, %s9865_s10  ;;  %v14024_v1 = vpop.xlane.xlu1 %5036  ;;  %v14039_v53 = vld [vmem:[%s10226_s28 + $0x50] sm:$0xff] }
 0x7a1   : > { %v5451_v61 = vmul.f32 %v14039_v53, %v4997_v43 }
 0x7a2   : > { %5587 = vrot.lane.b32.xlu1 %v5450_v24, %s9865_s10 }
 0x7a3   : > { %v4999_v0 = vpop.xlane.xlu0 %4998 }
 0x7a4   : > { %v5452_v41 = vmul.f32 %v14032_v11, %v4999_v0  ;;  %5585 = vrot.lane.b32.xlu0 %v5449_v12, %s9865_s10  ;;  %v14036_v15 = vpop.xlane.xlu1 %5040  ;;  %v14051_v12 = vld [vmem:[%s10226_s28 + $0x60] sm:$0xff] }
 0x7a5   : > { %v5453_v56 = vmul.f32 %v14051_v12, %v13959_v58 }
 0x7a6   : > { %5591 = vrot.lane.b32.xlu1 %v5452_v41, %s9865_s10  ;;  %v14057_v41 = vld [vmem:[%s10226_s28 + $0x78] sm:$0xff] }
 0x7a7   : > { %v5003_v16 = vpop.xlane.xlu0 %5002 }
 0x7a8   : > { %v5454_v24 = vmul.f32 %v14044_v40, %v5003_v16  ;;  %5589 = vrot.lane.b32.xlu0 %v5451_v61, %s9865_s10  ;;  %v14048_v0 = vpop.xlane.xlu1 %5044  ;;  %v14064_v61 = vld [vmem:[%s10226_s28 + $0x70] sm:$0xff] }
 0x7a9   : > { %v5455_v59 = vmul.f32 %v14064_v61, %v13962_v29 }
 0x7aa   : > { %5595 = vrot.lane.b32.xlu1 %v5454_v24, %s9865_s10  ;;  %v14070_v24 = vld [vmem:[%s10226_s28 + $0x88] sm:$0xff] }
 0x7ab   : > { %v5007_v43 = vpop.xlane.xlu0 %5006 }
 0x7ac   : > { %v5456_v18 = vmul.f32 %v14057_v41, %v5007_v43  ;;  %5593 = vrot.lane.b32.xlu0 %v5453_v56, %s9865_s10  ;;  %v14061_v16 = vpop.xlane.xlu1 %5048  ;;  %v14075_v43 = vld [vmem:[%s10226_s28 + $0x80] sm:$0xff] }
 0x7ad   : > { %v5457_v56 = vmul.f32 %v14075_v43, %v13966_v45 }
 0x7ae   : > { %5599 = vrot.lane.b32.xlu1 %v5456_v18, %s9865_s10 }
 0x7af   : > { %v5011_v58 = vpop.xlane.xlu0 %5010 }
 0x7b0   : > { %v5458_v30 = vmul.f32 %v14070_v24, %v5011_v58  ;;  %5597 = vrot.lane.b32.xlu0 %v5455_v59, %s9865_s10  ;;  %v14079_v21 = vpop.xlane.xlu1 %5052  ;;  %v14088_v58 = vld [vmem:[%s10226_s28 + $0x90] sm:$0xff] }
 0x7b1   : > { %v5459_v59 = vmul.f32 %v14088_v58, %v13968_v35  ;;  %v14104_v35 = vld [vmem:[%s10226_s28 + $0xb0] sm:$0xff] }
 0x7b2   : > { %5603 = vrot.lane.b32.xlu1 %v5458_v30, %s9865_s10  ;;  %v14096_v30 = vld [vmem:[%s10226_s28 + $0xa0] sm:$0xff] }
 0x7b3   : > { %v5015_v29 = vpop.xlane.xlu0 %5014 }
 0x7b4   : > { %v5460_v18 = vmul.f32 %v14083_v62, %v5015_v29  ;;  %5601 = vrot.lane.b32.xlu0 %v5457_v56, %s9865_s10  ;;  %v5057_v55 = vpop.xlane.xlu1 %5056  ;;  %v5461_v29 = vmul.f32 %v14096_v30, %v13972_v51 }
 0x7b6   : > { %5607 = vrot.lane.b32.xlu1 %v5460_v18, %s9865_s10  ;;  %v5463_v18 = vmul.f32 %v14104_v35, %v13978_v33  ;;  %v17087_v33 = vld [vmem:[#allocation342_spill] sm:$0xff] }
 0x7b7   : > { %v5019_v45 = vpop.xlane.xlu0 %5018  ;;  %v5467_v2 = vmul.f32 %v17087_v33, %v14000_v39  ;;  %v17090_v39 = vld [vmem:[#allocation361_spill] sm:$0xff] }
 0x7b8   : > { %v5462_v20 = vmul.f32 %v17082_v13, %v5019_v45  ;;  %5605 = vrot.lane.b32.xlu0 %v5459_v59, %s9865_s10  ;;  %v5061_v13 = vpop.xlane.xlu1 %5060  ;;  %v17084_v45 = vld [vmem:[#allocation339_spill] sm:$0xff] }
 0x7ba   : > { %5611 = vrot.lane.b32.xlu1 %v5462_v20, %s9865_s10  ;;  %v17085_v20 = vld [vmem:[#allocation265_spill] sm:$0xff] }
 0x7bb   : > { %v5023_v56 = vpop.xlane.xlu0 %5022  ;;  %v5465_v51 = vmul.f32 %v17085_v20, %v13988_v44  ;;  %v17089_v44 = vld [vmem:[#allocation355_spill] sm:$0xff] }
 0x7bc   : > { %v5464_v10 = vmul.f32 %v17083_v14, %v5023_v56  ;;  %5609 = vrot.lane.b32.xlu0 %v5461_v29, %s9865_s10  ;;  %v5065_v29 = vpop.xlane.xlu1 %5064  ;;  %v17086_v56 = vld [vmem:[#allocation354_spill] sm:$0xff] }
 0x7be   : > { %5615 = vrot.lane.b32.xlu1 %v5464_v10, %s9865_s10 }
 0x7bf   : > { %v5027_v59 = vpop.xlane.xlu0 %5026 }
 0x7c0   : > { %v5466_v32 = vmul.f32 %v17084_v45, %v5027_v59  ;;  %5613 = vrot.lane.b32.xlu0 %v5463_v18, %s9865_s10  ;;  %v17088_v59 = vld [vmem:[#allocation359_spill] sm:$0xff]  ;;  %v5469_v18 = vmul.f32 %v17089_v44, %v14012_v60  ;;  %v17091_v60 = vld [vmem:[#allocation352_spill] sm:$0xff] }
 0x7c1   : > { %v5473_v33 = vmul.f32 %v17091_v60, %v14036_v15  ;;  %v17093_v15 = vld [vmem:[#allocation362_spill] sm:$0xff] }
 0x7c2   : > { %5619 = vrot.lane.b32.xlu1 %v5466_v32, %s9865_s10  ;;  %v5069_v32 = vpop.xlane.xlu1 %5068 }
 0x7c3   : > { %v5031_v14 = vpop.xlane.xlu0 %5030 }
 0x7c4   : > { %v5468_v26 = vmul.f32 %v17086_v56, %v5031_v14  ;;  %5617 = vrot.lane.b32.xlu0 %v5465_v51, %s9865_s10  ;;  %v5471_v51 = vmul.f32 %v17090_v39, %v14024_v1  ;;  %v17092_v1 = vld [vmem:[#allocation358_spill] sm:$0xff] }
 0x7c6   : > { %5623 = vrot.lane.b32.xlu1 %v5468_v26, %s9865_s10  ;;  %v5073_v56 = vpop.xlane.xlu1 %5072 }
 0x7c7   : > { %v5035_v10 = vpop.xlane.xlu0 %5034 }
 0x7c8   : > { %v5470_v45 = vmul.f32 %v17088_v59, %v5035_v10  ;;  %5621 = vrot.lane.b32.xlu0 %v5467_v2, %s9865_s10  ;;  %v5475_v59 = vmul.f32 %v17092_v1, %v14048_v0  ;;  %v17094_v0 = vld [vmem:[#allocation366_spill] sm:$0xff] }
 0x7c9   : > { %v5479_v39 = vmul.f32 %v17094_v0, %v14079_v21  ;;  %v17097_v1 = vld [vmem:[#allocation374_spill] sm:$0xff]  ;;  %v17100_v0 = vld [vmem:[#allocation384_spill] sm:$0xff] }
 0x7ca   : > { %5627 = vrot.lane.b32.xlu1 %v5470_v45, %s9865_s10  ;;  %v5077_v45 = vpop.xlane.xlu1 %5076 }
 0x7cb   : > { %v5039_v20 = vpop.xlane.xlu0 %5038 }
 0x7cc   : > { %v5472_v14 = vmul.f32 %v5039_v20, %v13381_v7  ;;  %5625 = vrot.lane.b32.xlu0 %v5469_v18, %s9865_s10  ;;  %v5477_v18 = vmul.f32 %v17093_v15, %v14061_v16 }
 0x7ce   : > { %5631 = vrot.lane.b32.xlu1 %v5472_v14, %s9865_s10 }
 0x7cf   : > { %v5043_v26 = vpop.xlane.xlu0 %5042 }
 0x7d0   : > { %v5474_v2 = vmul.f32 %v5043_v26, %v13407_v54  ;;  %5629 = vrot.lane.b32.xlu0 %v5471_v51, %s9865_s10  ;;  %v17095_v26 = vld [vmem:[#allocation368_spill] sm:$0xff] }
 0x7d1   : > { %v5481_v16 = vmul.f32 %v17095_v26, %v5057_v55  ;;  %v5485_v55 = vmul.f32 %v17097_v1, %v5065_v29 }
 0x7d2   : > { %5635 = vrot.lane.b32.xlu1 %v5474_v2, %s9865_s10 }
 0x7d3   : > { %v5047_v10 = vpop.xlane.xlu0 %5046 }
 0x7d4   : > { %v5476_v7 = vmul.f32 %v5047_v10, %v13433_v50  ;;  %5633 = vrot.lane.b32.xlu0 %v5473_v33, %s9865_s10  ;;  %v5081_v50 = vpop.xlane.xlu1 %5080  ;;  %v17096_v33 = vld [vmem:[#allocation372_spill] sm:$0xff] }
 0x7d5   : > { %v5483_v10 = vmul.f32 %v17096_v33, %v5061_v13 }
 0x7d6   : > { %5639 = vrot.lane.b32.xlu1 %v5476_v7, %s9865_s10 }
 0x7d7   : > { %v5051_v44 = vpop.xlane.xlu0 %5050 }
 0x7d8   : > { %v5478_v54 = vmul.f32 %v5051_v44, %v13453_v31  ;;  %5637 = vrot.lane.b32.xlu0 %v5475_v59, %s9865_s10  ;;  %v5085_v2 = vpop.xlane.xlu1 %5084 }
 0x7da   : > { %5643 = vrot.lane.b32.xlu1 %v5478_v54, %s9865_s10 }
 0x7db   : > { %v5055_v20 = vpop.xlane.xlu0 %5054 }
 0x7dc   : > { %v5480_v14 = vmul.f32 %v5055_v20, %v13473_v47  ;;  %5641 = vrot.lane.b32.xlu0 %v5477_v18, %s9865_s10  ;;  %v5089_v7 = vpop.xlane.xlu1 %5088 }
 0x7de   : > { %5647 = vrot.lane.b32.xlu1 %v5480_v14, %s9865_s10 }
 0x7df   : > { %v5059_v51 = vpop.xlane.xlu0 %5058 }
 0x7e0   : > { %v5482_v31 = vmul.f32 %v5059_v51, %v13493_v28  ;;  %5645 = vrot.lane.b32.xlu0 %v5479_v39, %s9865_s10  ;;  %v5093_v13 = vpop.xlane.xlu1 %5092  ;;  %v17101_v51 = vld [vmem:[#allocation391_spill] sm:$0xff] }
 0x7e2   : > { %5651 = vrot.lane.b32.xlu1 %v5482_v31, %s9865_s10 }
 0x7e3   : > { %v5063_v60 = vpop.xlane.xlu0 %5062 }
 0x7e4   : > { %v5484_v47 = vmul.f32 %v5063_v60, %v13513_v19  ;;  %5649 = vrot.lane.b32.xlu0 %v5481_v16, %s9865_s10  ;;  %v17098_v19 = vld [vmem:[#allocation378_spill] sm:$0xff]  ;;  %v5097_v14 = vpop.xlane.xlu1 %5096 }
 0x7e5   : > { %v5487_v54 = vmul.f32 %v17098_v19, %v5069_v32  ;;  %v5491_v32 = vmul.f32 %v17100_v0, %v5077_v45  ;;  %v17103_v60 = vld [vmem:[#allocation394_spill] sm:$0xff] }
 0x7e6   : > { %5655 = vrot.lane.b32.xlu1 %v5484_v47, %s9865_s10 }
 0x7e7   : > { %v5067_v21 = vpop.xlane.xlu0 %5066 }
 0x7e8   : > { %v5486_v28 = vmul.f32 %v5067_v21, %v13533_v52  ;;  %5653 = vrot.lane.b32.xlu0 %v5483_v10, %s9865_s10  ;;  %v17099_v52 = vld [vmem:[#allocation380_spill] sm:$0xff]  ;;  %v17105_v21 = vld [vmem:[#allocation399_spill] sm:$0xff] }
 0x7e9   : > { %v5489_v20 = vmul.f32 %v17099_v52, %v5073_v56  ;;  %v5101_v56 = vpop.xlane.xlu1 %5100 }
 0x7ea   : > { %5659 = vrot.lane.b32.xlu1 %v5486_v28, %s9865_s10 }
 0x7eb   : > { %v5071_v59 = vpop.xlane.xlu0 %5070 }
 0x7ec   : > { %v5488_v44 = vmul.f32 %v5071_v59, %v13553_v8  ;;  %5657 = vrot.lane.b32.xlu0 %v5485_v55, %s9865_s10 }
 0x7ed   : > { %v14181_v10 = vpop.permute.xlu1 %5569 }
 0x7ee   : > { %5663 = vrot.lane.b32.xlu1 %v5488_v44, %s9865_s10 }
 0x7ef   : > { %v5075_v15 = vpop.xlane.xlu0 %5074 }
 0x7f0   : > { %v5490_v18 = vmul.f32 %v5075_v15, %v13573_v4  ;;  %5661 = vrot.lane.b32.xlu0 %v5487_v54, %s9865_s10  ;;  %v17102_v4 = vld [vmem:[#allocation386_spill] sm:$0xff] }
 0x7f1   : > { %v5493_v26 = vmul.f32 %v17102_v4, %v5081_v50  ;;  %v17106_v50 = vld [vmem:[#allocation393_spill] sm:$0xff] }
 0x7f2   : > { %5667 = vrot.lane.b32.xlu1 %v5490_v18, %s9865_s10  ;;  %v5497_v1 = vmul.f32 %v17106_v50, %v5089_v7  ;;  %v5501_v7 = vmul.f32 %v13661_v57, %v5097_v14  ;;  %v14301_v50 = vld [vmem:[%s10226_s28 + $0xd8] sm:$0xff] }
 0x7f3   : > { %v5079_v29 = vpop.xlane.xlu0 %5078 }
 0x7f4   : > { %v5492_v8 = vmul.f32 %v5079_v29, %v13589_v38  ;;  %5665 = vrot.lane.b32.xlu0 %v5489_v20, %s9865_s10  ;;  %v17104_v38 = vld [vmem:[#allocation390_spill] sm:$0xff] }
 0x7f5   : > { %v5495_v33 = vmul.f32 %v17104_v38, %v5085_v2  ;;  %v17107_v2 = vld [vmem:[#allocation398_spill] sm:$0xff]  ;;  %v9531_v38 = vld [vmem:[%s10226_s28 + $0xc0] sm:$0xff] }
 0x7f6   : > { %5671 = vrot.lane.b32.xlu1 %v5492_v8, %s9865_s10  ;;  %v5499_v19 = vmul.f32 %v17107_v2, %v5093_v13  ;;  %v5503_v13 = vmul.f32 %v13680_v23, %v5101_v56  ;;  %v14310_v2 = vld [vmem:[%s10226_s28 + $0xe8] sm:$0xff] }
 0x7f7   : > { %v5083_v39 = vpop.xlane.xlu0 %5082 }
 0x7f8   : > { %v5494_v31 = vmul.f32 %v5083_v39, %v17101_v51  ;;  %5669 = vrot.lane.b32.xlu0 %v5491_v32, %s9865_s10 }
 0x7fa   : > { %5675 = vrot.lane.b32.xlu1 %v5494_v31, %s9865_s10 }
 0x7fb   : > { %v5087_v16 = vpop.xlane.xlu0 %5086 }
 0x7fc   : > { %v5496_v47 = vmul.f32 %v5087_v16, %v17103_v60  ;;  %5673 = vrot.lane.b32.xlu0 %v5493_v26, %s9865_s10  ;;  %v14274_v16 = vld [vmem:[%s10226_s28 + $0xa8] sm:$0xff] }
 0x7fe   : > { %5679 = vrot.lane.b32.xlu1 %v5496_v47, %s9865_s10  ;;  %v14283_v47 = vld [vmem:[%s10226_s28 + $0xb8] sm:$0xff] }
 0x7ff   : > { %v5091_v45 = vpop.xlane.xlu0 %5090 }
 0x800   : > { %v5498_v28 = vmul.f32 %v5091_v45, %v17105_v21  ;;  %5677 = vrot.lane.b32.xlu0 %v5495_v33, %s9865_s10  ;;  %v14292_v45 = vld [vmem:[%s10226_s28 + $0xc8] sm:$0xff]  ;;  %v9533_v21 = vld [vmem:[%s10226_s28 + $0xd0] sm:$0xff] }
 0x802   : > { %5683 = vrot.lane.b32.xlu1 %v5498_v28, %s9865_s10 }
 0x803   : > { %v5095_v55 = vpop.xlane.xlu0 %5094 }
 0x804   : > { %v5500_v59 = vmul.f32 %v5095_v55, %v13665_v5  ;;  %5681 = vrot.lane.b32.xlu0 %v5497_v1, %s9865_s10  ;;  %v14189_v44 = vpop.permute.xlu1 %5573  ;;  %v9535_v55 = vld [vmem:[%s10226_s28 + $0xe0] sm:$0xff] }
 0x806   : > { %5687 = vrot.lane.b32.xlu1 %v5500_v59, %s9865_s10 }
 0x807   : > { %v5099_v54 = vpop.xlane.xlu0 %5098 }
 0x808   : > { %v5502_v15 = vmul.f32 %v5099_v54, %v13684_v6  ;;  %5685 = vrot.lane.b32.xlu0 %v5499_v19, %s9865_s10  ;;  %v14195_v18 = vpop.permute.xlu1 %5575  ;;  %v9537_v54 = vld [vmem:[%s10226_s28 + $0xf0] sm:$0xff] }
 0x80a   : > { %5691 = vrot.lane.b32.xlu1 %v5502_v15, %s9865_s10 }
 0x80b   : > { %v5103_v5 = vpop.xlane.xlu0 %5102 }
 0x80c   : > { %v5504_v52 = vmul.f32 %v5103_v5, %v13699_v49  ;;  %5689 = vrot.lane.b32.xlu0 %v5501_v7, %s9865_s10  ;;  %v14201_v20 = vpop.permute.xlu1 %5579  ;;  %v14319_v7 = vld [vmem:[%s10226_s28 + $0xf8] sm:$0xff] }
 0x80e   : > { %5695 = vrot.lane.b32.xlu1 %v5504_v52, %s9865_s10  ;;  %v9539_v52 = vld [vmem:[%s10226_s28 + $0x100] sm:$0xff] }
 0x80f   : > { %v14205_v6 = vpop.permute.xlu0 %4462 }
 0x810   : > { %17108 = vst [vmem:[#allocation163_spill] sm:$0xff] %v14205_v6  ;;  %5693 = vrot.lane.b32.xlu0 %v5503_v13, %s9865_s10  ;;  %v14208_v29 = vpop.permute.xlu1 %5583 }
 0x812   : > { %5830 = vperm.xlu1 %8737, %v13991_v46  }
 0x813   : > { %v14211_v57 = vpop.permute.xlu0 %5571 }
 0x814   : > { %17109 = vst [vmem:[#allocation152_spill] sm:$0xff] %v14211_v57  ;;  %5826 = vperm.xlu0 %8736, %v13947_v3   ;;  %v14214_v49 = vpop.permute.xlu1 %5587 }
 0x816   : > { %5834 = vperm.xlu1 %8737, %v13975_v37  }
 0x817   : > { %v14217_v14 = vpop.permute.xlu0 %5577 }
 0x818   : > { %17110 = vst [vmem:[#allocation162_spill] sm:$0xff] %v14217_v14  ;;  %5838 = vperm.xlu0 %8736, %v13984_v42   ;;  %v14220_v23 = vpop.permute.xlu1 %5591  ;;  %v17141_v14 = vld [vmem:[#allocation164_spill] sm:$0xff] }
 0x819   : > { %v3167_v57 = vmul.f32 %v13947_v3, %v17141_v14  ;;  %v14422_v14 = vld [vmem:[%s10226_s28 + $0x1a8] sm:$0xff] }
 0x81a   : > { %5842 = vperm.xlu1 %8737, %v14003_v36  }
 0x81b   : > { %v14223_v8 = vpop.permute.xlu0 %5581 }
 0x81c   : > { %17111 = vst [vmem:[#allocation219_spill] sm:$0xff] %v14223_v8  ;;  %5846 = vperm.xlu0 %8736, %v13996_v9   ;;  %v14226_v46 = vpop.permute.xlu1 %5595 }
 0x81e   : > { %5850 = vperm.xlu1 %8737, %v14015_v25  }
 0x81f   : > { %v14229_v0 = vpop.permute.xlu0 %5585 }
 0x820   : > { %17112 = vst [vmem:[#allocation172_spill] sm:$0xff] %v14229_v0  ;;  %5854 = vperm.xlu0 %8736, %v14008_v63   ;;  %v14232_v32 = vpop.permute.xlu1 %5599  ;;  %v14391_v0 = vld [vmem:[%s10226_s28 + $0x178] sm:$0xff] }
 0x822   : > { %5858 = vperm.xlu1 %8737, %v14027_v22  }
 0x823   : > { %v14235_v39 = vpop.permute.xlu0 %5589 }
 0x824   : > { %17113 = vst [vmem:[#allocation118_spill] sm:$0xff] %v14235_v39  ;;  %5862 = vperm.xlu0 %8736, %v14020_v34   ;;  %v14238_v36 = vpop.permute.xlu1 %5603 }
 0x826   : > { %5866 = vperm.xlu1 %8737, %v14039_v53  }
 0x827   : > { %v14241_v51 = vpop.permute.xlu0 %5593 }
 0x828   : > { %17114 = vst [vmem:[#allocation158_spill] sm:$0xff] %v14241_v51  ;;  %5870 = vperm.xlu0 %8736, %v14032_v11   ;;  %v14244_v25 = vpop.permute.xlu1 %5607  ;;  %v14382_v51 = vld [vmem:[%s10226_s28 + $0x168] sm:$0xff] }
 0x82a   : > { %5874 = vperm.xlu1 %8737, %v14051_v12  }
 0x82b   : > { %v14247_v31 = vpop.permute.xlu0 %5597 }
 0x82c   : > { %17115 = vst [vmem:[#allocation133_spill] sm:$0xff] %v14247_v31  ;;  %5878 = vperm.xlu0 %8736, %v14044_v40   ;;  %v14250_v22 = vpop.permute.xlu1 %5611 }
 0x82e   : > { %5882 = vperm.xlu1 %8737, %v14064_v61  }
 0x82f   : > { %v14253_v4 = vpop.permute.xlu0 %5601 }
 0x830   : > { %17116 = vst [vmem:[#allocation194_spill] sm:$0xff] %v14253_v4  ;;  %5886 = vperm.xlu0 %8736, %v14057_v41   ;;  %v14256_v53 = vpop.permute.xlu1 %5615  ;;  %v14373_v4 = vld [vmem:[%s10226_s28 + $0x158] sm:$0xff] }
 0x832   : > { %5890 = vperm.xlu1 %8737, %v14075_v43  }
 0x833   : > { %v14259_v26 = vpop.permute.xlu0 %5605 }
 0x834   : > { %17117 = vst [vmem:[#allocation134_spill] sm:$0xff] %v14259_v26  ;;  %5894 = vperm.xlu0 %8736, %v14070_v24   ;;  %v14262_v12 = vpop.permute.xlu1 %5619 }
 0x836   : > { %5898 = vperm.xlu1 %8737, %v14088_v58  }
 0x837   : > { %v14265_v56 = vpop.permute.xlu0 %5609 }
 0x838   : > { %17118 = vst [vmem:[#allocation210_spill] sm:$0xff] %v14265_v56  ;;  %5902 = vperm.xlu0 %8736, %v14083_v62   ;;  %v14268_v61 = vpop.permute.xlu1 %5623  ;;  %v14364_v56 = vld [vmem:[%s10226_s28 + $0x148] sm:$0xff] }
 0x83a   : > { %5906 = vperm.xlu1 %8737, %v14096_v30  }
 0x83b   : > { %v14271_v43 = vpop.permute.xlu0 %5613 }
 0x83c   : > { %17119 = vst [vmem:[#allocation144_spill] sm:$0xff] %v14271_v43  ;;  %5910 = vperm.xlu0 %8736, %v14274_v16   ;;  %v14277_v60 = vpop.permute.xlu1 %5627 }
 0x83e   : > { %5914 = vperm.xlu1 %8737, %v14104_v35  }
 0x83f   : > { %v14280_v58 = vpop.permute.xlu0 %5617 }
 0x840   : > { %17120 = vst [vmem:[#allocation79_spill] sm:$0xff] %v14280_v58  ;;  %5918 = vperm.xlu0 %8736, %v14283_v47   ;;  %v14286_v30 = vpop.permute.xlu1 %5631  ;;  %v14355_v58 = vld [vmem:[%s10226_s28 + $0x138] sm:$0xff] }
 0x842   : > { %5922 = vperm.xlu1 %8737, %v9531_v38   ;;  %v14328_v38 = vld [vmem:[%s10226_s28 + $0x108] sm:$0xff] }
 0x843   : > { %v14289_v33 = vpop.permute.xlu0 %5621 }
 0x844   : > { %17121 = vst [vmem:[#allocation165_spill] sm:$0xff] %v14289_v33  ;;  %5926 = vperm.xlu0 %8736, %v14292_v45   ;;  %v14295_v35 = vpop.permute.xlu1 %5635 }
 0x846   : > { %5930 = vperm.xlu1 %8737, %v9533_v21  }
 0x847   : > { %v14298_v28 = vpop.permute.xlu0 %5625 }
 0x848   : > { %17122 = vst [vmem:[#allocation90_spill] sm:$0xff] %v14298_v28  ;;  %5934 = vperm.xlu0 %8736, %v14301_v50   ;;  %v14304_v1 = vpop.permute.xlu1 %5639  ;;  %v14346_v28 = vld [vmem:[%s10226_s28 + $0x128] sm:$0xff] }
 0x84a   : > { %5938 = vperm.xlu1 %8737, %v9535_v55   ;;  %v9541_v55 = vld [vmem:[%s10226_s28 + $0x110] sm:$0xff] }
 0x84b   : > { %v14307_v59 = vpop.permute.xlu0 %5629 }
 0x84c   : > { %17123 = vst [vmem:[#allocation139_spill] sm:$0xff] %v14307_v59  ;;  %5942 = vperm.xlu0 %8736, %v14310_v2   ;;  %v14313_v19 = vpop.permute.xlu1 %5643 }
 0x84e   : > { %5946 = vperm.xlu1 %8737, %v9537_v54  }
 0x84f   : > { %v14316_v15 = vpop.permute.xlu0 %5633 }
 0x850   : > { %17124 = vst [vmem:[#allocation121_spill] sm:$0xff] %v14316_v15  ;;  %5950 = vperm.xlu0 %8736, %v14319_v7   ;;  %v14322_v5 = vpop.permute.xlu1 %5647  ;;  %v14337_v15 = vld [vmem:[%s10226_s28 + $0x118] sm:$0xff] }
 0x852   : > { %5954 = vperm.xlu1 %8737, %v9539_v52  }
 0x853   : > { %v14325_v13 = vpop.permute.xlu0 %5637 }
 0x854   : > { %17125 = vst [vmem:[#allocation149_spill] sm:$0xff] %v14325_v13  ;;  %5958 = vperm.xlu0 %8736, %v14328_v38   ;;  %v14331_v21 = vpop.permute.xlu1 %5651  ;;  %v9543_v13 = vld [vmem:[%s10226_s28 + $0x120] sm:$0xff] }
 0x856   : > { %5962 = vperm.xlu1 %8737, %v9541_v55  }
 0x857   : > { %v14334_v54 = vpop.permute.xlu0 %5641 }
 0x858   : > { %17126 = vst [vmem:[#allocation107_spill] sm:$0xff] %v14334_v54  ;;  %5966 = vperm.xlu0 %8736, %v14337_v15   ;;  %v14340_v52 = vpop.permute.xlu1 %5655  ;;  %v9545_v54 = vld [vmem:[%s10226_s28 + $0x130] sm:$0xff] }
 0x85a   : > { %5970 = vperm.xlu1 %8737, %v9543_v13  }
 0x85b   : > { %v14343_v59 = vpop.permute.xlu0 %5645 }
 0x85c   : > { %17127 = vst [vmem:[#allocation167_spill] sm:$0xff] %v14343_v59  ;;  %5974 = vperm.xlu0 %8736, %v14346_v28   ;;  %v14349_v55 = vpop.permute.xlu1 %5659  ;;  %v9547_v59 = vld [vmem:[%s10226_s28 + $0x140] sm:$0xff] }
 0x85e   : > { %5978 = vperm.xlu1 %8737, %v9545_v54  }
 0x85f   : > { %v14352_v33 = vpop.permute.xlu0 %5649 }
 0x860   : > { %17128 = vst [vmem:[#allocation224_spill] sm:$0xff] %v14352_v33  ;;  %5982 = vperm.xlu0 %8736, %v14355_v58   ;;  %v14358_v13 = vpop.permute.xlu1 %5663  ;;  %v9549_v33 = vld [vmem:[%s10226_s28 + $0x150] sm:$0xff] }
 0x861   : > { %17129 = vst [vmem:[#allocation173_spill] sm:$0xff] %v14358_v13  ;;  %v17146_v13 = vld [vmem:[#allocation179_spill] sm:$0xff] }
 0x862   : > { %5986 = vperm.xlu1 %8737, %v9547_v59  }
 0x863   : > { %v14361_v43 = vpop.permute.xlu0 %5653 }
 0x864   : > { %17130 = vst [vmem:[#allocation183_spill] sm:$0xff] %v14361_v43  ;;  %5990 = vperm.xlu0 %8736, %v14364_v56   ;;  %v14367_v54 = vpop.permute.xlu1 %5667  ;;  %v9551_v43 = vld [vmem:[%s10226_s28 + $0x160] sm:$0xff] }
 0x865   : > { %17131 = vst [vmem:[#allocation174_spill] sm:$0xff] %v14367_v54 }
 0x866   : > { %5994 = vperm.xlu1 %8737, %v9549_v33   ;;  %v9553_v33 = vld [vmem:[%s10226_s28 + $0x170] sm:$0xff] }
 0x867   : > { %v14370_v26 = vpop.permute.xlu0 %5657 }
 0x868   : > { %17132 = vst [vmem:[#allocation185_spill] sm:$0xff] %v14370_v26  ;;  %5998 = vperm.xlu0 %8736, %v14373_v4   ;;  %v14376_v59 = vpop.permute.xlu1 %5671 }
 0x869   : > { %17133 = vst [vmem:[#allocation205_spill] sm:$0xff] %v14376_v59  ;;  %v9559_v59 = vld [vmem:[%s10226_s28 + $0x1a0] sm:$0xff] }
 0x86a   : > { %6002 = vperm.xlu1 %8737, %v9551_v43   ;;  %v9555_v43 = vld [vmem:[%s10226_s28 + $0x180] sm:$0xff] }
 0x86b   : > { %v14379_v31 = vpop.permute.xlu0 %5661 }
 0x86c   : > { %17134 = vst [vmem:[#allocation111_spill] sm:$0xff] %v14379_v31  ;;  %6006 = vperm.xlu0 %8736, %v14382_v51   ;;  %v14386_v26 = vpop.permute.xlu1 %5675  ;;  %v14398_v31 = vld [vmem:[%s10226_s28 + $0x188] sm:$0xff] }
 0x86d   : > { %17135 = vst [vmem:[#allocation84_spill] sm:$0xff] %v14386_v26  ;;  %17138 = vst [vmem:[#allocation116_spill] sm:$0xff] %v14398_v31  ;;  %v14409_v26 = vld [vmem:[%s10226_s28 + $0x198] sm:$0xff] }
 0x86e   : > { %6010 = vperm.xlu1 %8737, %v9553_v33   ;;  %v9557_v33 = vld [vmem:[%s10226_s28 + $0x190] sm:$0xff]  ;;  %17142 = vst [vmem:[#allocation54_spill] sm:$0xff] %v14409_v26 }
 0x86f   : > { %v14388_v39 = vpop.permute.xlu0 %5665 }
 0x870   : > { %17136 = vst [vmem:[#allocation230_spill] sm:$0xff] %v14388_v39  ;;  %6014 = vperm.xlu0 %8736, %v14391_v0   ;;  %v14401_v6 = vpop.permute.xlu1 %5679 }
 0x871   : > { %17139 = vst [vmem:[#allocation122_spill] sm:$0xff] %v14401_v6 }
 0x872   : > { %6018 = vperm.xlu1 %8737, %v9555_v43   ;;  %v17143_v43 = vld [vmem:[#allocation334_spill] sm:$0xff] }
 0x873   : > { %v14395_v8 = vpop.permute.xlu0 %5669 }
 0x874   : > { %17137 = vst [vmem:[#allocation103_spill] sm:$0xff] %v14395_v8  ;;  %6022 = vperm.xlu0 %8736, %v14398_v31   ;;  %v4528_v8 = vadd.f32 %v17143_v43, %v3167_v57  ;;  %v14414_v54 = vpop.permute.xlu1 %5683  ;;  %v9561_v57 = vld [vmem:[%s10226_s28 + $0x1b0] sm:$0xff] }
 0x875   : > { %17144 = vst [vmem:[#allocation339_spill] sm:$0xff] %v14414_v54  ;;  %v17149_v43 = vld [vmem:[#allocation182_spill] sm:$0xff] }
 0x876   : > { %6026 = vperm.xlu1 %8737, %v9557_v33   ;;  %v3169_v33 = vmul.f32 %v13975_v37, %v17146_v13  ;;  %v14433_v13 = vld [vmem:[%s10226_s28 + $0x1b8] sm:$0xff] }
 0x877   : > { %v14404_v39 = vpop.permute.xlu0 %5673 }
 0x878   : > { %17140 = vst [vmem:[#allocation223_spill] sm:$0xff] %v14404_v39  ;;  %6030 = vperm.xlu0 %8736, %v14409_v26   ;;  %v5761_v39 = vadd.f32 %v14181_v10, %v4528_v8  ;;  %v17147_v26 = vld [vmem:[#allocation336_spill] sm:$0xff]  ;;  %v14436_v10 = vpop.permute.xlu1 %5687  ;;  %v17151_v8 = vld [vmem:[#allocation338_spill] sm:$0xff] }
 0x879   : > { %v4530_v31 = vadd.f32 %v17147_v26, %v3169_v33  ;;  %17150 = vst [vmem:[#allocation342_spill] sm:$0xff] %v14436_v10  ;;  %v9563_v33 = vld [vmem:[%s10226_s28 + $0x1c0] sm:$0xff] }
 0x87a   : > { %6034 = vperm.xlu1 %8737, %v9559_v59   ;;  %v6209_v54 = vmax.f32 %v5761_v39, 1e-30 }
 0x87b   : > { %v14416_v6 = vpop.permute.xlu0 %5677  ;;  %v5763_v37 = vadd.f32 %v14189_v44, %v4530_v31  ;;  %v14446_v31 = vld [vmem:[%s10226_s28 + $0x1c8] sm:$0xff] }
 0x87c   : > { %17145 = vst [vmem:[#allocation265_spill] sm:$0xff] %v14416_v6  ;;  %6038 = vperm.xlu0 %8736, %v14422_v14   ;;  %v3170_v6 = vmul.f32 %v13984_v42, %v17149_v43  ;;  %9206 = vrcp.f32 %v6209_v54  ;;  %17154 = vst [vmem:[#allocation355_spill] sm:$0xff] %v14446_v31  ;;  %v17155_v43 = vld [vmem:[#allocation344_spill] sm:$0xff] }
 0x87d   : > { %v6211_v39 = vmax.f32 %v5763_v37, 1e-30 }
 0x87e   : > { %6042 = vperm.xlu1 %8737, %v9561_v57   ;;  %v4531_v26 = vadd.f32 %v17151_v8, %v3170_v6  ;;  %v9565_v6 = vld [vmem:[%s10226_s28 + $0x1d0] sm:$0xff]  ;;  %v14451_v8 = vpop.permute.xlu1 %5691 }
 0x87f   : > { %v14427_v59 = vpop.permute.xlu0 %5681  ;;  %17156 = vst [vmem:[#allocation361_spill] sm:$0xff] %v14451_v8  ;;  %9208 = vrcp.f32 %v6211_v39 }
 0x880   : > { %17148 = vst [vmem:[#allocation354_spill] sm:$0xff] %v14427_v59  ;;  %6046 = vperm.xlu0 %8736, %v14433_v13   ;;  %v17153_v59 = vld [vmem:[#allocation190_spill] sm:$0xff]  ;;  %v5764_v44 = vadd.f32 %v14195_v18, %v4531_v26  ;;  %v14457_v18 = vld [vmem:[%s10226_s28 + $0x1d8] sm:$0xff] }
 0x881   : > { %v3172_v42 = vmul.f32 %v13996_v9, %v17153_v59  ;;  %17158 = vst [vmem:[#allocation352_spill] sm:$0xff] %v14457_v18 }
 0x882   : > { %6050 = vperm.xlu1 %8737, %v9563_v33   ;;  %v17157_v33 = vld [vmem:[#allocation197_spill] sm:$0xff]  ;;  %v6212_v9 = vmax.f32 %v5764_v44, 1e-30 }
 0x883   : > { %v14440_v57 = vpop.permute.xlu0 %5685  ;;  %v4533_v10 = vadd.f32 %v17155_v43, %v3172_v42  ;;  %v17160_v43 = vld [vmem:[#allocation348_spill] sm:$0xff] }
 0x884   : > { %17152 = vst [vmem:[#allocation359_spill] sm:$0xff] %v14440_v57  ;;  %6054 = vperm.xlu0 %8736, %v14446_v31   ;;  %v3174_v57 = vmul.f32 %v14008_v63, %v17157_v33  ;;  %v9567_v42 = vld [vmem:[%s10226_s28 + $0x1e0] sm:$0xff]  ;;  %9210 = vrcp.f32 %v6212_v9 }
 0x885   : > { %v5766_v54 = vadd.f32 %v14201_v20, %v4533_v10  ;;  %v14468_v20 = vld [vmem:[%s10226_s28 + $0x1e8] sm:$0xff]  ;;  %v14471_v10 = vpop.permute.xlu1 %5695 }
 0x886   : > { %6058 = vperm.xlu1 %8737, %v9565_v6   ;;  %v4535_v26 = vadd.f32 %v17160_v43, %v3174_v57  ;;  %v17161_v6 = vld [vmem:[#allocation214_spill] sm:$0xff]  ;;  %17162 = vst [vmem:[#allocation362_spill] sm:$0xff] %v14468_v20  ;;  %17163 = vst [vmem:[#allocation366_spill] sm:$0xff] %v14471_v10  ;;  %v9207_v44 = vpop.eup %9206 }
 0x887   : > { %v14460_v37 = vpop.permute.xlu0 %5689  ;;  %v3176_v59 = vmul.f32 %v14020_v34, %v17161_v6  ;;  %v6214_v63 = vmax.f32 %v5766_v54, 1e-30  ;;  %v9569_v57 = vld [vmem:[%s10226_s28 + $0x1f0] sm:$0xff]  ;;  %v14481_v54 = vld [vmem:[%s10226_s28 + $0x1f8] sm:$0xff] }
 0x888   : > { %6062 = vperm.xlu0 %8736, %v14457_v18   ;;  %17159 = vst [vmem:[#allocation358_spill] sm:$0xff] %v14460_v37  ;;  %v5768_v39 = vadd.f32 %v14208_v29, %v4535_v26  ;;  %v17164_v37 = vld [vmem:[#allocation60_spill] sm:$0xff]  ;;  %17167 = vst [vmem:[#allocation372_spill] sm:$0xff] %v14481_v54  ;;  %v6337_v26 = vmul.f32 0.5, %v9207_v44  ;;  %v17170_v18 = vmov 0  }
 0x889   : > { %v4537_v33 = vadd.f32 %v17164_v37, %v3176_v59  ;;  %9212 = vrcp.f32 %v6214_v63  ;;  %v9209_v8 = vpop.eup %9208  ;;  %v17169_v37 = vld [vmem:[#allocation281_spill] sm:$0xff] }
 0x88a   : > { %6066 = vperm.xlu1 %8737, %v9567_v42   ;;  %v17166_v42 = vld [vmem:[#allocation227_spill] sm:$0xff]  ;;  %v6216_v9 = vmax.f32 %v5768_v39, 1e-30  ;;  %v17173_v39 = vld [vmem:[#allocation244_spill] sm:$0xff] }
 0x88b   : > { %v14475_v43 = vpop.permute.xlu0 %5693  ;;  %v3178_v6 = vmul.f32 %v14032_v11, %v17166_v42  ;;  %v5770_v29 = vadd.f32 %v14214_v49, %v4537_v33 }
 0x88c   : > { %6070 = vperm.xlu0 %8736, %v14468_v20   ;;  %17165 = vst [vmem:[#allocation368_spill] sm:$0xff] %v14475_v43  ;;  %v17168_v20 = vld [vmem:[#allocation353_spill] sm:$0xff]  ;;  %9214 = vrcp.f32 %v6216_v9 }
 0x88d   : > { %v4539_v59 = vadd.f32 %v17168_v20, %v3178_v6  ;;  %v17171_v43 = vld [vmem:[#allocation233_spill] sm:$0xff]  ;;  %v6218_v49 = vmax.f32 %v5770_v29, 1e-30  ;;  %v17175_v6 = vld [vmem:[#allocation363_spill] sm:$0xff] }
 0x88e   : > { %6074 = vperm.xlu1 %8737, %v9569_v57   ;;  %v3180_v42 = vmul.f32 %v14044_v40, %v17171_v43  ;;  %v17176_v43 = vld [vmem:[#allocation278_spill] sm:$0xff] }
 0x88f   : > { %v5772_v33 = vadd.f32 %v14220_v23, %v4539_v59  ;;  %9216 = vrcp.f32 %v6218_v49 }
 0x890   : > { %6078 = vperm.xlu0 %8736, %v14481_v54   ;;  %v4541_v20 = vadd.f32 %v17175_v6, %v3180_v42  ;;  %v9211_v54 = vpop.eup %9210 }
 0x891   : > { %v5831_v10 = vpop.permute.xlu1 %5830 }
 0x892   : > { %v6082_v57 = vmul.f32 %v5831_v10, %v17169_v37  ;;  %8739 = vset.pattern.permute.xlu1 %v17170_v18  ;;  %v6339_v10 = vmul.f32 0.5, %v9209_v8  ;;  %v5774_v29 = vadd.f32 %v14226_v46, %v4541_v20  ;;  %v6340_v8 = vmul.f32 0.5, %v9211_v54  ;;  %v17184_v20 = vld [vmem:[#allocation248_spill] sm:$0xff]  ;;  %v17185_v54 = vld [vmem:[#allocation285_spill] sm:$0xff] }
 0x893   : > { %v14489_v63 = vpop.permute.xlu0 %5826  ;;  %6595 = vperm.xlu1 %8739, %v6337_v26   ;;  %v17178_v26 = vld [vmem:[#allocation280_spill] sm:$0xff]  ;;  %v3184_v49 = vmul.f32 %v14070_v24, %v17184_v20 }
 0x894   : > { %17172 = vst [vmem:[#allocation374_spill] sm:$0xff] %v14489_v63  ;;  %8738 = vset.pattern.permute.xlu0 %v17170_v18  ;;  %v14494_v44 = vadd.f32 %v6082_v57, %v17173_v39  ;;  %v17177_v63 = vld [vmem:[#allocation239_spill] sm:$0xff]  ;;  %v6220_v18 = vmax.f32 %v5772_v33, 1e-30  ;;  %v9213_v39 = vpop.eup %9212  ;;  %v6222_v33 = vmax.f32 %v5774_v29, 1e-30 }
 0x895   : > { %3297 = vperm.xlu0 %8738, %v13947_v3   ;;  %v5835_v37 = vpop.permute.xlu1 %5834  ;;  %v3182_v9 = vmul.f32 %v14057_v41, %v17177_v63  ;;  %v17179_v57 = vld [vmem:[#allocation243_spill] sm:$0xff]  ;;  %v17182_v63 = vld [vmem:[#allocation72_spill] sm:$0xff] }
 0x896   : > { %17174 = vst [vmem:[#allocation378_spill] sm:$0xff] %v14494_v44  ;;  %v6083_v31 = vmul.f32 %v17176_v43, %v5835_v37  ;;  %v17180_v43 = vld [vmem:[#allocation369_spill] sm:$0xff]  ;;  %v17181_v37 = vld [vmem:[#allocation283_spill] sm:$0xff]  ;;  %9218 = vrcp.f32 %v6220_v18  ;;  %v17190_v29 = vld [vmem:[#allocation28_spill] sm:$0xff] }
 0x897   : > { %v5839_v23 = vpop.permute.xlu0 %5838  ;;  %6605 = vperm.xlu1 %8739, %v6339_v10   ;;  %v4543_v6 = vadd.f32 %v17180_v43, %v3182_v9  ;;  %v6342_v9 = vmul.f32 0.5, %v9213_v39  ;;  %v17189_v43 = vld [vmem:[#allocation282_spill] sm:$0xff]  ;;  %9220 = vrcp.f32 %v6222_v33  ;;  %v17197_v33 = vld [vmem:[#allocation101_spill] sm:$0xff] }
 0x898   : > { %v6084_v59 = vmul.f32 %v17178_v26, %v5839_v23  ;;  %v14504_v42 = vadd.f32 %v6083_v31, %v17179_v57  ;;  %v17186_v23 = vld [vmem:[#allocation30_spill] sm:$0xff] }
 0x899   : > { %3342 = vperm.xlu0 %8738, %v14020_v34   ;;  %v5843_v3 = vpop.permute.xlu1 %5842  ;;  %v5776_v31 = vadd.f32 %v14232_v32, %v4543_v6  ;;  %v17191_v18 = vld [vmem:[#allocation250_spill] sm:$0xff]  ;;  %v17192_v6 = vld [vmem:[#allocation284_spill] sm:$0xff] }
 0x89a   : > { %v6085_v44 = vmul.f32 %v5843_v3, %v17181_v37  ;;  %v14510_v46 = vadd.f32 %v6084_v59, %v17182_v63  ;;  %v9215_v63 = vpop.eup %9214  ;;  %v17188_v59 = vld [vmem:[#allocation375_spill] sm:$0xff]  ;;  %v3186_v32 = vmul.f32 %v14083_v62, %v17191_v18 }
 0x89b   : > { %v5847_v10 = vpop.permute.xlu0 %5846  ;;  %6610 = vperm.xlu1 %8739, %v6340_v8   ;;  %v4545_v3 = vadd.f32 %v17188_v59, %v3184_v49  ;;  %v6344_v49 = vmul.f32 0.5, %v9215_v63 }
 0x89c   : > { %17183 = vst [vmem:[#allocation380_spill] sm:$0xff] %v14510_v46  ;;  %v6086_v34 = vmul.f32 %v5847_v10, %v17185_v54  ;;  %v14517_v26 = vadd.f32 %v6085_v44, %v17186_v23  ;;  %v6224_v44 = vmax.f32 %v5776_v31, 1e-30  ;;  %v17193_v10 = vld [vmem:[#allocation27_spill] sm:$0xff]  ;;  %v17198_v31 = vld [vmem:[#allocation258_spill] sm:$0xff] }
 0x89d   : > { %3352 = vperm.xlu0 %8738, %v14032_v11   ;;  %v5851_v57 = vpop.permute.xlu1 %5850  ;;  %v5778_v39 = vadd.f32 %v14238_v36, %v4545_v3  ;;  %v3188_v36 = vmul.f32 %v14274_v16, %v17198_v31 }
 0x89e   : > { %17187 = vst [vmem:[#allocation384_spill] sm:$0xff] %v14517_v26  ;;  %v6087_v37 = vmul.f32 %v17189_v43, %v5851_v57  ;;  %v14523_v46 = vadd.f32 %v6086_v34, %v17190_v29  ;;  %v9217_v34 = vpop.eup %9216  ;;  %v17195_v57 = vld [vmem:[#allocation381_spill] sm:$0xff]  ;;  %v17196_v43 = vld [vmem:[#allocation100_spill] sm:$0xff]  ;;  %9222 = vrcp.f32 %v6224_v44 }
 0x89f   : > { %v5855_v8 = vpop.permute.xlu0 %5854  ;;  %6620 = vperm.xlu1 %8739, %v6342_v9   ;;  %v4547_v59 = vadd.f32 %v17195_v57, %v3186_v32  ;;  %v6226_v3 = vmax.f32 %v5778_v39, 1e-30  ;;  %v17204_v39 = vld [vmem:[#allocation94_spill] sm:$0xff] }
 0x8a0   : > { %v6088_v11 = vmul.f32 %v17192_v6, %v5855_v8  ;;  %v14530_v54 = vadd.f32 %v6087_v37, %v17193_v10  ;;  %v6346_v8 = vmul.f32 0.5, %v9217_v34  ;;  %v9219_v6 = vpop.eup %9218 }
 0x8a1   : > { %3362 = vperm.xlu0 %8738, %v14044_v40   ;;  %v5859_v23 = vpop.permute.xlu1 %5858  ;;  %v5780_v63 = vadd.f32 %v14244_v25, %v4547_v59  ;;  %v17199_v40 = vld [vmem:[#allocation253_spill] sm:$0xff]  ;;  %9224 = vrcp.f32 %v6226_v3  ;;  %v6348_v59 = vmul.f32 0.5, %v9219_v6 }
 0x8a2   : > { %17194 = vst [vmem:[#allocation391_spill] sm:$0xff] %v14530_v54  ;;  %v6089_v29 = vmul.f32 %v5859_v23, %v17196_v43  ;;  %v14536_v26 = vadd.f32 %v6088_v11, %v17197_v33  ;;  %v17201_v11 = vld [vmem:[#allocation387_spill] sm:$0xff]  ;;  %v17202_v23 = vld [vmem:[#allocation218_spill] sm:$0xff]  ;;  %v17203_v43 = vld [vmem:[#allocation269_spill] sm:$0xff] }
 0x8a3   : > { %v14540_v9 = vpop.permute.xlu0 %5862  ;;  %6630 = vperm.xlu1 %8739, %v6344_v49   ;;  %v4549_v10 = vadd.f32 %v17201_v11, %v3188_v36  ;;  %v3190_v33 = vmul.f32 %v14283_v47, %v17203_v43  ;;  %v6228_v25 = vmax.f32 %v5780_v63, 1e-30  ;;  %v17206_v36 = vld [vmem:[#allocation395_spill] sm:$0xff]  ;;  %v17209_v63 = vld [vmem:[#allocation176_spill] sm:$0xff] }
 0x8a4   : > { %v14544_v37 = vadd.f32 %v6089_v29, %v17199_v40 }
 0x8a5   : > { %3372 = vperm.xlu0 %8738, %v14057_v41   ;;  %v5867_v32 = vpop.permute.xlu1 %5866  ;;  %v5782_v44 = vadd.f32 %v14250_v22, %v4549_v10  ;;  %v9221_v41 = vpop.eup %9220  ;;  %v4551_v40 = vadd.f32 %v17206_v36, %v3190_v33  ;;  %9226 = vrcp.f32 %v6228_v25  ;;  %v17211_v33 = vld [vmem:[#allocation401_spill] sm:$0xff] }
 0x8a6   : > { %17200 = vst [vmem:[#allocation386_spill] sm:$0xff] %v14544_v37  ;;  %v6091_v57 = vmul.f32 %v17202_v23, %v5867_v32  ;;  %v17207_v32 = vld [vmem:[#allocation287_spill] sm:$0xff]  ;;  %v17208_v23 = vld [vmem:[#allocation125_spill] sm:$0xff]  ;;  %v6350_v6 = vmul.f32 0.5, %v9221_v41 }
 0x8a7   : > { %v14551_v49 = vpop.permute.xlu0 %5870  ;;  %6640 = vperm.xlu1 %8739, %v6346_v8   ;;  %v3192_v37 = vmul.f32 %v14292_v45, %v17208_v23  ;;  %v6230_v22 = vmax.f32 %v5782_v44, 1e-30  ;;  %v5784_v3 = vadd.f32 %v14256_v53, %v4551_v40  ;;  %v17214_v44 = vld [vmem:[#allocation266_spill] sm:$0xff] }
 0x8a8   : > { %v14555_v34 = vadd.f32 %v6091_v57, %v17204_v39  ;;  %v9223_v57 = vpop.eup %9222 }
 0x8a9   : > { %3382 = vperm.xlu0 %8738, %v14070_v24   ;;  %v5875_v29 = vpop.permute.xlu1 %5874  ;;  %v4553_v39 = vadd.f32 %v17211_v33, %v3192_v37  ;;  %9228 = vrcp.f32 %v6230_v22  ;;  %v6232_v53 = vmax.f32 %v5784_v3, 1e-30  ;;  %v17217_v33 = vld [vmem:[#allocation257_spill] sm:$0xff] }
 0x8aa   : > { %17205 = vst [vmem:[#allocation394_spill] sm:$0xff] %v14555_v34  ;;  %v6093_v11 = vmul.f32 %v5875_v29, %v17207_v32  ;;  %v17212_v29 = vld [vmem:[#allocation232_spill] sm:$0xff]  ;;  %v17213_v32 = vld [vmem:[#allocation247_spill] sm:$0xff]  ;;  %v17218_v3 = vld [vmem:[#allocation181_spill] sm:$0xff] }
 0x8ab   : > { %v14562_v8 = vpop.permute.xlu0 %5878  ;;  %6650 = vperm.xlu1 %8739, %v6348_v59   ;;  %v3194_v34 = vmul.f32 %v14301_v50, %v17213_v32  ;;  %v5786_v25 = vadd.f32 %v14262_v12, %v4553_v39  ;;  %v9225_v37 = vpop.eup %9224  ;;  %9230 = vrcp.f32 %v6232_v53 }
 0x8ac   : > { %v14566_v10 = vadd.f32 %v6093_v11, %v17209_v63  ;;  %v17216_v63 = vld [vmem:[#allocation291_spill] sm:$0xff] }
 0x8ad   : > { %3392 = vperm.xlu0 %8738, %v14083_v62   ;;  %v5883_v24 = vpop.permute.xlu1 %5882  ;;  %v6352_v62 = vmul.f32 0.5, %v9223_v57  ;;  %v4555_v11 = vadd.f32 %v13706_v48, %v3194_v34  ;;  %v6234_v12 = vmax.f32 %v5786_v25, 1e-30  ;;  %v17222_v25 = vld [vmem:[#allocation191_spill] sm:$0xff] }
 0x8ae   : > { %17210 = vst [vmem:[#allocation390_spill] sm:$0xff] %v14566_v10  ;;  %v6095_v36 = vmul.f32 %v17212_v29, %v5883_v24  ;;  %v3196_v29 = vmul.f32 %v14310_v2, %v17217_v33 }
 0x8af   : > { %v14573_v59 = vpop.permute.xlu0 %5886  ;;  %6660 = vperm.xlu1 %8739, %v6350_v6   ;;  %v5788_v22 = vadd.f32 %v14268_v61, %v4555_v11  ;;  %v9227_v48 = vpop.eup %9226  ;;  %9232 = vrcp.f32 %v6234_v12 }
 0x8b0   : > { %v14577_v41 = vadd.f32 %v6095_v36, %v17214_v44  ;;  %v4557_v34 = vadd.f32 %v13721_v17, %v3196_v29  ;;  %v17220_v36 = vld [vmem:[#allocation290_spill] sm:$0xff]  ;;  %v17224_v29 = vld [vmem:[#allocation293_spill] sm:$0xff] }
 0x8b1   : > { %3402 = vperm.xlu0 %8738, %v14274_v16   ;;  %v5891_v40 = vpop.permute.xlu1 %5890  ;;  %v6354_v16 = vmul.f32 0.5, %v9225_v37  ;;  %v6236_v61 = vmax.f32 %v5788_v22, 1e-30  ;;  %v17226_v22 = vld [vmem:[#allocation38_spill] sm:$0xff] }
 0x8b2   : > { %17215 = vst [vmem:[#allocation399_spill] sm:$0xff] %v14577_v41  ;;  %v6097_v24 = vmul.f32 %v5891_v40, %v17216_v63  ;;  %v17221_v40 = vld [vmem:[#allocation260_spill] sm:$0xff]  ;;  %v5790_v53 = vadd.f32 %v14277_v60, %v4557_v34  ;;  %v17276_v41 = vld [vmem:[#allocation54_spill] sm:$0xff] }
 0x8b3   : > { %v14584_v6 = vpop.permute.xlu0 %5894  ;;  %6670 = vperm.xlu1 %8739, %v6352_v62   ;;  %v3198_v63 = vmul.f32 %v14319_v7, %v17221_v40  ;;  %v9229_v17 = vpop.eup %9228  ;;  %9234 = vrcp.f32 %v6236_v61 }
 0x8b4   : > { %v14588_v57 = vadd.f32 %v6097_v24, %v17218_v3  ;;  %v6238_v60 = vmax.f32 %v5790_v53, 1e-30  ;;  %v17231_v53 = vld [vmem:[#allocation66_spill] sm:$0xff] }
 0x8b5   : > { %3412 = vperm.xlu0 %8738, %v14283_v47   ;;  %v5899_v39 = vpop.permute.xlu1 %5898  ;;  %v6356_v47 = vmul.f32 0.5, %v9227_v48  ;;  %v4559_v24 = vadd.f32 %v13732_v27, %v3198_v63  ;;  %v9231_v27 = vpop.eup %9230 }
 0x8b6   : > { %17219 = vst [vmem:[#allocation393_spill] sm:$0xff] %v14588_v57  ;;  %v6099_v44 = vmul.f32 %v17220_v36, %v5899_v39  ;;  %v17225_v39 = vld [vmem:[#allocation263_spill] sm:$0xff]  ;;  %9236 = vrcp.f32 %v6238_v60 }
 0x8b7   : > { %v14595_v62 = vpop.permute.xlu0 %5902  ;;  %6680 = vperm.xlu1 %8739, %v6354_v16   ;;  %v3200_v36 = vmul.f32 %v14328_v38, %v17225_v39  ;;  %v5792_v12 = vadd.f32 %v14286_v30, %v4559_v24 }
 0x8b8   : > { %v14599_v37 = vadd.f32 %v6099_v44, %v17222_v25  ;;  %v17228_v44 = vld [vmem:[#allocation412_spill] sm:$0xff]  ;;  %v17229_v25 = vld [vmem:[#allocation85_spill] sm:$0xff] }
 0x8b9   : > { %3422 = vperm.xlu0 %8738, %v14292_v45   ;;  %v5907_v11 = vpop.permute.xlu1 %5906  ;;  %v6358_v45 = vmul.f32 0.5, %v9229_v17  ;;  %v4561_v63 = vadd.f32 %v17228_v44, %v3200_v36  ;;  %v6240_v30 = vmax.f32 %v5792_v12, 1e-30  ;;  %v17233_v36 = vld [vmem:[#allocation414_spill] sm:$0xff]  ;;  %v17236_v12 = vld [vmem:[#allocation217_spill] sm:$0xff] }
 0x8ba   : > { %17223 = vst [vmem:[#allocation398_spill] sm:$0xff] %v14599_v37  ;;  %v6101_v3 = vmul.f32 %v5907_v11, %v17224_v29  ;;  %v17230_v29 = vld [vmem:[#allocation268_spill] sm:$0xff] }
 0x8bb   : > { %v14606_v16 = vpop.permute.xlu0 %5910  ;;  %6690 = vperm.xlu1 %8739, %v6356_v47   ;;  %v3202_v37 = vmul.f32 %v14337_v15, %v17230_v29  ;;  %v5794_v61 = vadd.f32 %v14295_v35, %v4561_v63  ;;  %9238 = vrcp.f32 %v6240_v30 }
 0x8bc   : > { %v14610_v48 = vadd.f32 %v6101_v3, %v17226_v22  ;;  %v9233_v3 = vpop.eup %9232 }
 0x8bd   : > { %3432 = vperm.xlu0 %8738, %v14301_v50   ;;  %v5915_v34 = vpop.permute.xlu1 %5914  ;;  %v6360_v50 = vmul.f32 0.5, %v9231_v27  ;;  %v4563_v22 = vadd.f32 %v17233_v36, %v3202_v37  ;;  %v6242_v35 = vmax.f32 %v5794_v61, 1e-30  ;;  %v9235_v37 = vpop.eup %9234  ;;  %v17241_v61 = vld [vmem:[#allocation81_spill] sm:$0xff] }
 0x8be   : > { %17227 = vst [vmem:[#allocation164_spill] sm:$0xff] %v14610_v48  ;;  %v6103_v11 = vmul.f32 %v17229_v25, %v5915_v34  ;;  %v17234_v34 = vld [vmem:[#allocation297_spill] sm:$0xff]  ;;  %v17235_v25 = vld [vmem:[#allocation331_spill] sm:$0xff] }
 0x8bf   : > { %v14617_v47 = vpop.permute.xlu0 %5918  ;;  %6700 = vperm.xlu1 %8739, %v6358_v45   ;;  %v3204_v48 = vmul.f32 %v14346_v28, %v17235_v25  ;;  %v5796_v60 = vadd.f32 %v14304_v1, %v4563_v22  ;;  %9240 = vrcp.f32 %v6242_v35 }
 0x8c0   : > { %v14621_v17 = vadd.f32 %v6103_v11, %v17231_v53  ;;  %v17238_v11 = vld [vmem:[#allocation417_spill] sm:$0xff] }
 0x8c1   : > { %3442 = vperm.xlu0 %8738, %v14310_v2   ;;  %v5923_v24 = vpop.permute.xlu1 %5922  ;;  %v6362_v2 = vmul.f32 0.5, %v9233_v3  ;;  %v4565_v53 = vadd.f32 %v17238_v11, %v3204_v48  ;;  %v6244_v1 = vmax.f32 %v5796_v60, 1e-30  ;;  %v9237_v48 = vpop.eup %9236  ;;  %v17246_v60 = vld [vmem:[#allocation91_spill] sm:$0xff] }
 0x8c2   : > { %17232 = vst [vmem:[#allocation334_spill] sm:$0xff] %v14621_v17  ;;  %v6105_v44 = vmul.f32 %v5923_v24, %v17234_v34  ;;  %v17239_v24 = vld [vmem:[#allocation296_spill] sm:$0xff]  ;;  %v17240_v34 = vld [vmem:[#allocation337_spill] sm:$0xff] }
 0x8c3   : > { %v14628_v45 = vpop.permute.xlu0 %5926  ;;  %6710 = vperm.xlu1 %8739, %v6360_v50   ;;  %v3206_v17 = vmul.f32 %v14355_v58, %v17240_v34  ;;  %v5798_v30 = vadd.f32 %v14313_v19, %v4565_v53  ;;  %9242 = vrcp.f32 %v6244_v1 }
 0x8c4   : > { %v14632_v27 = vadd.f32 %v6105_v44, %v17236_v12  ;;  %v17243_v44 = vld [vmem:[#allocation419_spill] sm:$0xff] }
 0x8c5   : > { %3452 = vperm.xlu0 %8738, %v14319_v7   ;;  %v5931_v63 = vpop.permute.xlu1 %5930  ;;  %v6364_v7 = vmul.f32 0.5, %v9235_v37  ;;  %v4567_v12 = vadd.f32 %v17243_v44, %v3206_v17  ;;  %v6246_v19 = vmax.f32 %v5798_v30, 1e-30  ;;  %v9239_v17 = vpop.eup %9238  ;;  %v17251_v30 = vld [vmem:[#allocation160_spill] sm:$0xff] }
 0x8c6   : > { %17237 = vst [vmem:[#allocation336_spill] sm:$0xff] %v14632_v27  ;;  %v6107_v36 = vmul.f32 %v17239_v24, %v5931_v63  ;;  %v17244_v63 = vld [vmem:[#allocation301_spill] sm:$0xff]  ;;  %v17245_v24 = vld [vmem:[#allocation343_spill] sm:$0xff] }
 0x8c7   : > { %v14639_v50 = vpop.permute.xlu0 %5934  ;;  %6720 = vperm.xlu1 %8739, %v6362_v2   ;;  %v3208_v27 = vmul.f32 %v14364_v56, %v17245_v24  ;;  %v5800_v35 = vadd.f32 %v14322_v5, %v4567_v12  ;;  %9244 = vrcp.f32 %v6246_v19  ;;  %v17411_v24 = vld [vmem:[#allocation380_spill] sm:$0xff] }
 0x8c8   : > { %v14643_v3 = vadd.f32 %v6107_v36, %v17241_v61  ;;  %v17248_v36 = vld [vmem:[#allocation421_spill] sm:$0xff] }
 0x8c9   : > { %3462 = vperm.xlu0 %8738, %v14328_v38   ;;  %v5939_v22 = vpop.permute.xlu1 %5938  ;;  %v6366_v38 = vmul.f32 0.5, %v9237_v48  ;;  %v4569_v61 = vadd.f32 %v17248_v36, %v3208_v27  ;;  %v6248_v5 = vmax.f32 %v5800_v35, 1e-30  ;;  %v9241_v27 = vpop.eup %9240  ;;  %v17257_v35 = vld [vmem:[#allocation43_spill] sm:$0xff] }
 0x8ca   : > { %17242 = vst [vmem:[#allocation338_spill] sm:$0xff] %v14643_v3  ;;  %v6109_v11 = vmul.f32 %v5939_v22, %v17244_v63  ;;  %v17249_v22 = vld [vmem:[#allocation300_spill] sm:$0xff]  ;;  %v17250_v63 = vld [vmem:[#allocation347_spill] sm:$0xff] }
 0x8cb   : > { %v14650_v2 = vpop.permute.xlu0 %5942  ;;  %6730 = vperm.xlu1 %8739, %v6364_v7   ;;  %v3210_v3 = vmul.f32 %v14373_v4, %v17250_v63  ;;  %v5802_v1 = vadd.f32 %v14331_v21, %v4569_v61  ;;  %9246 = vrcp.f32 %v6248_v5  ;;  %v17405_v63 = vld [vmem:[#allocation254_spill] sm:$0xff] }
 0x8cc   : > { %v14654_v37 = vadd.f32 %v6109_v11, %v17246_v60  ;;  %v17253_v11 = vld [vmem:[#allocation423_spill] sm:$0xff] }
 0x8cd   : > { %3472 = vperm.xlu0 %8738, %v14337_v15   ;;  %v5947_v53 = vpop.permute.xlu1 %5946  ;;  %v6368_v15 = vmul.f32 0.5, %v9239_v17  ;;  %v4571_v60 = vadd.f32 %v17253_v11, %v3210_v3  ;;  %v6250_v21 = vmax.f32 %v5802_v1, 1e-30  ;;  %v9243_v3 = vpop.eup %9242  ;;  %v17263_v1 = vld [vmem:[#allocation44_spill] sm:$0xff] }
 0x8ce   : > { %17247 = vst [vmem:[#allocation344_spill] sm:$0xff] %v14654_v37  ;;  %v6111_v44 = vmul.f32 %v17249_v22, %v5947_v53  ;;  %v17254_v53 = vld [vmem:[#allocation305_spill] sm:$0xff]  ;;  %v17255_v22 = vld [vmem:[#allocation188_spill] sm:$0xff] }
 0x8cf   : > { %v14661_v7 = vpop.permute.xlu0 %5950  ;;  %6740 = vperm.xlu1 %8739, %v6366_v38   ;;  %v3212_v37 = vmul.f32 %v14382_v51, %v17255_v22  ;;  %v5804_v19 = vadd.f32 %v14340_v52, %v4571_v60  ;;  %9248 = vrcp.f32 %v6250_v21  ;;  %v17270_v21 = vld [vmem:[#allocation173_spill] sm:$0xff] }
 0x8d0   : > { %v14665_v48 = vadd.f32 %v6111_v44, %v17251_v30  ;;  %v17259_v44 = vld [vmem:[#allocation425_spill] sm:$0xff] }
 0x8d1   : > { %3482 = vperm.xlu0 %8738, %v14346_v28   ;;  %v5955_v12 = vpop.permute.xlu1 %5954  ;;  %v6370_v28 = vmul.f32 0.5, %v9241_v27  ;;  %v4573_v30 = vadd.f32 %v17259_v44, %v3212_v37  ;;  %v6252_v52 = vmax.f32 %v5804_v19, 1e-30  ;;  %v9245_v37 = vpop.eup %9244 }
 0x8d2   : > { %17252 = vst [vmem:[#allocation348_spill] sm:$0xff] %v14665_v48  ;;  %v6113_v36 = vmul.f32 %v5955_v12, %v17254_v53  ;;  %v17260_v12 = vld [vmem:[#allocation304_spill] sm:$0xff]  ;;  %v17261_v53 = vld [vmem:[#allocation351_spill] sm:$0xff] }
 0x8d3   : > { %v14672_v38 = vpop.permute.xlu0 %5958  ;;  %6750 = vperm.xlu1 %8739, %v6368_v15   ;;  %v3214_v48 = vmul.f32 %v14391_v0, %v17261_v53  ;;  %v5806_v5 = vadd.f32 %v14349_v55, %v4573_v30  ;;  %9250 = vrcp.f32 %v6252_v52  ;;  %v17271_v30 = vld [vmem:[#allocation45_spill] sm:$0xff]  ;;  %v17323_v53 = vld [vmem:[#allocation51_spill] sm:$0xff] }
 0x8d4   : > { %17256 = vst [vmem:[#allocation60_spill] sm:$0xff] %v14672_v38  ;;  %v14676_v17 = vadd.f32 %v6113_v36, %v17257_v35  ;;  %v17265_v36 = vld [vmem:[#allocation427_spill] sm:$0xff] }
 0x8d5   : > { %3492 = vperm.xlu0 %8738, %v14355_v58   ;;  %v5963_v61 = vpop.permute.xlu1 %5962  ;;  %v6372_v58 = vmul.f32 0.5, %v9243_v3  ;;  %v4575_v35 = vadd.f32 %v17265_v36, %v3214_v48  ;;  %v6254_v55 = vmax.f32 %v5806_v5, 1e-30  ;;  %v9247_v48 = vpop.eup %9246  ;;  %v17274_v36 = vld [vmem:[#allocation114_spill] sm:$0xff] }
 0x8d6   : > { %17258 = vst [vmem:[#allocation353_spill] sm:$0xff] %v14676_v17  ;;  %v6115_v11 = vmul.f32 %v17260_v12, %v5963_v61  ;;  %v17266_v61 = vld [vmem:[#allocation237_spill] sm:$0xff]  ;;  %v17267_v12 = vld [vmem:[#allocation360_spill] sm:$0xff]  ;;  %v17278_v5 = vld [vmem:[#allocation174_spill] sm:$0xff] }
 0x8d7   : > { %v14683_v15 = vpop.permute.xlu0 %5966  ;;  %6760 = vperm.xlu1 %8739, %v6370_v28   ;;  %v17268_v17 = vld [vmem:[#allocation116_spill] sm:$0xff]  ;;  %v5808_v19 = vadd.f32 %v17270_v21, %v4575_v35  ;;  %9252 = vrcp.f32 %v6254_v55 }
 0x8d8   : > { %17262 = vst [vmem:[#allocation281_spill] sm:$0xff] %v14683_v15  ;;  %v14687_v27 = vadd.f32 %v6115_v11, %v17263_v1  ;;  %v3216_v57 = vmul.f32 %v17268_v17, %v17267_v12  ;;  %v17273_v1 = vld [vmem:[#allocation55_spill] sm:$0xff]  ;;  %v17313_v12 = vld [vmem:[#allocation189_spill] sm:$0xff]  ;;  %v17408_v15 = vld [vmem:[#allocation126_spill] sm:$0xff] }
 0x8d9   : > { %3502 = vperm.xlu0 %8738, %v14364_v56   ;;  %v5971_v60 = vpop.permute.xlu1 %5970  ;;  %v6374_v56 = vmul.f32 0.5, %v9245_v37  ;;  %v6256_v52 = vmax.f32 %v5808_v19, 1e-30  ;;  %v17285_v19 = vld [vmem:[#allocation205_spill] sm:$0xff] }
 0x8da   : > { %17264 = vst [vmem:[#allocation244_spill] sm:$0xff] %v14687_v27  ;;  %v6117_v44 = vmul.f32 %v5971_v60, %v17266_v61  ;;  %v4577_v60 = vadd.f32 %v17273_v1, %v3216_v57  ;;  %v17275_v27 = vld [vmem:[#allocation367_spill] sm:$0xff]  ;;  %v9249_v57 = vpop.eup %9248  ;;  %v17282_v1 = vld [vmem:[#allocation241_spill] sm:$0xff] }
 0x8db   : > { %v14694_v28 = vpop.permute.xlu0 %5974  ;;  %6770 = vperm.xlu1 %8739, %v6372_v58   ;;  %v3218_v10 = vmul.f32 %v17276_v41, %v17275_v27  ;;  %9254 = vrcp.f32 %v6256_v52  ;;  %v17305_v27 = vld [vmem:[#allocation312_spill] sm:$0xff] }
 0x8dc   : > { %17269 = vst [vmem:[#allocation363_spill] sm:$0xff] %v14694_v28  ;;  %v14698_v3 = vadd.f32 %v6117_v44, %v17271_v30  ;;  %v5810_v35 = vadd.f32 %v17278_v5, %v4577_v60  ;;  %v17279_v44 = vld [vmem:[#allocation46_spill] sm:$0xff]  ;;  %v17403_v28 = vld [vmem:[#allocation279_spill] sm:$0xff] }
 0x8dd   : > { %3512 = vperm.xlu0 %8738, %v14373_v4   ;;  %v5979_v11 = vpop.permute.xlu1 %5978  ;;  %v6376_v4 = vmul.f32 0.5, %v9247_v48  ;;  %v17281_v30 = vld [vmem:[#allocation58_spill] sm:$0xff] }
 0x8de   : > { %17272 = vst [vmem:[#allocation278_spill] sm:$0xff] %v14698_v3  ;;  %v6119_v61 = vmul.f32 %v17274_v36, %v5979_v11  ;;  %v4579_v11 = vadd.f32 %v17281_v30, %v3218_v10  ;;  %v17283_v3 = vld [vmem:[#allocation373_spill] sm:$0xff]  ;;  %v6258_v55 = vmax.f32 %v5810_v35, 1e-30  ;;  %v9251_v10 = vpop.eup %9250  ;;  %v17289_v30 = vld [vmem:[#allocation238_spill] sm:$0xff]  ;;  %v17292_v35 = vld [vmem:[#allocation84_spill] sm:$0xff] }
 0x8df   : > { %v14705_v58 = vpop.permute.xlu0 %5982  ;;  %6780 = vperm.xlu1 %8739, %v6374_v56   ;;  %v3220_v54 = vmul.f32 %v14422_v14, %v17283_v3 }
 0x8e0   : > { %17277 = vst [vmem:[#allocation280_spill] sm:$0xff] %v14705_v58  ;;  %v14709_v37 = vadd.f32 %v6119_v61, %v17279_v44  ;;  %v5812_v60 = vadd.f32 %v17285_v19, %v4579_v11  ;;  %v17286_v61 = vld [vmem:[#allocation47_spill] sm:$0xff]  ;;  %v17288_v44 = vld [vmem:[#allocation42_spill] sm:$0xff]  ;;  %9256 = vrcp.f32 %v6258_v55 }
 0x8e1   : > { %3522 = vperm.xlu0 %8738, %v14382_v51   ;;  %v5987_v21 = vpop.permute.xlu1 %5986  ;;  %v6378_v51 = vmul.f32 0.5, %v9249_v57  ;;  %v17293_v57 = vld [vmem:[#allocation48_spill] sm:$0xff]  ;;  %v9253_v19 = vpop.eup %9252 }
 0x8e2   : > { %17280 = vst [vmem:[#allocation243_spill] sm:$0xff] %v14709_v37  ;;  %v6121_v36 = vmul.f32 %v5987_v21, %v17282_v1  ;;  %v4581_v21 = vadd.f32 %v17288_v44, %v3220_v54  ;;  %v17290_v37 = vld [vmem:[#allocation379_spill] sm:$0xff]  ;;  %v6260_v52 = vmax.f32 %v5812_v60, 1e-30  ;;  %v17296_v44 = vld [vmem:[#allocation313_spill] sm:$0xff] }
 0x8e3   : > { %v14716_v56 = vpop.permute.xlu0 %5990  ;;  %6790 = vperm.xlu1 %8739, %v6376_v4   ;;  %v3222_v3 = vmul.f32 %v14433_v13, %v17290_v37  ;;  %v17298_v37 = vld [vmem:[#allocation355_spill] sm:$0xff] }
 0x8e4   : > { %17284 = vst [vmem:[#allocation369_spill] sm:$0xff] %v14716_v56  ;;  %v14720_v48 = vadd.f32 %v6121_v36, %v17286_v61  ;;  %v5814_v11 = vadd.f32 %v17292_v35, %v4581_v21  ;;  %v17295_v61 = vld [vmem:[#allocation62_spill] sm:$0xff]  ;;  %9258 = vrcp.f32 %v6260_v52  ;;  %v17301_v35 = vld [vmem:[#allocation49_spill] sm:$0xff] }
 0x8e5   : > { %3532 = vperm.xlu0 %8738, %v14391_v0   ;;  %v5995_v5 = vpop.permute.xlu1 %5994  ;;  %v6380_v0 = vmul.f32 0.5, %v9251_v10  ;;  %v17300_v21 = vld [vmem:[#allocation122_spill] sm:$0xff]  ;;  %v17306_v52 = vld [vmem:[#allocation333_spill] sm:$0xff] }
 0x8e6   : > { %17287 = vst [vmem:[#allocation283_spill] sm:$0xff] %v14720_v48  ;;  %v6123_v1 = vmul.f32 %v17289_v30, %v5995_v5  ;;  %v4583_v5 = vadd.f32 %v17295_v61, %v3222_v3  ;;  %v17297_v48 = vld [vmem:[#allocation385_spill] sm:$0xff]  ;;  %v6262_v60 = vmax.f32 %v5814_v11, 1e-30  ;;  %v6382_v3 = vmul.f32 0.5, %v9253_v19  ;;  %v9255_v61 = vpop.eup %9254 }
 0x8e7   : > { %v14727_v4 = vpop.permute.xlu0 %5998  ;;  %6800 = vperm.xlu1 %8739, %v6378_v51   ;;  %v3224_v51 = vmul.f32 %v17298_v37, %v17297_v48  ;;  %v17334_v56 = vld [vmem:[#allocation361_spill] sm:$0xff] }
 0x8e8   : > { %17291 = vst [vmem:[#allocation72_spill] sm:$0xff] %v14727_v4  ;;  %v14731_v36 = vadd.f32 %v6123_v1, %v17293_v57  ;;  %v5816_v1 = vadd.f32 %v17300_v21, %v4583_v5  ;;  %v17303_v57 = vld [vmem:[#allocation168_spill] sm:$0xff]  ;;  %9260 = vrcp.f32 %v6262_v60 }
 0x8e9   : > { %3542 = vperm.xlu0 %8738, %v17268_v17   ;;  %v6003_v54 = vpop.permute.xlu1 %6002  ;;  %v9571_v17 = vld [vmem:[%s10226_s28 + $0x8] sm:$0xff]  ;;  %v17308_v5 = vld [vmem:[#allocation352_spill] sm:$0xff] }
 0x8ea   : > { %17294 = vst [vmem:[#allocation248_spill] sm:$0xff] %v14731_v36  ;;  %v6125_v30 = vmul.f32 %v6003_v54, %v17296_v44  ;;  %v3168_v36 = vmul.f32 %v9571_v17, %v17303_v57  ;;  %v17304_v44 = vld [vmem:[#allocation68_spill] sm:$0xff]  ;;  %v17310_v17 = vld [vmem:[#allocation339_spill] sm:$0xff] }
 0x8eb   : > { %v14738_v55 = vpop.permute.xlu0 %6006  ;;  %6810 = vperm.xlu1 %8739, %v6380_v0   ;;  %v4585_v48 = vadd.f32 %v17304_v44, %v3224_v51  ;;  %v9572_v57 = vld [vmem:[%s10226_s28 + $0x20] sm:$0xff]  ;;  %v6384_v44 = vmul.f32 0.5, %v9255_v61  ;;  %v17322_v61 = vld [vmem:[#allocation342_spill] sm:$0xff] }
 0x8ec   : > { %17299 = vst [vmem:[#allocation285_spill] sm:$0xff] %v14738_v55  ;;  %v14742_v10 = vadd.f32 %v6125_v30, %v17301_v35  ;;  %v4529_v11 = vadd.f32 %v17306_v52, %v3168_v36  ;;  %v17307_v55 = vld [vmem:[#allocation392_spill] sm:$0xff]  ;;  %v6264_v35 = vmax.f32 %v5816_v1, 1e-30  ;;  %v3171_v51 = vmul.f32 %v9572_v57, %v17313_v12  ;;  %v9257_v36 = vpop.eup %9256 }
 0x8ed   : > { %3552 = vperm.xlu0 %8738, %v17276_v41   ;;  %v6011_v54 = vpop.permute.xlu1 %6010  ;;  %v3226_v21 = vmul.f32 %v17308_v5, %v17307_v55  ;;  %v5818_v19 = vadd.f32 %v17310_v17, %v4585_v48  ;;  %v17315_v55 = vld [vmem:[#allocation152_spill] sm:$0xff]  ;;  %v17318_v17 = vld [vmem:[#allocation341_spill] sm:$0xff] }
 0x8ee   : > { %17302 = vst [vmem:[#allocation30_spill] sm:$0xff] %v14742_v10  ;;  %v6127_v0 = vmul.f32 %v17305_v27, %v6011_v54  ;;  %v17311_v10 = vld [vmem:[#allocation420_spill] sm:$0xff]  ;;  %9262 = vrcp.f32 %v6264_v35 }
 0x8ef   : > { %v14752_v30 = vpop.permute.xlu0 %6014  ;;  %6820 = vperm.xlu1 %8739, %v6382_v3   ;;  %v17314_v54 = vld [vmem:[#allocation156_spill] sm:$0xff]  ;;  %v5762_v3 = vadd.f32 %v17315_v55, %v4529_v11  ;;  %v9573_v55 = vld [vmem:[%s10226_s28 + $0x30] sm:$0xff] }
 0x8f0   : > { %17309 = vst [vmem:[#allocation375_spill] sm:$0xff] %v14752_v30  ;;  %v14756_v41 = vadd.f32 %v6127_v0, %v17311_v10  ;;  %v4587_v52 = vadd.f32 %v17314_v54, %v3226_v21  ;;  %v17316_v60 = vld [vmem:[#allocation316_spill] sm:$0xff]  ;;  %v17317_v30 = vld [vmem:[#allocation179_spill] sm:$0xff]  ;;  %v4532_v10 = vadd.f32 %v17318_v17, %v3171_v51  ;;  %v6386_v54 = vmul.f32 0.5, %v9257_v36  ;;  %v9259_v51 = vpop.eup %9258 }
 0x8f1   : > { %3562 = vperm.xlu0 %8738, %v14422_v14   ;;  %v6019_v27 = vpop.permute.xlu1 %6018  ;;  %v6403_v48 = vmax.f32 %v17317_v30, 1e-30  ;;  %v17319_v0 = vld [vmem:[#allocation400_spill] sm:$0xff]  ;;  %v6266_v14 = vmax.f32 %v5818_v19, 1e-30 }
 0x8f2   : > { %17312 = vst [vmem:[#allocation282_spill] sm:$0xff] %v14756_v41  ;;  %v6129_v1 = vmul.f32 %v6019_v27, %v17316_v60  ;;  %v17320_v41 = vld [vmem:[#allocation362_spill] sm:$0xff]  ;;  %v5820_v12 = vadd.f32 %v17322_v61, %v4587_v52  ;;  %v17325_v11 = vld [vmem:[#allocation196_spill] sm:$0xff] }
 0x8f3   : > { %v3228_v4 = vmul.f32 %v17320_v41, %v17319_v0  ;;  %v14768_v57 = vpop.permute.xlu0 %6022  ;;  %6830 = vperm.xlu1 %8739, %v6384_v44   ;;  %v3173_v27 = vmul.f32 %v9573_v55, %v17325_v11  ;;  %v17326_v60 = vld [vmem:[#allocation108_spill] sm:$0xff]  ;;  %v6210_v0 = vmax.f32 %v5762_v3, 1e-30  ;;  %v17327_v44 = vld [vmem:[#allocation162_spill] sm:$0xff]  ;;  %9264 = vrcp.f32 %v6403_v48 }
 0x8f4   : > { %17321 = vst [vmem:[#allocation28_spill] sm:$0xff] %v14768_v57  ;;  %v14772_v21 = vadd.f32 %v6129_v1, %v17323_v53  ;;  %v5765_v35 = vadd.f32 %v17327_v44, %v4532_v10  ;;  %v17328_v19 = vld [vmem:[#allocation24_spill] sm:$0xff]  ;;  %v17329_v52 = vld [vmem:[#allocation182_spill] sm:$0xff]  ;;  %9266 = vrcp.f32 %v6266_v14  ;;  %v17340_v14 = vld [vmem:[#allocation219_spill] sm:$0xff] }
 0x8f5   : > { %3572 = vperm.xlu0 %8738, %v14433_v13   ;;  %v6027_v30 = vpop.permute.xlu1 %6026  ;;  %v4589_v17 = vadd.f32 %v17326_v60, %v3228_v4  ;;  %v6404_v53 = vmax.f32 %v17329_v52, 1e-30  ;;  %v17330_v1 = vld [vmem:[#allocation346_spill] sm:$0xff]  ;;  %v17332_v55 = vld [vmem:[#allocation372_spill] sm:$0xff]  ;;  %v6268_v13 = vmax.f32 %v5820_v12, 1e-30  ;;  %9268 = vrcp.f32 %v6210_v0 }
 0x8f6   : > { %17324 = vst [vmem:[#allocation250_spill] sm:$0xff] %v14772_v21  ;;  %v6131_v57 = vmul.f32 %v17328_v19, %v6027_v30  ;;  %v4534_v61 = vadd.f32 %v17330_v1, %v3173_v27  ;;  %v17331_v21 = vld [vmem:[#allocation404_spill] sm:$0xff]  ;;  %v17337_v10 = vld [vmem:[#allocation190_spill] sm:$0xff]  ;;  %v17339_v52 = vld [vmem:[#allocation163_spill] sm:$0xff]  ;;  %v6388_v1 = vmul.f32 0.5, %v9259_v51 }
 0x8f7   : > { %v3230_v36 = vmul.f32 %v17332_v55, %v17331_v21  ;;  %v14784_v11 = vpop.permute.xlu0 %6030  ;;  %6840 = vperm.xlu1 %8739, %v6386_v54   ;;  %v5822_v4 = vadd.f32 %v17334_v56, %v4589_v17  ;;  %v17335_v3 = vld [vmem:[#allocation52_spill] sm:$0xff]  ;;  %v6406_v30 = vmax.f32 %v17337_v10, 1e-30  ;;  %v6213_v12 = vmax.f32 %v5765_v35, 1e-30  ;;  %v17342_v17 = vld [vmem:[#allocation197_spill] sm:$0xff] }
 0x8f8   : > { %17333 = vst [vmem:[#allocation284_spill] sm:$0xff] %v14784_v11  ;;  %v14788_v60 = vadd.f32 %v6131_v57, %v17335_v3  ;;  %v9574_v48 = vld [vmem:[%s10226_s28 + $0x40] sm:$0xff]  ;;  %v9261_v11 = vpop.eup %9260  ;;  %v5767_v56 = vadd.f32 %v17340_v14, %v4534_v61  ;;  %9270 = vrcp.f32 %v6404_v53  ;;  %v6408_v3 = vmax.f32 %v17342_v17, 1e-30  ;;  %v17343_v10 = vld [vmem:[#allocation350_spill] sm:$0xff] }
 0x8f9   : > { %v17338_v44 = vld [vmem:[#allocation204_spill] sm:$0xff]  ;;  %v4591_v27 = vadd.f32 %v17339_v52, %v3230_v36  ;;  %3582 = vperm.xlu0 %8738, %v17298_v37   ;;  %v6035_v21 = vpop.permute.xlu1 %6034  ;;  %9272 = vrcp.f32 %v6268_v13  ;;  %v6270_v51 = vmax.f32 %v5822_v4, 1e-30  ;;  %v17345_v37 = vld [vmem:[#allocation366_spill] sm:$0xff]  ;;  %v6390_v14 = vmul.f32 0.5, %v9261_v11 }
 0x8fa   : > { %17336 = vst [vmem:[#allocation27_spill] sm:$0xff] %v14788_v60  ;;  %v3175_v19 = vmul.f32 %v9574_v48, %v17338_v44  ;;  %v17341_v54 = vld [vmem:[#allocation320_spill] sm:$0xff]  ;;  %v17346_v52 = vld [vmem:[#allocation426_spill] sm:$0xff]  ;;  %9274 = vrcp.f32 %v6406_v30  ;;  %v6215_v13 = vmax.f32 %v5767_v56, 1e-30 }
 0x8fb   : > { %v6133_v57 = vmul.f32 %v6035_v21, %v17341_v54  ;;  %v14799_v48 = vpop.permute.xlu0 %6038  ;;  %6850 = vperm.xlu1 %8739, %v6388_v1   ;;  %v5824_v36 = vadd.f32 %v17345_v37, %v4591_v27  ;;  %v17348_v0 = vld [vmem:[#allocation214_spill] sm:$0xff]  ;;  %v9263_v54 = vpop.eup %9262  ;;  %9276 = vrcp.f32 %v6213_v12  ;;  %v17350_v4 = vld [vmem:[#allocation172_spill] sm:$0xff]  ;;  %v17351_v27 = vld [vmem:[#allocation319_spill] sm:$0xff] }
 0x8fc   : > { %v4536_v60 = vadd.f32 %v17343_v10, %v3175_v19  ;;  %17344 = vst [vmem:[#allocation381_spill] sm:$0xff] %v14799_v48  ;;  %v6410_v35 = vmax.f32 %v17348_v0, 1e-30  ;;  %v9575_v61 = vld [vmem:[%s10226_s28 + $0x50] sm:$0xff]  ;;  %9278 = vrcp.f32 %v6408_v3  ;;  %v17354_v37 = vld [vmem:[#allocation195_spill] sm:$0xff]  ;;  %v9576_v12 = vld [vmem:[%s10226_s28 + $0x60] sm:$0xff] }
 0x8fd   : > { %v14803_v44 = vadd.f32 %v6133_v57, %v17346_v52  ;;  %v17349_v21 = vld [vmem:[#allocation82_spill] sm:$0xff]  ;;  %3592 = vperm.xlu0 %8738, %v17308_v5   ;;  %v6043_v19 = vpop.permute.xlu1 %6042  ;;  %v17352_v57 = vld [vmem:[#allocation227_spill] sm:$0xff]  ;;  %9280 = vrcp.f32 %v6270_v51  ;;  %v6272_v11 = vmax.f32 %v5824_v36, 1e-30  ;;  %v17355_v5 = vld [vmem:[#allocation105_spill] sm:$0xff]  ;;  %v6392_v3 = vmul.f32 0.5, %v9263_v54 }
 0x8fe   : > { %v3177_v53 = vmul.f32 %v9575_v61, %v17349_v21  ;;  %v5769_v1 = vadd.f32 %v17350_v4, %v4536_v60  ;;  %v6135_v17 = vmul.f32 %v17351_v27, %v6043_v19  ;;  %v6412_v30 = vmax.f32 %v17352_v57, 1e-30  ;;  %v9265_v61 = vpop.eup %9264  ;;  %v17357_v56 = vld [vmem:[#allocation98_spill] sm:$0xff]  ;;  %v17358_v4 = vld [vmem:[#allocation233_spill] sm:$0xff]  ;;  %v17360_v57 = vld [vmem:[#allocation324_spill] sm:$0xff] }
 0x8ff   : > { %17347 = vst [vmem:[#allocation100_spill] sm:$0xff] %v14803_v44  ;;  %v14812_v10 = vpop.permute.xlu0 %6046  ;;  %6860 = vperm.xlu1 %8739, %v6390_v14   ;;  %9282 = vrcp.f32 %v6410_v35  ;;  %v3179_v60 = vmul.f32 %v9576_v12, %v17357_v56  ;;  %v6414_v19 = vmax.f32 %v17358_v4, 1e-30  ;;  %v9267_v14 = vpop.eup %9266  ;;  %v17359_v51 = vld [vmem:[#allocation118_spill] sm:$0xff]  ;;  %v9578_v56 = vld [vmem:[%s10226_s28 + $0x80] sm:$0xff] }
 0x900   : > { %17353 = vst [vmem:[#allocation101_spill] sm:$0xff] %v14812_v10  ;;  %v4538_v52 = vadd.f32 %v17354_v37, %v3177_v53  ;;  %v14816_v0 = vadd.f32 %v6135_v17, %v17355_v5  ;;  %9284 = vrcp.f32 %v6215_v13  ;;  %v6217_v53 = vmax.f32 %v5769_v1, 1e-30  ;;  %v17361_v37 = vld [vmem:[#allocation239_spill] sm:$0xff]  ;;  %v17362_v5 = vld [vmem:[#allocation357_spill] sm:$0xff]  ;;  %v9269_v54 = vpop.eup %9268  ;;  %v9577_v13 = vld [vmem:[%s10226_s28 + $0x70] sm:$0xff] }
 0x901   : > { %3602 = vperm.xlu0 %8738, %v17320_v41   ;;  %v6051_v27 = vpop.permute.xlu1 %6050  ;;  %9286 = vrcp.f32 %v6412_v30  ;;  %v6416_v35 = vmax.f32 %v17361_v37, 1e-30  ;;  %v17364_v41 = vld [vmem:[#allocation221_spill] sm:$0xff]  ;;  %v17366_v1 = vld [vmem:[#allocation112_spill] sm:$0xff]  ;;  %v6394_v30 = vmul.f32 0.5, %v9267_v14 }
 0x902   : > { %17356 = vst [vmem:[#allocation258_spill] sm:$0xff] %v14816_v0  ;;  %v5771_v36 = vadd.f32 %v17359_v51, %v4538_v52  ;;  %v6137_v17 = vmul.f32 %v6051_v27, %v17360_v57  ;;  %v4540_v0 = vadd.f32 %v17362_v5, %v3179_v60  ;;  %9288 = vrcp.f32 %v6272_v11  ;;  %v9271_v44 = vpop.eup %9270  ;;  %v17367_v51 = vld [vmem:[#allocation158_spill] sm:$0xff]  ;;  %v17371_v14 = vld [vmem:[#allocation76_spill] sm:$0xff] }
 0x903   : > { %v14826_v12 = vpop.permute.xlu0 %6054  ;;  %6870 = vperm.xlu1 %8739, %v6392_v3   ;;  %9290 = vrcp.f32 %v6414_v19  ;;  %v3181_v52 = vmul.f32 %v9577_v13, %v17366_v1  ;;  %v9273_v60 = vpop.eup %9272  ;;  %v17368_v3 = vld [vmem:[#allocation323_spill] sm:$0xff]  ;;  %v17369_v19 = vld [vmem:[#allocation365_spill] sm:$0xff] }
 0x904   : > { %17363 = vst [vmem:[#allocation253_spill] sm:$0xff] %v14826_v12  ;;  %v14829_v4 = vadd.f32 %v6137_v17, %v17364_v41  ;;  %v5773_v27 = vadd.f32 %v17367_v51, %v4540_v0  ;;  %9292 = vrcp.f32 %v6217_v53  ;;  %v6219_v37 = vmax.f32 %v5771_v36, 1e-30  ;;  %v9275_v11 = vpop.eup %9274  ;;  %v17373_v36 = vld [vmem:[#allocation133_spill] sm:$0xff]  ;;  %v17382_v12 = vld [vmem:[#allocation327_spill] sm:$0xff] }
 0x905   : > { %3612 = vperm.xlu0 %8738, %v17332_v55   ;;  %v6059_v57 = vpop.permute.xlu1 %6058  ;;  %9294 = vrcp.f32 %v6416_v35  ;;  %v6418_v17 = vmax.f32 %v17184_v20, 1e-30  ;;  %v4542_v41 = vadd.f32 %v17369_v19, %v3181_v52  ;;  %v9277_v0 = vpop.eup %9276  ;;  %v17374_v20 = vld [vmem:[#allocation246_spill] sm:$0xff] }
 0x906   : > { %17365 = vst [vmem:[#allocation387_spill] sm:$0xff] %v14829_v4  ;;  %v6139_v5 = vmul.f32 %v17368_v3, %v6059_v57  ;;  %v6338_v4 = vmul.f32 0.5, %v9269_v54  ;;  %v9279_v51 = vpop.eup %9278  ;;  %v6221_v53 = vmax.f32 %v5773_v27, 1e-30  ;;  %v6396_v57 = vmul.f32 0.5, %v9273_v60  ;;  %v17375_v54 = vld [vmem:[#allocation328_spill] sm:$0xff] }
 0x907   : > { %v14838_v13 = vpop.permute.xlu0 %6062  ;;  %6880 = vperm.xlu1 %8739, %v6394_v30   ;;  %v5775_v1 = vadd.f32 %v17373_v36, %v4542_v41  ;;  %v9281_v35 = vpop.eup %9280  ;;  %v3183_v21 = vmul.f32 %v9578_v56, %v17374_v20  ;;  %9296 = vrcp.f32 %v6219_v37  ;;  %v6420_v30 = vmax.f32 %v17191_v18, 1e-30  ;;  %v17377_v60 = vld [vmem:[#allocation371_spill] sm:$0xff]  ;;  %v17378_v41 = vld [vmem:[#allocation170_spill] sm:$0xff] }
 0x908   : > { %17370 = vst [vmem:[#allocation218_spill] sm:$0xff] %v14838_v13  ;;  %v14841_v55 = vadd.f32 %v6139_v5, %v17371_v14  ;;  %9298 = vrcp.f32 %v6418_v17  ;;  %v6341_v5 = vmul.f32 0.5, %v9277_v0  ;;  %v6531_v56 = vmul.f32 0.5, %v9265_v61  ;;  %v9579_v20 = vld [vmem:[%s10226_s28 + $0x90] sm:$0xff]  ;;  %v17380_v0 = vld [vmem:[#allocation93_spill] sm:$0xff] }
 0x909   : > { %6600 = vperm.xlu0 %8738, %v6338_v4   ;;  %v6067_v3 = vpop.permute.xlu1 %6066  ;;  %v9283_v19 = vpop.eup %9282  ;;  %v4544_v4 = vadd.f32 %v17377_v60, %v3183_v21  ;;  %9300 = vrcp.f32 %v6221_v53  ;;  %v6223_v37 = vmax.f32 %v5775_v1, 1e-30  ;;  %v6532_v18 = vmul.f32 0.5, %v9271_v44  ;;  %v17384_v44 = vld [vmem:[#allocation377_spill] sm:$0xff] }
 0x90a   : > { %17372 = vst [vmem:[#allocation269_spill] sm:$0xff] %v14841_v55  ;;  %v6141_v52 = vmul.f32 %v6067_v3, %v17375_v54  ;;  %v9285_v27 = vpop.eup %9284  ;;  %v6398_v3 = vmul.f32 0.5, %v9281_v35  ;;  %v3185_v13 = vmul.f32 %v9579_v20, %v17380_v0  ;;  %v6536_v60 = vmul.f32 0.5, %v9279_v51  ;;  %v17390_v0 = vld [vmem:[#allocation256_spill] sm:$0xff] }
 0x90b   : > { %v14848_v14 = vpop.permute.xlu0 %6070  ;;  %6890 = vperm.xlu1 %8739, %v6396_v57   ;;  %v9287_v55 = vpop.eup %9286  ;;  %9302 = vrcp.f32 %v6420_v30  ;;  %v6343_v61 = vmul.f32 0.5, %v9285_v27  ;;  %v6422_v51 = vmax.f32 %v17198_v31, 1e-30  ;;  %v17388_v30 = vld [vmem:[#allocation240_spill] sm:$0xff]  ;;  %v17389_v27 = vld [vmem:[#allocation71_spill] sm:$0xff] }
 0x90c   : > { %17376 = vst [vmem:[#allocation94_spill] sm:$0xff] %v14848_v14  ;;  %v14852_v36 = vadd.f32 %v6141_v52, %v17378_v41  ;;  %v9289_v54 = vpop.eup %9288  ;;  %v17381_v14 = vld [vmem:[#allocation194_spill] sm:$0xff]  ;;  %v6534_v52 = vmul.f32 0.5, %v9275_v11  ;;  %v6540_v35 = vmul.f32 0.5, %v9287_v55  ;;  %v4546_v41 = vadd.f32 %v17384_v44, %v3185_v13 }
 0x90d   : > { %6615 = vperm.xlu0 %8738, %v6341_v5   ;;  %v6075_v17 = vpop.permute.xlu1 %6074  ;;  %v5777_v57 = vadd.f32 %v17381_v14, %v4544_v4  ;;  %v9291_v21 = vpop.eup %9290  ;;  %v6538_v5 = vmul.f32 0.5, %v9283_v19  ;;  %v17387_v4 = vld [vmem:[#allocation106_spill] sm:$0xff]  ;;  %9304 = vrcp.f32 %v6223_v37  ;;  %v6400_v11 = vmul.f32 0.5, %v9289_v54 }
 0x90e   : > { %17379 = vst [vmem:[#allocation395_spill] sm:$0xff] %v14852_v36  ;;  %v6143_v10 = vmul.f32 %v17382_v12, %v6075_v17  ;;  %v9293_v1 = vpop.eup %9292  ;;  %v17385_v36 = vld [vmem:[#allocation69_spill] sm:$0xff]  ;;  %v6979_v12 = vmul.f32 %v17387_v4, %v6531_v56  ;;  %v4848_v17 = vmul.f32 %v17389_v27, %v17388_v30  ;;  %v14875_v31 = vmul.f32 0.5, %v9291_v21  ;;  %v17394_v54 = vld [vmem:[#allocation78_spill] sm:$0xff]  ;;  %v17399_v21 = vld [vmem:[#allocation252_spill] sm:$0xff] }
 0x90f   : > { %v14858_v53 = vpop.permute.xlu0 %6078  ;;  %6900 = vperm.xlu1 %8739, %v6398_v3   ;;  %v9295_v14 = vpop.eup %9294  ;;  %v9580_v3 = vld [vmem:[%s10226_s28 + $0xa0] sm:$0xff]  ;;  %v6225_v19 = vmax.f32 %v5777_v57, 1e-30  ;;  %v6345_v56 = vmul.f32 0.5, %v9293_v1  ;;  %v17395_v4 = vld [vmem:[#allocation102_spill] sm:$0xff]  ;;  %9306 = vrcp.f32 %v6422_v51  ;;  %v17400_v1 = vld [vmem:[#allocation25_spill] sm:$0xff] }
 0x910   : > { %17383 = vst [vmem:[#allocation287_spill] sm:$0xff] %v14858_v53  ;;  %v14862_v20 = vadd.f32 %v6143_v10, %v17385_v36  ;;  %v3187_v55 = vmul.f32 %v9580_v3, %v17390_v0  ;;  %v17391_v53 = vld [vmem:[#allocation134_spill] sm:$0xff]  ;;  %v14881_v30 = vmul.f32 %v17395_v4, %v6540_v35  ;;  %v14883_v57 = vmul.f32 0.5, %v9295_v14 }
 0x911   : > { %6625 = vperm.xlu0 %8738, %v6343_v61   ;;  %v5779_v13 = vadd.f32 %v17391_v53, %v4546_v41  ;;  %v17392_v10 = vld [vmem:[#allocation242_spill] sm:$0xff]  ;;  %v9297_v37 = vpop.eup %9296  ;;  %v14878_v61 = vmul.f32 %v6534_v52, %v17394_v54  ;;  %v17396_v53 = vld [vmem:[#allocation383_spill] sm:$0xff]  ;;  %v17401_v54 = vld [vmem:[#allocation120_spill] sm:$0xff]  ;;  %9308 = vrcp.f32 %v6225_v19 }
 0x912   : > { %17386 = vst [vmem:[#allocation125_spill] sm:$0xff] %v14862_v20  ;;  %v6596_v44 = vpop.permute.xlu1 %6595  ;;  %v6980_v36 = vmul.f32 %v17392_v10, %v6532_v18  ;;  %v17393_v20 = vld [vmem:[#allocation86_spill] sm:$0xff]  ;;  %v4548_v41 = vadd.f32 %v17396_v53, %v3187_v55  ;;  %v9299_v27 = vpop.eup %9298  ;;  %v14889_v10 = vmul.f32 %v6538_v5, %v17399_v21  ;;  %v6347_v58 = vmul.f32 0.5, %v9297_v37  ;;  %v17407_v19 = vld [vmem:[#allocation389_spill] sm:$0xff] }
 0x913   : > { %v14873_v48 = vmul.f32 %v17393_v20, %v6536_v60  ;;  %6910 = vperm.xlu1 %8739, %v6400_v11   ;;  %v17397_v60 = vld [vmem:[#allocation119_spill] sm:$0xff]  ;;  %v9581_v52 = vld [vmem:[%s10226_s28 + $0xb0] sm:$0xff]  ;;  %v6227_v14 = vmax.f32 %v5779_v13, 1e-30  ;;  %v9301_v22 = vpop.eup %9300 }
 0x914   : > { %v3298_v18 = vpop.permute.xlu0 %3297  ;;  %v17398_v20 = vld [vmem:[#allocation31_spill] sm:$0xff]  ;;  %v3189_v35 = vmul.f32 %v9581_v52, %v17401_v54  ;;  %v17402_v0 = vld [vmem:[#allocation210_spill] sm:$0xff]  ;;  %v14901_v52 = vmul.f32 0.5, %v9299_v27 }
 0x915   : > { %v4859_v3 = vmul.f32 %v17398_v20, %v17397_v60  ;;  %v3615_v11 = vmul.f32 %v3298_v18, %v17400_v1  ;;  %6635 = vperm.xlu0 %8738, %v6345_v56   ;;  %v5781_v55 = vadd.f32 %v17402_v0, %v4548_v41  ;;  %v17404_v60 = vld [vmem:[#allocation374_spill] sm:$0xff]  ;;  %v17406_v18 = vld [vmem:[#allocation109_spill] sm:$0xff]  ;;  %v6424_v1 = vmax.f32 %v17203_v43, 1e-30  ;;  %v9303_v0 = vpop.eup %9302  ;;  %v9582_v41 = vld [vmem:[%s10226_s28 + $0xc0] sm:$0xff] }
 0x916   : > { %v6606_v53 = vpop.permute.xlu1 %6605  ;;  %v6081_v20 = vmul.f32 %v17404_v60, %v17403_v28  ;;  %v4857_v56 = vmul.f32 %v17406_v18, %v17405_v63  ;;  %v4550_v13 = vadd.f32 %v17407_v19, %v3189_v35  ;;  %v3191_v37 = vmul.f32 %v9582_v41, %v17408_v15  ;;  %v17410_v60 = vld [vmem:[#allocation231_spill] sm:$0xff] }
 0x917   : > { %v4912_v5 = vadd.f32 %v4848_v17, %v3615_v11  ;;  %v6915_v51 = vmul.f32 %v6606_v53, %v14504_v42  ;;  %v6349_v42 = vmul.f32 0.5, %v9301_v22  ;;  %9310 = vrcp.f32 %v6227_v14  ;;  %v17409_v11 = vld [vmem:[#allocation144_spill] sm:$0xff]  ;;  %v9305_v53 = vpop.eup %9304  ;;  %v17413_v22 = vld [vmem:[#allocation397_spill] sm:$0xff] }
 0x918   : > { %v3343_v54 = vpop.permute.xlu0 %3342  ;;  %v6229_v63 = vmax.f32 %v5781_v55, 1e-30  ;;  %v5783_v43 = vadd.f32 %v17409_v11, %v4550_v13  ;;  %v6090_v35 = vmul.f32 %v14540_v9, %v17410_v60  ;;  %9312 = vrcp.f32 %v6424_v1  ;;  %v17414_v13 = vld [vmem:[#allocation77_spill] sm:$0xff] }
 0x919   : > { %v6145_v38 = vadd.f32 %v6081_v20, %v4912_v5  ;;  %v7043_v28 = vadd.f32 %v6979_v12, %v6915_v51  ;;  %v3624_v17 = vmul.f32 %v3343_v54, %v17399_v21  ;;  %6645 = vperm.xlu0 %8738, %v6347_v58   ;;  %v14911_v20 = vmul.f32 0.5, %v9303_v0  ;;  %v9583_v12 = vld [vmem:[%s10226_s28 + $0xd0] sm:$0xff]  ;;  %v17412_v21 = vld [vmem:[#allocation255_spill] sm:$0xff]  ;;  %v9307_v0 = vpop.eup %9306 }
 0x91a   : > { %v6611_v27 = vpop.permute.xlu1 %6610  ;;  %v3193_v58 = vmul.f32 %v9583_v12, %v17412_v21  ;;  %v4552_v54 = vadd.f32 %v17413_v22, %v3191_v37  ;;  %9314 = vrcp.f32 %v6229_v63  ;;  %v17418_v63 = vld [vmem:[#allocation136_spill] sm:$0xff] }
 0x91b   : > { %v6913_v18 = vmul.f32 %v6596_v44, %v6145_v38  ;;  %v4921_v19 = vadd.f32 %v4857_v56, %v3624_v17  ;;  %v6916_v41 = vmul.f32 %v6611_v27, %v17411_v24  ;;  %v6351_v38 = vmul.f32 0.5, %v9305_v53  ;;  %v17415_v44 = vld [vmem:[#allocation79_spill] sm:$0xff]  ;;  %v17416_v17 = vld [vmem:[#allocation286_spill] sm:$0xff]  ;;  %v17417_v27 = vld [vmem:[#allocation33_spill] sm:$0xff] }
 0x91c   : > { %v3353_v14 = vpop.permute.xlu0 %3352  ;;  %v6231_v24 = vmax.f32 %v5783_v43, 1e-30  ;;  %v5785_v56 = vadd.f32 %v17415_v44, %v4552_v54  ;;  %v6092_v37 = vmul.f32 %v17416_v17, %v14551_v49  ;;  %v14926_v60 = vmul.f32 %v17417_v27, %v14883_v57  ;;  %v17419_v53 = vld [vmem:[#allocation110_spill] sm:$0xff]  ;;  %v17423_v57 = vld [vmem:[#allocation267_spill] sm:$0xff]  ;;  %v9584_v54 = vld [vmem:[%s10226_s28 + $0xe0] sm:$0xff] }
 0x91d   : > { %v7044_v55 = vadd.f32 %v6980_v36, %v6916_v41  ;;  %v3626_v5 = vmul.f32 %v17395_v4, %v3353_v14  ;;  %6655 = vperm.xlu0 %8738, %v6349_v42   ;;  %v6154_v51 = vadd.f32 %v6090_v35, %v4921_v19  ;;  %v14918_v9 = vadd.f32 %v17414_v13, %v6913_v18  ;;  %v9309_v42 = vpop.eup %9308  ;;  %v17420_v35 = vld [vmem:[#allocation270_spill] sm:$0xff]  ;;  %v17421_v18 = vld [vmem:[#allocation129_spill] sm:$0xff]  ;;  %v17422_v41 = vld [vmem:[#allocation403_spill] sm:$0xff] }
 0x91e   : > { %v6621_v1 = vpop.permute.xlu1 %6620  ;;  %v4863_v43 = vmul.f32 %v17419_v53, %v17418_v63  ;;  %v4861_v19 = vmul.f32 %v17421_v18, %v17420_v35  ;;  %v4554_v12 = vadd.f32 %v17422_v41, %v3193_v58  ;;  %v6426_v49 = vmax.f32 %v17208_v23, 1e-30  ;;  %v17424_v14 = vld [vmem:[#allocation259_spill] sm:$0xff]  ;;  %v9585_v35 = vld [vmem:[%s10226_s28 + $0xf0] sm:$0xff]  ;;  %v17428_v18 = vld [vmem:[#allocation261_spill] sm:$0xff] }
 0x91f   : > { %v7855_v11 = vpack.c.bf16 %v7044_v55, %v7043_v28  ;;  %v4923_v36 = vadd.f32 %v4859_v3, %v3626_v5  ;;  %v6918_v4 = vmul.f32 %v6621_v1, %v14523_v46  ;;  %v3195_v55 = vmul.f32 %v9584_v54, %v17424_v14  ;;  %v17425_v5 = vld [vmem:[#allocation165_spill] sm:$0xff] }
 0x920   : > { %v3363_v22 = vpop.permute.xlu0 %3362  ;;  %9316 = vrcp.f32 %v6231_v24  ;;  %v6233_v58 = vmax.f32 %v5785_v56, 1e-30  ;;  %v5787_v13 = vadd.f32 %v17425_v5, %v4554_v12  ;;  %v6353_v44 = vmul.f32 0.5, %v9309_v42  ;;  %v17426_v1 = vld [vmem:[#allocation289_spill] sm:$0xff]  ;;  %v17427_v56 = vld [vmem:[#allocation406_spill] sm:$0xff] }
 0x921   : > { %8007 = vst [vmem:[%s14936_s4 + $0x8] sm:$0xff] %v7855_v11   ;;  %v14940_v46 = vadd.f32 %v14878_v61, %v6918_v4  ;;  %v3628_v3 = vmul.f32 %v3363_v22, %v17423_v57  ;;  %6665 = vperm.xlu0 %8738, %v6351_v38   ;;  %v6156_v28 = vadd.f32 %v6092_v37, %v4923_v36  ;;  %v9311_v4 = vpop.eup %9310  ;;  %v6428_v37 = vmax.f32 %v17213_v32, 1e-30  ;;  %v17429_v32 = vld [vmem:[#allocation90_spill] sm:$0xff]  ;;  %v17430_v22 = vld [vmem:[#allocation288_spill] sm:$0xff] }
 0x922   : > { %v6631_v23 = vpop.permute.xlu1 %6630  ;;  %v6094_v17 = vmul.f32 %v14562_v8, %v17426_v1  ;;  %v14951_v38 = vmul.f32 %v14875_v31, %v17423_v57  ;;  %v14954_v24 = vmul.f32 0.5, %v9307_v0  ;;  %v4556_v36 = vadd.f32 %v17427_v56, %v3195_v55  ;;  %v9313_v53 = vpop.eup %9312  ;;  %v17432_v55 = vld [vmem:[#allocation135_spill] sm:$0xff]  ;;  %v17433_v5 = vld [vmem:[#allocation142_spill] sm:$0xff] }
 0x923   : > { %v4925_v11 = vadd.f32 %v4861_v19, %v3628_v3  ;;  %v6920_v61 = vmul.f32 %v6631_v23, %v14536_v26  ;;  %9318 = vrcp.f32 %v6426_v49  ;;  %v3197_v31 = vmul.f32 %v9585_v35, %v17428_v18  ;;  %v17437_v56 = vld [vmem:[#allocation139_spill] sm:$0xff] }
 0x924   : > { %v3373_v63 = vpop.permute.xlu0 %3372  ;;  %9320 = vrcp.f32 %v6233_v58  ;;  %v6235_v19 = vmax.f32 %v5787_v13, 1e-30  ;;  %v5789_v0 = vadd.f32 %v17429_v32, %v4556_v36  ;;  %v6355_v12 = vmul.f32 0.5, %v9311_v4  ;;  %v9315_v3 = vpop.eup %9314  ;;  %v17434_v58 = vld [vmem:[#allocation408_spill] sm:$0xff]  ;;  %v17439_v32 = vld [vmem:[#allocation147_spill] sm:$0xff] }
 0x925   : > { %v14958_v42 = vadd.f32 %v14873_v48, %v6920_v61  ;;  %v3630_v8 = vmul.f32 %v17417_v27, %v3373_v63  ;;  %6675 = vperm.xlu0 %8738, %v6353_v44   ;;  %v6158_v26 = vadd.f32 %v6094_v17, %v4925_v11  ;;  %v6096_v49 = vmul.f32 %v17430_v22, %v14573_v59  ;;  %v17431_v27 = vld [vmem:[#allocation59_spill] sm:$0xff]  ;;  %v17435_v59 = vld [vmem:[#allocation36_spill] sm:$0xff] }
 0x926   : > { %v6641_v41 = vpop.permute.xlu1 %6640  ;;  %v14968_v54 = vmul.f32 %v17431_v27, %v14911_v20  ;;  %v4865_v23 = vmul.f32 %v17433_v5, %v17432_v55  ;;  %9322 = vrcp.f32 %v6428_v37  ;;  %v4558_v13 = vadd.f32 %v17434_v58, %v3197_v31  ;;  %v9586_v11 = vld [vmem:[%s10226_s28 + $0x100] sm:$0xff]  ;;  %v17442_v55 = vld [vmem:[#allocation178_spill] sm:$0xff]  ;;  %v17443_v58 = vld [vmem:[#allocation121_spill] sm:$0xff] }
 0x927   : > { %v4927_v48 = vadd.f32 %v4863_v43, %v3630_v8  ;;  %v6922_v57 = vmul.f32 %v6641_v41, %v6154_v51  ;;  %v6430_v1 = vmax.f32 %v17217_v33, 1e-30  ;;  %v17436_v61 = vld [vmem:[#allocation264_spill] sm:$0xff]  ;;  %9324 = vrcp.f32 %v6235_v19  ;;  %v17438_v8 = vld [vmem:[#allocation235_spill] sm:$0xff]  ;;  %v17440_v41 = vld [vmem:[#allocation61_spill] sm:$0xff] }
 0x928   : > { %v3383_v44 = vpop.permute.xlu0 %3382  ;;  %v3199_v20 = vmul.f32 %v9586_v11, %v17436_v61  ;;  %v6237_v4 = vmax.f32 %v5789_v0, 1e-30  ;;  %v5791_v36 = vadd.f32 %v17437_v56, %v4558_v13  ;;  %v6357_v63 = vmul.f32 0.5, %v9315_v3  ;;  %v17441_v0 = vld [vmem:[#allocation410_spill] sm:$0xff]  ;;  %v17446_v56 = vld [vmem:[#allocation161_spill] sm:$0xff] }
 0x929   : > { %v14975_v17 = vadd.f32 %v14889_v10, %v6922_v57  ;;  %v3632_v43 = vmul.f32 %v3383_v44, %v17435_v59  ;;  %6685 = vperm.xlu0 %8738, %v6355_v12   ;;  %v6160_v51 = vadd.f32 %v6096_v49, %v4927_v48  ;;  %v6098_v33 = vmul.f32 %v14584_v6, %v17438_v8  ;;  %v9587_v3 = vld [vmem:[%s10226_s28 + $0x110] sm:$0xff] }
 0x92a   : > { %v6651_v37 = vpop.permute.xlu1 %6650  ;;  %v9317_v31 = vpop.eup %9316  ;;  %v4867_v12 = vmul.f32 %v17440_v41, %v17439_v32  ;;  %v14987_v22 = vmul.f32 %v14901_v52, %v17435_v59  ;;  %v6552_v19 = vmul.f32 0.5, %v9313_v53  ;;  %v4560_v49 = vadd.f32 %v17441_v0, %v3199_v20  ;;  %v17444_v59 = vld [vmem:[#allocation292_spill] sm:$0xff] }
 0x92b   : > { %v4929_v35 = vadd.f32 %v4865_v23, %v3632_v43  ;;  %v6924_v10 = vmul.f32 %v6651_v37, %v6156_v28  ;;  %9326 = vrcp.f32 %v6430_v1  ;;  %v3201_v5 = vmul.f32 %v9587_v3, %v17442_v55  ;;  %v17447_v37 = vld [vmem:[#allocation63_spill] sm:$0xff]  ;;  %v17452_v0 = vld [vmem:[#allocation332_spill] sm:$0xff] }
 0x92c   : > { %v3393_v48 = vpop.permute.xlu0 %3392  ;;  %9328 = vrcp.f32 %v6237_v4  ;;  %v6239_v23 = vmax.f32 %v5791_v36, 1e-30  ;;  %v5793_v52 = vadd.f32 %v17443_v58, %v4560_v49  ;;  %v6359_v44 = vmul.f32 0.5, %v9317_v31  ;;  %v17448_v4 = vld [vmem:[#allocation213_spill] sm:$0xff] }
 0x92d   : > { %v14991_v57 = vadd.f32 %v14881_v30, %v6924_v10  ;;  %v3634_v6 = vmul.f32 %v17431_v27, %v3393_v48  ;;  %6695 = vperm.xlu0 %8738, %v6357_v63   ;;  %v6162_v28 = vadd.f32 %v6098_v33, %v4929_v35  ;;  %v9319_v53 = vpop.eup %9318  ;;  %v6100_v1 = vmul.f32 %v17444_v59, %v14595_v62  ;;  %v17445_v27 = vld [vmem:[#allocation193_spill] sm:$0xff] }
 0x92e   : > { %v6661_v13 = vpop.permute.xlu1 %6660  ;;  %v9321_v11 = vpop.eup %9320  ;;  %v15000_v20 = vmul.f32 %v17445_v27, %v6552_v19  ;;  %v4871_v63 = vmul.f32 %v17447_v37, %v17446_v56  ;;  %v17449_v36 = vld [vmem:[#allocation153_spill] sm:$0xff]  ;;  %v6432_v31 = vmax.f32 %v17221_v40, 1e-30  ;;  %v9588_v19 = vld [vmem:[%s10226_s28 + $0x120] sm:$0xff]  ;;  %9330 = vrcp.f32 %v6239_v23  ;;  %v17455_v23 = vld [vmem:[#allocation415_spill] sm:$0xff] }
 0x92f   : > { %v4931_v30 = vadd.f32 %v4867_v12, %v3634_v6  ;;  %v6926_v43 = vmul.f32 %v6661_v13, %v6158_v26  ;;  %v4869_v8 = vmul.f32 %v17449_v36, %v17448_v4  ;;  %v17450_v33 = vld [vmem:[#allocation57_spill] sm:$0xff]  ;;  %v3203_v49 = vmul.f32 %v9588_v19, %v17452_v0  ;;  %v17454_v13 = vld [vmem:[#allocation295_spill] sm:$0xff]  ;;  %v9589_v37 = vld [vmem:[%s10226_s28 + $0x130] sm:$0xff] }
 0x930   : > { %v4562_v35 = vadd.f32 %v17450_v33, %v3201_v5  ;;  %v3403_v10 = vpop.permute.xlu0 %3402  ;;  %v17451_v62 = vld [vmem:[#allocation209_spill] sm:$0xff]  ;;  %v9323_v12 = vpop.eup %9322  ;;  %v6241_v48 = vmax.f32 %v5793_v52, 1e-30  ;;  %v6361_v5 = vmul.f32 0.5, %v9321_v11  ;;  %v6102_v40 = vmul.f32 %v14606_v16, %v17454_v13  ;;  %v17456_v4 = vld [vmem:[#allocation335_spill] sm:$0xff]  ;;  %v17459_v19 = vld [vmem:[#allocation92_spill] sm:$0xff] }
 0x931   : > { %v15009_v32 = vadd.f32 %v14951_v38, %v6926_v43  ;;  %v3636_v26 = vmul.f32 %v3403_v10, %v17451_v62  ;;  %6705 = vperm.xlu0 %8738, %v6359_v44   ;;  %v6164_v41 = vadd.f32 %v6100_v1, %v4931_v30  ;;  %v17453_v6 = vld [vmem:[#allocation149_spill] sm:$0xff]  ;;  %v9325_v43 = vpop.eup %9324  ;;  %v15019_v44 = vmul.f32 %v14954_v24, %v17451_v62  ;;  %v17458_v10 = vld [vmem:[#allocation294_spill] sm:$0xff] }
 0x932   : > { %v5795_v3 = vadd.f32 %v17453_v6, %v4562_v35  ;;  %v6671_v58 = vpop.permute.xlu1 %6670  ;;  %v6434_v1 = vmax.f32 %v17225_v39, 1e-30  ;;  %v15022_v30 = vmul.f32 0.5, %v9319_v53  ;;  %v4564_v52 = vadd.f32 %v17455_v23, %v3203_v49  ;;  %v17460_v49 = vld [vmem:[#allocation166_spill] sm:$0xff] }
 0x933   : > { %v4933_v38 = vadd.f32 %v4869_v8, %v3636_v26  ;;  %v6928_v59 = vmul.f32 %v6671_v58, %v6160_v51  ;;  %9332 = vrcp.f32 %v6432_v31  ;;  %v3205_v36 = vmul.f32 %v9589_v37, %v17456_v4  ;;  %v17457_v8 = vld [vmem:[#allocation107_spill] sm:$0xff] }
 0x934   : > { %v3413_v56 = vpop.permute.xlu0 %3412  ;;  %9334 = vrcp.f32 %v6241_v48  ;;  %v6243_v24 = vmax.f32 %v5795_v3, 1e-30  ;;  %v5797_v39 = vadd.f32 %v17457_v8, %v4564_v52  ;;  %v6363_v35 = vmul.f32 0.5, %v9325_v43  ;;  %v17461_v58 = vld [vmem:[#allocation35_spill] sm:$0xff] }
 0x935   : > { %v15026_v11 = vadd.f32 %v14926_v60, %v6928_v59  ;;  %v3638_v16 = vmul.f32 %v17445_v27, %v3413_v56  ;;  %6715 = vperm.xlu0 %8738, %v6361_v5   ;;  %v6166_v51 = vadd.f32 %v6102_v40, %v4933_v38  ;;  %v9327_v33 = vpop.eup %9326  ;;  %v6104_v31 = vmul.f32 %v17458_v10, %v14617_v47  ;;  %v17462_v40 = vld [vmem:[#allocation83_spill] sm:$0xff] }
 0x936   : > { %v6681_v53 = vpop.permute.xlu1 %6680  ;;  %v9329_v26 = vpop.eup %9328  ;;  %9336 = vrcp.f32 %v6434_v1  ;;  %v6556_v27 = vmul.f32 0.5, %v9323_v12  ;;  %v4873_v6 = vmul.f32 %v17460_v49, %v17459_v19  ;;  %v4566_v48 = vadd.f32 %v17461_v58, %v3205_v36  ;;  %v17464_v43 = vld [vmem:[#allocation167_spill] sm:$0xff]  ;;  %v17470_v19 = vld [vmem:[#allocation345_spill] sm:$0xff]  ;;  %v17471_v58 = vld [vmem:[#allocation224_spill] sm:$0xff] }
 0x937   : > { %v4935_v60 = vadd.f32 %v4871_v63, %v3638_v16  ;;  %v6930_v62 = vmul.f32 %v6681_v53, %v6162_v28  ;;  %v6436_v5 = vmax.f32 %v17230_v29, 1e-30  ;;  %v9590_v63 = vld [vmem:[%s10226_s28 + $0x140] sm:$0xff]  ;;  %9338 = vrcp.f32 %v6243_v24  ;;  %v17465_v56 = vld [vmem:[#allocation299_spill] sm:$0xff]  ;;  %v17468_v24 = vld [vmem:[#allocation50_spill] sm:$0xff] }
 0x938   : > { %v3423_v3 = vpop.permute.xlu0 %3422  ;;  %v17463_v28 = vld [vmem:[#allocation340_spill] sm:$0xff]  ;;  %v6245_v12 = vmax.f32 %v5797_v39, 1e-30  ;;  %v5799_v1 = vadd.f32 %v17464_v43, %v4566_v48  ;;  %v6365_v52 = vmul.f32 0.5, %v9329_v26  ;;  %v6106_v29 = vmul.f32 %v14628_v45, %v17465_v56  ;;  %v9331_v37 = vpop.eup %9330  ;;  %v17466_v36 = vld [vmem:[#allocation171_spill] sm:$0xff] }
 0x939   : > { %v15039_v13 = vadd.f32 %v14987_v22, %v6930_v62  ;;  %v3640_v38 = vmul.f32 %v3423_v3, %v17462_v40  ;;  %6725 = vperm.xlu0 %8738, %v6363_v35   ;;  %v6168_v47 = vadd.f32 %v6104_v31, %v4935_v60  ;;  %v3207_v59 = vmul.f32 %v9590_v63, %v17463_v28  ;;  %v17467_v8 = vld [vmem:[#allocation211_spill] sm:$0xff]  ;;  %v17469_v62 = vld [vmem:[#allocation140_spill] sm:$0xff] }
 0x93a   : > { %v6691_v23 = vpop.permute.xlu1 %6690  ;;  %v4875_v53 = vmul.f32 %v17467_v8, %v17466_v36  ;;  %v6438_v35 = vmax.f32 %v17235_v25, 1e-30  ;;  %v15050_v10 = vmul.f32 0.5, %v9327_v33  ;;  %9340 = vrcp.f32 %v6436_v5  ;;  %v17474_v56 = vld [vmem:[#allocation96_spill] sm:$0xff] }
 0x93b   : > { %v4937_v16 = vadd.f32 %v4873_v6, %v3640_v38  ;;  %v6932_v22 = vmul.f32 %v6691_v23, %v6164_v41  ;;  %v4568_v39 = vadd.f32 %v17468_v24, %v3207_v59  ;;  %v9591_v41 = vld [vmem:[%s10226_s28 + $0x150] sm:$0xff]  ;;  %9342 = vrcp.f32 %v6245_v12  ;;  %v17473_v12 = vld [vmem:[#allocation424_spill] sm:$0xff] }
 0x93c   : > { %v3433_v31 = vpop.permute.xlu0 %3432  ;;  %v3209_v49 = vmul.f32 %v9591_v41, %v17470_v19  ;;  %v6247_v6 = vmax.f32 %v5799_v1, 1e-30  ;;  %v6367_v3 = vmul.f32 0.5, %v9331_v37  ;;  %v17472_v38 = vld [vmem:[#allocation298_spill] sm:$0xff]  ;;  %v15063_v43 = vmul.f32 %v17469_v62, %v6556_v27  ;;  %v17476_v37 = vld [vmem:[#allocation39_spill] sm:$0xff]  ;;  %v9592_v8 = vld [vmem:[%s10226_s28 + $0x160] sm:$0xff] }
 0x93d   : > { %v15054_v60 = vadd.f32 %v14968_v54, %v6932_v22  ;;  %v3642_v26 = vmul.f32 %v17469_v62, %v3433_v31  ;;  %6735 = vperm.xlu0 %8738, %v6365_v52   ;;  %v6170_v45 = vadd.f32 %v6106_v29, %v4937_v16  ;;  %v5801_v25 = vadd.f32 %v17471_v58, %v4568_v39  ;;  %v9333_v48 = vpop.eup %9332  ;;  %v17475_v29 = vld [vmem:[#allocation177_spill] sm:$0xff]  ;;  %v17479_v62 = vld [vmem:[#allocation303_spill] sm:$0xff] }
 0x93e   : > { %v6701_v33 = vpop.permute.xlu1 %6700  ;;  %v6108_v5 = vmul.f32 %v17472_v38, %v14639_v50  ;;  %v9335_v59 = vpop.eup %9334  ;;  %9344 = vrcp.f32 %v6438_v35  ;;  %v6440_v23 = vmax.f32 %v17240_v34, 1e-30  ;;  %v4570_v1 = vadd.f32 %v17473_v12, %v3209_v49  ;;  %v17477_v27 = vld [vmem:[#allocation349_spill] sm:$0xff]  ;;  %v17478_v34 = vld [vmem:[#allocation183_spill] sm:$0xff] }
 0x93f   : > { %v4939_v54 = vadd.f32 %v4875_v53, %v3642_v26  ;;  %v6934_v63 = vmul.f32 %v6701_v33, %v6166_v51  ;;  %v4877_v16 = vmul.f32 %v17475_v29, %v17474_v56  ;;  %v3211_v53 = vmul.f32 %v9592_v8, %v17477_v27 }
 0x940   : > { %v3443_v52 = vpop.permute.xlu0 %3442  ;;  %v9337_v36 = vpop.eup %9336  ;;  %9346 = vrcp.f32 %v6247_v6  ;;  %v6249_v35 = vmax.f32 %v5801_v25, 1e-30  ;;  %v5803_v24 = vadd.f32 %v17478_v34, %v4570_v1  ;;  %v6369_v31 = vmul.f32 0.5, %v9335_v59  ;;  %v17481_v25 = vld [vmem:[#allocation405_spill] sm:$0xff]  ;;  %v17483_v59 = vld [vmem:[#allocation40_spill] sm:$0xff] }
 0x941   : > { %v15070_v22 = vadd.f32 %v15019_v44, %v6934_v63  ;;  %v3644_v50 = vmul.f32 %v3443_v52, %v17476_v37  ;;  %6745 = vperm.xlu0 %8738, %v6367_v3   ;;  %v6172_v51 = vadd.f32 %v6108_v5, %v4939_v54  ;;  %v6110_v26 = vmul.f32 %v14650_v2, %v17479_v62  ;;  %v9339_v49 = vpop.eup %9338  ;;  %v17480_v3 = vld [vmem:[#allocation53_spill] sm:$0xff]  ;;  %v17482_v5 = vld [vmem:[#allocation104_spill] sm:$0xff] }
 0x942   : > { %v6711_v39 = vpop.permute.xlu1 %6710  ;;  %v7002_v58 = vmul.f32 %v15022_v30, %v17462_v40  ;;  %v6560_v33 = vmul.f32 0.5, %v9333_v48  ;;  %9348 = vrcp.f32 %v6440_v23  ;;  %v4572_v38 = vadd.f32 %v17480_v3, %v3211_v53  ;;  %v17484_v1 = vld [vmem:[#allocation128_spill] sm:$0xff]  ;;  %v17485_v40 = vld [vmem:[#allocation185_spill] sm:$0xff] }
 0x943   : > { %v4941_v44 = vadd.f32 %v4877_v16, %v3644_v50  ;;  %v6936_v41 = vmul.f32 %v6711_v39, %v6168_v47  ;;  %v4879_v54 = vmul.f32 %v17482_v5, %v17481_v25  ;;  %v9593_v47 = vld [vmem:[%s10226_s28 + $0x170] sm:$0xff]  ;;  %9350 = vrcp.f32 %v6249_v35  ;;  %v9594_v25 = vld [vmem:[%s10226_s28 + $0x180] sm:$0xff] }
 0x944   : > { %v3453_v6 = vpop.permute.xlu0 %3452  ;;  %v3213_v52 = vmul.f32 %v9593_v47, %v17484_v1  ;;  %v6251_v30 = vmax.f32 %v5803_v24, 1e-30  ;;  %v5805_v48 = vadd.f32 %v17485_v40, %v4572_v38  ;;  %v9341_v56 = vpop.eup %9340  ;;  %v6371_v29 = vmul.f32 0.5, %v9339_v49  ;;  %v17486_v16 = vld [vmem:[#allocation302_spill] sm:$0xff]  ;;  %v17488_v24 = vld [vmem:[#allocation67_spill] sm:$0xff]  ;;  %v17491_v38 = vld [vmem:[#allocation113_spill] sm:$0xff] }
 0x945   : > { %v15084_v63 = vadd.f32 %v15000_v20, %v6936_v41  ;;  %v3646_v12 = vmul.f32 %v17483_v59, %v3453_v6  ;;  %6755 = vperm.xlu0 %8738, %v6369_v31   ;;  %v6174_v2 = vadd.f32 %v6110_v26, %v4941_v44  ;;  %v6112_v50 = vmul.f32 %v17486_v16, %v14661_v7  ;;  %v9343_v53 = vpop.eup %9342  ;;  %v17487_v31 = vld [vmem:[#allocation343_spill] sm:$0xff]  ;;  %v17495_v40 = vld [vmem:[#allocation60_spill] sm:$0xff] }
 0x946   : > { %v6721_v23 = vpop.permute.xlu1 %6720  ;;  %v15093_v34 = vmul.f32 %v17483_v59, %v6560_v33  ;;  %v15095_v39 = vmul.f32 0.5, %v9337_v36  ;;  %v6442_v35 = vmax.f32 %v17487_v31, 1e-30  ;;  %v4574_v62 = vadd.f32 %v17488_v24, %v3213_v52  ;;  %v17489_v44 = vld [vmem:[#allocation123_spill] sm:$0xff]  ;;  %v17492_v33 = vld [vmem:[#allocation356_spill] sm:$0xff] }
 0x947   : > { %v4943_v20 = vadd.f32 %v4879_v54, %v3646_v12  ;;  %v6938_v8 = vmul.f32 %v6721_v23, %v6170_v45  ;;  %v17490_v41 = vld [vmem:[#allocation407_spill] sm:$0xff]  ;;  %v3215_v5 = vmul.f32 %v9594_v25, %v17492_v33  ;;  %9352 = vrcp.f32 %v6251_v30  ;;  %v17498_v24 = vld [vmem:[#allocation220_spill] sm:$0xff] }
 0x948   : > { %v3463_v26 = vpop.permute.xlu0 %3462  ;;  %v4881_v49 = vmul.f32 %v17490_v41, %v17489_v44  ;;  %v9345_v6 = vpop.eup %9344  ;;  %v6253_v36 = vmax.f32 %v5805_v48, 1e-30  ;;  %v17493_v54 = vld [vmem:[#allocation111_spill] sm:$0xff]  ;;  %v6373_v47 = vmul.f32 0.5, %v9343_v53  ;;  %9354 = vrcp.f32 %v6442_v35  ;;  %v17497_v48 = vld [vmem:[#allocation409_spill] sm:$0xff] }
 0x949   : > { %v15101_v3 = vadd.f32 %v7002_v58, %v6938_v8  ;;  %v3648_v7 = vmul.f32 %v3463_v26, %v17491_v38  ;;  %6765 = vperm.xlu0 %8738, %v6371_v29   ;;  %v6176_v45 = vadd.f32 %v6112_v50, %v4943_v20  ;;  %v5807_v59 = vadd.f32 %v17493_v54, %v4574_v62  ;;  %v17494_v52 = vld [vmem:[#allocation307_spill] sm:$0xff]  ;;  %v17502_v54 = vld [vmem:[#allocation281_spill] sm:$0xff] }
 0x94a   : > { %v6731_v12 = vpop.permute.xlu1 %6730  ;;  %v6114_v23 = vmul.f32 %v17495_v40, %v17494_v52  ;;  %v9347_v8 = vpop.eup %9346  ;;  %v7006_v29 = vmul.f32 %v15050_v10, %v17476_v37  ;;  %v6564_v50 = vmul.f32 0.5, %v9341_v56  ;;  %v17496_v20 = vld [vmem:[#allocation115_spill] sm:$0xff]  ;;  %v4883_v62 = vmul.f32 %v17498_v24, %v17497_v48  ;;  %v17501_v37 = vld [vmem:[#allocation230_spill] sm:$0xff] }
 0x94b   : > { %v4945_v58 = vadd.f32 %v4881_v49, %v3648_v7  ;;  %v6940_v16 = vmul.f32 %v6731_v12, %v6172_v51  ;;  %v4576_v31 = vadd.f32 %v17496_v20, %v3215_v5  ;;  %v17499_v26 = vld [vmem:[#allocation127_spill] sm:$0xff]  ;;  %v9595_v49 = vld [vmem:[%s10226_s28 + $0x190] sm:$0xff]  ;;  %v17500_v7 = vld [vmem:[#allocation364_spill] sm:$0xff]  ;;  %9356 = vrcp.f32 %v6253_v36 }
 0x94c   : > { %v3473_v30 = vpop.permute.xlu0 %3472  ;;  %v9349_v51 = vpop.eup %9348  ;;  %v3217_v25 = vmul.f32 %v9595_v49, %v17500_v7  ;;  %v6255_v10 = vmax.f32 %v5807_v59, 1e-30  ;;  %v6375_v5 = vmul.f32 0.5, %v9347_v8  ;;  %v17503_v12 = vld [vmem:[#allocation306_spill] sm:$0xff] }
 0x94d   : > { %v15115_v53 = vadd.f32 %v15063_v43, %v6940_v16  ;;  %v3650_v44 = vmul.f32 %v17499_v26, %v3473_v30  ;;  %6775 = vperm.xlu0 %8738, %v6373_v47   ;;  %v6178_v41 = vadd.f32 %v6114_v23, %v4945_v58  ;;  %v5809_v56 = vadd.f32 %v17501_v37, %v4576_v31  ;;  %v9351_v16 = vpop.eup %9350  ;;  %v17504_v58 = vld [vmem:[#allocation347_spill] sm:$0xff]  ;;  %v17506_v48 = vld [vmem:[#allocation138_spill] sm:$0xff] }
 0x94e   : > { %v6741_v35 = vpop.permute.xlu1 %6740  ;;  %v6116_v52 = vmul.f32 %v17503_v12, %v17502_v54  ;;  %v15124_v47 = vmul.f32 %v17499_v26, %v6564_v50  ;;  %v6566_v23 = vmul.f32 0.5, %v9345_v6  ;;  %v6444_v20 = vmax.f32 %v17504_v58, 1e-30  ;;  %v17505_v30 = vld [vmem:[#allocation75_spill] sm:$0xff]  ;;  %v17508_v8 = vld [vmem:[#allocation150_spill] sm:$0xff] }
 0x94f   : > { %v4947_v43 = vadd.f32 %v4883_v62, %v3650_v44  ;;  %v6942_v40 = vmul.f32 %v6741_v35, %v6174_v2  ;;  %v4578_v36 = vadd.f32 %v17505_v30, %v3217_v25  ;;  %v17507_v31 = vld [vmem:[#allocation411_spill] sm:$0xff]  ;;  %v9596_v2 = vld [vmem:[%s10226_s28 + $0x1a0] sm:$0xff]  ;;  %v17509_v44 = vld [vmem:[#allocation370_spill] sm:$0xff]  ;;  %9358 = vrcp.f32 %v6255_v10 }
 0x950   : > { %v3483_v59 = vpop.permute.xlu0 %3482  ;;  %v4885_v24 = vmul.f32 %v17507_v31, %v17506_v48  ;;  %v3219_v35 = vmul.f32 %v9596_v2, %v17509_v44  ;;  %v6257_v50 = vmax.f32 %v5809_v56, 1e-30  ;;  %v17510_v6 = vld [vmem:[#allocation103_spill] sm:$0xff]  ;;  %v6377_v12 = vmul.f32 0.5, %v9351_v16  ;;  %v17511_v25 = vld [vmem:[#allocation309_spill] sm:$0xff]  ;;  %v17516_v2 = vld [vmem:[#allocation132_spill] sm:$0xff] }
 0x951   : > { %v15130_v49 = vadd.f32 %v7006_v29, %v6942_v40  ;;  %v3652_v37 = vmul.f32 %v3483_v59, %v17508_v8  ;;  %6785 = vperm.xlu0 %8738, %v6375_v5   ;;  %v6180_v62 = vadd.f32 %v6116_v52, %v4947_v43  ;;  %v5811_v26 = vadd.f32 %v17510_v6, %v4578_v36  ;;  %v17512_v58 = vld [vmem:[#allocation363_spill] sm:$0xff]  ;;  %v9353_v40 = vpop.eup %9352  ;;  %v17513_v52 = vld [vmem:[#allocation73_spill] sm:$0xff] }
 0x952   : > { %v6751_v54 = vpop.permute.xlu1 %6750  ;;  %v6118_v30 = vmul.f32 %v17512_v58, %v17511_v25  ;;  %v7010_v5 = vmul.f32 %v15095_v39, %v17491_v38  ;;  %9360 = vrcp.f32 %v6444_v20  ;;  %v4580_v43 = vadd.f32 %v17513_v52, %v3219_v35  ;;  %v17514_v56 = vld [vmem:[#allocation413_spill] sm:$0xff]  ;;  %v17518_v38 = vld [vmem:[#allocation223_spill] sm:$0xff]  ;;  %v17519_v58 = vld [vmem:[#allocation280_spill] sm:$0xff] }
 0x953   : > { %v4949_v48 = vadd.f32 %v4885_v24, %v3652_v37  ;;  %v6944_v29 = vmul.f32 %v6751_v54, %v6176_v45  ;;  %v6568_v10 = vmul.f32 0.5, %v9349_v51  ;;  %v17515_v31 = vld [vmem:[#allocation141_spill] sm:$0xff]  ;;  %v9355_v45 = vpop.eup %9354  ;;  %v9597_v37 = vld [vmem:[%s10226_s28 + $0x1b0] sm:$0xff]  ;;  %v17517_v54 = vld [vmem:[#allocation376_spill] sm:$0xff]  ;;  %9362 = vrcp.f32 %v6257_v50 }
 0x954   : > { %v3493_v59 = vpop.permute.xlu0 %3492  ;;  %v4887_v36 = vmul.f32 %v17515_v31, %v17514_v56  ;;  %v3221_v25 = vmul.f32 %v9597_v37, %v17517_v54  ;;  %v6259_v39 = vmax.f32 %v5811_v26, 1e-30  ;;  %v5813_v20 = vadd.f32 %v17518_v38, %v4580_v43  ;;  %v17520_v52 = vld [vmem:[#allocation308_spill] sm:$0xff]  ;;  %v17523_v26 = vld [vmem:[#allocation201_spill] sm:$0xff]  ;;  %v17525_v54 = vld [vmem:[#allocation186_spill] sm:$0xff] }
 0x955   : > { %v15144_v16 = vadd.f32 %v15093_v34, %v6944_v29  ;;  %v3654_v6 = vmul.f32 %v17516_v2, %v3493_v59  ;;  %6795 = vperm.xlu0 %8738, %v6377_v12   ;;  %v6182_v24 = vadd.f32 %v6118_v30, %v4949_v48  ;;  %v6379_v51 = vmul.f32 0.5, %v9353_v40  ;;  %v9357_v31 = vpop.eup %9356  ;;  %v17521_v30 = vld [vmem:[#allocation188_spill] sm:$0xff]  ;;  %v17522_v59 = vld [vmem:[#allocation65_spill] sm:$0xff] }
 0x956   : > { %v6761_v35 = vpop.permute.xlu1 %6760  ;;  %v6120_v56 = vmul.f32 %v17520_v52, %v17519_v58  ;;  %v7014_v12 = vmul.f32 %v6566_v23, %v17508_v8  ;;  %v6446_v48 = vmax.f32 %v17521_v30, 1e-30  ;;  %v4582_v44 = vadd.f32 %v17522_v59, %v3221_v25  ;;  %v17524_v43 = vld [vmem:[#allocation416_spill] sm:$0xff] }
 0x957   : > { %v4951_v34 = vadd.f32 %v4887_v36, %v3654_v6  ;;  %v6946_v29 = vmul.f32 %v6761_v35, %v6178_v41  ;;  %v15156_v50 = vmul.f32 %v17516_v2, %v6568_v10  ;;  %v4889_v38 = vmul.f32 %v17524_v43, %v17523_v26  ;;  %v9598_v36 = vld [vmem:[%s10226_s28 + $0x1c0] sm:$0xff]  ;;  %v17526_v6 = vld [vmem:[#allocation382_spill] sm:$0xff]  ;;  %v17527_v35 = vld [vmem:[#allocation265_spill] sm:$0xff] }
 0x958   : > { %v3503_v37 = vpop.permute.xlu0 %3502  ;;  %v3223_v23 = vmul.f32 %v9598_v36, %v17526_v6  ;;  %9364 = vrcp.f32 %v6259_v39  ;;  %v6261_v8 = vmax.f32 %v5813_v20, 1e-30  ;;  %v5815_v25 = vadd.f32 %v17527_v35, %v4582_v44  ;;  %v17528_v10 = vld [vmem:[#allocation311_spill] sm:$0xff]  ;;  %v17529_v2 = vld [vmem:[#allocation369_spill] sm:$0xff]  ;;  %v17532_v39 = vld [vmem:[#allocation418_spill] sm:$0xff] }
 0x959   : > { %v15160_v40 = vadd.f32 %v7010_v5, %v6946_v29  ;;  %v3656_v58 = vmul.f32 %v3503_v37, %v17525_v54  ;;  %6805 = vperm.xlu0 %8738, %v6379_v51   ;;  %v6184_v41 = vadd.f32 %v6120_v56, %v4951_v34  ;;  %v6381_v30 = vmul.f32 0.5, %v9357_v31  ;;  %v9359_v29 = vpop.eup %9358  ;;  %v17530_v37 = vld [vmem:[#allocation351_spill] sm:$0xff]  ;;  %v17533_v20 = vld [vmem:[#allocation200_spill] sm:$0xff] }
 0x95a   : > { %v6771_v52 = vpop.permute.xlu1 %6770  ;;  %v6122_v59 = vmul.f32 %v17529_v2, %v17528_v10  ;;  %9366 = vrcp.f32 %v6446_v48  ;;  %v6448_v51 = vmax.f32 %v17530_v37, 1e-30  ;;  %v17531_v56 = vld [vmem:[#allocation215_spill] sm:$0xff]  ;;  %v6570_v36 = vmul.f32 0.5, %v9355_v45  ;;  %v17535_v31 = vld [vmem:[#allocation180_spill] sm:$0xff]  ;;  %v17537_v2 = vld [vmem:[#allocation354_spill] sm:$0xff] }
 0x95b   : > { %v4953_v26 = vadd.f32 %v4889_v38, %v3656_v58  ;;  %v6948_v5 = vmul.f32 %v6771_v52, %v6180_v62  ;;  %v4584_v34 = vadd.f32 %v17531_v56, %v3223_v23  ;;  %v4891_v6 = vmul.f32 %v17533_v20, %v17532_v39  ;;  %v9599_v62 = vld [vmem:[%s10226_s28 + $0x1d0] sm:$0xff]  ;;  %v17536_v58 = vld [vmem:[#allocation388_spill] sm:$0xff] }
 0x95c   : > { %v3513_v43 = vpop.permute.xlu0 %3512  ;;  %v9361_v38 = vpop.eup %9360  ;;  %v3225_v48 = vmul.f32 %v9599_v62, %v17536_v58  ;;  %9368 = vrcp.f32 %v6261_v8  ;;  %v6263_v52 = vmax.f32 %v5815_v25, 1e-30  ;;  %v6383_v45 = vmul.f32 0.5, %v9359_v29  ;;  %v17538_v56 = vld [vmem:[#allocation72_spill] sm:$0xff]  ;;  %v17539_v39 = vld [vmem:[#allocation310_spill] sm:$0xff]  ;;  %v17542_v25 = vld [vmem:[#allocation245_spill] sm:$0xff] }
 0x95d   : > { %v15173_v44 = vadd.f32 %v15124_v47, %v6948_v5  ;;  %v3658_v35 = vmul.f32 %v17535_v31, %v3513_v43  ;;  %6815 = vperm.xlu0 %8738, %v6381_v30   ;;  %v6186_v10 = vadd.f32 %v6122_v59, %v4953_v26  ;;  %v5817_v23 = vadd.f32 %v17537_v2, %v4584_v34  ;;  %v9363_v7 = vpop.eup %9362  ;;  %v17540_v30 = vld [vmem:[#allocation360_spill] sm:$0xff]  ;;  %v17543_v62 = vld [vmem:[#allocation422_spill] sm:$0xff] }
 0x95e   : > { %v6781_v37 = vpop.permute.xlu1 %6780  ;;  %v6124_v20 = vmul.f32 %v17539_v39, %v17538_v56  ;;  %9370 = vrcp.f32 %v6448_v51  ;;  %v6450_v59 = vmax.f32 %v17540_v30, 1e-30  ;;  %v17541_v26 = vld [vmem:[#allocation80_spill] sm:$0xff]  ;;  %v7018_v8 = vmul.f32 %v6570_v36, %v17525_v54  ;;  %v17545_v29 = vld [vmem:[#allocation74_spill] sm:$0xff]  ;;  %v17549_v54 = vld [vmem:[#allocation285_spill] sm:$0xff] }
 0x95f   : > { %17534 = vst [vmem:[#allocation176_spill] sm:$0xff] %v15173_v44  ;;  %v4955_v47 = vadd.f32 %v4891_v6, %v3658_v35  ;;  %v6950_v5 = vmul.f32 %v6781_v37, %v6182_v24  ;;  %v4586_v43 = vadd.f32 %v17541_v26, %v3225_v48  ;;  %v4893_v34 = vmul.f32 %v17543_v62, %v17542_v25  ;;  %v9600_v6 = vld [vmem:[%s10226_s28 + $0x1e0] sm:$0xff]  ;;  %v17547_v37 = vld [vmem:[#allocation359_spill] sm:$0xff] }
 0x960   : > { %v3523_v33 = vpop.permute.xlu0 %3522  ;;  %v17546_v24 = vld [vmem:[#allocation396_spill] sm:$0xff]  ;;  %9372 = vrcp.f32 %v6263_v52  ;;  %v6265_v51 = vmax.f32 %v5817_v23, 1e-30  ;;  %v6385_v30 = vmul.f32 0.5, %v9363_v7  ;;  %v17548_v26 = vld [vmem:[#allocation315_spill] sm:$0xff]  ;;  %v17553_v23 = vld [vmem:[#allocation198_spill] sm:$0xff] }
 0x961   : > { %v15186_v2 = vadd.f32 %v7014_v12, %v6950_v5  ;;  %v3660_v58 = vmul.f32 %v3523_v33, %v17545_v29  ;;  %6825 = vperm.xlu0 %8738, %v6383_v45   ;;  %v6188_v56 = vadd.f32 %v6124_v20, %v4955_v47  ;;  %v3227_v35 = vmul.f32 %v9600_v6, %v17546_v24  ;;  %v17550_v33 = vld [vmem:[#allocation367_spill] sm:$0xff]  ;;  %v17551_v20 = vld [vmem:[#allocation234_spill] sm:$0xff]  ;;  %v17552_v52 = vld [vmem:[#allocation216_spill] sm:$0xff] }
 0x962   : > { %v5819_v39 = vadd.f32 %v17547_v37, %v4586_v43  ;;  %v6791_v48 = vpop.permute.xlu1 %6790  ;;  %v6126_v36 = vmul.f32 %v17549_v54, %v17548_v26  ;;  %v9365_v5 = vpop.eup %9364  ;;  %9374 = vrcp.f32 %v6450_v59  ;;  %v6452_v45 = vmax.f32 %v17550_v33, 1e-30  ;;  %v17555_v7 = vld [vmem:[#allocation124_spill] sm:$0xff]  ;;  %v17557_v54 = vld [vmem:[#allocation358_spill] sm:$0xff] }
 0x963   : > { %17544 = vst [vmem:[#allocation401_spill] sm:$0xff] %v15186_v2  ;;  %v4957_v25 = vadd.f32 %v4893_v34, %v3660_v58  ;;  %v6952_v12 = vmul.f32 %v6791_v48, %v6184_v41  ;;  %v4588_v47 = vadd.f32 %v17551_v20, %v3227_v35  ;;  %v6572_v6 = vmul.f32 0.5, %v9361_v38  ;;  %v9601_v41 = vld [vmem:[%s10226_s28 + $0x1f0] sm:$0xff]  ;;  %v17558_v20 = vld [vmem:[#allocation375_spill] sm:$0xff]  ;;  %s9867_s28 = smov [#allocation10]  }
 0x964   : > { %v3533_v62 = vpop.permute.xlu0 %3532  ;;  %v4895_v24 = vmul.f32 %v17553_v23, %v17552_v52  ;;  %v9367_v58 = vpop.eup %9366  ;;  %v17556_v34 = vld [vmem:[#allocation402_spill] sm:$0xff]  ;;  %9376 = vrcp.f32 %v6265_v51  ;;  %v6267_v48 = vmax.f32 %v5819_v39, 1e-30  ;;  %v6387_v38 = vmul.f32 0.5, %v9365_v5  ;;  %v17564_v5 = vld [vmem:[#allocation151_spill] sm:$0xff]  ;;  %s9726_s26 = sshll.u32 %s9867_s28, 4  ;;  %s9727_s26 = int_to_ptr.vmem [resolvable:$false] %s9726_s26 }
 0x965   : > { %v15199_v43 = vadd.f32 %v15156_v50, %v6952_v12  ;;  %v3662_v37 = vmul.f32 %v17555_v7, %v3533_v62  ;;  %6835 = vperm.xlu0 %8738, %v6385_v30   ;;  %v6190_v26 = vadd.f32 %v6126_v36, %v4957_v25  ;;  %v3229_v59 = vmul.f32 %v9601_v41, %v17556_v34  ;;  %v17559_v2 = vld [vmem:[#allocation314_spill] sm:$0xff]  ;;  %v17560_v62 = vld [vmem:[#allocation373_spill] sm:$0xff]  ;;  %v17561_v36 = vld [vmem:[#allocation99_spill] sm:$0xff]  ;;  %s9728_s10 = scalar_lea.vmem %s9727_s26, 8192  ;;  %p9729_p10 = scmp.lt.s32.totalorder %s15446_s22, %s9727_s26 }
 0x966   : > { %v5821_v35 = vadd.f32 %v17557_v54, %v4588_v47  ;;  %v6801_v33 = vpop.permute.xlu1 %6800  ;;  %v6128_v52 = vmul.f32 %v17559_v2, %v17558_v20  ;;  %v9369_v12 = vpop.eup %9368  ;;  %9378 = vrcp.f32 %v6452_v45  ;;  %v6454_v30 = vmax.f32 %v17560_v62, 1e-30  ;;  %v17562_v51 = vld [vmem:[#allocation154_spill] sm:$0xff]  ;;  %v17565_v45 = vld [vmem:[#allocation368_spill] sm:$0xff]  ;;  %p9730_p0 = scmp.lt.s32.totalorder %s9728_s10, %s9722_s27 }
 0x967   : > { %17554 = vst [vmem:[#allocation232_spill] sm:$0xff] %v15199_v43  ;;  %v4959_v23 = vadd.f32 %v4895_v24, %v3662_v37  ;;  %v6954_v50 = vmul.f32 %v6801_v33, %v6186_v10  ;;  %v4590_v25 = vadd.f32 %v17561_v36, %v3229_v59  ;;  %v7020_v41 = vmul.f32 %v17535_v31, %v6572_v6  ;;  %v17563_v39 = vld [vmem:[#allocation70_spill] sm:$0xff]  ;;  %v17567_v36 = vld [vmem:[#allocation28_spill] sm:$0xff] }
 0x968   : > { %v3543_v43 = vpop.permute.xlu0 %3542  ;;  %v4897_v34 = vmul.f32 %v17563_v39, %v17562_v51  ;;  %v9371_v24 = vpop.eup %9370  ;;  %9380 = vrcp.f32 %v6267_v48  ;;  %v6269_v10 = vmax.f32 %v5821_v35, 1e-30  ;;  %v6574_v20 = vmul.f32 0.5, %v9367_v58  ;;  %v17566_v62 = vld [vmem:[#allocation318_spill] sm:$0xff]  ;;  %v17571_v35 = vld [vmem:[#allocation137_spill] sm:$0xff]  ;;  %p9731_p12 = por %p9730_p0, %p9729_p10 }
 0x969   : > { %v15212_v47 = vadd.f32 %v7018_v8, %v6954_v50  ;;  %v3664_v54 = vmul.f32 %v3543_v43, %v17564_v5  ;;  %6845 = vperm.xlu0 %8738, %v6387_v38   ;;  %v6192_v2 = vadd.f32 %v6128_v52, %v4959_v23  ;;  %v5823_v37 = vadd.f32 %v17565_v45, %v4590_v25  ;;  %v17568_v8 = vld [vmem:[#allocation379_spill] sm:$0xff]  ;;  %v17572_v45 = vld [vmem:[#allocation284_spill] sm:$0xff] }
 0x96a   : > { %v6811_v33 = vpop.permute.xlu1 %6810  ;;  %v6389_v59 = vmul.f32 0.5, %v9369_v12  ;;  %v6130_v31 = vmul.f32 %v17567_v36, %v17566_v62  ;;  %v9373_v51 = vpop.eup %9372  ;;  %9382 = vrcp.f32 %v6454_v30  ;;  %v6456_v50 = vmax.f32 %v17568_v8, 1e-30  ;;  %v17569_v38 = vld [vmem:[#allocation199_spill] sm:$0xff]  ;;  %p9732_p13 = pnand %p9731_p12, %p9725_p9 }
 0x96b   : > { %v4961_v6 = vadd.f32 %v4897_v34, %v3664_v54  ;;  %v6956_v44 = vmul.f32 %v6811_v33, %v6188_v56  ;;  %v17570_v52 = vld [vmem:[#allocation143_spill] sm:$0xff]  ;;  %9384 = vrcp.f32 %v6269_v10  ;;  %v6271_v39 = vmax.f32 %v5823_v37, 1e-30  ;;  %v17573_v33 = vld [vmem:[#allocation317_spill] sm:$0xff] }
 0x96c   : > { %v3553_v43 = vpop.permute.xlu0 %3552  ;;  %v4899_v23 = vmul.f32 %v17570_v52, %v17569_v38  ;;  %v9375_v12 = vpop.eup %9374  ;;  %v7022_v34 = vmul.f32 %v6574_v20, %v17545_v29  ;;  %v6576_v54 = vmul.f32 0.5, %v9371_v24  ;;  %v6391_v30 = vmul.f32 0.5, %v9373_v51  ;;  %v17578_v37 = vld [vmem:[#allocation207_spill] sm:$0xff] }
 0x96d   : > { %v15221_v48 = vadd.f32 %v7020_v41, %v6956_v44  ;;  %v3666_v25 = vmul.f32 %v17571_v35, %v3553_v43  ;;  %6855 = vperm.xlu0 %8738, %v6389_v59   ;;  %v6194_v58 = vadd.f32 %v6130_v31, %v4961_v6  ;;  %v6132_v62 = vmul.f32 %v17573_v33, %v17572_v45  ;;  %v17574_v44 = vld [vmem:[#allocation385_spill] sm:$0xff]  ;;  %v17575_v59 = vld [vmem:[#allocation208_spill] sm:$0xff]  ;;  %v17576_v31 = vld [vmem:[#allocation146_spill] sm:$0xff] }
 0x96e   : > { %v6821_v56 = vpop.permute.xlu1 %6820  ;;  %v9377_v38 = vpop.eup %9376  ;;  %9386 = vrcp.f32 %v6456_v50  ;;  %v6458_v41 = vmax.f32 %v17574_v44, 1e-30  ;;  %v4901_v6 = vmul.f32 %v17576_v31, %v17575_v59  ;;  %v7024_v51 = vmul.f32 %v17555_v7, %v6576_v54  ;;  %v17579_v50 = vld [vmem:[#allocation322_spill] sm:$0xff]  ;;  %v17581_v59 = vld [vmem:[#allocation168_spill] sm:$0xff] }
 0x96f   : > { %v4963_v36 = vadd.f32 %v4899_v23, %v3666_v25  ;;  %v6958_v8 = vmul.f32 %v6821_v56, %v6190_v26  ;;  %9388 = vrcp.f32 %v6271_v39  ;;  %v6578_v26 = vmul.f32 0.5, %v9375_v12  ;;  %v17580_v25 = vld [vmem:[#allocation381_spill] sm:$0xff] }
 0x970   : > { %v3563_v43 = vpop.permute.xlu0 %3562  ;;  %v9379_v20 = vpop.eup %9378  ;;  %v6393_v23 = vmul.f32 0.5, %v9377_v38  ;;  %v6134_v56 = vmul.f32 %v17580_v25, %v17579_v50  ;;  %9390 = vrcp.f32 %v6458_v41  ;;  %v17585_v39 = vld [vmem:[#allocation157_spill] sm:$0xff]  ;;  %v17586_v38 = vld [vmem:[#allocation392_spill] sm:$0xff] }
 0x971   : > { %v15230_v10 = vadd.f32 %v7022_v34, %v6958_v8  ;;  %v3668_v29 = vmul.f32 %v3563_v43, %v17578_v37  ;;  %6865 = vperm.xlu0 %8738, %v6391_v30   ;;  %v6196_v24 = vadd.f32 %v6132_v62, %v4963_v36  ;;  %v6402_v34 = vmax.f32 %v17581_v59, 1e-30  ;;  %v17582_v43 = vld [vmem:[#allocation41_spill] sm:$0xff]  ;;  %v17583_v30 = vld [vmem:[#allocation203_spill] sm:$0xff] }
 0x972   : > { %v6831_v52 = vpop.permute.xlu1 %6830  ;;  %v9381_v44 = vpop.eup %9380  ;;  %v4903_v62 = vmul.f32 %v17583_v30, %v17582_v43  ;;  %v6460_v31 = vmax.f32 %v17586_v38, 1e-30  ;;  %v17587_v50 = vld [vmem:[#allocation101_spill] sm:$0xff]  ;;  %v17593_v38 = vld [vmem:[#allocation226_spill] sm:$0xff] }
 0x973   : > { %17577 = vst [vmem:[#allocation247_spill] sm:$0xff] %v15230_v10  ;;  %v4965_v45 = vadd.f32 %v4901_v6, %v3668_v29  ;;  %v6960_v33 = vmul.f32 %v6831_v52, %v6192_v2  ;;  %v7026_v6 = vmul.f32 %v6578_v26, %v17564_v5  ;;  %v6580_v29 = vmul.f32 0.5, %v9379_v20  ;;  %v17588_v41 = vld [vmem:[#allocation321_spill] sm:$0xff] }
 0x974   : > { %v3573_v8 = vpop.permute.xlu0 %3572  ;;  %v9383_v54 = vpop.eup %9382  ;;  %v6395_v52 = vmul.f32 0.5, %v9381_v44  ;;  %v6136_v25 = vmul.f32 %v17588_v41, %v17587_v50  ;;  %9392 = vrcp.f32 %v6402_v34  ;;  %v17594_v44 = vld [vmem:[#allocation400_spill] sm:$0xff]  ;;  %v17596_v41 = vld [vmem:[#allocation253_spill] sm:$0xff] }
 0x975   : > { %v15239_v36 = vadd.f32 %v7024_v51, %v6960_v33  ;;  %v3670_v7 = vmul.f32 %v17585_v39, %v3573_v8  ;;  %6875 = vperm.xlu0 %8738, %v6393_v23   ;;  %v6198_v12 = vadd.f32 %v6134_v56, %v4965_v45  ;;  %v9385_v43 = vpop.eup %9384  ;;  %v17589_v51 = vld [vmem:[#allocation189_spill] sm:$0xff]  ;;  %v17590_v23 = vld [vmem:[#allocation271_spill] sm:$0xff]  ;;  %9394 = vrcp.f32 %v6460_v31 }
 0x976   : > { %v6841_v2 = vpop.permute.xlu1 %6840  ;;  %v6405_v33 = vmax.f32 %v17589_v51, 1e-30  ;;  %v17591_v56 = vld [vmem:[#allocation159_spill] sm:$0xff]  ;;  %v6462_v50 = vmax.f32 %v17594_v44, 1e-30  ;;  %v6582_v34 = vmul.f32 0.5, %v9383_v54 }
 0x977   : > { %17584 = vst [vmem:[#allocation266_spill] sm:$0xff] %v15239_v36  ;;  %v4967_v59 = vadd.f32 %v4903_v62, %v3670_v7  ;;  %v6962_v10 = vmul.f32 %v6841_v2, %v6194_v58  ;;  %v4905_v45 = vmul.f32 %v17591_v56, %v17590_v23  ;;  %v7028_v58 = vmul.f32 %v17571_v35, %v6580_v29  ;;  %v17595_v2 = vld [vmem:[#allocation326_spill] sm:$0xff]  ;;  %v17600_v44 = vld [vmem:[#allocation87_spill] sm:$0xff] }
 0x978   : > { %v3583_v8 = vpop.permute.xlu0 %3582  ;;  %v9387_v26 = vpop.eup %9386  ;;  %v6397_v7 = vmul.f32 0.5, %v9385_v43  ;;  %v6138_v51 = vmul.f32 %v17596_v41, %v17595_v2  ;;  %9396 = vrcp.f32 %v6405_v33  ;;  %v17601_v43 = vld [vmem:[#allocation404_spill] sm:$0xff]  ;;  %v17603_v41 = vld [vmem:[#allocation325_spill] sm:$0xff] }
 0x979   : > { %v15249_v30 = vadd.f32 %v7026_v6, %v6962_v10  ;;  %v3672_v5 = vmul.f32 %v3583_v8, %v17593_v38  ;;  %6885 = vperm.xlu0 %8738, %v6395_v52   ;;  %v6200_v20 = vadd.f32 %v6136_v25, %v4967_v59  ;;  %v9389_v10 = vpop.eup %9388  ;;  %v17597_v6 = vld [vmem:[#allocation196_spill] sm:$0xff]  ;;  %v17598_v25 = vld [vmem:[#allocation273_spill] sm:$0xff]  ;;  %9398 = vrcp.f32 %v6462_v50 }
 0x97a   : > { %v6851_v62 = vpop.permute.xlu1 %6850  ;;  %v6407_v8 = vmax.f32 %v17597_v6, 1e-30  ;;  %v17599_v59 = vld [vmem:[#allocation88_spill] sm:$0xff]  ;;  %v9391_v29 = vpop.eup %9390  ;;  %v6464_v2 = vmax.f32 %v17601_v43, 1e-30  ;;  %v6584_v33 = vmul.f32 0.5, %v9387_v26 }
 0x97b   : > { %17592 = vst [vmem:[#allocation291_spill] sm:$0xff] %v15249_v30  ;;  %v4969_v36 = vadd.f32 %v4905_v45, %v3672_v5  ;;  %v6964_v23 = vmul.f32 %v6851_v62, %v6196_v24  ;;  %v4907_v31 = vmul.f32 %v17599_v59, %v17598_v25  ;;  %v7030_v24 = vmul.f32 %v6582_v34, %v17578_v37  ;;  %v17602_v62 = vld [vmem:[#allocation218_spill] sm:$0xff]  ;;  %v17607_v50 = vld [vmem:[#allocation276_spill] sm:$0xff] }
 0x97c   : > { %v3593_v52 = vpop.permute.xlu0 %3592  ;;  %v6399_v5 = vmul.f32 0.5, %v9389_v10  ;;  %v6140_v6 = vmul.f32 %v17603_v41, %v17602_v62  ;;  %9400 = vrcp.f32 %v6407_v8  ;;  %v17608_v34 = vld [vmem:[#allocation204_spill] sm:$0xff]  ;;  %v6586_v43 = vmul.f32 0.5, %v9391_v29  ;;  %v17609_v62 = vld [vmem:[#allocation330_spill] sm:$0xff] }
 0x97d   : > { %v15259_v56 = vadd.f32 %v7028_v58, %v6964_v23  ;;  %v3674_v35 = vmul.f32 %v17600_v44, %v3593_v52  ;;  %6895 = vperm.xlu0 %8738, %v6397_v7   ;;  %v6202_v54 = vadd.f32 %v6138_v51, %v4969_v36  ;;  %v17604_v23 = vld [vmem:[#allocation277_spill] sm:$0xff]  ;;  %v17605_v52 = vld [vmem:[#allocation148_spill] sm:$0xff]  ;;  %v6409_v26 = vmax.f32 %v17608_v34, 1e-30  ;;  %v17615_v29 = vld [vmem:[#allocation82_spill] sm:$0xff] }
 0x97e   : > { %v6861_v45 = vpop.permute.xlu1 %6860  ;;  %v4909_v7 = vmul.f32 %v17605_v52, %v17604_v23  ;;  %v9393_v37 = vpop.eup %9392  ;;  %9402 = vrcp.f32 %v6464_v2  ;;  %v17612_v23 = vld [vmem:[#allocation275_spill] sm:$0xff]  ;;  %v6411_v34 = vmax.f32 %v17615_v29, 1e-30 }
 0x97f   : > { %v4971_v30 = vadd.f32 %v4907_v31, %v3674_v35  ;;  %v6966_v25 = vmul.f32 %v6861_v45, %v6198_v12  ;;  %v17610_v31 = vld [vmem:[#allocation94_spill] sm:$0xff]  ;;  %v7032_v35 = vmul.f32 %v17585_v39, %v6584_v33  ;;  %v9395_v41 = vpop.eup %9394  ;;  %9404 = vrcp.f32 %v6409_v26  ;;  %v17616_v39 = vld [vmem:[#allocation287_spill] sm:$0xff] }
 0x980   : > { %v3603_v58 = vpop.permute.xlu0 %3602  ;;  %v6142_v12 = vmul.f32 %v17610_v31, %v17609_v62  ;;  %v6588_v31 = vmul.f32 0.5, %v9395_v41  ;;  %9406 = vrcp.f32 %v6411_v34 }
 0x981   : > { %v15268_v36 = vadd.f32 %v7030_v24, %v6966_v25  ;;  %v3676_v51 = vmul.f32 %v3603_v58, %v17607_v50  ;;  %6905 = vperm.xlu0 %8738, %v6399_v5   ;;  %v6204_v59 = vadd.f32 %v6140_v6, %v4971_v30  ;;  %v17611_v25 = vld [vmem:[#allocation175_spill] sm:$0xff]  ;;  %v17614_v30 = vld [vmem:[#allocation274_spill] sm:$0xff] }
 0x982   : > { %v6871_v10 = vpop.permute.xlu1 %6870  ;;  %v4911_v58 = vmul.f32 %v17612_v23, %v17611_v25  ;;  %v9397_v2 = vpop.eup %9396 }
 0x983   : > { %17606 = vst [vmem:[#allocation257_spill] sm:$0xff] %v15268_v36  ;;  %v4973_v8 = vadd.f32 %v4909_v7, %v3676_v51  ;;  %v6968_v45 = vmul.f32 %v6871_v10, %v6200_v20  ;;  %v6530_v36 = vmul.f32 0.5, %v9393_v37  ;;  %v7034_v7 = vmul.f32 %v6586_v43, %v17593_v38  ;;  %v17617_v20 = vld [vmem:[#allocation329_spill] sm:$0xff]  ;;  %v9399_v25 = vpop.eup %9398  ;;  %v17620_v37 = vld [vmem:[#allocation98_spill] sm:$0xff] }
 0x984   : > { %v3613_v24 = vpop.permute.xlu0 %3612  ;;  %v6144_v33 = vmul.f32 %v17617_v20, %v17616_v39  ;;  %v6413_v38 = vmax.f32 %v17620_v37, 1e-30  ;;  %v6533_v43 = vmul.f32 0.5, %v9397_v2 }
 0x985   : > { %v15277_v5 = vadd.f32 %v7032_v35, %v6968_v45  ;;  %v3678_v6 = vmul.f32 %v17614_v30, %v3613_v24  ;;  %v6206_v52 = vadd.f32 %v6142_v12, %v4973_v8  ;;  %v17618_v45 = vld [vmem:[#allocation26_spill] sm:$0xff] }
 0x986   : > { %v6881_v51 = vpop.permute.xlu1 %6880  ;;  %v6978_v23 = vmul.f32 %v6530_v36, %v17618_v45  ;;  %v17619_v12 = vld [vmem:[#allocation378_spill] sm:$0xff]  ;;  %v9401_v29 = vpop.eup %9400  ;;  %v17621_v36 = vld [vmem:[#allocation29_spill] sm:$0xff]  ;;  %9408 = vrcp.f32 %v6413_v38  ;;  %v17625_v38 = vld [vmem:[#allocation391_spill] sm:$0xff] }
 0x987   : > { %17613 = vst [vmem:[#allocation181_spill] sm:$0xff] %v15277_v5  ;;  %v4975_v10 = vadd.f32 %v4911_v58, %v3678_v6  ;;  %v6970_v62 = vmul.f32 %v6881_v51, %v6202_v54  ;;  %v7036_v54 = vmul.f32 %v17600_v44, %v6588_v31  ;;  %v6590_v58 = vmul.f32 0.5, %v9399_v25 }
 0x988   : > { %v6601_v35 = vpop.permute.xlu0 %6600  ;;  %v9403_v6 = vpop.eup %9402 }
 0x989   : > { %v15285_v24 = vadd.f32 %v7034_v7, %v6970_v62  ;;  %v6914_v26 = vmul.f32 %v6601_v35, %v17619_v12  ;;  %v6208_v8 = vadd.f32 %v6144_v33, %v4975_v10  ;;  %v6981_v7 = vmul.f32 %v6533_v43, %v17621_v36  ;;  %v17622_v33 = vld [vmem:[#allocation384_spill] sm:$0xff]  ;;  %v9405_v25 = vpop.eup %9404  ;;  %v17624_v12 = vld [vmem:[#allocation249_spill] sm:$0xff] }
 0x98a   : > { %v6891_v5 = vpop.permute.xlu1 %6890  ;;  %v17623_v10 = vld [vmem:[#allocation112_spill] sm:$0xff]  ;;  %v6535_v35 = vmul.f32 0.5, %v9401_v29  ;;  %v6592_v31 = vmul.f32 0.5, %v9403_v6  ;;  %v17626_v29 = vld [vmem:[#allocation246_spill] sm:$0xff]  ;;  %v9407_v6 = vpop.eup %9406 }
 0x98b   : > { %v7042_v39 = vadd.f32 %v6978_v23, %v6914_v26  ;;  %v6972_v41 = vmul.f32 %v6891_v5, %v6204_v59  ;;  %v6415_v2 = vmax.f32 %v17623_v10, 1e-30  ;;  %v7038_v59 = vmul.f32 %v6590_v58, %v17607_v50  ;;  %v17627_v36 = vld [vmem:[#allocation32_spill] sm:$0xff]  ;;  %v17629_v10 = vld [vmem:[#allocation93_spill] sm:$0xff] }
 0x98c   : > { %v6616_v51 = vpop.permute.xlu0 %6615 }
 0x98d   : > { %v7850_v20 = vpack.c.bf16 %v7042_v39, %v14918_v9  ;;  %v15292_v62 = vadd.f32 %v7036_v54, %v6972_v41  ;;  %v6917_v34 = vmul.f32 %v6616_v51, %v17622_v33  ;;  %v6983_v9 = vmul.f32 %v17624_v12, %v6535_v35  ;;  %v17628_v33 = vld [vmem:[#allocation386_spill] sm:$0xff] }
 0x98e   : > { %v6901_v45 = vpop.permute.xlu1 %6900  ;;  %9410 = vrcp.f32 %v6415_v2  ;;  %v6417_v39 = vmax.f32 %v17626_v29, 1e-30  ;;  %v6537_v41 = vmul.f32 0.5, %v9405_v25  ;;  %v6419_v2 = vmax.f32 %v17629_v10, 1e-30  ;;  %v17632_v25 = vld [vmem:[#allocation256_spill] sm:$0xff] }
 0x98f   : > { %7851 = vst [vmem:[%s14936_s4] sm:$0xff] %v7850_v20   ;;  %v7045_v44 = vadd.f32 %v6981_v7, %v6917_v34  ;;  %v6974_v5 = vmul.f32 %v6901_v45, %v6206_v52  ;;  %v7040_v52 = vmul.f32 %v17614_v30, %v6592_v31  ;;  %v6539_v35 = vmul.f32 0.5, %v9407_v6  ;;  %v17631_v31 = vld [vmem:[#allocation394_spill] sm:$0xff] }
 0x990   : > { %v6626_v23 = vpop.permute.xlu0 %6625  ;;  %v6985_v7 = vmul.f32 %v6537_v41, %v17627_v36  ;;  %9412 = vrcp.f32 %v6417_v39  ;;  %v17636_v36 = vld [vmem:[#allocation262_spill] sm:$0xff] }
 0x991   : > { %v7860_v26 = vpack.c.bf16 %v14940_v46, %v7045_v44  ;;  %v15300_v37 = vadd.f32 %v7038_v59, %v6974_v5  ;;  %v6919_v43 = vmul.f32 %v6626_v23, %v17625_v38  ;;  %v9409_v44 = vpop.eup %9408  ;;  %9414 = vrcp.f32 %v6419_v2 }
 0x992   : > { %v6911_v54 = vpop.permute.xlu1 %6910  ;;  %v6421_v23 = vmax.f32 %v17632_v25, 1e-30  ;;  %v6541_v12 = vmul.f32 0.5, %v9409_v44  ;;  %v17638_v44 = vld [vmem:[#allocation184_spill] sm:$0xff] }
 0x993   : > { %8008 = vst [vmem:[%s14936_s4 + $0x10] sm:$0xff] %v7860_v26   ;;  %v7047_v50 = vadd.f32 %v6983_v9, %v6919_v43  ;;  %v6976_v58 = vmul.f32 %v6911_v54, %v6208_v8  ;;  %v17630_v8 = vld [vmem:[#allocation251_spill] sm:$0xff]  ;;  %v17633_v43 = vld [vmem:[#allocation34_spill] sm:$0xff] }
 0x994   : > { %v6636_v51 = vpop.permute.xlu0 %6635  ;;  %v6987_v59 = vmul.f32 %v17630_v8, %v6539_v35  ;;  %v6989_v29 = vmul.f32 %v6541_v12, %v17633_v43  ;;  %v17634_v54 = vld [vmem:[#allocation390_spill] sm:$0xff]  ;;  %9416 = vrcp.f32 %v6421_v23  ;;  %v17640_v23 = vld [vmem:[#allocation56_spill] sm:$0xff] }
 0x995   : > { %v7865_v46 = vpack.c.bf16 %v14958_v42, %v7047_v50  ;;  %v15308_v20 = vadd.f32 %v7040_v52, %v6976_v58  ;;  %v6921_v34 = vmul.f32 %v6636_v51, %v17628_v33  ;;  %v17635_v50 = vld [vmem:[#allocation120_spill] sm:$0xff]  ;;  %v17637_v33 = vld [vmem:[#allocation399_spill] sm:$0xff] }
 0x997   : > { %8009 = vst [vmem:[%s14936_s4 + $0x18] sm:$0xff] %v7865_v46   ;;  %v7049_v45 = vadd.f32 %v6985_v7, %v6921_v34 }
 0x998   : > { %v6646_v30 = vpop.permute.xlu0 %6645  ;;  %v9411_v26 = vpop.eup %9410 }
 0x999   : > { %v7870_v5 = vpack.c.bf16 %v14975_v17, %v7049_v45  ;;  %v6923_v42 = vmul.f32 %v6646_v30, %v17631_v31  ;;  %v6423_v17 = vmax.f32 %v17635_v50, 1e-30  ;;  %v6543_v52 = vmul.f32 0.5, %v9411_v26  ;;  %v17641_v26 = vld [vmem:[#allocation398_spill] sm:$0xff] }
 0x99a   : > { %v9413_v6 = vpop.eup %9412 }
 0x99b   : > { %8010 = vst [vmem:[%s14936_s4 + $0x20] sm:$0xff] %v7870_v5   ;;  %v7051_v9 = vadd.f32 %v6987_v59, %v6923_v42  ;;  %v6991_v7 = vmul.f32 %v17636_v36, %v6543_v52  ;;  %9418 = vrcp.f32 %v6423_v17  ;;  %v6545_v10 = vmul.f32 0.5, %v9413_v6  ;;  %v9415_v35 = vpop.eup %9414  ;;  %v17639_v59 = vld [vmem:[#allocation393_spill] sm:$0xff]  ;;  %v17643_v17 = vld [vmem:[#allocation164_spill] sm:$0xff] }
 0x99c   : > { %v6656_v38 = vpop.permute.xlu0 %6655  ;;  %v6547_v31 = vmul.f32 0.5, %v9415_v35  ;;  %v17644_v36 = vld [vmem:[#allocation64_spill] sm:$0xff]  ;;  %v17646_v35 = vld [vmem:[#allocation206_spill] sm:$0xff] }
 0x99d   : > { %v7875_v39 = vpack.c.bf16 %v14991_v57, %v7051_v9  ;;  %v6925_v41 = vmul.f32 %v6656_v38, %v17634_v54  ;;  %v6425_v57 = vmax.f32 %v17408_v15, 1e-30  ;;  %v6993_v30 = vmul.f32 %v6545_v10, %v17638_v44  ;;  %v17642_v54 = vld [vmem:[#allocation202_spill] sm:$0xff] }
 0x99e   : > { %v9417_v25 = vpop.eup %9416  ;;  %v6995_v12 = vmul.f32 %v17640_v23, %v6547_v31  ;;  %v17648_v31 = vld [vmem:[#allocation37_spill] sm:$0xff] }
 0x99f   : > { %8011 = vst [vmem:[%s14936_s4 + $0x28] sm:$0xff] %v7875_v39   ;;  %v7053_v58 = vadd.f32 %v6989_v29, %v6925_v41  ;;  %9420 = vrcp.f32 %v6425_v57  ;;  %v6549_v43 = vmul.f32 0.5, %v9417_v25 }
 0x9a0   : > { %v6666_v51 = vpop.permute.xlu0 %6665 }
 0x9a1   : > { %v7880_v46 = vpack.c.bf16 %v15009_v32, %v7053_v58  ;;  %v6927_v34 = vmul.f32 %v6666_v51, %v17637_v33  ;;  %v6427_v32 = vmax.f32 %v17412_v21, 1e-30  ;;  %v6997_v41 = vmul.f32 %v6549_v43, %v17642_v54  ;;  %v17645_v33 = vld [vmem:[#allocation334_spill] sm:$0xff] }
 0x9a3   : > { %8012 = vst [vmem:[%s14936_s4 + $0x30] sm:$0xff] %v7880_v46   ;;  %v7055_v2 = vadd.f32 %v6991_v7, %v6927_v34  ;;  %9422 = vrcp.f32 %v6427_v32 }
 0x9a4   : > { %v6676_v45 = vpop.permute.xlu0 %6675 }
 0x9a5   : > { %v7885_v8 = vpack.c.bf16 %v15026_v11, %v7055_v2  ;;  %v6929_v5 = vmul.f32 %v6676_v45, %v17639_v59  ;;  %v6429_v11 = vmax.f32 %v17424_v14, 1e-30  ;;  %v9419_v39 = vpop.eup %9418 }
 0x9a6   : > { %v6551_v58 = vmul.f32 0.5, %v9419_v39  ;;  %v17651_v39 = vld [vmem:[#allocation344_spill] sm:$0xff] }
 0x9a7   : > { %8013 = vst [vmem:[%s14936_s4 + $0x38] sm:$0xff] %v7885_v8   ;;  %v7057_v42 = vadd.f32 %v6993_v30, %v6929_v5  ;;  %9424 = vrcp.f32 %v6429_v11  ;;  %v17647_v30 = vld [vmem:[#allocation336_spill] sm:$0xff]  ;;  %v17650_v11 = vld [vmem:[#allocation97_spill] sm:$0xff] }
 0x9a8   : > { %v6686_v15 = vpop.permute.xlu0 %6685  ;;  %v6999_v7 = vmul.f32 %v17644_v36, %v6551_v58 }
 0x9a9   : > { %v7890_v9 = vpack.c.bf16 %v15039_v13, %v7057_v42  ;;  %v6931_v38 = vmul.f32 %v6686_v15, %v17641_v26  ;;  %v6431_v13 = vmax.f32 %v17428_v18, 1e-30  ;;  %v9421_v51 = vpop.eup %9420  ;;  %v17649_v15 = vld [vmem:[#allocation338_spill] sm:$0xff] }
 0x9aa   : > { %v6553_v57 = vmul.f32 0.5, %v9421_v51 }
 0x9ab   : > { %8014 = vst [vmem:[%s14936_s4 + $0x40] sm:$0xff] %v7890_v9   ;;  %v7059_v29 = vadd.f32 %v6995_v12, %v6931_v38  ;;  %9426 = vrcp.f32 %v6431_v13  ;;  %v17653_v13 = vld [vmem:[#allocation348_spill] sm:$0xff] }
 0x9ac   : > { %v6696_v21 = vpop.permute.xlu0 %6695  ;;  %v7001_v45 = vmul.f32 %v6553_v57, %v17646_v35 }
 0x9ad   : > { %v7895_v50 = vpack.c.bf16 %v15054_v60, %v7059_v29  ;;  %v6933_v52 = vmul.f32 %v6696_v21, %v17643_v17  ;;  %v6433_v60 = vmax.f32 %v17436_v61, 1e-30  ;;  %v9423_v2 = vpop.eup %9422  ;;  %v17652_v17 = vld [vmem:[#allocation89_spill] sm:$0xff] }
 0x9ae   : > { %v6555_v59 = vmul.f32 0.5, %v9423_v2 }
 0x9af   : > { %8015 = vst [vmem:[%s14936_s4 + $0x48] sm:$0xff] %v7895_v50   ;;  %v7061_v6 = vadd.f32 %v6997_v41, %v6933_v52  ;;  %9428 = vrcp.f32 %v6433_v60 }
 0x9b0   : > { %v6706_v14 = vpop.permute.xlu0 %6705  ;;  %v7003_v42 = vmul.f32 %v17648_v31, %v6555_v59  ;;  %v17660_v31 = vld [vmem:[#allocation278_spill] sm:$0xff] }
 0x9b1   : > { %v7900_v46 = vpack.c.bf16 %v15070_v22, %v7061_v6  ;;  %v6935_v34 = vmul.f32 %v6706_v14, %v17645_v33  ;;  %v6435_v22 = vmax.f32 %v17442_v55, 1e-30  ;;  %v9425_v32 = vpop.eup %9424  ;;  %v6439_v55 = vmax.f32 %v17456_v4, 1e-30  ;;  %v17655_v33 = vld [vmem:[#allocation353_spill] sm:$0xff] }
 0x9b2   : > { %v6557_v12 = vmul.f32 0.5, %v9425_v32  ;;  %v6443_v14 = vmax.f32 %v17470_v19, 1e-30 }
 0x9b3   : > { %8016 = vst [vmem:[%s14936_s4 + $0x50] sm:$0xff] %v7900_v46   ;;  %v7063_v10 = vadd.f32 %v6999_v7, %v6935_v34  ;;  %9430 = vrcp.f32 %v6435_v22  ;;  %v17654_v7 = vld [vmem:[#allocation222_spill] sm:$0xff]  ;;  %v6447_v22 = vmax.f32 %v17484_v1, 1e-30  ;;  %v17663_v1 = vld [vmem:[#allocation225_spill] sm:$0xff] }
 0x9b4   : > { %v6716_v18 = vpop.permute.xlu0 %6715  ;;  %v7005_v43 = vmul.f32 %v6557_v12, %v17650_v11 }
 0x9b5   : > { %v7905_v44 = vpack.c.bf16 %v15084_v63, %v7063_v10  ;;  %v6937_v8 = vmul.f32 %v6716_v18, %v17647_v30  ;;  %v6437_v63 = vmax.f32 %v17452_v0, 1e-30  ;;  %v9427_v26 = vpop.eup %9426  ;;  %v6441_v0 = vmax.f32 %v17463_v28, 1e-30  ;;  %v17656_v18 = vld [vmem:[#allocation117_spill] sm:$0xff] }
 0x9b6   : > { %v6445_v10 = vmax.f32 %v17477_v27, 1e-30  ;;  %v17659_v27 = vld [vmem:[#allocation176_spill] sm:$0xff] }
 0x9b7   : > { %8017 = vst [vmem:[%s14936_s4 + $0x58] sm:$0xff] %v7905_v44   ;;  %v7065_v5 = vadd.f32 %v7001_v45, %v6937_v8  ;;  %9432 = vrcp.f32 %v6437_v63  ;;  %v17657_v45 = vld [vmem:[#allocation244_spill] sm:$0xff] }
 0x9b8   : > { %v6726_v61 = vpop.permute.xlu0 %6725  ;;  %9434 = vrcp.f32 %v6439_v55 }
 0x9b9   : > { %v7910_v25 = vpack.c.bf16 %v15101_v3, %v7065_v5  ;;  %v6939_v23 = vmul.f32 %v6726_v61, %v17649_v15  ;;  %v6559_v3 = vmul.f32 0.5, %v9427_v26  ;;  %v9429_v41 = vpop.eup %9428  ;;  %9436 = vrcp.f32 %v6441_v0  ;;  %v17658_v5 = vld [vmem:[#allocation130_spill] sm:$0xff] }
 0x9ba   : > { %v6561_v6 = vmul.f32 0.5, %v9429_v41  ;;  %9438 = vrcp.f32 %v6443_v14  ;;  %v17666_v41 = vld [vmem:[#allocation232_spill] sm:$0xff] }
 0x9bb   : > { %8018 = vst [vmem:[%s14936_s4 + $0x60] sm:$0xff] %v7910_v25   ;;  %v7067_v9 = vadd.f32 %v7003_v42, %v6939_v23  ;;  %v7007_v4 = vmul.f32 %v17652_v17, %v6559_v3  ;;  %9440 = vrcp.f32 %v6445_v10  ;;  %v17661_v23 = vld [vmem:[#allocation356_spill] sm:$0xff] }
 0x9bc   : > { %v6736_v38 = vpop.permute.xlu0 %6735  ;;  %v7009_v46 = vmul.f32 %v6561_v6, %v17654_v7  ;;  %9442 = vrcp.f32 %v6447_v22  ;;  %v6449_v63 = vmax.f32 %v17661_v23, 1e-30  ;;  %v17670_v7 = vld [vmem:[#allocation187_spill] sm:$0xff] }
 0x9bd   : > { %v7915_v29 = vpack.c.bf16 %v15115_v53, %v7067_v9  ;;  %v6941_v21 = vmul.f32 %v6736_v38, %v17651_v39  ;;  %v9431_v51 = vpop.eup %9430  ;;  %v17662_v9 = vld [vmem:[#allocation401_spill] sm:$0xff]  ;;  %v17664_v38 = vld [vmem:[#allocation243_spill] sm:$0xff] }
 0x9be   : > { %v6563_v60 = vmul.f32 0.5, %v9431_v51  ;;  %9444 = vrcp.f32 %v6449_v63 }
 0x9bf   : > { %8019 = vst [vmem:[%s14936_s4 + $0x68] sm:$0xff] %v7915_v29   ;;  %v7069_v54 = vadd.f32 %v7005_v43, %v6941_v21  ;;  %v17665_v21 = vld [vmem:[#allocation364_spill] sm:$0xff] }
 0x9c0   : > { %v6746_v50 = vpop.permute.xlu0 %6745  ;;  %v7011_v35 = vmul.f32 %v17656_v18, %v6563_v60  ;;  %v6451_v3 = vmax.f32 %v17665_v21, 1e-30 }
 0x9c1   : > { %v7920_v52 = vpack.c.bf16 %v15130_v49, %v7069_v54  ;;  %v6943_v58 = vmul.f32 %v6746_v50, %v17653_v13  ;;  %v9433_v57 = vpop.eup %9432  ;;  %v17667_v50 = vld [vmem:[#allocation192_spill] sm:$0xff] }
 0x9c2   : > { %v9435_v30 = vpop.eup %9434  ;;  %v6565_v8 = vmul.f32 0.5, %v9433_v57  ;;  %9446 = vrcp.f32 %v6451_v3  ;;  %v17672_v57 = vld [vmem:[#allocation376_spill] sm:$0xff] }
 0x9c3   : > { %8020 = vst [vmem:[%s14936_s4 + $0x70] sm:$0xff] %v7920_v52   ;;  %v7071_v53 = vadd.f32 %v7007_v4, %v6943_v58  ;;  %v6567_v25 = vmul.f32 0.5, %v9435_v30  ;;  %v9437_v15 = vpop.eup %9436  ;;  %v17668_v4 = vld [vmem:[#allocation283_spill] sm:$0xff]  ;;  %v6455_v10 = vmax.f32 %v17672_v57, 1e-30  ;;  %v17690_v57 = vld [vmem:[#allocation257_spill] sm:$0xff] }
 0x9c4   : > { %v6756_v36 = vpop.permute.xlu0 %6755  ;;  %v7013_v32 = vmul.f32 %v6565_v8, %v17658_v5  ;;  %v6569_v43 = vmul.f32 0.5, %v9437_v15  ;;  %v9439_v29 = vpop.eup %9438  ;;  %v17676_v5 = vld [vmem:[#allocation247_spill] sm:$0xff] }
 0x9c5   : > { %v7925_v28 = vpack.c.bf16 %v15144_v16, %v7071_v53  ;;  %v6945_v34 = vmul.f32 %v6756_v36, %v17655_v33  ;;  %v7015_v55 = vmul.f32 %v17663_v1, %v6567_v25  ;;  %v6571_v13 = vmul.f32 0.5, %v9439_v29  ;;  %v9441_v58 = vpop.eup %9440  ;;  %v17669_v53 = vld [vmem:[#allocation370_spill] sm:$0xff] }
 0x9c6   : > { %v7017_v17 = vmul.f32 %v6569_v43, %v17667_v50  ;;  %v6453_v51 = vmax.f32 %v17669_v53, 1e-30  ;;  %v9443_v60 = vpop.eup %9442 }
 0x9c7   : > { %8021 = vst [vmem:[%s14936_s4 + $0x78] sm:$0xff] %v7925_v28   ;;  %v7073_v49 = vadd.f32 %v7009_v46, %v6945_v34  ;;  %v7019_v46 = vmul.f32 %v17670_v7, %v6571_v13  ;;  %v17671_v28 = vld [vmem:[#allocation248_spill] sm:$0xff]  ;;  %v6573_v34 = vmul.f32 0.5, %v9441_v58 }
 0x9c8   : > { %v6766_v2 = vpop.permute.xlu0 %6765  ;;  %9448 = vrcp.f32 %v6453_v51  ;;  %v9445_v30 = vpop.eup %9444 }
 0x9c9   : > { %v7930_v19 = vpack.c.bf16 %v15160_v40, %v7073_v49  ;;  %v6947_v44 = vmul.f32 %v6766_v2, %v17657_v45  ;;  %v17674_v45 = vld [vmem:[#allocation30_spill] sm:$0xff]  ;;  %9450 = vrcp.f32 %v6455_v10 }
 0x9cb   : > { %8022 = vst [vmem:[%s14936_s4 + $0x80] sm:$0xff] %v7930_v19   ;;  %v7075_v16 = vadd.f32 %v7011_v35, %v6947_v44  ;;  %v17673_v35 = vld [vmem:[#allocation236_spill] sm:$0xff] }
 0x9cc   : > { %v6776_v59 = vpop.permute.xlu0 %6775  ;;  %v7021_v19 = vmul.f32 %v6573_v34, %v17673_v35  ;;  %v9447_v25 = vpop.eup %9446  ;;  %v17692_v35 = vld [vmem:[#allocation258_spill] sm:$0xff] }
 0x9cd   : > { %v7935_v61 = vpack.c.bf16 %v17659_v27, %v7075_v16  ;;  %v6949_v42 = vmul.f32 %v6776_v59, %v17660_v31  ;;  %v17675_v16 = vld [vmem:[#allocation382_spill] sm:$0xff]  ;;  %v17677_v27 = vld [vmem:[#allocation95_spill] sm:$0xff] }
 0x9ce   : > { %v6457_v22 = vmax.f32 %v17675_v16, 1e-30  ;;  %v17678_v31 = vld [vmem:[#allocation282_spill] sm:$0xff]  ;;  %v17694_v16 = vld [vmem:[#allocation228_spill] sm:$0xff] }
 0x9cf   : > { %8023 = vst [vmem:[%s14936_s4 + $0x88] sm:$0xff] %v7935_v61   ;;  %v7077_v40 = vadd.f32 %v7013_v32, %v6949_v42 }
 0x9d0   : > { %v6786_v12 = vpop.permute.xlu0 %6785  ;;  %9452 = vrcp.f32 %v6457_v22 }
 0x9d1   : > { %v7940_v26 = vpack.c.bf16 %v17662_v9, %v7077_v40  ;;  %v6951_v11 = vmul.f32 %v6786_v12, %v17664_v38  ;;  %v17679_v40 = vld [vmem:[#allocation388_spill] sm:$0xff]  ;;  %v17680_v12 = vld [vmem:[#allocation266_spill] sm:$0xff] }
 0x9d2   : > { %v6459_v23 = vmax.f32 %v17679_v40, 1e-30  ;;  %v9449_v43 = vpop.eup %9448 }
 0x9d3   : > { %8024 = vst [vmem:[%s14936_s4 + $0x90] sm:$0xff] %v7940_v26   ;;  %v7079_v39 = vadd.f32 %v7015_v55, %v6951_v11  ;;  %v17681_v26 = vld [vmem:[#allocation145_spill] sm:$0xff]  ;;  %v17682_v55 = vld [vmem:[#allocation250_spill] sm:$0xff]  ;;  %v6579_v11 = vmul.f32 0.5, %v9447_v25  ;;  %v9451_v13 = vpop.eup %9450 }
 0x9d4   : > { %v6796_v54 = vpop.permute.xlu0 %6795  ;;  %9454 = vrcp.f32 %v6459_v23 }
 0x9d5   : > { %v7945_v0 = vpack.c.bf16 %v17666_v41, %v7079_v39  ;;  %v6953_v52 = vmul.f32 %v6796_v54, %v17668_v4  ;;  %v17683_v39 = vld [vmem:[#allocation396_spill] sm:$0xff]  ;;  %v17684_v54 = vld [vmem:[#allocation291_spill] sm:$0xff] }
 0x9d6   : > { %v6461_v21 = vmax.f32 %v17683_v39, 1e-30 }
 0x9d7   : > { %8025 = vst [vmem:[%s14936_s4 + $0x98] sm:$0xff] %v7945_v0   ;;  %v7081_v6 = vadd.f32 %v7017_v17, %v6953_v52  ;;  %v17685_v0 = vld [vmem:[#allocation131_spill] sm:$0xff]  ;;  %v6581_v52 = vmul.f32 0.5, %v9449_v43 }
 0x9d8   : > { %v6806_v14 = vpop.permute.xlu0 %6805  ;;  %v7027_v50 = vmul.f32 %v17685_v0, %v6579_v11  ;;  %v17686_v17 = vld [vmem:[#allocation27_spill] sm:$0xff]  ;;  %9456 = vrcp.f32 %v6461_v21  ;;  %v17703_v21 = vld [vmem:[#allocation229_spill] sm:$0xff] }
 0x9d9   : > { %v7950_v36 = vpack.c.bf16 %v15212_v47, %v7081_v6  ;;  %v6955_v33 = vmul.f32 %v6806_v14, %v17671_v28  ;;  %v6575_v47 = vmul.f32 0.5, %v9443_v60  ;;  %v17687_v6 = vld [vmem:[#allocation402_spill] sm:$0xff] }
 0x9da   : > { %v6463_v53 = vmax.f32 %v17687_v6, 1e-30  ;;  %v9453_v34 = vpop.eup %9452 }
 0x9db   : > { %8026 = vst [vmem:[%s14936_s4 + $0xa0] sm:$0xff] %v7950_v36   ;;  %v7083_v49 = vadd.f32 %v7019_v46, %v6955_v33  ;;  %v7023_v61 = vmul.f32 %v17677_v27, %v6575_v47  ;;  %v17688_v36 = vld [vmem:[#allocation169_spill] sm:$0xff]  ;;  %v17689_v46 = vld [vmem:[#allocation100_spill] sm:$0xff]  ;;  %v6583_v33 = vmul.f32 0.5, %v9451_v13 }
 0x9dc   : > { %v6816_v2 = vpop.permute.xlu0 %6815  ;;  %v7029_v7 = vmul.f32 %v6581_v52, %v17688_v36  ;;  %9458 = vrcp.f32 %v6463_v53 }
 0x9dd   : > { %v7955_v18 = vpack.c.bf16 %v15221_v48, %v7083_v49  ;;  %v6957_v44 = vmul.f32 %v6816_v2, %v17674_v45  ;;  %v6577_v48 = vmul.f32 0.5, %v9445_v30  ;;  %v17691_v2 = vld [vmem:[#allocation155_spill] sm:$0xff]  ;;  %v6585_v45 = vmul.f32 0.5, %v9453_v34  ;;  %v17693_v30 = vld [vmem:[#allocation181_spill] sm:$0xff] }
 0x9df   : > { %8027 = vst [vmem:[%s14936_s4 + $0xa8] sm:$0xff] %v7955_v18   ;;  %v7085_v8 = vadd.f32 %v7021_v19, %v6957_v44  ;;  %v7025_v1 = vmul.f32 %v6577_v48, %v17681_v26  ;;  %v7031_v18 = vmul.f32 %v17691_v2, %v6583_v33  ;;  %v9455_v44 = vpop.eup %9454  ;;  %v7033_v22 = vmul.f32 %v6585_v45, %v17694_v16  ;;  %v17698_v48 = vld [vmem:[#allocation212_spill] sm:$0xff] }
 0x9e0   : > { %v6826_v59 = vpop.permute.xlu0 %6825 }
 0x9e1   : > { %v7960_v32 = vpack.c.bf16 %v17676_v5, %v7085_v8  ;;  %v6959_v42 = vmul.f32 %v6826_v59, %v17678_v31  ;;  %v17696_v59 = vld [vmem:[#allocation387_spill] sm:$0xff] }
 0x9e2   : > { %v9457_v27 = vpop.eup %9456 }
 0x9e3   : > { %8028 = vst [vmem:[%s14936_s4 + $0xb0] sm:$0xff] %v7960_v32   ;;  %v7087_v15 = vadd.f32 %v7023_v61, %v6959_v42  ;;  %v6587_v32 = vmul.f32 0.5, %v9455_v44  ;;  %v6589_v23 = vmul.f32 0.5, %v9457_v27 }
 0x9e4   : > { %v6836_v63 = vpop.permute.xlu0 %6835 }
 0x9e5   : > { %v7965_v9 = vpack.c.bf16 %v17680_v12, %v7087_v15  ;;  %v6961_v38 = vmul.f32 %v6836_v63, %v17682_v55  ;;  %v7035_v25 = vmul.f32 %v17698_v48, %v6587_v32  ;;  %v17699_v15 = vld [vmem:[#allocation269_spill] sm:$0xff] }
 0x9e6   : > { %v9459_v63 = vpop.eup %9458 }
 0x9e7   : > { %8029 = vst [vmem:[%s14936_s4 + $0xb8] sm:$0xff] %v7965_v9   ;;  %v7089_v29 = vadd.f32 %v7025_v1, %v6961_v38  ;;  %v17700_v1 = vld [vmem:[#allocation272_spill] sm:$0xff]  ;;  %v17701_v38 = vld [vmem:[#allocation395_spill] sm:$0xff] }
 0x9e8   : > { %v6846_v3 = vpop.permute.xlu0 %6845  ;;  %v7037_v55 = vmul.f32 %v6589_v23, %v17700_v1 }
 0x9e9   : > { %v7970_v41 = vpack.c.bf16 %v17684_v54, %v7089_v29  ;;  %v6963_v4 = vmul.f32 %v6846_v3, %v17686_v17  ;;  %v17704_v54 = vld [vmem:[#allocation125_spill] sm:$0xff] }
 0x9eb   : > { %8030 = vst [vmem:[%s14936_s4 + $0xc0] sm:$0xff] %v7970_v41   ;;  %v7091_v58 = vadd.f32 %v7027_v50, %v6963_v4 }
 0x9ec   : > { %v6856_v51 = vpop.permute.xlu0 %6855 }
 0x9ed   : > { %v7975_v14 = vpack.c.bf16 %v15259_v56, %v7091_v58  ;;  %v6965_v28 = vmul.f32 %v6856_v51, %v17689_v46 }
 0x9ef   : > { %8031 = vst [vmem:[%s14936_s4 + $0xc8] sm:$0xff] %v7975_v14   ;;  %v7093_v60 = vadd.f32 %v7029_v7, %v6965_v28 }
 0x9f0   : > { %v6866_v49 = vpop.permute.xlu0 %6865 }
 0x9f1   : > { %v7980_v10 = vpack.c.bf16 %v17690_v57, %v7093_v60  ;;  %v6967_v19 = vmul.f32 %v6866_v49, %v17692_v35 }
 0x9f3   : > { %8032 = vst [vmem:[%s14936_s4 + $0xd0] sm:$0xff] %v7980_v10   ;;  %v7095_v56 = vadd.f32 %v7031_v18, %v6967_v19 }
 0x9f4   : > { %v6876_v47 = vpop.permute.xlu0 %6875 }
 0x9f5   : > { %v7985_v8 = vpack.c.bf16 %v17693_v30, %v7095_v56  ;;  %v6969_v5 = vmul.f32 %v6876_v47, %v17696_v59 }
 0x9f7   : > { %8033 = vst [vmem:[%s14936_s4 + $0xd8] sm:$0xff] %v7985_v8   ;;  %v7097_v61 = vadd.f32 %v7033_v22, %v6969_v5 }
 0x9f8   : > { %v6886_v31 = vpop.permute.xlu0 %6885 }
 0x9f9   : > { %v7990_v42 = vpack.c.bf16 %v15285_v24, %v7097_v61  ;;  %v6971_v40 = vmul.f32 %v6886_v31, %v17699_v15  ;;  %v6591_v24 = vmul.f32 0.5, %v9459_v63 }
 0x9fb   : > { %8034 = vst [vmem:[%s14936_s4 + $0xe0] sm:$0xff] %v7990_v42   ;;  %v7099_v12 = vadd.f32 %v7035_v25, %v6971_v40  ;;  %v7039_v3 = vmul.f32 %v17703_v21, %v6591_v24 }
 0x9fc   : > { %v6896_v9 = vpop.permute.xlu0 %6895 }
 0x9fd   : > { %v7995_v26 = vpack.c.bf16 %v15292_v62, %v7099_v12  ;;  %v6973_v11 = vmul.f32 %v6896_v9, %v17701_v38 }
 0x9ff   : > { %8035 = vst [vmem:[%s14936_s4 + $0xe8] sm:$0xff] %v7995_v26   ;;  %v7101_v43 = vadd.f32 %v7037_v55, %v6973_v11 }
 0xa00   : > { %v6906_v29 = vpop.permute.xlu0 %6905 }
 0xa01   : > { %v8000_v39 = vpack.c.bf16 %v15300_v37, %v7101_v43  ;;  %v6975_v41 = vmul.f32 %v6906_v29, %v17704_v54 }
 0xa03   : > { %8036 = vst [vmem:[%s14936_s4 + $0xf0] sm:$0xff] %v8000_v39   ;;  %v7103_v62 = vadd.f32 %v7039_v3, %v6975_v41 }
 0xa05   : > { %v8005_v0 = vpack.c.bf16 %v15308_v20, %v7103_v62 }
 0xa07   : > { %8037 = vst [vmem:[%s14936_s4 + $0xf8] sm:$0xff] %v8005_v0  }
 0xa08   : > { %9735 = shalt.err (!%p9732_p13)
}
 0xa09   : > { %s9736_s4 = scalar_lea.hbm %s15452_s8, 4096  ;;  %s9740_s13 = scalar_lea.hbm %s17706_s6, 16384 }
 0xa0a   : > { %p9737_p7 = scmp.ne.s32.totalorder %s15452_s8, %s9736_s4  ;;  %p9741_p2 = scmp.lt.u32.totalorder %s15452_s8, %s17706_s6 }
 0xa0b   : > { %p9742_p4 = scmp.lt.u32.totalorder %s9740_s13, %s9736_s4  ;;  %p9744_p5 = scmp.lt.u32.totalorder %s9736_s4, %s15452_s8 }
 0xa0c   : > { %p9738_p1 = pnand %p9737_p7, %p17707_p8 }
 0xa0d   : > { %p9743_p6 = por %p9742_p4, %p9741_p2 }
 0xa0e   : > { %p9739_p11 = pneg %p9738_p1 }
 0xa0f   : > { %p9745_p3 = por %p9744_p5, %p9743_p6 }
 0xa11   : > { %p9746_p9 = pnand %p9745_p3, %p9739_p11 }
 0xa13   : > { %9749 = shalt.err (!%p9746_p9)
}
 0xa14   : > { %s9868_s5 = smov 64   ;;  %s9869_s7 = smov 4  }
 0xa15   : > { %8613 = dma.vmem_to_hbm [thread:$0]  (%p17707_p8), %s15446_s22, 4096, %s15452_s8, %s7426_s12, %s9868_s5, %s9868_s5, %s9869_s7  }
 0xa16 PF: > { %s17708_s20 = sld [smem:[#allocation22_spill]]  ;;  %p8633_p10 = scmp.ge.s32.totalorder %s9852_s25, 2 }
 0xa17   : > { %s7458_s21 = sand.u32 1, %s9824_s18  }
 0xa18   : > { %s7459_s27 = scalar_lea.sflag [#allocation4], %s7458_s21 }
 0xa1c   : > { %p17709_p0 = scmp.ne.s32.totalorder %s17708_s20, 0 }
 0xa1e   : > { %p8629_p12 = pnand %p8633_p10, %p17709_p0 }
 0xa20   : > { %9807 = dma.done.wait (!%p8629_p12), %s7459_s27, 4096  }
 0xa21   : > { %9809 = vsyncadd (!%p8629_p12), %s7459_s27, 4294963200  ;;  %s26_s25 = sadd.s32 1, %s9852_s25   ;;  %s17710_s1 = sld [smem:[#allocation16_spill]] }
 0xa22   : > { %p23_p13 = scmp.ge.s32.totalorder %s26_s25, 6   ;;  %s17711_s20 = sld [smem:[#allocation23_spill]] }
 0xa23   : > { %s17712_s11 = sld [smem:[#allocation19_spill]]  ;;  %s17713_s8 = sld [smem:[#allocation20_spill]] }
 0xa24   : > { %s17714_s15 = smov %s9816_s16  ;;  %s17715_s16 = smov %s9820_s17 }
 0xa25   : > { %s17716_s17 = smov %s10149_s14  ;;  %s17717_s18 = smov %s9828_s19 }
 0xa26   : > { %s17719_s21 = smov %s9844_s23  ;;  %s17720_s22 = smov %s9848_s24 }
 0xa27   : > { %s17718_s19 = smov %s17710_s1  ;;  %25 = sbr.rel (!%p23_p13) target bundleno = 17 (0x11), region = 118 }
 0xa29   : > { %s17721_s23 = smov %s17712_s11  ;;  %s17722_s24 = smov %s17713_s8 }
 0xa2e   :  { %7464 = vsyncpa [#allocation3], 1 }
 0xa2f   :  { %7466 = vsyncpa [#allocation3 + $0x1], 1 }
 0xa30   :  { %7467 = vsyncpa [#allocation6], 1 }
 0xa31   :  { %7469 = vsyncpa [#allocation6 + $0x1], 1 }
 0xa32   :  { %7470 = vsyncpa [#allocation9], 1 }
 0xa33   :  { %7472 = vsyncpa [#allocation9 + $0x1], 1 }
 0xa34   :  { %7473 = vsyncpa [#allocation4], 1 }
 0xa35   :  { %7475 = vsyncpa [#allocation4 + $0x1], 1 }

</bundles_post_ra>
